<compile_context>
chip_gen: v7x
topology: tpu7x:2x2x1
jax: 0.10.0
libtpu: 0.0.40
codegen_flags: <defaults>
</compile_context>

<pallas_src>
import jax
import jax.numpy as jnp
from jax.experimental import pallas as pl
from jax.experimental.pallas import tpu as pltpu


def _pick_tile(n, pref):
    """`pref` if it evenly divides n, else the full extent (always a legal block)."""
    return pref if (n >= pref and n % pref == 0) else n


# ---------------------------------------------------------------------------
# Kernel 1: fused pairwise squared distance + running top-k (kNN)
# ---------------------------------------------------------------------------

def _knn_kernel(q_ref, db_ref, bestd_ref, besti_ref):
    # q_ref:  (1, tm, 3)  query points (points-major, tiny load)
    # db_ref: (1, 3, tn)  database points (channel-first, lane-dense)
    # bestd_ref / besti_ref: (1, tm, k)  running top-k, resident across the N2 axis
    j = pl.program_id(2)
    k = bestd_ref.shape[2]
    tm = q_ref.shape[1]
    tn = db_ref.shape[2]
    INF = jnp.float32(jnp.inf)

    q = q_ref[0].astype(jnp.float32)    # (tm, 3)
    db = db_ref[0].astype(jnp.float32)  # (3, tn)

    # Squared distances via VPU broadcasts (always >= 0, unlike |a|^2+|b|^2-2ab).
    d2 = jnp.zeros((tm, tn), jnp.float32)
    for c in range(3):
        diff = q[:, c:c + 1] - db[c:c + 1, :]
        d2 = d2 + diff * diff

    # Global column indices (tracked in f32: exact for idx < 2^24).
    col = (j * tn + jax.lax.broadcasted_iota(jnp.int32, (tm, tn), 1)).astype(jnp.float32)

    # Tile-local top-k over the lane-aligned (tm, tn) block.
    tile_d, tile_i = [], []
    dcur = d2
    for _ in range(k):
        m = jnp.min(dcur, axis=1, keepdims=True)                               # (tm, 1)
        sel = jnp.min(jnp.where(dcur == m, col, INF), axis=1, keepdims=True)   # min index among ties
        tile_d.append(m)
        tile_i.append(sel)
        dcur = jnp.where((dcur == m) & (col == sel), INF, dcur)
    tile_d = jnp.concatenate(tile_d, axis=1)                                   # (tm, k)
    tile_i = jnp.concatenate(tile_i, axis=1)                                   # (tm, k) f32 ids

    @pl.when(j == 0)
    def _init():
        bestd_ref[0] = tile_d
        besti_ref[0] = tile_i.astype(jnp.int32)

    @pl.when(j > 0)
    def _merge():
        cand_d = jnp.concatenate([tile_d, bestd_ref[0]], axis=1)               # (tm, 2k)
        cand_i = jnp.concatenate([tile_i, besti_ref[0].astype(jnp.float32)], axis=1)
        nd, ni = [], []
        dcur2 = cand_d
        for _ in range(k):
            m = jnp.min(dcur2, axis=1, keepdims=True)
            sel = jnp.min(jnp.where(dcur2 == m, cand_i, INF), axis=1, keepdims=True)
            nd.append(m)
            ni.append(sel)
            dcur2 = jnp.where((dcur2 == m) & (cand_i == sel), INF, dcur2)
        bestd_ref[0] = jnp.concatenate(nd, axis=1)
        besti_ref[0] = jnp.concatenate(ni, axis=1).astype(jnp.int32)


def knn(query_pm, db_cf, k, tm_pref=256, tn_pref=256):
    """query_pm: (B, Nq, 3); db_cf: (B, 3, Nd) -> (sqdist, idx), each (B, Nq, k)."""
    B, Nq, _ = query_pm.shape
    Nd = db_cf.shape[2]
    tm = _pick_tile(Nq, tm_pref)
    tn = _pick_tile(Nd, tn_pref)
    return pl.pallas_call(
        _knn_kernel,
        out_shape=(jax.ShapeDtypeStruct((B, Nq, k), jnp.float32),
                   jax.ShapeDtypeStruct((B, Nq, k), jnp.int32)),
        grid=(B, Nq // tm, Nd // tn),
        in_specs=[
            pl.BlockSpec((1, tm, 3), lambda b, i, j: (b, i, 0)),
            pl.BlockSpec((1, 3, tn), lambda b, i, j: (b, 0, j)),
        ],
        out_specs=(pl.BlockSpec((1, tm, k), lambda b, i, j: (b, i, 0)),
                   pl.BlockSpec((1, tm, k), lambda b, i, j: (b, i, 0))),
        compiler_params=pltpu.CompilerParams(
            dimension_semantics=("parallel", "parallel", "arbitrary")),
    )(query_pm, db_cf)


# ---------------------------------------------------------------------------
# Kernel 2: cost-volume shared MLP + max-pool over nsample (channel-first)
# ---------------------------------------------------------------------------

def _cost_kernel(qf_ref, qx_ref, gf_ref, gx_ref,
                 w1q_ref, w1g_ref, w1x_ref, b1_ref,
                 w2_ref, b2_ref, w3_ref, b3_ref, out_ref):
    # qf_ref: (1, C, tm) f32; qx_ref: (1, 3, tm) f32
    # gf_ref: (1, K, C, tm) bf16; gx_ref: (1, K, 3, tm) f32
    # weights are channel-first (transposed); out_ref: (1, C3, tm)
    K = gf_ref.shape[1]
    tm = qf_ref.shape[2]

    qf = qf_ref[0].astype(jnp.bfloat16)                       # (C, tm)
    qx = qx_ref[0].astype(jnp.float32)                        # (3, tm)
    w1x = w1x_ref[...]                                        # (C1, 3) f32

    # Per-point (k-invariant) part of layer 1: W1q @ qf + b1 - W1x @ qx
    # (the dxyz branch uses grouped_xyz - query_xyz; the query part is folded here).
    q_h = jnp.dot(w1q_ref[...], qf,
                  preferred_element_type=jnp.float32) + b1_ref[...]   # (C1, tm)
    for c in range(3):
        q_h = q_h - w1x[:, c:c + 1] * qx[c:c + 1, :]

    # Stack the K neighbours along the lane axis -> one wide matmul per layer.
    gf_all = jnp.concatenate([gf_ref[0, kk].astype(jnp.bfloat16) for kk in range(K)],
                             axis=1)                          # (C, K*tm) bf16
    gx_all = jnp.concatenate([gx_ref[0, kk].astype(jnp.float32) for kk in range(K)],
                             axis=1)                          # (3, K*tm) f32
    qh_all = jnp.concatenate([q_h] * K, axis=1)               # (C1, K*tm)

    h = jnp.dot(w1g_ref[...], gf_all,
                preferred_element_type=jnp.float32) + qh_all
    for c in range(3):                                        # 3-channel dxyz branch on the VPU
        h = h + w1x[:, c:c + 1] * gx_all[c:c + 1, :]
    h = jnp.maximum(h, 0.0)
    h = jnp.maximum(jnp.dot(w2_ref[...], h.astype(jnp.bfloat16),
                            preferred_element_type=jnp.float32) + b2_ref[...], 0.0)
    h = jnp.maximum(jnp.dot(w3_ref[...], h.astype(jnp.bfloat16),
                            preferred_element_type=jnp.float32) + b3_ref[...], 0.0)  # (C3, K*tm)

    # Running max-pool over the K static lane slabs.
    acc = h[:, 0:tm]
    for kk in range(1, K):
        acc = jnp.maximum(acc, h[:, kk * tm:(kk + 1) * tm])
    out_ref[0] = acc                                          # (C3, tm), lane-dense


def cost_volume(q_feat_cf, q_xyz_cf, g_feat_cf, g_xyz_cf, p, tm_pref=256):
    """q_feat_cf: (B2, C, N); q_xyz_cf: (B2, 3, N); g_feat_cf: (B2, K, C, N) bf16;
    g_xyz_cf: (B2, K, 3, N) -> (B2, C3, N) channel-first cost features."""
    B2, C, N = q_feat_cf.shape
    K = g_feat_cf.shape[1]
    C3 = p["w3_t"].shape[0]
    tm = _pick_tile(N, tm_pref)
    wspec = lambda w: pl.BlockSpec(w.shape, lambda b, i: (0, 0))
    return pl.pallas_call(
        _cost_kernel,
        out_shape=jax.ShapeDtypeStruct((B2, C3, N), jnp.float32),
        grid=(B2, N // tm),
        in_specs=[
            pl.BlockSpec((1, C, tm), lambda b, i: (b, 0, i)),
            pl.BlockSpec((1, 3, tm), lambda b, i: (b, 0, i)),
            pl.BlockSpec((1, K, C, tm), lambda b, i: (b, 0, 0, i)),
            pl.BlockSpec((1, K, 3, tm), lambda b, i: (b, 0, 0, i)),
            wspec(p["w1q_t"]), wspec(p["w1g_t"]), wspec(p["w1x_t"]), wspec(p["b1"]),
            wspec(p["w2_t"]), wspec(p["b2"]), wspec(p["w3_t"]), wspec(p["b3"]),
        ],
        out_specs=pl.BlockSpec((1, C3, tm), lambda b, i: (b, 0, i)),
        compiler_params=pltpu.CompilerParams(
            dimension_semantics=("parallel", "parallel")),
    )(q_feat_cf, q_xyz_cf, g_feat_cf, g_xyz_cf,
      p["w1q_t"], p["w1g_t"], p["w1x_t"], p["b1"],
      p["w2_t"], p["b2"], p["w3_t"], p["b3"])


# ---------------------------------------------------------------------------
# Kernel 3: flow regression head (channel-first, fused first-layer matmul)
# ---------------------------------------------------------------------------

def _flow_head_kernel(cost_ref, f1_ref, ff_ref, cf_ref,
                      w1_ref, w1c_ref, b1_ref,
                      w2_ref, b2_ref, wf_ref, bf_ref,
                      feats_out_ref, flow_out_ref):
    # Concatenate [cost ; feats1 ; flow_feats] along sublanes -> one contraction.
    x = jnp.concatenate([cost_ref[0].astype(jnp.bfloat16),
                         f1_ref[0].astype(jnp.bfloat16),
                         ff_ref[0].astype(jnp.bfloat16)], axis=0)   # (C3+C+Fd, tm)
    cf = cf_ref[0].astype(jnp.float32)                              # (3, tm)

    h = jnp.dot(w1_ref[...], x, preferred_element_type=jnp.float32)  # (H1, tm)
    w1c = w1c_ref[...]                                                # (H1, 3) f32 -- VPU branch
    for c in range(3):
        h = h + w1c[:, c:c + 1] * cf[c:c + 1, :]
    h = jnp.maximum(h + b1_ref[...], 0.0)
    h = jnp.maximum(jnp.dot(w2_ref[...], h.astype(jnp.bfloat16),
                            preferred_element_type=jnp.float32) + b2_ref[...], 0.0)  # (H2, tm)
    feats_out_ref[0] = h
    # Final 3-channel regressor kept in f32 (precision-sensitive), lane-dense output.
    delta = jnp.dot(wf_ref[...], h, preferred_element_type=jnp.float32) + bf_ref[...]  # (3, tm)
    flow_out_ref[0] = cf + delta


def flow_head(cost_cf, f1_cf, ffeat_cf, cflow_cf, p, tm_pref=256):
    B, C3, N = cost_cf.shape
    C = f1_cf.shape[1]
    Fd = ffeat_cf.shape[1]
    H2 = p["w2_t"].shape[0]
    tm = _pick_tile(N, tm_pref)
    wspec = lambda w: pl.BlockSpec(w.shape, lambda b, i: (0, 0))
    return pl.pallas_call(
        _flow_head_kernel,
        out_shape=(jax.ShapeDtypeStruct((B, H2, N), jnp.float32),
                   jax.ShapeDtypeStruct((B, 3, N), jnp.float32)),
        grid=(B, N // tm),
        in_specs=[
            pl.BlockSpec((1, C3, tm), lambda b, i: (b, 0, i)),
            pl.BlockSpec((1, C, tm), lambda b, i: (b, 0, i)),
            pl.BlockSpec((1, Fd, tm), lambda b, i: (b, 0, i)),
            pl.BlockSpec((1, 3, tm), lambda b, i: (b, 0, i)),
            wspec(p["w1_t"]), wspec(p["w1c_t"]), wspec(p["b1"]),
            wspec(p["w2_t"]), wspec(p["b2"]), wspec(p["wf_t"]), wspec(p["bf"]),
        ],
        out_specs=(pl.BlockSpec((1, H2, tm), lambda b, i: (b, 0, i)),
                   pl.BlockSpec((1, 3, tm), lambda b, i: (b, 0, i))),
        compiler_params=pltpu.CompilerParams(
            dimension_semantics=("parallel", "parallel")),
    )(cost_cf, f1_cf, ffeat_cf, cflow_cf,
      p["w1_t"], p["w1c_t"], p["b1"],
      p["w2_t"], p["b2"], p["wf_t"], p["bf"])


# ---------------------------------------------------------------------------
# JAX glue: neighbour gather, warping
# ---------------------------------------------------------------------------

def group_points_cf(points_cf, idx_t):
    """points_cf: (B, C, N); idx_t: (B, K, N) int32 -> (B, K, C, N)."""
    # TODO(synk): data-dependent row gather stays in XLA; not expressible with
    # BlockSpec index_maps (would need an in-kernel DMA gather).
    take_one = lambda pts, ind: jnp.take(pts, ind, axis=1)   # (C,N),(N,) -> (C,N)
    take_k = jax.vmap(take_one, in_axes=(None, 0))           # -> (K, C, N)
    return jax.vmap(take_k)(points_cf, idx_t)


def point_warping(pc1, pc2, c_flow, k):
    """PointWarping: inverse-distance interpolation of c_flow onto pc2.
    pc1, pc2, c_flow: (B, 3, N) channel-first. Returns warped pc2 (B, 3, N2)."""
    if c_flow is None:
        return pc2
    xyz1_to_2 = pc1 + c_flow                                        # (B,3,N1)
    query_pm = jnp.transpose(pc2, (0, 2, 1))                        # (B,N2,3) small
    d2, idx = knn(query_pm, xyz1_to_2, k)                           # (B,N2,k)
    dist = jnp.maximum(jnp.sqrt(d2), 1e-10)
    inv = 1.0 / dist
    weight = inv / jnp.sum(inv, axis=-1, keepdims=True)             # (B,N2,k)
    grouped_flow = jax.vmap(lambda f, i: jnp.take(f, i, axis=1))(c_flow, idx)  # (B,3,N2,k)
    flow2 = jnp.sum(weight[:, None, :, :] * grouped_flow, axis=-1)  # (B,3,N2)
    return pc2 - flow2


# ---------------------------------------------------------------------------
# Parameters (deterministic synthetic init) and module wrapper
# ---------------------------------------------------------------------------

def _dense(key, cin, cout):
    return jax.random.normal(key, (cin, cout), jnp.float32) * jnp.sqrt(2.0 / cin)


def init_params(key, feat_channel, mlp, flow_mlp, use_flow):
    assert len(mlp) == 3 and len(flow_mlp) == 2
    C = feat_channel
    C1, C2, C3 = mlp
    H1, H2 = flow_mlp
    Fd = flow_mlp[-1]
    keys = jax.random.split(key, 6)

    # cost-volume shared MLP: layer-1 rows are [grouped_feat | query_feat | dxyz]
    w1 = _dense(keys[0], 2 * C + 3, C1)
    w2 = _dense(keys[1], C1, C2)
    w3 = _dense(keys[2], C2, C3)
    cost = dict(
        w1g_t=w1[:C].T.astype(jnp.bfloat16),            # (C1, C)
        w1q_t=w1[C:2 * C].T.astype(jnp.bfloat16),       # (C1, C)
        w1x_t=w1[2 * C:].T,                             # (C1, 3) f32, VPU branch
        b1=jnp.zeros((C1, 1), jnp.float32),
        w2_t=w2.T.astype(jnp.bfloat16), b2=jnp.zeros((C2, 1), jnp.float32),
        w3_t=w3.T.astype(jnp.bfloat16), b3=jnp.zeros((C3, 1), jnp.float32))

    flow = None
    if use_flow:
        # flow head: layer-1 rows are [cost_fwd | feats1 | flow_feats | c_flow]
        cin_flow = C3 + C + Fd + 3
        fw1 = _dense(keys[3], cin_flow, H1)
        fw2 = _dense(keys[4], H1, H2)
        wf = _dense(keys[5], H2, 3)
        o3 = C3 + C + Fd
        flow = dict(
            w1_t=fw1[:o3].T.astype(jnp.bfloat16),        # (H1, C3+C+Fd)
            w1c_t=fw1[o3:].T,                            # (H1, 3) f32
            b1=jnp.zeros((H1, 1), jnp.float32),
            w2_t=fw2.T.astype(jnp.bfloat16), b2=jnp.zeros((H2, 1), jnp.float32),
            wf_t=wf.T,                                   # (3, H2) f32
            bf=jnp.zeros((3, 1), jnp.float32))
    return dict(cost=cost, flow=flow)


class RefineFlowRegressorPallas:
    """Pallas/JAX re-implementation of RefineFlowRegressor.forward."""

    def __init__(self, key, nsample=8, in_channel=32, feat_channel=32,
                 mlp=(32, 32, 32), flow_mlp=(32, 32), use_flow=True):
        del in_channel  # feats channel = feat_channel in this synthetic config
        self.use_flow = use_flow
        self.nsample = nsample
        self.feat_channel = feat_channel
        self.flow_dim = flow_mlp[-1]
        self.params = init_params(key, feat_channel, mlp, flow_mlp, use_flow)

    # --- PointConvTransFlowV2 (interpreted): bidirectional cost + flow head ---
    def _cost(self, pc1, pc2, pc2_warp, feats1, feats2, c_flow, flow_feats):
        B, _, N = pc1.shape
        assert pc2.shape == pc1.shape, "pc1/pc2 must share the same point count"
        xyz2_tgt = pc2_warp if pc2_warp is not None else pc2

        # Stack forward (pc1 -> warped pc2) and backward (pc2 -> pc1) directions
        # along the batch axis: one kNN call + one cost-volume call for both.
        q_xyz_cf = jnp.concatenate([pc1, pc2], axis=0)            # (2B,3,N)
        db_xyz_cf = jnp.concatenate([xyz2_tgt, pc1], axis=0)      # (2B,3,N)
        q_feat_cf = jnp.concatenate([feats1, feats2], axis=0)     # (2B,C,N)
        db_feat_cf = jnp.concatenate([feats2, feats1], axis=0)    # (2B,C,N)

        q_xyz_pm = jnp.transpose(q_xyz_cf, (0, 2, 1))             # (2B,N,3) (tiny)
        _, idx = knn(q_xyz_pm, db_xyz_cf, self.nsample)           # (2B,N,K)
        idx_t = jnp.transpose(idx, (0, 2, 1))                     # (2B,K,N)

        # Grouped features gathered directly in bf16 (halves the big HBM array);
        # the query-xyz subtraction is folded inside the cost kernel.
        g_feat = group_points_cf(db_feat_cf.astype(jnp.bfloat16), idx_t)   # (2B,K,C,N) bf16
        g_xyz = group_points_cf(db_xyz_cf, idx_t)                          # (2B,K,3,N) f32

        cost_st = cost_volume(q_feat_cf, q_xyz_cf, g_feat, g_xyz,
                              self.params["cost"])                         # (2B,C3,N)
        cost_fwd, cost_bwd = cost_st[:B], cost_st[B:]

        if not self.use_flow:
            return cost_fwd, cost_bwd, flow_feats, c_flow

        cflow_cf = c_flow if c_flow is not None else jnp.zeros((B, 3, N), jnp.float32)
        ffeat_cf = (flow_feats if flow_feats is not None
                    else jnp.zeros((B, self.flow_dim, N), jnp.float32))
        new_feats, new_flow = flow_head(cost_fwd, feats1, ffeat_cf, cflow_cf,
                                        self.params["flow"])
        return cost_fwd, cost_bwd, new_feats, new_flow

    def __call__(self, pc1, pc2, feats1, feats2, wraping_num=5,
                 c_flow=None, flow_feats=None):
        if c_flow is None:
            pc2_warp = None
        else:
            pc2_warp = point_warping(pc1, pc2, c_flow, wraping_num)
        if self.use_flow:
            return self._cost(pc1, pc2, pc2_warp, feats1, feats2, c_flow, flow_feats)
        return self._cost(pc1, pc2, pc2_warp, feats1, feats2, None, None)


# ---------------------------------------------------------------------------
# Demo
# ---------------------------------------------------------------------------

if __name__ == "__main__":
    key = jax.random.PRNGKey(0)
    kparam, k1, k2, k3, k4, k5 = jax.random.split(key, 6)

    B, N, C = 2, 128, 32          # small synthetic shapes
    pc1 = jax.random.normal(k1, (B, 3, N), jnp.float32)
    pc2 = jax.random.normal(k2, (B, 3, N), jnp.float32)
    feats1 = jax.random.normal(k3, (B, C, N), jnp.float32)
    feats2 = jax.random.normal(k4, (B, C, N), jnp.float32)
    c_flow = 0.1 * jax.random.normal(k5, (B, 3, N), jnp.float32)
    flow_feats = jnp.zeros((B, 32, N), jnp.float32)

    model = RefineFlowRegressorPallas(
        kparam, nsample=8, in_channel=C, feat_channel=C,
        mlp=(32, 32, 32), flow_mlp=(32, 32), use_flow=True)

    run = jax.jit(lambda a, b, c, d, e, f: model(a, b, c, d, 5, e, f))
    out = run(pc1, pc2, feats1, feats2, c_flow, flow_feats)
    jax.block_until_ready(out)

    cost_fwd, cost_bwd, flow_feats_out, c_flow_out = out
    assert cost_fwd.shape == (B, 32, N)
    assert cost_bwd.shape == (B, 32, N)
    assert flow_feats_out.shape == (B, 32, N)
    assert c_flow_out.shape == (B, 3, N)
    print("KERNEL_OK")
</pallas_src>

<mosaic_0001>
module attributes {stable_mosaic.version = 11 : i64} {
  func.func @_knn_kernel(%arg0: i32, %arg1: i32, %arg2: i32, %arg3: memref<1x128x3xf32, #tpu.memory_space<vmem>>, %arg4: memref<1x3x128xf32, #tpu.memory_space<vmem>>, %arg5: memref<1x128x5xf32, #tpu.memory_space<vmem>>, %arg6: memref<1x128x5xi32, #tpu.memory_space<vmem>>) attributes {dimension_semantics = [#tpu.dimension_semantics<parallel>, #tpu.dimension_semantics<parallel>, #tpu.dimension_semantics<arbitrary>], iteration_bounds = array<i64: 2, 1, 1>, scalar_prefetch = 0 : i64, scratch_operands = 0 : i64, tpu.core_type = #tpu.core_type<tc>, window_params = [{transform_indices = @transform_0, window_bounds = array<i64: 1, 128, 3>}, {transform_indices = @transform_1, window_bounds = array<i64: 1, 3, 128>}, {transform_indices = @transform_2, window_bounds = array<i64: 1, 128, 5>}, {transform_indices = @transform_3, window_bounds = array<i64: 1, 128, 5>}]} {
    %c0 = arith.constant 0 : index
    %c0_0 = arith.constant 0 : index
    %c0_1 = arith.constant 0 : index
    %0 = vector.load %arg3[%c0, %c0_0, %c0_1] : memref<1x128x3xf32, #tpu.memory_space<vmem>>, vector<1x128x3xf32>
    %1 = vector.shape_cast %0 : vector<1x128x3xf32> to vector<128x3xf32>
    %c0_2 = arith.constant 0 : index
    %c0_3 = arith.constant 0 : index
    %c0_4 = arith.constant 0 : index
    %2 = vector.load %arg4[%c0_2, %c0_3, %c0_4] : memref<1x3x128xf32, #tpu.memory_space<vmem>>, vector<1x3x128xf32>
    %3 = vector.shape_cast %2 : vector<1x3x128xf32> to vector<3x128xf32>
    %cst = arith.constant 0.000000e+00 : f32
    %4 = vector.broadcast %cst : f32 to vector<128x128xf32>
    %5 = vector.extract_strided_slice %1 {offsets = [0, 0], sizes = [128, 1], strides = [1, 1]} : vector<128x3xf32> to vector<128x1xf32>
    %6 = vector.extract_strided_slice %3 {offsets = [0, 0], sizes = [1, 128], strides = [1, 1]} : vector<3x128xf32> to vector<1x128xf32>
    %7 = vector.broadcast %5 : vector<128x1xf32> to vector<128x128xf32>
    %8 = vector.broadcast %6 : vector<1x128xf32> to vector<128x128xf32>
    %9 = arith.subf %7, %8 : vector<128x128xf32>
    %10 = arith.mulf %9, %9 : vector<128x128xf32>
    %11 = arith.addf %4, %10 : vector<128x128xf32>
    %12 = vector.extract_strided_slice %1 {offsets = [0, 1], sizes = [128, 1], strides = [1, 1]} : vector<128x3xf32> to vector<128x1xf32>
    %13 = vector.extract_strided_slice %3 {offsets = [1, 0], sizes = [1, 128], strides = [1, 1]} : vector<3x128xf32> to vector<1x128xf32>
    %14 = vector.broadcast %12 : vector<128x1xf32> to vector<128x128xf32>
    %15 = vector.broadcast %13 : vector<1x128xf32> to vector<128x128xf32>
    %16 = arith.subf %14, %15 : vector<128x128xf32>
    %17 = arith.mulf %16, %16 : vector<128x128xf32>
    %18 = arith.addf %11, %17 : vector<128x128xf32>
    %19 = vector.extract_strided_slice %1 {offsets = [0, 2], sizes = [128, 1], strides = [1, 1]} : vector<128x3xf32> to vector<128x1xf32>
    %20 = vector.extract_strided_slice %3 {offsets = [2, 0], sizes = [1, 128], strides = [1, 1]} : vector<3x128xf32> to vector<1x128xf32>
    %21 = vector.broadcast %19 : vector<128x1xf32> to vector<128x128xf32>
    %22 = vector.broadcast %20 : vector<1x128xf32> to vector<128x128xf32>
    %23 = arith.subf %21, %22 : vector<128x128xf32>
    %24 = arith.mulf %23, %23 : vector<128x128xf32>
    %25 = arith.addf %18, %24 : vector<128x128xf32>
    %c128_i32 = arith.constant 128 : i32
    %26 = arith.muli %arg2, %c128_i32 : i32
    %27 = tpu.iota {dimensions = array<i32: 1>} : vector<128x128xi32>
    %28 = vector.broadcast %26 : i32 to vector<128x128xi32>
    %29 = arith.addi %28, %27 : vector<128x128xi32>
    %30 = arith.sitofp %29 : vector<128x128xi32> to vector<128x128xf32>
    %cst_5 = arith.constant dense<0x7F800000> : vector<128xf32>
    %31 = vector.multi_reduction <minimumf>, %25, %cst_5 [1] : vector<128x128xf32> to vector<128xf32>
    %32 = vector.shape_cast %31 : vector<128xf32> to vector<128x1xf32>
    %33 = vector.broadcast %32 : vector<128x1xf32> to vector<128x128xf32>
    %34 = arith.cmpf oeq, %25, %33 : vector<128x128xf32>
    %cst_6 = arith.constant 0x7F800000 : f32
    %35 = vector.broadcast %cst_6 : f32 to vector<128x128xf32>
    %36 = arith.select %34, %30, %35 : vector<128x128xi1>, vector<128x128xf32>
    %cst_7 = arith.constant dense<0x7F800000> : vector<128xf32>
    %37 = vector.multi_reduction <minimumf>, %36, %cst_7 [1] : vector<128x128xf32> to vector<128xf32>
    %38 = vector.shape_cast %37 : vector<128xf32> to vector<128x1xf32>
    %39 = vector.broadcast %32 : vector<128x1xf32> to vector<128x128xf32>
    %40 = arith.cmpf oeq, %25, %39 : vector<128x128xf32>
    %41 = vector.broadcast %38 : vector<128x1xf32> to vector<128x128xf32>
    %42 = arith.cmpf oeq, %30, %41 : vector<128x128xf32>
    %43 = arith.andi %40, %42 : vector<128x128xi1>
    %cst_8 = arith.constant 0x7F800000 : f32
    %44 = vector.broadcast %cst_8 : f32 to vector<128x128xf32>
    %45 = arith.select %43, %44, %25 : vector<128x128xi1>, vector<128x128xf32>
    %cst_9 = arith.constant dense<0x7F800000> : vector<128xf32>
    %46 = vector.multi_reduction <minimumf>, %45, %cst_9 [1] : vector<128x128xf32> to vector<128xf32>
    %47 = vector.shape_cast %46 : vector<128xf32> to vector<128x1xf32>
    %48 = vector.broadcast %47 : vector<128x1xf32> to vector<128x128xf32>
    %49 = arith.cmpf oeq, %45, %48 : vector<128x128xf32>
    %cst_10 = arith.constant 0x7F800000 : f32
    %50 = vector.broadcast %cst_10 : f32 to vector<128x128xf32>
    %51 = arith.select %49, %30, %50 : vector<128x128xi1>, vector<128x128xf32>
    %cst_11 = arith.constant dense<0x7F800000> : vector<128xf32>
    %52 = vector.multi_reduction <minimumf>, %51, %cst_11 [1] : vector<128x128xf32> to vector<128xf32>
    %53 = vector.shape_cast %52 : vector<128xf32> to vector<128x1xf32>
    %54 = vector.broadcast %47 : vector<128x1xf32> to vector<128x128xf32>
    %55 = arith.cmpf oeq, %45, %54 : vector<128x128xf32>
    %56 = vector.broadcast %53 : vector<128x1xf32> to vector<128x128xf32>
    %57 = arith.cmpf oeq, %30, %56 : vector<128x128xf32>
    %58 = arith.andi %55, %57 : vector<128x128xi1>
    %cst_12 = arith.constant 0x7F800000 : f32
    %59 = vector.broadcast %cst_12 : f32 to vector<128x128xf32>
    %60 = arith.select %58, %59, %45 : vector<128x128xi1>, vector<128x128xf32>
    %cst_13 = arith.constant dense<0x7F800000> : vector<128xf32>
    %61 = vector.multi_reduction <minimumf>, %60, %cst_13 [1] : vector<128x128xf32> to vector<128xf32>
    %62 = vector.shape_cast %61 : vector<128xf32> to vector<128x1xf32>
    %63 = vector.broadcast %62 : vector<128x1xf32> to vector<128x128xf32>
    %64 = arith.cmpf oeq, %60, %63 : vector<128x128xf32>
    %cst_14 = arith.constant 0x7F800000 : f32
    %65 = vector.broadcast %cst_14 : f32 to vector<128x128xf32>
    %66 = arith.select %64, %30, %65 : vector<128x128xi1>, vector<128x128xf32>
    %cst_15 = arith.constant dense<0x7F800000> : vector<128xf32>
    %67 = vector.multi_reduction <minimumf>, %66, %cst_15 [1] : vector<128x128xf32> to vector<128xf32>
    %68 = vector.shape_cast %67 : vector<128xf32> to vector<128x1xf32>
    %69 = vector.broadcast %62 : vector<128x1xf32> to vector<128x128xf32>
    %70 = arith.cmpf oeq, %60, %69 : vector<128x128xf32>
    %71 = vector.broadcast %68 : vector<128x1xf32> to vector<128x128xf32>
    %72 = arith.cmpf oeq, %30, %71 : vector<128x128xf32>
    %73 = arith.andi %70, %72 : vector<128x128xi1>
    %cst_16 = arith.constant 0x7F800000 : f32
    %74 = vector.broadcast %cst_16 : f32 to vector<128x128xf32>
    %75 = arith.select %73, %74, %60 : vector<128x128xi1>, vector<128x128xf32>
    %cst_17 = arith.constant dense<0x7F800000> : vector<128xf32>
    %76 = vector.multi_reduction <minimumf>, %75, %cst_17 [1] : vector<128x128xf32> to vector<128xf32>
    %77 = vector.shape_cast %76 : vector<128xf32> to vector<128x1xf32>
    %78 = vector.broadcast %77 : vector<128x1xf32> to vector<128x128xf32>
    %79 = arith.cmpf oeq, %75, %78 : vector<128x128xf32>
    %cst_18 = arith.constant 0x7F800000 : f32
    %80 = vector.broadcast %cst_18 : f32 to vector<128x128xf32>
    %81 = arith.select %79, %30, %80 : vector<128x128xi1>, vector<128x128xf32>
    %cst_19 = arith.constant dense<0x7F800000> : vector<128xf32>
    %82 = vector.multi_reduction <minimumf>, %81, %cst_19 [1] : vector<128x128xf32> to vector<128xf32>
    %83 = vector.shape_cast %82 : vector<128xf32> to vector<128x1xf32>
    %84 = vector.broadcast %77 : vector<128x1xf32> to vector<128x128xf32>
    %85 = arith.cmpf oeq, %75, %84 : vector<128x128xf32>
    %86 = vector.broadcast %83 : vector<128x1xf32> to vector<128x128xf32>
    %87 = arith.cmpf oeq, %30, %86 : vector<128x128xf32>
    %88 = arith.andi %85, %87 : vector<128x128xi1>
    %cst_20 = arith.constant 0x7F800000 : f32
    %89 = vector.broadcast %cst_20 : f32 to vector<128x128xf32>
    %90 = arith.select %88, %89, %75 : vector<128x128xi1>, vector<128x128xf32>
    %cst_21 = arith.constant dense<0x7F800000> : vector<128xf32>
    %91 = vector.multi_reduction <minimumf>, %90, %cst_21 [1] : vector<128x128xf32> to vector<128xf32>
    %92 = vector.shape_cast %91 : vector<128xf32> to vector<128x1xf32>
    %93 = vector.broadcast %92 : vector<128x1xf32> to vector<128x128xf32>
    %94 = arith.cmpf oeq, %90, %93 : vector<128x128xf32>
    %cst_22 = arith.constant 0x7F800000 : f32
    %95 = vector.broadcast %cst_22 : f32 to vector<128x128xf32>
    %96 = arith.select %94, %30, %95 : vector<128x128xi1>, vector<128x128xf32>
    %cst_23 = arith.constant dense<0x7F800000> : vector<128xf32>
    %97 = vector.multi_reduction <minimumf>, %96, %cst_23 [1] : vector<128x128xf32> to vector<128xf32>
    %98 = vector.shape_cast %97 : vector<128xf32> to vector<128x1xf32>
    %99 = tpu.concatenate %32, %47, %62, %77, %92 in 1 : vector<128x1xf32>, vector<128x1xf32>, vector<128x1xf32>, vector<128x1xf32>, vector<128x1xf32> -> vector<128x5xf32>
    %100 = tpu.concatenate %38, %53, %68, %83, %98 in 1 : vector<128x1xf32>, vector<128x1xf32>, vector<128x1xf32>, vector<128x1xf32>, vector<128x1xf32> -> vector<128x5xf32>
    %c0_i32 = arith.constant 0 : i32
    %101 = arith.cmpi eq, %arg2, %c0_i32 : i32
    %102 = arith.extui %101 : i1 to i32
    %c0_i32_24 = arith.constant 0 : i32
    %103 = arith.cmpi ne, %102, %c0_i32_24 : i32
    scf.if %103 {
      %c0_28 = arith.constant 0 : index
      %c0_29 = arith.constant 0 : index
      %c0_30 = arith.constant 0 : index
      %107 = vector.load %arg5[%c0_28, %c0_29, %c0_30] : memref<1x128x5xf32, #tpu.memory_space<vmem>>, vector<1x128x5xf32>
      %108 = vector.shape_cast %107 : vector<1x128x5xf32> to vector<128x5xf32>
      %109 = vector.shape_cast %99 : vector<128x5xf32> to vector<1x128x5xf32>
      tpu.vector_store %arg5[%c0_28, %c0_29, %c0_30], %109 {strides = array<i32>} : memref<1x128x5xf32, #tpu.memory_space<vmem>>, vector<1x128x5xf32>,
      %110 = arith.fptosi %100 : vector<128x5xf32> to vector<128x5xi32>
      %c0_31 = arith.constant 0 : index
      %c0_32 = arith.constant 0 : index
      %c0_33 = arith.constant 0 : index
      %111 = vector.load %arg6[%c0_31, %c0_32, %c0_33] : memref<1x128x5xi32, #tpu.memory_space<vmem>>, vector<1x128x5xi32>
      %112 = vector.shape_cast %111 : vector<1x128x5xi32> to vector<128x5xi32>
      %113 = vector.shape_cast %110 : vector<128x5xi32> to vector<1x128x5xi32>
      tpu.vector_store %arg6[%c0_31, %c0_32, %c0_33], %113 {strides = array<i32>} : memref<1x128x5xi32, #tpu.memory_space<vmem>>, vector<1x128x5xi32>,
    } else {
    }
    %c0_i32_25 = arith.constant 0 : i32
    %104 = arith.cmpi sgt, %arg2, %c0_i32_25 : i32
    %105 = arith.extui %104 : i1 to i32
    %cst_26 = arith.constant 0x7F800000 : f32
    %c0_i32_27 = arith.constant 0 : i32
    %106 = arith.cmpi ne, %105, %c0_i32_27 : i32
    scf.if %106 {
      %c0_28 = arith.constant 0 : index
      %c0_29 = arith.constant 0 : index
      %c0_30 = arith.constant 0 : index
      %107 = vector.load %arg5[%c0_28, %c0_29, %c0_30] : memref<1x128x5xf32, #tpu.memory_space<vmem>>, vector<1x128x5xf32>
      %108 = vector.shape_cast %107 : vector<1x128x5xf32> to vector<128x5xf32>
      %109 = tpu.concatenate %99, %108 in 1 : vector<128x5xf32>, vector<128x5xf32> -> vector<128x10xf32>
      %c0_31 = arith.constant 0 : index
      %c0_32 = arith.constant 0 : index
      %c0_33 = arith.constant 0 : index
      %110 = vector.load %arg6[%c0_31, %c0_32, %c0_33] : memref<1x128x5xi32, #tpu.memory_space<vmem>>, vector<1x128x5xi32>
      %111 = vector.shape_cast %110 : vector<1x128x5xi32> to vector<128x5xi32>
      %112 = arith.sitofp %111 : vector<128x5xi32> to vector<128x5xf32>
      %113 = tpu.concatenate %100, %112 in 1 : vector<128x5xf32>, vector<128x5xf32> -> vector<128x10xf32>
      %cst_34 = arith.constant dense<0x7F800000> : vector<128xf32>
      %114 = vector.multi_reduction <minimumf>, %109, %cst_34 [1] : vector<128x10xf32> to vector<128xf32>
      %115 = vector.shape_cast %114 : vector<128xf32> to vector<128x1xf32>
      %116 = vector.broadcast %115 : vector<128x1xf32> to vector<128x10xf32>
      %117 = arith.cmpf oeq, %109, %116 : vector<128x10xf32>
      %118 = vector.broadcast %cst_26 : f32 to vector<128x10xf32>
      %119 = arith.select %117, %113, %118 : vector<128x10xi1>, vector<128x10xf32>
      %cst_35 = arith.constant dense<0x7F800000> : vector<128xf32>
      %120 = vector.multi_reduction <minimumf>, %119, %cst_35 [1] : vector<128x10xf32> to vector<128xf32>
      %121 = vector.shape_cast %120 : vector<128xf32> to vector<128x1xf32>
      %122 = vector.broadcast %115 : vector<128x1xf32> to vector<128x10xf32>
      %123 = arith.cmpf oeq, %109, %122 : vector<128x10xf32>
      %124 = vector.broadcast %121 : vector<128x1xf32> to vector<128x10xf32>
      %125 = arith.cmpf oeq, %113, %124 : vector<128x10xf32>
      %126 = arith.andi %123, %125 : vector<128x10xi1>
      %127 = vector.broadcast %cst_26 : f32 to vector<128x10xf32>
      %128 = arith.select %126, %127, %109 : vector<128x10xi1>, vector<128x10xf32>
      %cst_36 = arith.constant dense<0x7F800000> : vector<128xf32>
      %129 = vector.multi_reduction <minimumf>, %128, %cst_36 [1] : vector<128x10xf32> to vector<128xf32>
      %130 = vector.shape_cast %129 : vector<128xf32> to vector<128x1xf32>
      %131 = vector.broadcast %130 : vector<128x1xf32> to vector<128x10xf32>
      %132 = arith.cmpf oeq, %128, %131 : vector<128x10xf32>
      %133 = vector.broadcast %cst_26 : f32 to vector<128x10xf32>
      %134 = arith.select %132, %113, %133 : vector<128x10xi1>, vector<128x10xf32>
      %cst_37 = arith.constant dense<0x7F800000> : vector<128xf32>
      %135 = vector.multi_reduction <minimumf>, %134, %cst_37 [1] : vector<128x10xf32> to vector<128xf32>
      %136 = vector.shape_cast %135 : vector<128xf32> to vector<128x1xf32>
      %137 = vector.broadcast %130 : vector<128x1xf32> to vector<128x10xf32>
      %138 = arith.cmpf oeq, %128, %137 : vector<128x10xf32>
      %139 = vector.broadcast %136 : vector<128x1xf32> to vector<128x10xf32>
      %140 = arith.cmpf oeq, %113, %139 : vector<128x10xf32>
      %141 = arith.andi %138, %140 : vector<128x10xi1>
      %142 = vector.broadcast %cst_26 : f32 to vector<128x10xf32>
      %143 = arith.select %141, %142, %128 : vector<128x10xi1>, vector<128x10xf32>
      %cst_38 = arith.constant dense<0x7F800000> : vector<128xf32>
      %144 = vector.multi_reduction <minimumf>, %143, %cst_38 [1] : vector<128x10xf32> to vector<128xf32>
      %145 = vector.shape_cast %144 : vector<128xf32> to vector<128x1xf32>
      %146 = vector.broadcast %145 : vector<128x1xf32> to vector<128x10xf32>
      %147 = arith.cmpf oeq, %143, %146 : vector<128x10xf32>
      %148 = vector.broadcast %cst_26 : f32 to vector<128x10xf32>
      %149 = arith.select %147, %113, %148 : vector<128x10xi1>, vector<128x10xf32>
      %cst_39 = arith.constant dense<0x7F800000> : vector<128xf32>
      %150 = vector.multi_reduction <minimumf>, %149, %cst_39 [1] : vector<128x10xf32> to vector<128xf32>
      %151 = vector.shape_cast %150 : vector<128xf32> to vector<128x1xf32>
      %152 = vector.broadcast %145 : vector<128x1xf32> to vector<128x10xf32>
      %153 = arith.cmpf oeq, %143, %152 : vector<128x10xf32>
      %154 = vector.broadcast %151 : vector<128x1xf32> to vector<128x10xf32>
      %155 = arith.cmpf oeq, %113, %154 : vector<128x10xf32>
      %156 = arith.andi %153, %155 : vector<128x10xi1>
      %157 = vector.broadcast %cst_26 : f32 to vector<128x10xf32>
      %158 = arith.select %156, %157, %143 : vector<128x10xi1>, vector<128x10xf32>
      %cst_40 = arith.constant dense<0x7F800000> : vector<128xf32>
      %159 = vector.multi_reduction <minimumf>, %158, %cst_40 [1] : vector<128x10xf32> to vector<128xf32>
      %160 = vector.shape_cast %159 : vector<128xf32> to vector<128x1xf32>
      %161 = vector.broadcast %160 : vector<128x1xf32> to vector<128x10xf32>
      %162 = arith.cmpf oeq, %158, %161 : vector<128x10xf32>
      %163 = vector.broadcast %cst_26 : f32 to vector<128x10xf32>
      %164 = arith.select %162, %113, %163 : vector<128x10xi1>, vector<128x10xf32>
      %cst_41 = arith.constant dense<0x7F800000> : vector<128xf32>
      %165 = vector.multi_reduction <minimumf>, %164, %cst_41 [1] : vector<128x10xf32> to vector<128xf32>
      %166 = vector.shape_cast %165 : vector<128xf32> to vector<128x1xf32>
      %167 = vector.broadcast %160 : vector<128x1xf32> to vector<128x10xf32>
      %168 = arith.cmpf oeq, %158, %167 : vector<128x10xf32>
      %169 = vector.broadcast %166 : vector<128x1xf32> to vector<128x10xf32>
      %170 = arith.cmpf oeq, %113, %169 : vector<128x10xf32>
      %171 = arith.andi %168, %170 : vector<128x10xi1>
      %172 = vector.broadcast %cst_26 : f32 to vector<128x10xf32>
      %173 = arith.select %171, %172, %158 : vector<128x10xi1>, vector<128x10xf32>
      %cst_42 = arith.constant dense<0x7F800000> : vector<128xf32>
      %174 = vector.multi_reduction <minimumf>, %173, %cst_42 [1] : vector<128x10xf32> to vector<128xf32>
      %175 = vector.shape_cast %174 : vector<128xf32> to vector<128x1xf32>
      %176 = vector.broadcast %175 : vector<128x1xf32> to vector<128x10xf32>
      %177 = arith.cmpf oeq, %173, %176 : vector<128x10xf32>
      %178 = vector.broadcast %cst_26 : f32 to vector<128x10xf32>
      %179 = arith.select %177, %113, %178 : vector<128x10xi1>, vector<128x10xf32>
      %cst_43 = arith.constant dense<0x7F800000> : vector<128xf32>
      %180 = vector.multi_reduction <minimumf>, %179, %cst_43 [1] : vector<128x10xf32> to vector<128xf32>
      %181 = vector.shape_cast %180 : vector<128xf32> to vector<128x1xf32>
      %182 = tpu.concatenate %115, %130, %145, %160, %175 in 1 : vector<128x1xf32>, vector<128x1xf32>, vector<128x1xf32>, vector<128x1xf32>, vector<128x1xf32> -> vector<128x5xf32>
      %c0_44 = arith.constant 0 : index
      %c0_45 = arith.constant 0 : index
      %c0_46 = arith.constant 0 : index
      %183 = vector.load %arg5[%c0_44, %c0_45, %c0_46] : memref<1x128x5xf32, #tpu.memory_space<vmem>>, vector<1x128x5xf32>
      %184 = vector.shape_cast %183 : vector<1x128x5xf32> to vector<128x5xf32>
      %185 = vector.shape_cast %182 : vector<128x5xf32> to vector<1x128x5xf32>
      tpu.vector_store %arg5[%c0_44, %c0_45, %c0_46], %185 {strides = array<i32>} : memref<1x128x5xf32, #tpu.memory_space<vmem>>, vector<1x128x5xf32>,
      %186 = tpu.concatenate %121, %136, %151, %166, %181 in 1 : vector<128x1xf32>, vector<128x1xf32>, vector<128x1xf32>, vector<128x1xf32>, vector<128x1xf32> -> vector<128x5xf32>
      %187 = arith.fptosi %186 : vector<128x5xf32> to vector<128x5xi32>
      %c0_47 = arith.constant 0 : index
      %c0_48 = arith.constant 0 : index
      %c0_49 = arith.constant 0 : index
      %188 = vector.load %arg6[%c0_47, %c0_48, %c0_49] : memref<1x128x5xi32, #tpu.memory_space<vmem>>, vector<1x128x5xi32>
      %189 = vector.shape_cast %188 : vector<1x128x5xi32> to vector<128x5xi32>
      %190 = vector.shape_cast %187 : vector<128x5xi32> to vector<1x128x5xi32>
      tpu.vector_store %arg6[%c0_47, %c0_48, %c0_49], %190 {strides = array<i32>} : memref<1x128x5xi32, #tpu.memory_space<vmem>>, vector<1x128x5xi32>,
    } else {
    }
    return
  }
  func.func @transform_0(%arg0: i32, %arg1: i32, %arg2: i32) -> (i32, i32, i32) {
    %c0_i32 = arith.constant 0 : i32
    %c0_i32_0 = arith.constant 0 : i32
    return %arg0, %arg1, %c0_i32 : i32, i32, i32
  }
  func.func @transform_1(%arg0: i32, %arg1: i32, %arg2: i32) -> (i32, i32, i32) {
    %c0_i32 = arith.constant 0 : i32
    %c0_i32_0 = arith.constant 0 : i32
    return %arg0, %c0_i32, %arg2 : i32, i32, i32
  }
  func.func @transform_2(%arg0: i32, %arg1: i32, %arg2: i32) -> (i32, i32, i32) {
    %c0_i32 = arith.constant 0 : i32
    %c0_i32_0 = arith.constant 0 : i32
    return %arg0, %arg1, %c0_i32 : i32, i32, i32
  }
  func.func @transform_3(%arg0: i32, %arg1: i32, %arg2: i32) -> (i32, i32, i32) {
    %c0_i32 = arith.constant 0 : i32
    %c0_i32_0 = arith.constant 0 : i32
    return %arg0, %arg1, %c0_i32 : i32, i32, i32
  }
}

module attributes {stable_mosaic.version = 11 : i64} {
  func.func @_knn_kernel(%arg0: i32, %arg1: i32, %arg2: i32, %arg3: memref<1x128x3xf32, #tpu.memory_space<vmem>>, %arg4: memref<1x3x128xf32, #tpu.memory_space<vmem>>, %arg5: memref<1x128x8xf32, #tpu.memory_space<vmem>>, %arg6: memref<1x128x8xi32, #tpu.memory_space<vmem>>) attributes {dimension_semantics = [#tpu.dimension_semantics<parallel>, #tpu.dimension_semantics<parallel>, #tpu.dimension_semantics<arbitrary>], iteration_bounds = array<i64: 4, 1, 1>, scalar_prefetch = 0 : i64, scratch_operands = 0 : i64, tpu.core_type = #tpu.core_type<tc>, window_params = [{transform_indices = @transform_0, window_bounds = array<i64: 1, 128, 3>}, {transform_indices = @transform_1, window_bounds = array<i64: 1, 3, 128>}, {transform_indices = @transform_2, window_bounds = array<i64: 1, 128, 8>}, {transform_indices = @transform_3, window_bounds = array<i64: 1, 128, 8>}]} {
    %c0 = arith.constant 0 : index
    %c0_0 = arith.constant 0 : index
    %c0_1 = arith.constant 0 : index
    %0 = vector.load %arg3[%c0, %c0_0, %c0_1] : memref<1x128x3xf32, #tpu.memory_space<vmem>>, vector<1x128x3xf32>
    %1 = vector.shape_cast %0 : vector<1x128x3xf32> to vector<128x3xf32>
    %c0_2 = arith.constant 0 : index
    %c0_3 = arith.constant 0 : index
    %c0_4 = arith.constant 0 : index
    %2 = vector.load %arg4[%c0_2, %c0_3, %c0_4] : memref<1x3x128xf32, #tpu.memory_space<vmem>>, vector<1x3x128xf32>
    %3 = vector.shape_cast %2 : vector<1x3x128xf32> to vector<3x128xf32>
    %cst = arith.constant 0.000000e+00 : f32
    %4 = vector.broadcast %cst : f32 to vector<128x128xf32>
    %5 = vector.extract_strided_slice %1 {offsets = [0, 0], sizes = [128, 1], strides = [1, 1]} : vector<128x3xf32> to vector<128x1xf32>
    %6 = vector.extract_strided_slice %3 {offsets = [0, 0], sizes = [1, 128], strides = [1, 1]} : vector<3x128xf32> to vector<1x128xf32>
    %7 = vector.broadcast %5 : vector<128x1xf32> to vector<128x128xf32>
    %8 = vector.broadcast %6 : vector<1x128xf32> to vector<128x128xf32>
    %9 = arith.subf %7, %8 : vector<128x128xf32>
    %10 = arith.mulf %9, %9 : vector<128x128xf32>
    %11 = arith.addf %4, %10 : vector<128x128xf32>
    %12 = vector.extract_strided_slice %1 {offsets = [0, 1], sizes = [128, 1], strides = [1, 1]} : vector<128x3xf32> to vector<128x1xf32>
    %13 = vector.extract_strided_slice %3 {offsets = [1, 0], sizes = [1, 128], strides = [1, 1]} : vector<3x128xf32> to vector<1x128xf32>
    %14 = vector.broadcast %12 : vector<128x1xf32> to vector<128x128xf32>
    %15 = vector.broadcast %13 : vector<1x128xf32> to vector<128x128xf32>
    %16 = arith.subf %14, %15 : vector<128x128xf32>
    %17 = arith.mulf %16, %16 : vector<128x128xf32>
    %18 = arith.addf %11, %17 : vector<128x128xf32>
    %19 = vector.extract_strided_slice %1 {offsets = [0, 2], sizes = [128, 1], strides = [1, 1]} : vector<128x3xf32> to vector<128x1xf32>
    %20 = vector.extract_strided_slice %3 {offsets = [2, 0], sizes = [1, 128], strides = [1, 1]} : vector<3x128xf32> to vector<1x128xf32>
    %21 = vector.broadcast %19 : vector<128x1xf32> to vector<128x128xf32>
    %22 = vector.broadcast %20 : vector<1x128xf32> to vector<128x128xf32>
    %23 = arith.subf %21, %22 : vector<128x128xf32>
    %24 = arith.mulf %23, %23 : vector<128x128xf32>
    %25 = arith.addf %18, %24 : vector<128x128xf32>
    %c128_i32 = arith.constant 128 : i32
    %26 = arith.muli %arg2, %c128_i32 : i32
    %27 = tpu.iota {dimensions = array<i32: 1>} : vector<128x128xi32>
    %28 = vector.broadcast %26 : i32 to vector<128x128xi32>
    %29 = arith.addi %28, %27 : vector<128x128xi32>
    %30 = arith.sitofp %29 : vector<128x128xi32> to vector<128x128xf32>
    %cst_5 = arith.constant dense<0x7F800000> : vector<128xf32>
    %31 = vector.multi_reduction <minimumf>, %25, %cst_5 [1] : vector<128x128xf32> to vector<128xf32>
    %32 = vector.shape_cast %31 : vector<128xf32> to vector<128x1xf32>
    %33 = vector.broadcast %32 : vector<128x1xf32> to vector<128x128xf32>
    %34 = arith.cmpf oeq, %25, %33 : vector<128x128xf32>
    %cst_6 = arith.constant 0x7F800000 : f32
    %35 = vector.broadcast %cst_6 : f32 to vector<128x128xf32>
    %36 = arith.select %34, %30, %35 : vector<128x128xi1>, vector<128x128xf32>
    %cst_7 = arith.constant dense<0x7F800000> : vector<128xf32>
    %37 = vector.multi_reduction <minimumf>, %36, %cst_7 [1] : vector<128x128xf32> to vector<128xf32>
    %38 = vector.shape_cast %37 : vector<128xf32> to vector<128x1xf32>
    %39 = vector.broadcast %32 : vector<128x1xf32> to vector<128x128xf32>
    %40 = arith.cmpf oeq, %25, %39 : vector<128x128xf32>
    %41 = vector.broadcast %38 : vector<128x1xf32> to vector<128x128xf32>
    %42 = arith.cmpf oeq, %30, %41 : vector<128x128xf32>
    %43 = arith.andi %40, %42 : vector<128x128xi1>
    %cst_8 = arith.constant 0x7F800000 : f32
    %44 = vector.broadcast %cst_8 : f32 to vector<128x128xf32>
    %45 = arith.select %43, %44, %25 : vector<128x128xi1>, vector<128x128xf32>
    %cst_9 = arith.constant dense<0x7F800000> : vector<128xf32>
    %46 = vector.multi_reduction <minimumf>, %45, %cst_9 [1] : vector<128x128xf32> to vector<128xf32>
    %47 = vector.shape_cast %46 : vector<128xf32> to vector<128x1xf32>
    %48 = vector.broadcast %47 : vector<128x1xf32> to vector<128x128xf32>
    %49 = arith.cmpf oeq, %45, %48 : vector<128x128xf32>
    %cst_10 = arith.constant 0x7F800000 : f32
    %50 = vector.broadcast %cst_10 : f32 to vector<128x128xf32>
    %51 = arith.select %49, %30, %50 : vector<128x128xi1>, vector<128x128xf32>
    %cst_11 = arith.constant dense<0x7F800000> : vector<128xf32>
    %52 = vector.multi_reduction <minimumf>, %51, %cst_11 [1] : vector<128x128xf32> to vector<128xf32>
    %53 = vector.shape_cast %52 : vector<128xf32> to vector<128x1xf32>
    %54 = vector.broadcast %47 : vector<128x1xf32> to vector<128x128xf32>
    %55 = arith.cmpf oeq, %45, %54 : vector<128x128xf32>
    %56 = vector.broadcast %53 : vector<128x1xf32> to vector<128x128xf32>
    %57 = arith.cmpf oeq, %30, %56 : vector<128x128xf32>
    %58 = arith.andi %55, %57 : vector<128x128xi1>
    %cst_12 = arith.constant 0x7F800000 : f32
    %59 = vector.broadcast %cst_12 : f32 to vector<128x128xf32>
    %60 = arith.select %58, %59, %45 : vector<128x128xi1>, vector<128x128xf32>
    %cst_13 = arith.constant dense<0x7F800000> : vector<128xf32>
    %61 = vector.multi_reduction <minimumf>, %60, %cst_13 [1] : vector<128x128xf32> to vector<128xf32>
    %62 = vector.shape_cast %61 : vector<128xf32> to vector<128x1xf32>
    %63 = vector.broadcast %62 : vector<128x1xf32> to vector<128x128xf32>
    %64 = arith.cmpf oeq, %60, %63 : vector<128x128xf32>
    %cst_14 = arith.constant 0x7F800000 : f32
    %65 = vector.broadcast %cst_14 : f32 to vector<128x128xf32>
    %66 = arith.select %64, %30, %65 : vector<128x128xi1>, vector<128x128xf32>
    %cst_15 = arith.constant dense<0x7F800000> : vector<128xf32>
    %67 = vector.multi_reduction <minimumf>, %66, %cst_15 [1] : vector<128x128xf32> to vector<128xf32>
    %68 = vector.shape_cast %67 : vector<128xf32> to vector<128x1xf32>
    %69 = vector.broadcast %62 : vector<128x1xf32> to vector<128x128xf32>
    %70 = arith.cmpf oeq, %60, %69 : vector<128x128xf32>
    %71 = vector.broadcast %68 : vector<128x1xf32> to vector<128x128xf32>
    %72 = arith.cmpf oeq, %30, %71 : vector<128x128xf32>
    %73 = arith.andi %70, %72 : vector<128x128xi1>
    %cst_16 = arith.constant 0x7F800000 : f32
    %74 = vector.broadcast %cst_16 : f32 to vector<128x128xf32>
    %75 = arith.select %73, %74, %60 : vector<128x128xi1>, vector<128x128xf32>
    %cst_17 = arith.constant dense<0x7F800000> : vector<128xf32>
    %76 = vector.multi_reduction <minimumf>, %75, %cst_17 [1] : vector<128x128xf32> to vector<128xf32>
    %77 = vector.shape_cast %76 : vector<128xf32> to vector<128x1xf32>
    %78 = vector.broadcast %77 : vector<128x1xf32> to vector<128x128xf32>
    %79 = arith.cmpf oeq, %75, %78 : vector<128x128xf32>
    %cst_18 = arith.constant 0x7F800000 : f32
    %80 = vector.broadcast %cst_18 : f32 to vector<128x128xf32>
    %81 = arith.select %79, %30, %80 : vector<128x128xi1>, vector<128x128xf32>
    %cst_19 = arith.constant dense<0x7F800000> : vector<128xf32>
    %82 = vector.multi_reduction <minimumf>, %81, %cst_19 [1] : vector<128x128xf32> to vector<128xf32>
    %83 = vector.shape_cast %82 : vector<128xf32> to vector<128x1xf32>
    %84 = vector.broadcast %77 : vector<128x1xf32> to vector<128x128xf32>
    %85 = arith.cmpf oeq, %75, %84 : vector<128x128xf32>
    %86 = vector.broadcast %83 : vector<128x1xf32> to vector<128x128xf32>
    %87 = arith.cmpf oeq, %30, %86 : vector<128x128xf32>
    %88 = arith.andi %85, %87 : vector<128x128xi1>
    %cst_20 = arith.constant 0x7F800000 : f32
    %89 = vector.broadcast %cst_20 : f32 to vector<128x128xf32>
    %90 = arith.select %88, %89, %75 : vector<128x128xi1>, vector<128x128xf32>
    %cst_21 = arith.constant dense<0x7F800000> : vector<128xf32>
    %91 = vector.multi_reduction <minimumf>, %90, %cst_21 [1] : vector<128x128xf32> to vector<128xf32>
    %92 = vector.shape_cast %91 : vector<128xf32> to vector<128x1xf32>
    %93 = vector.broadcast %92 : vector<128x1xf32> to vector<128x128xf32>
    %94 = arith.cmpf oeq, %90, %93 : vector<128x128xf32>
    %cst_22 = arith.constant 0x7F800000 : f32
    %95 = vector.broadcast %cst_22 : f32 to vector<128x128xf32>
    %96 = arith.select %94, %30, %95 : vector<128x128xi1>, vector<128x128xf32>
    %cst_23 = arith.constant dense<0x7F800000> : vector<128xf32>
    %97 = vector.multi_reduction <minimumf>, %96, %cst_23 [1] : vector<128x128xf32> to vector<128xf32>
    %98 = vector.shape_cast %97 : vector<128xf32> to vector<128x1xf32>
    %99 = vector.broadcast %92 : vector<128x1xf32> to vector<128x128xf32>
    %100 = arith.cmpf oeq, %90, %99 : vector<128x128xf32>
    %101 = vector.broadcast %98 : vector<128x1xf32> to vector<128x128xf32>
    %102 = arith.cmpf oeq, %30, %101 : vector<128x128xf32>
    %103 = arith.andi %100, %102 : vector<128x128xi1>
    %cst_24 = arith.constant 0x7F800000 : f32
    %104 = vector.broadcast %cst_24 : f32 to vector<128x128xf32>
    %105 = arith.select %103, %104, %90 : vector<128x128xi1>, vector<128x128xf32>
    %cst_25 = arith.constant dense<0x7F800000> : vector<128xf32>
    %106 = vector.multi_reduction <minimumf>, %105, %cst_25 [1] : vector<128x128xf32> to vector<128xf32>
    %107 = vector.shape_cast %106 : vector<128xf32> to vector<128x1xf32>
    %108 = vector.broadcast %107 : vector<128x1xf32> to vector<128x128xf32>
    %109 = arith.cmpf oeq, %105, %108 : vector<128x128xf32>
    %cst_26 = arith.constant 0x7F800000 : f32
    %110 = vector.broadcast %cst_26 : f32 to vector<128x128xf32>
    %111 = arith.select %109, %30, %110 : vector<128x128xi1>, vector<128x128xf32>
    %cst_27 = arith.constant dense<0x7F800000> : vector<128xf32>
    %112 = vector.multi_reduction <minimumf>, %111, %cst_27 [1] : vector<128x128xf32> to vector<128xf32>
    %113 = vector.shape_cast %112 : vector<128xf32> to vector<128x1xf32>
    %114 = vector.broadcast %107 : vector<128x1xf32> to vector<128x128xf32>
    %115 = arith.cmpf oeq, %105, %114 : vector<128x128xf32>
    %116 = vector.broadcast %113 : vector<128x1xf32> to vector<128x128xf32>
    %117 = arith.cmpf oeq, %30, %116 : vector<128x128xf32>
    %118 = arith.andi %115, %117 : vector<128x128xi1>
    %cst_28 = arith.constant 0x7F800000 : f32
    %119 = vector.broadcast %cst_28 : f32 to vector<128x128xf32>
    %120 = arith.select %118, %119, %105 : vector<128x128xi1>, vector<128x128xf32>
    %cst_29 = arith.constant dense<0x7F800000> : vector<128xf32>
    %121 = vector.multi_reduction <minimumf>, %120, %cst_29 [1] : vector<128x128xf32> to vector<128xf32>
    %122 = vector.shape_cast %121 : vector<128xf32> to vector<128x1xf32>
    %123 = vector.broadcast %122 : vector<128x1xf32> to vector<128x128xf32>
    %124 = arith.cmpf oeq, %120, %123 : vector<128x128xf32>
    %cst_30 = arith.constant 0x7F800000 : f32
    %125 = vector.broadcast %cst_30 : f32 to vector<128x128xf32>
    %126 = arith.select %124, %30, %125 : vector<128x128xi1>, vector<128x128xf32>
    %cst_31 = arith.constant dense<0x7F800000> : vector<128xf32>
    %127 = vector.multi_reduction <minimumf>, %126, %cst_31 [1] : vector<128x128xf32> to vector<128xf32>
    %128 = vector.shape_cast %127 : vector<128xf32> to vector<128x1xf32>
    %129 = vector.broadcast %122 : vector<128x1xf32> to vector<128x128xf32>
    %130 = arith.cmpf oeq, %120, %129 : vector<128x128xf32>
    %131 = vector.broadcast %128 : vector<128x1xf32> to vector<128x128xf32>
    %132 = arith.cmpf oeq, %30, %131 : vector<128x128xf32>
    %133 = arith.andi %130, %132 : vector<128x128xi1>
    %cst_32 = arith.constant 0x7F800000 : f32
    %134 = vector.broadcast %cst_32 : f32 to vector<128x128xf32>
    %135 = arith.select %133, %134, %120 : vector<128x128xi1>, vector<128x128xf32>
    %cst_33 = arith.constant dense<0x7F800000> : vector<128xf32>
    %136 = vector.multi_reduction <minimumf>, %135, %cst_33 [1] : vector<128x128xf32> to vector<128xf32>
    %137 = vector.shape_cast %136 : vector<128xf32> to vector<128x1xf32>
    %138 = vector.broadcast %137 : vector<128x1xf32> to vector<128x128xf32>
    %139 = arith.cmpf oeq, %135, %138 : vector<128x128xf32>
    %cst_34 = arith.constant 0x7F800000 : f32
    %140 = vector.broadcast %cst_34 : f32 to vector<128x128xf32>
    %141 = arith.select %139, %30, %140 : vector<128x128xi1>, vector<128x128xf32>
    %cst_35 = arith.constant dense<0x7F800000> : vector<128xf32>
    %142 = vector.multi_reduction <minimumf>, %141, %cst_35 [1] : vector<128x128xf32> to vector<128xf32>
    %143 = vector.shape_cast %142 : vector<128xf32> to vector<128x1xf32>
    %144 = tpu.concatenate %32, %47, %62, %77, %92, %107, %122, %137 in 1 : vector<128x1xf32>, vector<128x1xf32>, vector<128x1xf32>, vector<128x1xf32>, vector<128x1xf32>, vector<128x1xf32>, vector<128x1xf32>, vector<128x1xf32> -> vector<128x8xf32>
    %145 = tpu.concatenate %38, %53, %68, %83, %98, %113, %128, %143 in 1 : vector<128x1xf32>, vector<128x1xf32>, vector<128x1xf32>, vector<128x1xf32>, vector<128x1xf32>, vector<128x1xf32>, vector<128x1xf32>, vector<128x1xf32> -> vector<128x8xf32>
    %c0_i32 = arith.constant 0 : i32
    %146 = arith.cmpi eq, %arg2, %c0_i32 : i32
    %147 = arith.extui %146 : i1 to i32
    %c0_i32_36 = arith.constant 0 : i32
    %148 = arith.cmpi ne, %147, %c0_i32_36 : i32
    scf.if %148 {
      %c0_40 = arith.constant 0 : index
      %c0_41 = arith.constant 0 : index
      %c0_42 = arith.constant 0 : index
      %152 = vector.load %arg5[%c0_40, %c0_41, %c0_42] : memref<1x128x8xf32, #tpu.memory_space<vmem>>, vector<1x128x8xf32>
      %153 = vector.shape_cast %152 : vector<1x128x8xf32> to vector<128x8xf32>
      %154 = vector.shape_cast %144 : vector<128x8xf32> to vector<1x128x8xf32>
      tpu.vector_store %arg5[%c0_40, %c0_41, %c0_42], %154 {strides = array<i32>} : memref<1x128x8xf32, #tpu.memory_space<vmem>>, vector<1x128x8xf32>,
      %155 = arith.fptosi %145 : vector<128x8xf32> to vector<128x8xi32>
      %c0_43 = arith.constant 0 : index
      %c0_44 = arith.constant 0 : index
      %c0_45 = arith.constant 0 : index
      %156 = vector.load %arg6[%c0_43, %c0_44, %c0_45] : memref<1x128x8xi32, #tpu.memory_space<vmem>>, vector<1x128x8xi32>
      %157 = vector.shape_cast %156 : vector<1x128x8xi32> to vector<128x8xi32>
      %158 = vector.shape_cast %155 : vector<128x8xi32> to vector<1x128x8xi32>
      tpu.vector_store %arg6[%c0_43, %c0_44, %c0_45], %158 {strides = array<i32>} : memref<1x128x8xi32, #tpu.memory_space<vmem>>, vector<1x128x8xi32>,
    } else {
    }
    %c0_i32_37 = arith.constant 0 : i32
    %149 = arith.cmpi sgt, %arg2, %c0_i32_37 : i32
    %150 = arith.extui %149 : i1 to i32
    %cst_38 = arith.constant 0x7F800000 : f32
    %c0_i32_39 = arith.constant 0 : i32
    %151 = arith.cmpi ne, %150, %c0_i32_39 : i32
    scf.if %151 {
      %c0_40 = arith.constant 0 : index
      %c0_41 = arith.constant 0 : index
      %c0_42 = arith.constant 0 : index
      %152 = vector.load %arg5[%c0_40, %c0_41, %c0_42] : memref<1x128x8xf32, #tpu.memory_space<vmem>>, vector<1x128x8xf32>
      %153 = vector.shape_cast %152 : vector<1x128x8xf32> to vector<128x8xf32>
      %154 = tpu.concatenate %144, %153 in 1 : vector<128x8xf32>, vector<128x8xf32> -> vector<128x16xf32>
      %c0_43 = arith.constant 0 : index
      %c0_44 = arith.constant 0 : index
      %c0_45 = arith.constant 0 : index
      %155 = vector.load %arg6[%c0_43, %c0_44, %c0_45] : memref<1x128x8xi32, #tpu.memory_space<vmem>>, vector<1x128x8xi32>
      %156 = vector.shape_cast %155 : vector<1x128x8xi32> to vector<128x8xi32>
      %157 = arith.sitofp %156 : vector<128x8xi32> to vector<128x8xf32>
      %158 = tpu.concatenate %145, %157 in 1 : vector<128x8xf32>, vector<128x8xf32> -> vector<128x16xf32>
      %cst_46 = arith.constant dense<0x7F800000> : vector<128xf32>
      %159 = vector.multi_reduction <minimumf>, %154, %cst_46 [1] : vector<128x16xf32> to vector<128xf32>
      %160 = vector.shape_cast %159 : vector<128xf32> to vector<128x1xf32>
      %161 = vector.broadcast %160 : vector<128x1xf32> to vector<128x16xf32>
      %162 = arith.cmpf oeq, %154, %161 : vector<128x16xf32>
      %163 = vector.broadcast %cst_38 : f32 to vector<128x16xf32>
      %164 = arith.select %162, %158, %163 : vector<128x16xi1>, vector<128x16xf32>
      %cst_47 = arith.constant dense<0x7F800000> : vector<128xf32>
      %165 = vector.multi_reduction <minimumf>, %164, %cst_47 [1] : vector<128x16xf32> to vector<128xf32>
      %166 = vector.shape_cast %165 : vector<128xf32> to vector<128x1xf32>
      %167 = vector.broadcast %160 : vector<128x1xf32> to vector<128x16xf32>
      %168 = arith.cmpf oeq, %154, %167 : vector<128x16xf32>
      %169 = vector.broadcast %166 : vector<128x1xf32> to vector<128x16xf32>
      %170 = arith.cmpf oeq, %158, %169 : vector<128x16xf32>
      %171 = arith.andi %168, %170 : vector<128x16xi1>
      %172 = vector.broadcast %cst_38 : f32 to vector<128x16xf32>
      %173 = arith.select %171, %172, %154 : vector<128x16xi1>, vector<128x16xf32>
      %cst_48 = arith.constant dense<0x7F800000> : vector<128xf32>
      %174 = vector.multi_reduction <minimumf>, %173, %cst_48 [1] : vector<128x16xf32> to vector<128xf32>
      %175 = vector.shape_cast %174 : vector<128xf32> to vector<128x1xf32>
      %176 = vector.broadcast %175 : vector<128x1xf32> to vector<128x16xf32>
      %177 = arith.cmpf oeq, %173, %176 : vector<128x16xf32>
      %178 = vector.broadcast %cst_38 : f32 to vector<128x16xf32>
      %179 = arith.select %177, %158, %178 : vector<128x16xi1>, vector<128x16xf32>
      %cst_49 = arith.constant dense<0x7F800000> : vector<128xf32>
      %180 = vector.multi_reduction <minimumf>, %179, %cst_49 [1] : vector<128x16xf32> to vector<128xf32>
      %181 = vector.shape_cast %180 : vector<128xf32> to vector<128x1xf32>
      %182 = vector.broadcast %175 : vector<128x1xf32> to vector<128x16xf32>
      %183 = arith.cmpf oeq, %173, %182 : vector<128x16xf32>
      %184 = vector.broadcast %181 : vector<128x1xf32> to vector<128x16xf32>
      %185 = arith.cmpf oeq, %158, %184 : vector<128x16xf32>
      %186 = arith.andi %183, %185 : vector<128x16xi1>
      %187 = vector.broadcast %cst_38 : f32 to vector<128x16xf32>
      %188 = arith.select %186, %187, %173 : vector<128x16xi1>, vector<128x16xf32>
      %cst_50 = arith.constant dense<0x7F800000> : vector<128xf32>
      %189 = vector.multi_reduction <minimumf>, %188, %cst_50 [1] : vector<128x16xf32> to vector<128xf32>
      %190 = vector.shape_cast %189 : vector<128xf32> to vector<128x1xf32>
      %191 = vector.broadcast %190 : vector<128x1xf32> to vector<128x16xf32>
      %192 = arith.cmpf oeq, %188, %191 : vector<128x16xf32>
      %193 = vector.broadcast %cst_38 : f32 to vector<128x16xf32>
      %194 = arith.select %192, %158, %193 : vector<128x16xi1>, vector<128x16xf32>
      %cst_51 = arith.constant dense<0x7F800000> : vector<128xf32>
      %195 = vector.multi_reduction <minimumf>, %194, %cst_51 [1] : vector<128x16xf32> to vector<128xf32>
      %196 = vector.shape_cast %195 : vector<128xf32> to vector<128x1xf32>
      %197 = vector.broadcast %190 : vector<128x1xf32> to vector<128x16xf32>
      %198 = arith.cmpf oeq, %188, %197 : vector<128x16xf32>
      %199 = vector.broadcast %196 : vector<128x1xf32> to vector<128x16xf32>
      %200 = arith.cmpf oeq, %158, %199 : vector<128x16xf32>
      %201 = arith.andi %198, %200 : vector<128x16xi1>
      %202 = vector.broadcast %cst_38 : f32 to vector<128x16xf32>
      %203 = arith.select %201, %202, %188 : vector<128x16xi1>, vector<128x16xf32>
      %cst_52 = arith.constant dense<0x7F800000> : vector<128xf32>
      %204 = vector.multi_reduction <minimumf>, %203, %cst_52 [1] : vector<128x16xf32> to vector<128xf32>
      %205 = vector.shape_cast %204 : vector<128xf32> to vector<128x1xf32>
      %206 = vector.broadcast %205 : vector<128x1xf32> to vector<128x16xf32>
      %207 = arith.cmpf oeq, %203, %206 : vector<128x16xf32>
      %208 = vector.broadcast %cst_38 : f32 to vector<128x16xf32>
      %209 = arith.select %207, %158, %208 : vector<128x16xi1>, vector<128x16xf32>
      %cst_53 = arith.constant dense<0x7F800000> : vector<128xf32>
      %210 = vector.multi_reduction <minimumf>, %209, %cst_53 [1] : vector<128x16xf32> to vector<128xf32>
      %211 = vector.shape_cast %210 : vector<128xf32> to vector<128x1xf32>
      %212 = vector.broadcast %205 : vector<128x1xf32> to vector<128x16xf32>
      %213 = arith.cmpf oeq, %203, %212 : vector<128x16xf32>
      %214 = vector.broadcast %211 : vector<128x1xf32> to vector<128x16xf32>
      %215 = arith.cmpf oeq, %158, %214 : vector<128x16xf32>
      %216 = arith.andi %213, %215 : vector<128x16xi1>
      %217 = vector.broadcast %cst_38 : f32 to vector<128x16xf32>
      %218 = arith.select %216, %217, %203 : vector<128x16xi1>, vector<128x16xf32>
      %cst_54 = arith.constant dense<0x7F800000> : vector<128xf32>
      %219 = vector.multi_reduction <minimumf>, %218, %cst_54 [1] : vector<128x16xf32> to vector<128xf32>
      %220 = vector.shape_cast %219 : vector<128xf32> to vector<128x1xf32>
      %221 = vector.broadcast %220 : vector<128x1xf32> to vector<128x16xf32>
      %222 = arith.cmpf oeq, %218, %221 : vector<128x16xf32>
      %223 = vector.broadcast %cst_38 : f32 to vector<128x16xf32>
      %224 = arith.select %222, %158, %223 : vector<128x16xi1>, vector<128x16xf32>
      %cst_55 = arith.constant dense<0x7F800000> : vector<128xf32>
      %225 = vector.multi_reduction <minimumf>, %224, %cst_55 [1] : vector<128x16xf32> to vector<128xf32>
      %226 = vector.shape_cast %225 : vector<128xf32> to vector<128x1xf32>
      %227 = vector.broadcast %220 : vector<128x1xf32> to vector<128x16xf32>
      %228 = arith.cmpf oeq, %218, %227 : vector<128x16xf32>
      %229 = vector.broadcast %226 : vector<128x1xf32> to vector<128x16xf32>
      %230 = arith.cmpf oeq, %158, %229 : vector<128x16xf32>
      %231 = arith.andi %228, %230 : vector<128x16xi1>
      %232 = vector.broadcast %cst_38 : f32 to vector<128x16xf32>
      %233 = arith.select %231, %232, %218 : vector<128x16xi1>, vector<128x16xf32>
      %cst_56 = arith.constant dense<0x7F800000> : vector<128xf32>
      %234 = vector.multi_reduction <minimumf>, %233, %cst_56 [1] : vector<128x16xf32> to vector<128xf32>
      %235 = vector.shape_cast %234 : vector<128xf32> to vector<128x1xf32>
      %236 = vector.broadcast %235 : vector<128x1xf32> to vector<128x16xf32>
      %237 = arith.cmpf oeq, %233, %236 : vector<128x16xf32>
      %238 = vector.broadcast %cst_38 : f32 to vector<128x16xf32>
      %239 = arith.select %237, %158, %238 : vector<128x16xi1>, vector<128x16xf32>
      %cst_57 = arith.constant dense<0x7F800000> : vector<128xf32>
      %240 = vector.multi_reduction <minimumf>, %239, %cst_57 [1] : vector<128x16xf32> to vector<128xf32>
      %241 = vector.shape_cast %240 : vector<128xf32> to vector<128x1xf32>
      %242 = vector.broadcast %235 : vector<128x1xf32> to vector<128x16xf32>
      %243 = arith.cmpf oeq, %233, %242 : vector<128x16xf32>
      %244 = vector.broadcast %241 : vector<128x1xf32> to vector<128x16xf32>
      %245 = arith.cmpf oeq, %158, %244 : vector<128x16xf32>
      %246 = arith.andi %243, %245 : vector<128x16xi1>
      %247 = vector.broadcast %cst_38 : f32 to vector<128x16xf32>
      %248 = arith.select %246, %247, %233 : vector<128x16xi1>, vector<128x16xf32>
      %cst_58 = arith.constant dense<0x7F800000> : vector<128xf32>
      %249 = vector.multi_reduction <minimumf>, %248, %cst_58 [1] : vector<128x16xf32> to vector<128xf32>
      %250 = vector.shape_cast %249 : vector<128xf32> to vector<128x1xf32>
      %251 = vector.broadcast %250 : vector<128x1xf32> to vector<128x16xf32>
      %252 = arith.cmpf oeq, %248, %251 : vector<128x16xf32>
      %253 = vector.broadcast %cst_38 : f32 to vector<128x16xf32>
      %254 = arith.select %252, %158, %253 : vector<128x16xi1>, vector<128x16xf32>
      %cst_59 = arith.constant dense<0x7F800000> : vector<128xf32>
      %255 = vector.multi_reduction <minimumf>, %254, %cst_59 [1] : vector<128x16xf32> to vector<128xf32>
      %256 = vector.shape_cast %255 : vector<128xf32> to vector<128x1xf32>
      %257 = vector.broadcast %250 : vector<128x1xf32> to vector<128x16xf32>
      %258 = arith.cmpf oeq, %248, %257 : vector<128x16xf32>
      %259 = vector.broadcast %256 : vector<128x1xf32> to vector<128x16xf32>
      %260 = arith.cmpf oeq, %158, %259 : vector<128x16xf32>
      %261 = arith.andi %258, %260 : vector<128x16xi1>
      %262 = vector.broadcast %cst_38 : f32 to vector<128x16xf32>
      %263 = arith.select %261, %262, %248 : vector<128x16xi1>, vector<128x16xf32>
      %cst_60 = arith.constant dense<0x7F800000> : vector<128xf32>
      %264 = vector.multi_reduction <minimumf>, %263, %cst_60 [1] : vector<128x16xf32> to vector<128xf32>
      %265 = vector.shape_cast %264 : vector<128xf32> to vector<128x1xf32>
      %266 = vector.broadcast %265 : vector<128x1xf32> to vector<128x16xf32>
      %267 = arith.cmpf oeq, %263, %266 : vector<128x16xf32>
      %268 = vector.broadcast %cst_38 : f32 to vector<128x16xf32>
      %269 = arith.select %267, %158, %268 : vector<128x16xi1>, vector<128x16xf32>
      %cst_61 = arith.constant dense<0x7F800000> : vector<128xf32>
      %270 = vector.multi_reduction <minimumf>, %269, %cst_61 [1] : vector<128x16xf32> to vector<128xf32>
      %271 = vector.shape_cast %270 : vector<128xf32> to vector<128x1xf32>
      %272 = tpu.concatenate %160, %175, %190, %205, %220, %235, %250, %265 in 1 : vector<128x1xf32>, vector<128x1xf32>, vector<128x1xf32>, vector<128x1xf32>, vector<128x1xf32>, vector<128x1xf32>, vector<128x1xf32>, vector<128x1xf32> -> vector<128x8xf32>
      %c0_62 = arith.constant 0 : index
      %c0_63 = arith.constant 0 : index
      %c0_64 = arith.constant 0 : index
      %273 = vector.load %arg5[%c0_62, %c0_63, %c0_64] : memref<1x128x8xf32, #tpu.memory_space<vmem>>, vector<1x128x8xf32>
      %274 = vector.shape_cast %273 : vector<1x128x8xf32> to vector<128x8xf32>
      %275 = vector.shape_cast %272 : vector<128x8xf32> to vector<1x128x8xf32>
      tpu.vector_store %arg5[%c0_62, %c0_63, %c0_64], %275 {strides = array<i32>} : memref<1x128x8xf32, #tpu.memory_space<vmem>>, vector<1x128x8xf32>,
      %276 = tpu.concatenate %166, %181, %196, %211, %226, %241, %256, %271 in 1 : vector<128x1xf32>, vector<128x1xf32>, vector<128x1xf32>, vector<128x1xf32>, vector<128x1xf32>, vector<128x1xf32>, vector<128x1xf32>, vector<128x1xf32> -> vector<128x8xf32>
      %277 = arith.fptosi %276 : vector<128x8xf32> to vector<128x8xi32>
      %c0_65 = arith.constant 0 : index
      %c0_66 = arith.constant 0 : index
      %c0_67 = arith.constant 0 : index
      %278 = vector.load %arg6[%c0_65, %c0_66, %c0_67] : memref<1x128x8xi32, #tpu.memory_space<vmem>>, vector<1x128x8xi32>
      %279 = vector.shape_cast %278 : vector<1x128x8xi32> to vector<128x8xi32>
      %280 = vector.shape_cast %277 : vector<128x8xi32> to vector<1x128x8xi32>
      tpu.vector_store %arg6[%c0_65, %c0_66, %c0_67], %280 {strides = array<i32>} : memref<1x128x8xi32, #tpu.memory_space<vmem>>, vector<1x128x8xi32>,
    } else {
    }
    return
  }
  func.func @transform_0(%arg0: i32, %arg1: i32, %arg2: i32) -> (i32, i32, i32) {
    %c0_i32 = arith.constant 0 : i32
    %c0_i32_0 = arith.constant 0 : i32
    return %arg0, %arg1, %c0_i32 : i32, i32, i32
  }
  func.func @transform_1(%arg0: i32, %arg1: i32, %arg2: i32) -> (i32, i32, i32) {
    %c0_i32 = arith.constant 0 : i32
    %c0_i32_0 = arith.constant 0 : i32
    return %arg0, %c0_i32, %arg2 : i32, i32, i32
  }
  func.func @transform_2(%arg0: i32, %arg1: i32, %arg2: i32) -> (i32, i32, i32) {
    %c0_i32 = arith.constant 0 : i32
    %c0_i32_0 = arith.constant 0 : i32
    return %arg0, %arg1, %c0_i32 : i32, i32, i32
  }
  func.func @transform_3(%arg0: i32, %arg1: i32, %arg2: i32) -> (i32, i32, i32) {
    %c0_i32 = arith.constant 0 : i32
    %c0_i32_0 = arith.constant 0 : i32
    return %arg0, %arg1, %c0_i32 : i32, i32, i32
  }
}

module attributes {stable_mosaic.version = 11 : i64} {
  func.func @_cost_kernel(%arg0: i32, %arg1: i32, %arg2: memref<1x32x128xf32, #tpu.memory_space<vmem>>, %arg3: memref<1x3x128xf32, #tpu.memory_space<vmem>>, %arg4: memref<1x8x32x128xbf16, #tpu.memory_space<vmem>>, %arg5: memref<1x8x3x128xf32, #tpu.memory_space<vmem>>, %arg6: memref<32x32xbf16, #tpu.memory_space<vmem>>, %arg7: memref<32x32xbf16, #tpu.memory_space<vmem>>, %arg8: memref<32x3xf32, #tpu.memory_space<vmem>>, %arg9: memref<32x1xf32, #tpu.memory_space<vmem>>, %arg10: memref<32x32xbf16, #tpu.memory_space<vmem>>, %arg11: memref<32x1xf32, #tpu.memory_space<vmem>>, %arg12: memref<32x32xbf16, #tpu.memory_space<vmem>>, %arg13: memref<32x1xf32, #tpu.memory_space<vmem>>, %arg14: memref<1x32x128xf32, #tpu.memory_space<vmem>>) attributes {dimension_semantics = [#tpu.dimension_semantics<parallel>, #tpu.dimension_semantics<parallel>], iteration_bounds = array<i64: 4, 1>, scalar_prefetch = 0 : i64, scratch_operands = 0 : i64, tpu.core_type = #tpu.core_type<tc>, window_params = [{transform_indices = @transform_0, window_bounds = array<i64: 1, 32, 128>}, {transform_indices = @transform_1, window_bounds = array<i64: 1, 3, 128>}, {transform_indices = @transform_2, window_bounds = array<i64: 1, 8, 32, 128>}, {transform_indices = @transform_3, window_bounds = array<i64: 1, 8, 3, 128>}, {pipeline_mode = #tpu.pipeline_mode<synchronous>, transform_indices = @transform_4, window_bounds = array<i64: 32, 32>}, {pipeline_mode = #tpu.pipeline_mode<synchronous>, transform_indices = @transform_5, window_bounds = array<i64: 32, 32>}, {pipeline_mode = #tpu.pipeline_mode<synchronous>, transform_indices = @transform_6, window_bounds = array<i64: 32, 3>}, {pipeline_mode = #tpu.pipeline_mode<synchronous>, transform_indices = @transform_7, window_bounds = array<i64: 32, 1>}, {pipeline_mode = #tpu.pipeline_mode<synchronous>, transform_indices = @transform_8, window_bounds = array<i64: 32, 32>}, {pipeline_mode = #tpu.pipeline_mode<synchronous>, transform_indices = @transform_9, window_bounds = array<i64: 32, 1>}, {pipeline_mode = #tpu.pipeline_mode<synchronous>, transform_indices = @transform_10, window_bounds = array<i64: 32, 32>}, {pipeline_mode = #tpu.pipeline_mode<synchronous>, transform_indices = @transform_11, window_bounds = array<i64: 32, 1>}, {transform_indices = @transform_12, window_bounds = array<i64: 1, 32, 128>}]} {
    %c0 = arith.constant 0 : index
    %c0_0 = arith.constant 0 : index
    %c0_1 = arith.constant 0 : index
    %0 = vector.load %arg2[%c0, %c0_0, %c0_1] : memref<1x32x128xf32, #tpu.memory_space<vmem>>, vector<1x32x128xf32>
    %1 = vector.shape_cast %0 : vector<1x32x128xf32> to vector<32x128xf32>
    %2 = arith.truncf %1 : vector<32x128xf32> to vector<32x128xbf16>
    %c0_2 = arith.constant 0 : index
    %c0_3 = arith.constant 0 : index
    %c0_4 = arith.constant 0 : index
    %3 = vector.load %arg3[%c0_2, %c0_3, %c0_4] : memref<1x3x128xf32, #tpu.memory_space<vmem>>, vector<1x3x128xf32>
    %4 = vector.shape_cast %3 : vector<1x3x128xf32> to vector<3x128xf32>
    %c0_5 = arith.constant 0 : index
    %c0_6 = arith.constant 0 : index
    %5 = vector.load %arg8[%c0_5, %c0_6] : memref<32x3xf32, #tpu.memory_space<vmem>>, vector<32x3xf32>
    %c0_7 = arith.constant 0 : index
    %c0_8 = arith.constant 0 : index
    %6 = vector.load %arg6[%c0_7, %c0_8] : memref<32x32xbf16, #tpu.memory_space<vmem>>, vector<32x32xbf16>
    %cst = arith.constant dense<0.000000e+00> : vector<32x128xf32>
    %7 = tpu.matmul %6, %2, %cst {dimension_numbers = #tpu.dot_dimension_numbers<[1], [0], [0], [1], [0, 0, 1, 1], [], []>} : vector<32x32xbf16>, vector<32x128xbf16>, vector<32x128xf32> -> vector<32x128xf32>
    %c0_9 = arith.constant 0 : index
    %c0_10 = arith.constant 0 : index
    %8 = vector.load %arg9[%c0_9, %c0_10] : memref<32x1xf32, #tpu.memory_space<vmem>>, vector<32x1xf32>
    %9 = vector.broadcast %8 : vector<32x1xf32> to vector<32x128xf32>
    %10 = arith.addf %7, %9 : vector<32x128xf32>
    %11 = vector.extract_strided_slice %5 {offsets = [0, 0], sizes = [32, 1], strides = [1, 1]} : vector<32x3xf32> to vector<32x1xf32>
    %12 = vector.extract_strided_slice %4 {offsets = [0, 0], sizes = [1, 128], strides = [1, 1]} : vector<3x128xf32> to vector<1x128xf32>
    %13 = vector.broadcast %11 : vector<32x1xf32> to vector<32x128xf32>
    %14 = vector.broadcast %12 : vector<1x128xf32> to vector<32x128xf32>
    %15 = arith.mulf %13, %14 : vector<32x128xf32>
    %16 = arith.subf %10, %15 : vector<32x128xf32>
    %17 = vector.extract_strided_slice %5 {offsets = [0, 1], sizes = [32, 1], strides = [1, 1]} : vector<32x3xf32> to vector<32x1xf32>
    %18 = vector.extract_strided_slice %4 {offsets = [1, 0], sizes = [1, 128], strides = [1, 1]} : vector<3x128xf32> to vector<1x128xf32>
    %19 = vector.broadcast %17 : vector<32x1xf32> to vector<32x128xf32>
    %20 = vector.broadcast %18 : vector<1x128xf32> to vector<32x128xf32>
    %21 = arith.mulf %19, %20 : vector<32x128xf32>
    %22 = arith.subf %16, %21 : vector<32x128xf32>
    %23 = vector.extract_strided_slice %5 {offsets = [0, 2], sizes = [32, 1], strides = [1, 1]} : vector<32x3xf32> to vector<32x1xf32>
    %24 = vector.extract_strided_slice %4 {offsets = [2, 0], sizes = [1, 128], strides = [1, 1]} : vector<3x128xf32> to vector<1x128xf32>
    %25 = vector.broadcast %23 : vector<32x1xf32> to vector<32x128xf32>
    %26 = vector.broadcast %24 : vector<1x128xf32> to vector<32x128xf32>
    %27 = arith.mulf %25, %26 : vector<32x128xf32>
    %28 = arith.subf %22, %27 : vector<32x128xf32>
    %c0_11 = arith.constant 0 : index
    %c0_12 = arith.constant 0 : index
    %c0_13 = arith.constant 0 : index
    %c0_14 = arith.constant 0 : index
    %29 = vector.load %arg4[%c0_11, %c0_12, %c0_13, %c0_14] : memref<1x8x32x128xbf16, #tpu.memory_space<vmem>>, vector<1x1x32x128xbf16>
    %30 = vector.shape_cast %29 : vector<1x1x32x128xbf16> to vector<32x128xbf16>
    %c0_15 = arith.constant 0 : index
    %c1 = arith.constant 1 : index
    %c0_16 = arith.constant 0 : index
    %c0_17 = arith.constant 0 : index
    %31 = vector.load %arg4[%c0_15, %c1, %c0_16, %c0_17] : memref<1x8x32x128xbf16, #tpu.memory_space<vmem>>, vector<1x1x32x128xbf16>
    %32 = vector.shape_cast %31 : vector<1x1x32x128xbf16> to vector<32x128xbf16>
    %c0_18 = arith.constant 0 : index
    %c2 = arith.constant 2 : index
    %c0_19 = arith.constant 0 : index
    %c0_20 = arith.constant 0 : index
    %33 = vector.load %arg4[%c0_18, %c2, %c0_19, %c0_20] : memref<1x8x32x128xbf16, #tpu.memory_space<vmem>>, vector<1x1x32x128xbf16>
    %34 = vector.shape_cast %33 : vector<1x1x32x128xbf16> to vector<32x128xbf16>
    %c0_21 = arith.constant 0 : index
    %c3 = arith.constant 3 : index
    %c0_22 = arith.constant 0 : index
    %c0_23 = arith.constant 0 : index
    %35 = vector.load %arg4[%c0_21, %c3, %c0_22, %c0_23] : memref<1x8x32x128xbf16, #tpu.memory_space<vmem>>, vector<1x1x32x128xbf16>
    %36 = vector.shape_cast %35 : vector<1x1x32x128xbf16> to vector<32x128xbf16>
    %c0_24 = arith.constant 0 : index
    %c4 = arith.constant 4 : index
    %c0_25 = arith.constant 0 : index
    %c0_26 = arith.constant 0 : index
    %37 = vector.load %arg4[%c0_24, %c4, %c0_25, %c0_26] : memref<1x8x32x128xbf16, #tpu.memory_space<vmem>>, vector<1x1x32x128xbf16>
    %38 = vector.shape_cast %37 : vector<1x1x32x128xbf16> to vector<32x128xbf16>
    %c0_27 = arith.constant 0 : index
    %c5 = arith.constant 5 : index
    %c0_28 = arith.constant 0 : index
    %c0_29 = arith.constant 0 : index
    %39 = vector.load %arg4[%c0_27, %c5, %c0_28, %c0_29] : memref<1x8x32x128xbf16, #tpu.memory_space<vmem>>, vector<1x1x32x128xbf16>
    %40 = vector.shape_cast %39 : vector<1x1x32x128xbf16> to vector<32x128xbf16>
    %c0_30 = arith.constant 0 : index
    %c6 = arith.constant 6 : index
    %c0_31 = arith.constant 0 : index
    %c0_32 = arith.constant 0 : index
    %41 = vector.load %arg4[%c0_30, %c6, %c0_31, %c0_32] : memref<1x8x32x128xbf16, #tpu.memory_space<vmem>>, vector<1x1x32x128xbf16>
    %42 = vector.shape_cast %41 : vector<1x1x32x128xbf16> to vector<32x128xbf16>
    %c0_33 = arith.constant 0 : index
    %c7 = arith.constant 7 : index
    %c0_34 = arith.constant 0 : index
    %c0_35 = arith.constant 0 : index
    %43 = vector.load %arg4[%c0_33, %c7, %c0_34, %c0_35] : memref<1x8x32x128xbf16, #tpu.memory_space<vmem>>, vector<1x1x32x128xbf16>
    %44 = vector.shape_cast %43 : vector<1x1x32x128xbf16> to vector<32x128xbf16>
    %45 = tpu.concatenate %30, %32, %34, %36, %38, %40, %42, %44 in 1 : vector<32x128xbf16>, vector<32x128xbf16>, vector<32x128xbf16>, vector<32x128xbf16>, vector<32x128xbf16>, vector<32x128xbf16>, vector<32x128xbf16>, vector<32x128xbf16> -> vector<32x1024xbf16>
    %c0_36 = arith.constant 0 : index
    %c0_37 = arith.constant 0 : index
    %c0_38 = arith.constant 0 : index
    %c0_39 = arith.constant 0 : index
    %46 = vector.load %arg5[%c0_36, %c0_37, %c0_38, %c0_39] : memref<1x8x3x128xf32, #tpu.memory_space<vmem>>, vector<1x1x3x128xf32>
    %47 = vector.shape_cast %46 : vector<1x1x3x128xf32> to vector<3x128xf32>
    %c0_40 = arith.constant 0 : index
    %c1_41 = arith.constant 1 : index
    %c0_42 = arith.constant 0 : index
    %c0_43 = arith.constant 0 : index
    %48 = vector.load %arg5[%c0_40, %c1_41, %c0_42, %c0_43] : memref<1x8x3x128xf32, #tpu.memory_space<vmem>>, vector<1x1x3x128xf32>
    %49 = vector.shape_cast %48 : vector<1x1x3x128xf32> to vector<3x128xf32>
    %c0_44 = arith.constant 0 : index
    %c2_45 = arith.constant 2 : index
    %c0_46 = arith.constant 0 : index
    %c0_47 = arith.constant 0 : index
    %50 = vector.load %arg5[%c0_44, %c2_45, %c0_46, %c0_47] : memref<1x8x3x128xf32, #tpu.memory_space<vmem>>, vector<1x1x3x128xf32>
    %51 = vector.shape_cast %50 : vector<1x1x3x128xf32> to vector<3x128xf32>
    %c0_48 = arith.constant 0 : index
    %c3_49 = arith.constant 3 : index
    %c0_50 = arith.constant 0 : index
    %c0_51 = arith.constant 0 : index
    %52 = vector.load %arg5[%c0_48, %c3_49, %c0_50, %c0_51] : memref<1x8x3x128xf32, #tpu.memory_space<vmem>>, vector<1x1x3x128xf32>
    %53 = vector.shape_cast %52 : vector<1x1x3x128xf32> to vector<3x128xf32>
    %c0_52 = arith.constant 0 : index
    %c4_53 = arith.constant 4 : index
    %c0_54 = arith.constant 0 : index
    %c0_55 = arith.constant 0 : index
    %54 = vector.load %arg5[%c0_52, %c4_53, %c0_54, %c0_55] : memref<1x8x3x128xf32, #tpu.memory_space<vmem>>, vector<1x1x3x128xf32>
    %55 = vector.shape_cast %54 : vector<1x1x3x128xf32> to vector<3x128xf32>
    %c0_56 = arith.constant 0 : index
    %c5_57 = arith.constant 5 : index
    %c0_58 = arith.constant 0 : index
    %c0_59 = arith.constant 0 : index
    %56 = vector.load %arg5[%c0_56, %c5_57, %c0_58, %c0_59] : memref<1x8x3x128xf32, #tpu.memory_space<vmem>>, vector<1x1x3x128xf32>
    %57 = vector.shape_cast %56 : vector<1x1x3x128xf32> to vector<3x128xf32>
    %c0_60 = arith.constant 0 : index
    %c6_61 = arith.constant 6 : index
    %c0_62 = arith.constant 0 : index
    %c0_63 = arith.constant 0 : index
    %58 = vector.load %arg5[%c0_60, %c6_61, %c0_62, %c0_63] : memref<1x8x3x128xf32, #tpu.memory_space<vmem>>, vector<1x1x3x128xf32>
    %59 = vector.shape_cast %58 : vector<1x1x3x128xf32> to vector<3x128xf32>
    %c0_64 = arith.constant 0 : index
    %c7_65 = arith.constant 7 : index
    %c0_66 = arith.constant 0 : index
    %c0_67 = arith.constant 0 : index
    %60 = vector.load %arg5[%c0_64, %c7_65, %c0_66, %c0_67] : memref<1x8x3x128xf32, #tpu.memory_space<vmem>>, vector<1x1x3x128xf32>
    %61 = vector.shape_cast %60 : vector<1x1x3x128xf32> to vector<3x128xf32>
    %62 = tpu.concatenate %47, %49, %51, %53, %55, %57, %59, %61 in 1 : vector<3x128xf32>, vector<3x128xf32>, vector<3x128xf32>, vector<3x128xf32>, vector<3x128xf32>, vector<3x128xf32>, vector<3x128xf32>, vector<3x128xf32> -> vector<3x1024xf32>
    %63 = tpu.concatenate %28, %28, %28, %28, %28, %28, %28, %28 in 1 : vector<32x128xf32>, vector<32x128xf32>, vector<32x128xf32>, vector<32x128xf32>, vector<32x128xf32>, vector<32x128xf32>, vector<32x128xf32>, vector<32x128xf32> -> vector<32x1024xf32>
    %c0_68 = arith.constant 0 : index
    %c0_69 = arith.constant 0 : index
    %64 = vector.load %arg7[%c0_68, %c0_69] : memref<32x32xbf16, #tpu.memory_space<vmem>>, vector<32x32xbf16>
    %cst_70 = arith.constant dense<0.000000e+00> : vector<32x1024xf32>
    %65 = tpu.matmul %64, %45, %cst_70 {dimension_numbers = #tpu.dot_dimension_numbers<[1], [0], [0], [1], [0, 0, 1, 1], [], []>} : vector<32x32xbf16>, vector<32x1024xbf16>, vector<32x1024xf32> -> vector<32x1024xf32>
    %66 = arith.addf %65, %63 : vector<32x1024xf32>
    %67 = vector.extract_strided_slice %5 {offsets = [0, 0], sizes = [32, 1], strides = [1, 1]} : vector<32x3xf32> to vector<32x1xf32>
    %68 = vector.extract_strided_slice %62 {offsets = [0, 0], sizes = [1, 1024], strides = [1, 1]} : vector<3x1024xf32> to vector<1x1024xf32>
    %69 = vector.broadcast %67 : vector<32x1xf32> to vector<32x1024xf32>
    %70 = vector.broadcast %68 : vector<1x1024xf32> to vector<32x1024xf32>
    %71 = arith.mulf %69, %70 : vector<32x1024xf32>
    %72 = arith.addf %66, %71 : vector<32x1024xf32>
    %73 = vector.extract_strided_slice %5 {offsets = [0, 1], sizes = [32, 1], strides = [1, 1]} : vector<32x3xf32> to vector<32x1xf32>
    %74 = vector.extract_strided_slice %62 {offsets = [1, 0], sizes = [1, 1024], strides = [1, 1]} : vector<3x1024xf32> to vector<1x1024xf32>
    %75 = vector.broadcast %73 : vector<32x1xf32> to vector<32x1024xf32>
    %76 = vector.broadcast %74 : vector<1x1024xf32> to vector<32x1024xf32>
    %77 = arith.mulf %75, %76 : vector<32x1024xf32>
    %78 = arith.addf %72, %77 : vector<32x1024xf32>
    %79 = vector.extract_strided_slice %5 {offsets = [0, 2], sizes = [32, 1], strides = [1, 1]} : vector<32x3xf32> to vector<32x1xf32>
    %80 = vector.extract_strided_slice %62 {offsets = [2, 0], sizes = [1, 1024], strides = [1, 1]} : vector<3x1024xf32> to vector<1x1024xf32>
    %81 = vector.broadcast %79 : vector<32x1xf32> to vector<32x1024xf32>
    %82 = vector.broadcast %80 : vector<1x1024xf32> to vector<32x1024xf32>
    %83 = arith.mulf %81, %82 : vector<32x1024xf32>
    %84 = arith.addf %78, %83 : vector<32x1024xf32>
    %cst_71 = arith.constant 0.000000e+00 : f32
    %85 = vector.broadcast %cst_71 : f32 to vector<32x1024xf32>
    %86 = arith.maximumf %84, %85 : vector<32x1024xf32>
    %c0_72 = arith.constant 0 : index
    %c0_73 = arith.constant 0 : index
    %87 = vector.load %arg10[%c0_72, %c0_73] : memref<32x32xbf16, #tpu.memory_space<vmem>>, vector<32x32xbf16>
    %88 = arith.truncf %86 : vector<32x1024xf32> to vector<32x1024xbf16>
    %cst_74 = arith.constant dense<0.000000e+00> : vector<32x1024xf32>
    %89 = tpu.matmul %87, %88, %cst_74 {dimension_numbers = #tpu.dot_dimension_numbers<[1], [0], [0], [1], [0, 0, 1, 1], [], []>} : vector<32x32xbf16>, vector<32x1024xbf16>, vector<32x1024xf32> -> vector<32x1024xf32>
    %c0_75 = arith.constant 0 : index
    %c0_76 = arith.constant 0 : index
    %90 = vector.load %arg11[%c0_75, %c0_76] : memref<32x1xf32, #tpu.memory_space<vmem>>, vector<32x1xf32>
    %91 = vector.broadcast %90 : vector<32x1xf32> to vector<32x1024xf32>
    %92 = arith.addf %89, %91 : vector<32x1024xf32>
    %cst_77 = arith.constant 0.000000e+00 : f32
    %93 = vector.broadcast %cst_77 : f32 to vector<32x1024xf32>
    %94 = arith.maximumf %92, %93 : vector<32x1024xf32>
    %c0_78 = arith.constant 0 : index
    %c0_79 = arith.constant 0 : index
    %95 = vector.load %arg12[%c0_78, %c0_79] : memref<32x32xbf16, #tpu.memory_space<vmem>>, vector<32x32xbf16>
    %96 = arith.truncf %94 : vector<32x1024xf32> to vector<32x1024xbf16>
    %cst_80 = arith.constant dense<0.000000e+00> : vector<32x1024xf32>
    %97 = tpu.matmul %95, %96, %cst_80 {dimension_numbers = #tpu.dot_dimension_numbers<[1], [0], [0], [1], [0, 0, 1, 1], [], []>} : vector<32x32xbf16>, vector<32x1024xbf16>, vector<32x1024xf32> -> vector<32x1024xf32>
    %c0_81 = arith.constant 0 : index
    %c0_82 = arith.constant 0 : index
    %98 = vector.load %arg13[%c0_81, %c0_82] : memref<32x1xf32, #tpu.memory_space<vmem>>, vector<32x1xf32>
    %99 = vector.broadcast %98 : vector<32x1xf32> to vector<32x1024xf32>
    %100 = arith.addf %97, %99 : vector<32x1024xf32>
    %cst_83 = arith.constant 0.000000e+00 : f32
    %101 = vector.broadcast %cst_83 : f32 to vector<32x1024xf32>
    %102 = arith.maximumf %100, %101 : vector<32x1024xf32>
    %103 = vector.extract_strided_slice %102 {offsets = [0, 0], sizes = [32, 128], strides = [1, 1]} : vector<32x1024xf32> to vector<32x128xf32>
    %104 = vector.extract_strided_slice %102 {offsets = [0, 128], sizes = [32, 128], strides = [1, 1]} : vector<32x1024xf32> to vector<32x128xf32>
    %105 = arith.maximumf %103, %104 : vector<32x128xf32>
    %106 = vector.extract_strided_slice %102 {offsets = [0, 256], sizes = [32, 128], strides = [1, 1]} : vector<32x1024xf32> to vector<32x128xf32>
    %107 = arith.maximumf %105, %106 : vector<32x128xf32>
    %108 = vector.extract_strided_slice %102 {offsets = [0, 384], sizes = [32, 128], strides = [1, 1]} : vector<32x1024xf32> to vector<32x128xf32>
    %109 = arith.maximumf %107, %108 : vector<32x128xf32>
    %110 = vector.extract_strided_slice %102 {offsets = [0, 512], sizes = [32, 128], strides = [1, 1]} : vector<32x1024xf32> to vector<32x128xf32>
    %111 = arith.maximumf %109, %110 : vector<32x128xf32>
    %112 = vector.extract_strided_slice %102 {offsets = [0, 640], sizes = [32, 128], strides = [1, 1]} : vector<32x1024xf32> to vector<32x128xf32>
    %113 = arith.maximumf %111, %112 : vector<32x128xf32>
    %114 = vector.extract_strided_slice %102 {offsets = [0, 768], sizes = [32, 128], strides = [1, 1]} : vector<32x1024xf32> to vector<32x128xf32>
    %115 = arith.maximumf %113, %114 : vector<32x128xf32>
    %116 = vector.extract_strided_slice %102 {offsets = [0, 896], sizes = [32, 128], strides = [1, 1]} : vector<32x1024xf32> to vector<32x128xf32>
    %117 = arith.maximumf %115, %116 : vector<32x128xf32>
    %c0_84 = arith.constant 0 : index
    %c0_85 = arith.constant 0 : index
    %c0_86 = arith.constant 0 : index
    %118 = vector.load %arg14[%c0_84, %c0_85, %c0_86] : memref<1x32x128xf32, #tpu.memory_space<vmem>>, vector<1x32x128xf32>
    %119 = vector.shape_cast %118 : vector<1x32x128xf32> to vector<32x128xf32>
    %120 = vector.shape_cast %117 : vector<32x128xf32> to vector<1x32x128xf32>
    tpu.vector_store %arg14[%c0_84, %c0_85, %c0_86], %120 {strides = array<i32>} : memref<1x32x128xf32, #tpu.memory_space<vmem>>, vector<1x32x128xf32>,
    return
  }
  func.func @transform_0(%arg0: i32, %arg1: i32) -> (i32, i32, i32) {
    %c0_i32 = arith.constant 0 : i32
    %c0_i32_0 = arith.constant 0 : i32
    return %arg0, %c0_i32, %arg1 : i32, i32, i32
  }
  func.func @transform_1(%arg0: i32, %arg1: i32) -> (i32, i32, i32) {
    %c0_i32 = arith.constant 0 : i32
    %c0_i32_0 = arith.constant 0 : i32
    return %arg0, %c0_i32, %arg1 : i32, i32, i32
  }
  func.func @transform_2(%arg0: i32, %arg1: i32) -> (i32, i32, i32, i32) {
    %c0_i32 = arith.constant 0 : i32
    %c0_i32_0 = arith.constant 0 : i32
    %c0_i32_1 = arith.constant 0 : i32
    return %arg0, %c0_i32, %c0_i32_0, %arg1 : i32, i32, i32, i32
  }
  func.func @transform_3(%arg0: i32, %arg1: i32) -> (i32, i32, i32, i32) {
    %c0_i32 = arith.constant 0 : i32
    %c0_i32_0 = arith.constant 0 : i32
    %c0_i32_1 = arith.constant 0 : i32
    return %arg0, %c0_i32, %c0_i32_0, %arg1 : i32, i32, i32, i32
  }
  func.func @transform_4(%arg0: i32, %arg1: i32) -> (i32, i32) {
    %c0_i32 = arith.constant 0 : i32
    %c0_i32_0 = arith.constant 0 : i32
    %c0_i32_1 = arith.constant 0 : i32
    return %c0_i32, %c0_i32_0 : i32, i32
  }
  func.func @transform_5(%arg0: i32, %arg1: i32) -> (i32, i32) {
    %c0_i32 = arith.constant 0 : i32
    %c0_i32_0 = arith.constant 0 : i32
    %c0_i32_1 = arith.constant 0 : i32
    return %c0_i32, %c0_i32_0 : i32, i32
  }
  func.func @transform_6(%arg0: i32, %arg1: i32) -> (i32, i32) {
    %c0_i32 = arith.constant 0 : i32
    %c0_i32_0 = arith.constant 0 : i32
    %c0_i32_1 = arith.constant 0 : i32
    return %c0_i32, %c0_i32_0 : i32, i32
  }
  func.func @transform_7(%arg0: i32, %arg1: i32) -> (i32, i32) {
    %c0_i32 = arith.constant 0 : i32
    %c0_i32_0 = arith.constant 0 : i32
    %c0_i32_1 = arith.constant 0 : i32
    return %c0_i32, %c0_i32_0 : i32, i32
  }
  func.func @transform_8(%arg0: i32, %arg1: i32) -> (i32, i32) {
    %c0_i32 = arith.constant 0 : i32
    %c0_i32_0 = arith.constant 0 : i32
    %c0_i32_1 = arith.constant 0 : i32
    return %c0_i32, %c0_i32_0 : i32, i32
  }
  func.func @transform_9(%arg0: i32, %arg1: i32) -> (i32, i32) {
    %c0_i32 = arith.constant 0 : i32
    %c0_i32_0 = arith.constant 0 : i32
    %c0_i32_1 = arith.constant 0 : i32
    return %c0_i32, %c0_i32_0 : i32, i32
  }
  func.func @transform_10(%arg0: i32, %arg1: i32) -> (i32, i32) {
    %c0_i32 = arith.constant 0 : i32
    %c0_i32_0 = arith.constant 0 : i32
    %c0_i32_1 = arith.constant 0 : i32
    return %c0_i32, %c0_i32_0 : i32, i32
  }
  func.func @transform_11(%arg0: i32, %arg1: i32) -> (i32, i32) {
    %c0_i32 = arith.constant 0 : i32
    %c0_i32_0 = arith.constant 0 : i32
    %c0_i32_1 = arith.constant 0 : i32
    return %c0_i32, %c0_i32_0 : i32, i32
  }
  func.func @transform_12(%arg0: i32, %arg1: i32) -> (i32, i32, i32) {
    %c0_i32 = arith.constant 0 : i32
    %c0_i32_0 = arith.constant 0 : i32
    return %arg0, %c0_i32, %arg1 : i32, i32, i32
  }
}

module attributes {stable_mosaic.version = 11 : i64} {
  func.func @_flow_head_kernel(%arg0: i32, %arg1: i32, %arg2: memref<1x32x128xf32, #tpu.memory_space<vmem>>, %arg3: memref<1x32x128xf32, #tpu.memory_space<vmem>>, %arg4: memref<1x32x128xf32, #tpu.memory_space<vmem>>, %arg5: memref<1x3x128xf32, #tpu.memory_space<vmem>>, %arg6: memref<32x96xbf16, #tpu.memory_space<vmem>>, %arg7: memref<32x3xf32, #tpu.memory_space<vmem>>, %arg8: memref<32x1xf32, #tpu.memory_space<vmem>>, %arg9: memref<32x32xbf16, #tpu.memory_space<vmem>>, %arg10: memref<32x1xf32, #tpu.memory_space<vmem>>, %arg11: memref<3x32xf32, #tpu.memory_space<vmem>>, %arg12: memref<3x1xf32, #tpu.memory_space<vmem>>, %arg13: memref<1x32x128xf32, #tpu.memory_space<vmem>>, %arg14: memref<1x3x128xf32, #tpu.memory_space<vmem>>) attributes {dimension_semantics = [#tpu.dimension_semantics<parallel>, #tpu.dimension_semantics<parallel>], iteration_bounds = array<i64: 2, 1>, scalar_prefetch = 0 : i64, scratch_operands = 0 : i64, tpu.core_type = #tpu.core_type<tc>, window_params = [{transform_indices = @transform_0, window_bounds = array<i64: 1, 32, 128>}, {transform_indices = @transform_1, window_bounds = array<i64: 1, 32, 128>}, {transform_indices = @transform_2, window_bounds = array<i64: 1, 32, 128>}, {transform_indices = @transform_3, window_bounds = array<i64: 1, 3, 128>}, {pipeline_mode = #tpu.pipeline_mode<synchronous>, transform_indices = @transform_4, window_bounds = array<i64: 32, 96>}, {pipeline_mode = #tpu.pipeline_mode<synchronous>, transform_indices = @transform_5, window_bounds = array<i64: 32, 3>}, {pipeline_mode = #tpu.pipeline_mode<synchronous>, transform_indices = @transform_6, window_bounds = array<i64: 32, 1>}, {pipeline_mode = #tpu.pipeline_mode<synchronous>, transform_indices = @transform_7, window_bounds = array<i64: 32, 32>}, {pipeline_mode = #tpu.pipeline_mode<synchronous>, transform_indices = @transform_8, window_bounds = array<i64: 32, 1>}, {pipeline_mode = #tpu.pipeline_mode<synchronous>, transform_indices = @transform_9, window_bounds = array<i64: 3, 32>}, {pipeline_mode = #tpu.pipeline_mode<synchronous>, transform_indices = @transform_10, window_bounds = array<i64: 3, 1>}, {transform_indices = @transform_11, window_bounds = array<i64: 1, 32, 128>}, {transform_indices = @transform_12, window_bounds = array<i64: 1, 3, 128>}]} {
    %c0 = arith.constant 0 : index
    %c0_0 = arith.constant 0 : index
    %c0_1 = arith.constant 0 : index
    %0 = vector.load %arg2[%c0, %c0_0, %c0_1] : memref<1x32x128xf32, #tpu.memory_space<vmem>>, vector<1x32x128xf32>
    %1 = vector.shape_cast %0 : vector<1x32x128xf32> to vector<32x128xf32>
    %2 = arith.truncf %1 : vector<32x128xf32> to vector<32x128xbf16>
    %c0_2 = arith.constant 0 : index
    %c0_3 = arith.constant 0 : index
    %c0_4 = arith.constant 0 : index
    %3 = vector.load %arg3[%c0_2, %c0_3, %c0_4] : memref<1x32x128xf32, #tpu.memory_space<vmem>>, vector<1x32x128xf32>
    %4 = vector.shape_cast %3 : vector<1x32x128xf32> to vector<32x128xf32>
    %5 = arith.truncf %4 : vector<32x128xf32> to vector<32x128xbf16>
    %c0_5 = arith.constant 0 : index
    %c0_6 = arith.constant 0 : index
    %c0_7 = arith.constant 0 : index
    %6 = vector.load %arg4[%c0_5, %c0_6, %c0_7] : memref<1x32x128xf32, #tpu.memory_space<vmem>>, vector<1x32x128xf32>
    %7 = vector.shape_cast %6 : vector<1x32x128xf32> to vector<32x128xf32>
    %8 = arith.truncf %7 : vector<32x128xf32> to vector<32x128xbf16>
    %9 = tpu.concatenate %2, %5, %8 in 0 : vector<32x128xbf16>, vector<32x128xbf16>, vector<32x128xbf16> -> vector<96x128xbf16>
    %c0_8 = arith.constant 0 : index
    %c0_9 = arith.constant 0 : index
    %c0_10 = arith.constant 0 : index
    %10 = vector.load %arg5[%c0_8, %c0_9, %c0_10] : memref<1x3x128xf32, #tpu.memory_space<vmem>>, vector<1x3x128xf32>
    %11 = vector.shape_cast %10 : vector<1x3x128xf32> to vector<3x128xf32>
    %c0_11 = arith.constant 0 : index
    %c0_12 = arith.constant 0 : index
    %12 = vector.load %arg6[%c0_11, %c0_12] : memref<32x96xbf16, #tpu.memory_space<vmem>>, vector<32x96xbf16>
    %cst = arith.constant dense<0.000000e+00> : vector<32x128xf32>
    %13 = tpu.matmul %12, %9, %cst {dimension_numbers = #tpu.dot_dimension_numbers<[1], [0], [0], [1], [0, 0, 1, 1], [], []>} : vector<32x96xbf16>, vector<96x128xbf16>, vector<32x128xf32> -> vector<32x128xf32>
    %c0_13 = arith.constant 0 : index
    %c0_14 = arith.constant 0 : index
    %14 = vector.load %arg7[%c0_13, %c0_14] : memref<32x3xf32, #tpu.memory_space<vmem>>, vector<32x3xf32>
    %15 = vector.extract_strided_slice %14 {offsets = [0, 0], sizes = [32, 1], strides = [1, 1]} : vector<32x3xf32> to vector<32x1xf32>
    %16 = vector.extract_strided_slice %11 {offsets = [0, 0], sizes = [1, 128], strides = [1, 1]} : vector<3x128xf32> to vector<1x128xf32>
    %17 = vector.broadcast %15 : vector<32x1xf32> to vector<32x128xf32>
    %18 = vector.broadcast %16 : vector<1x128xf32> to vector<32x128xf32>
    %19 = arith.mulf %17, %18 : vector<32x128xf32>
    %20 = arith.addf %13, %19 : vector<32x128xf32>
    %21 = vector.extract_strided_slice %14 {offsets = [0, 1], sizes = [32, 1], strides = [1, 1]} : vector<32x3xf32> to vector<32x1xf32>
    %22 = vector.extract_strided_slice %11 {offsets = [1, 0], sizes = [1, 128], strides = [1, 1]} : vector<3x128xf32> to vector<1x128xf32>
    %23 = vector.broadcast %21 : vector<32x1xf32> to vector<32x128xf32>
    %24 = vector.broadcast %22 : vector<1x128xf32> to vector<32x128xf32>
    %25 = arith.mulf %23, %24 : vector<32x128xf32>
    %26 = arith.addf %20, %25 : vector<32x128xf32>
    %27 = vector.extract_strided_slice %14 {offsets = [0, 2], sizes = [32, 1], strides = [1, 1]} : vector<32x3xf32> to vector<32x1xf32>
    %28 = vector.extract_strided_slice %11 {offsets = [2, 0], sizes = [1, 128], strides = [1, 1]} : vector<3x128xf32> to vector<1x128xf32>
    %29 = vector.broadcast %27 : vector<32x1xf32> to vector<32x128xf32>
    %30 = vector.broadcast %28 : vector<1x128xf32> to vector<32x128xf32>
    %31 = arith.mulf %29, %30 : vector<32x128xf32>
    %32 = arith.addf %26, %31 : vector<32x128xf32>
    %c0_15 = arith.constant 0 : index
    %c0_16 = arith.constant 0 : index
    %33 = vector.load %arg8[%c0_15, %c0_16] : memref<32x1xf32, #tpu.memory_space<vmem>>, vector<32x1xf32>
    %34 = vector.broadcast %33 : vector<32x1xf32> to vector<32x128xf32>
    %35 = arith.addf %32, %34 : vector<32x128xf32>
    %cst_17 = arith.constant 0.000000e+00 : f32
    %36 = vector.broadcast %cst_17 : f32 to vector<32x128xf32>
    %37 = arith.maximumf %35, %36 : vector<32x128xf32>
    %c0_18 = arith.constant 0 : index
    %c0_19 = arith.constant 0 : index
    %38 = vector.load %arg9[%c0_18, %c0_19] : memref<32x32xbf16, #tpu.memory_space<vmem>>, vector<32x32xbf16>
    %39 = arith.truncf %37 : vector<32x128xf32> to vector<32x128xbf16>
    %cst_20 = arith.constant dense<0.000000e+00> : vector<32x128xf32>
    %40 = tpu.matmul %38, %39, %cst_20 {dimension_numbers = #tpu.dot_dimension_numbers<[1], [0], [0], [1], [0, 0, 1, 1], [], []>} : vector<32x32xbf16>, vector<32x128xbf16>, vector<32x128xf32> -> vector<32x128xf32>
    %c0_21 = arith.constant 0 : index
    %c0_22 = arith.constant 0 : index
    %41 = vector.load %arg10[%c0_21, %c0_22] : memref<32x1xf32, #tpu.memory_space<vmem>>, vector<32x1xf32>
    %42 = vector.broadcast %41 : vector<32x1xf32> to vector<32x128xf32>
    %43 = arith.addf %40, %42 : vector<32x128xf32>
    %cst_23 = arith.constant 0.000000e+00 : f32
    %44 = vector.broadcast %cst_23 : f32 to vector<32x128xf32>
    %45 = arith.maximumf %43, %44 : vector<32x128xf32>
    %c0_24 = arith.constant 0 : index
    %c0_25 = arith.constant 0 : index
    %c0_26 = arith.constant 0 : index
    %46 = vector.load %arg13[%c0_24, %c0_25, %c0_26] : memref<1x32x128xf32, #tpu.memory_space<vmem>>, vector<1x32x128xf32>
    %47 = vector.shape_cast %46 : vector<1x32x128xf32> to vector<32x128xf32>
    %48 = vector.shape_cast %45 : vector<32x128xf32> to vector<1x32x128xf32>
    tpu.vector_store %arg13[%c0_24, %c0_25, %c0_26], %48 {strides = array<i32>} : memref<1x32x128xf32, #tpu.memory_space<vmem>>, vector<1x32x128xf32>,
    %c0_27 = arith.constant 0 : index
    %c0_28 = arith.constant 0 : index
    %49 = vector.load %arg11[%c0_27, %c0_28] : memref<3x32xf32, #tpu.memory_space<vmem>>, vector<3x32xf32>
    %cst_29 = arith.constant dense<0.000000e+00> : vector<3x128xf32>
    %50 = tpu.matmul %49, %45, %cst_29 {dimension_numbers = #tpu.dot_dimension_numbers<[1], [0], [0], [1], [0, 0, 1, 1], [], []>} : vector<3x32xf32>, vector<32x128xf32>, vector<3x128xf32> -> vector<3x128xf32>
    %c0_30 = arith.constant 0 : index
    %c0_31 = arith.constant 0 : index
    %51 = vector.load %arg12[%c0_30, %c0_31] : memref<3x1xf32, #tpu.memory_space<vmem>>, vector<3x1xf32>
    %52 = vector.broadcast %51 : vector<3x1xf32> to vector<3x128xf32>
    %53 = arith.addf %50, %52 : vector<3x128xf32>
    %54 = arith.addf %11, %53 : vector<3x128xf32>
    %c0_32 = arith.constant 0 : index
    %c0_33 = arith.constant 0 : index
    %c0_34 = arith.constant 0 : index
    %55 = vector.load %arg14[%c0_32, %c0_33, %c0_34] : memref<1x3x128xf32, #tpu.memory_space<vmem>>, vector<1x3x128xf32>
    %56 = vector.shape_cast %55 : vector<1x3x128xf32> to vector<3x128xf32>
    %57 = vector.shape_cast %54 : vector<3x128xf32> to vector<1x3x128xf32>
    tpu.vector_store %arg14[%c0_32, %c0_33, %c0_34], %57 {strides = array<i32>} : memref<1x3x128xf32, #tpu.memory_space<vmem>>, vector<1x3x128xf32>,
    return
  }
  func.func @transform_0(%arg0: i32, %arg1: i32) -> (i32, i32, i32) {
    %c0_i32 = arith.constant 0 : i32
    %c0_i32_0 = arith.constant 0 : i32
    return %arg0, %c0_i32, %arg1 : i32, i32, i32
  }
  func.func @transform_1(%arg0: i32, %arg1: i32) -> (i32, i32, i32) {
    %c0_i32 = arith.constant 0 : i32
    %c0_i32_0 = arith.constant 0 : i32
    return %arg0, %c0_i32, %arg1 : i32, i32, i32
  }
  func.func @transform_2(%arg0: i32, %arg1: i32) -> (i32, i32, i32) {
    %c0_i32 = arith.constant 0 : i32
    %c0_i32_0 = arith.constant 0 : i32
    return %arg0, %c0_i32, %arg1 : i32, i32, i32
  }
  func.func @transform_3(%arg0: i32, %arg1: i32) -> (i32, i32, i32) {
    %c0_i32 = arith.constant 0 : i32
    %c0_i32_0 = arith.constant 0 : i32
    return %arg0, %c0_i32, %arg1 : i32, i32, i32
  }
  func.func @transform_4(%arg0: i32, %arg1: i32) -> (i32, i32) {
    %c0_i32 = arith.constant 0 : i32
    %c0_i32_0 = arith.constant 0 : i32
    %c0_i32_1 = arith.constant 0 : i32
    return %c0_i32, %c0_i32_0 : i32, i32
  }
  func.func @transform_5(%arg0: i32, %arg1: i32) -> (i32, i32) {
    %c0_i32 = arith.constant 0 : i32
    %c0_i32_0 = arith.constant 0 : i32
    %c0_i32_1 = arith.constant 0 : i32
    return %c0_i32, %c0_i32_0 : i32, i32
  }
  func.func @transform_6(%arg0: i32, %arg1: i32) -> (i32, i32) {
    %c0_i32 = arith.constant 0 : i32
    %c0_i32_0 = arith.constant 0 : i32
    %c0_i32_1 = arith.constant 0 : i32
    return %c0_i32, %c0_i32_0 : i32, i32
  }
  func.func @transform_7(%arg0: i32, %arg1: i32) -> (i32, i32) {
    %c0_i32 = arith.constant 0 : i32
    %c0_i32_0 = arith.constant 0 : i32
    %c0_i32_1 = arith.constant 0 : i32
    return %c0_i32, %c0_i32_0 : i32, i32
  }
  func.func @transform_8(%arg0: i32, %arg1: i32) -> (i32, i32) {
    %c0_i32 = arith.constant 0 : i32
    %c0_i32_0 = arith.constant 0 : i32
    %c0_i32_1 = arith.constant 0 : i32
    return %c0_i32, %c0_i32_0 : i32, i32
  }
  func.func @transform_9(%arg0: i32, %arg1: i32) -> (i32, i32) {
    %c0_i32 = arith.constant 0 : i32
    %c0_i32_0 = arith.constant 0 : i32
    %c0_i32_1 = arith.constant 0 : i32
    return %c0_i32, %c0_i32_0 : i32, i32
  }
  func.func @transform_10(%arg0: i32, %arg1: i32) -> (i32, i32) {
    %c0_i32 = arith.constant 0 : i32
    %c0_i32_0 = arith.constant 0 : i32
    %c0_i32_1 = arith.constant 0 : i32
    return %c0_i32, %c0_i32_0 : i32, i32
  }
  func.func @transform_11(%arg0: i32, %arg1: i32) -> (i32, i32, i32) {
    %c0_i32 = arith.constant 0 : i32
    %c0_i32_0 = arith.constant 0 : i32
    return %arg0, %c0_i32, %arg1 : i32, i32, i32
  }
  func.func @transform_12(%arg0: i32, %arg1: i32) -> (i32, i32, i32) {
    %c0_i32 = arith.constant 0 : i32
    %c0_i32_0 = arith.constant 0 : i32
    return %arg0, %c0_i32, %arg1 : i32, i32, i32
  }
}

</mosaic_0001>

<bundles_post_ra>
// kernel: _lambda_.4
= control target key start
LH: loop header
LB: loop body
LE: loop exit
PB: predicated region body
PF: predicated region fallthrough
CT: control target
= control target key end

     0   :  { %s3019_s12 = smov 0   ;;  %s3021_s13 = smov 0   ;;  %s4827_s0 = inlined_call_operand.vmem [shape: f32[2,128,3], index: 0, kind: input, shape index: {}]   ;;  %s4828_s1 = inlined_call_operand.vmem [shape: f32[2,3,128], index: 1, kind: input, shape index: {}]   ;;  %s4829_s2 = inlined_call_operand.vmem [shape: f32[2,128,5], index: 2, kind: output, shape index: {0}]   ;;  %s4830_s3 = inlined_call_operand.vmem [shape: s32[2,128,5], index: 3, kind: output, shape index: {1}]  }
   0x1   :  { %s3023_s14 = smov 0  }
   0x2 LB: > { %s33_s15 = sadd.s32 1, %s2990_s13  ;;  %p2894_p0 = scmp.ge.s32.totalorder %s2994_s14, 1  ;;  %s2994_s14 = sphi %s3023_s14, %s14_s14   ;;  %s2990_s13 = sphi %s3021_s13, %s5041_s13   ;;  %s2986_s12 = sphi %s3019_s12, %s5040_s12  }
   0x3   : > { %p35_p1 = scmp.ge.s32.totalorder %s33_s15, 2  ;;  %p184_p2 = scmp.lt.s32.totalorder %s2994_s14, 3 }
   0x5   : > { %s5043_s15 = smov (%p35_p1, %s33_s15), 0  ;;  %p185_p3 = pnand %p2894_p0, %p184_p2 }
   0x7   : > { %188 = sbr.rel (%p185_p3) target bundleno = 1701 (0x6a5), region = 28 }
   0xe   : > { %p233_p4 = scmp.lt.s32.totalorder %s2986_s12, 1  ;;  %v2996_v0 = vmov 0   ;;  %v2997_v17 = vmov 1   ;;  %v2998_v18 = vmov 2   ;;  %v366_v43 = vlaneseq }
   0xf   : > { %2967 = vset.pattern.permute.xlu1 %v2996_v0  ;;  %2966 = vset.pattern.permute.xlu0 %v2996_v0 }
  0x10   : > { %s5045_s12 = smov (!%p233_p4, %s2986_s12), 1  ;;  %v367_v46 = vshrl.u32 %v366_v43, 7 }
  0x11   : > { %s3040_s16 = sshll.u32 %s5045_s12, 7  ;;  %s2897_s20 = sshll.u32 %s5045_s12, 2 }
  0x12   : > { %s240_s19 = scalar_lea.vmem %s4827_s0, %s3040_s16  ;;  %s248_s23 = scalar_lea.vmem %s4828_s1, %s2897_s20  ;;  %v484_v47 = vsub.s32 1, %v367_v46  ;;  %v368_v50 = vsub.s32 0, %v367_v46  ;;  %v600_v56 = vsub.s32 2, %v367_v46 }
  0x13   : > { %v271_v1 = vld [vmem:[%s240_s19 + $0x10] sm:$0xff]  ;;  %v269_v2 = vld [vmem:[%s240_s19] sm:$0xff]  ;;  %v272_v3 = vld [vmem:[%s240_s19 + $0x18] sm:$0xff]  ;;  %s4626_s26 = scalar_lea.vmem %s4829_s2, %s3040_s16  ;;  %s4744_s29 = scalar_lea.vmem %s4830_s3, %s3040_s16 }
  0x14   : > { %298 = vperm.xlu1 %2967, %v271_v1   ;;  %288 = vperm.xlu0 %2966, %v269_v2   ;;  %v270_v4 = vld [vmem:[%s240_s19 + $0x8] sm:$0xff]  ;;  %v273_v6 = vld [vmem:[%s240_s19 + $0x20] sm:$0xff]  ;;  %v276_v7 = vld [vmem:[%s240_s19 + $0x38] sm:$0xff] }
  0x15   : > { %v274_v5 = vld [vmem:[%s240_s19 + $0x28] sm:$0xff]  ;;  %v275_v8 = vld [vmem:[%s240_s19 + $0x30] sm:$0xff]  ;;  %v277_v10 = vld [vmem:[%s240_s19 + $0x40] sm:$0xff] }
  0x16   : > { %v278_v9 = vld [vmem:[%s240_s19 + $0x48] sm:$0xff]  ;;  %v280_v11 = vld [vmem:[%s240_s19 + $0x58] sm:$0xff]  ;;  %v279_v12 = vld [vmem:[%s240_s19 + $0x50] sm:$0xff] }
  0x17   : > { %v282_v13 = vld [vmem:[%s240_s19 + $0x68] sm:$0xff]  ;;  %v281_v14 = vld [vmem:[%s240_s19 + $0x60] sm:$0xff]  ;;  %v284_v15 = vld [vmem:[%s240_s19 + $0x78] sm:$0xff] }
  0x18   : > { %303 = vperm.xlu1 %2967, %v272_v3   ;;  %293 = vperm.xlu0 %2966, %v270_v4   ;;  %v283_v16 = vld [vmem:[%s240_s19 + $0x70] sm:$0xff]  ;;  %v285_v51 = vld [vmem:[%s248_s23] sm:$0x7] }
  0x19   : > { %v3079_v52 = vrot.slane %v285_v51, %v484_v47  ;;  %v3085_v55 = vrot.slane %v285_v51, %v368_v50  ;;  %v3094_v62 = vrot.slane %v285_v51, %v600_v56 }
  0x1c   : > { %313 = vperm.xlu1 %2967, %v274_v5   ;;  %308 = vperm.xlu0 %2966, %v273_v6  }
  0x20   : > { %323 = vperm.xlu1 %2967, %v276_v7   ;;  %318 = vperm.xlu0 %2966, %v275_v8  }
  0x24   : > { %333 = vperm.xlu1 %2967, %v278_v9   ;;  %328 = vperm.xlu0 %2966, %v277_v10  }
  0x28   : > { %343 = vperm.xlu1 %2967, %v280_v11   ;;  %338 = vperm.xlu0 %2966, %v279_v12  }
  0x2c   : > { %353 = vperm.xlu1 %2967, %v282_v13   ;;  %348 = vperm.xlu0 %2966, %v281_v14  }
  0x30   : > { %363 = vperm.xlu1 %2967, %v284_v15   ;;  %358 = vperm.xlu0 %2966, %v283_v16  }
  0x34   : > { %2969 = vset.pattern.permute.xlu1 %v2997_v17  ;;  %2968 = vset.pattern.permute.xlu0 %v2997_v17 }
  0x35   : > { %423 = vperm.xlu1 %2969, %v270_v4   ;;  %419 = vperm.xlu0 %2968, %v269_v2  }
  0x39   : > { %427 = vperm.xlu1 %2969, %v271_v1   ;;  %431 = vperm.xlu0 %2968, %v272_v3  }
  0x3d   : > { %435 = vperm.xlu1 %2969, %v273_v6   ;;  %439 = vperm.xlu0 %2968, %v274_v5  }
  0x41   : > { %443 = vperm.xlu1 %2969, %v275_v8   ;;  %447 = vperm.xlu0 %2968, %v276_v7  }
  0x45   : > { %451 = vperm.xlu1 %2969, %v277_v10   ;;  %455 = vperm.xlu0 %2968, %v278_v9  }
  0x49   : > { %459 = vperm.xlu1 %2969, %v279_v12   ;;  %463 = vperm.xlu0 %2968, %v280_v11  }
  0x4d   : > { %467 = vperm.xlu1 %2969, %v281_v14   ;;  %471 = vperm.xlu0 %2968, %v282_v13  }
  0x51   : > { %475 = vperm.xlu1 %2969, %v283_v16   ;;  %479 = vperm.xlu0 %2968, %v284_v15  }
  0x55   : > { %2970 = vset.pattern.permute.xlu1 %v2998_v18  ;;  %2971 = vset.pattern.permute.xlu0 %v2998_v18 }
  0x56   : > { %535 = vperm.xlu1 %2970, %v269_v2   ;;  %539 = vperm.xlu0 %2971, %v270_v4  }
  0x5a   : > { %543 = vperm.xlu1 %2970, %v271_v1   ;;  %551 = vperm.xlu0 %2971, %v273_v6  }
  0x5e   : > { %547 = vperm.xlu1 %2970, %v272_v3   ;;  %559 = vperm.xlu0 %2971, %v275_v8  }
  0x62   : > { %555 = vperm.xlu1 %2970, %v274_v5   ;;  %567 = vperm.xlu0 %2971, %v277_v10  }
  0x66   : > { %563 = vperm.xlu1 %2970, %v276_v7   ;;  %575 = vperm.xlu0 %2971, %v279_v12  }
  0x6a   : > { %571 = vperm.xlu1 %2970, %v278_v9   ;;  %583 = vperm.xlu0 %2971, %v281_v14  }
  0x6e   : > { %579 = vperm.xlu1 %2970, %v280_v11   ;;  %591 = vperm.xlu0 %2971, %v283_v16  }
  0x72   : > { %587 = vperm.xlu1 %2970, %v282_v13  }
  0x76   : > { %595 = vperm.xlu1 %2970, %v284_v15  }
  0x93   : > { %v299_v19 = vpop.permute.xlu1 %298  ;;  %v289_v20 = vpop.permute.xlu0 %288 }
  0x94   : > { %v372_v61 = vsub.f32 %v299_v19, %v3085_v55  ;;  %v370_v63 = vsub.f32 %v289_v20, %v3085_v55 }
  0x96   : > { %v388_v6 = vmul.f32 %v372_v61, %v372_v61  ;;  %v386_v12 = vmul.f32 %v370_v63, %v370_v63 }
  0x97   : > { %v304_v21 = vpop.permute.xlu1 %303  ;;  %v294_v22 = vpop.permute.xlu0 %293 }
  0x98   : > { %v371_v0 = vsub.f32 %v294_v22, %v3085_v55  ;;  %v373_v1 = vsub.f32 %v304_v21, %v3085_v55 }
  0x9a   : > { %v387_v13 = vmul.f32 %v371_v0, %v371_v0  ;;  %v389_v16 = vmul.f32 %v373_v1, %v373_v1 }
  0x9b   : > { %v314_v23 = vpop.permute.xlu1 %313  ;;  %v309_v24 = vpop.permute.xlu0 %308 }
  0x9c   : > { %v375_v7 = vsub.f32 %v314_v23, %v3085_v55  ;;  %v374_v8 = vsub.f32 %v309_v24, %v3085_v55 }
  0x9e   : > { %v391_v24 = vmul.f32 %v375_v7, %v375_v7 }
  0x9f   : > { %v3046_v25 = vpop.permute.xlu1 %323  ;;  %v3048_v26 = vpop.permute.xlu0 %318 }
  0xa0   : > { %v377_v0 = vsub.f32 %v3046_v25, %v3085_v55 }
  0xa3   : > { %v3050_v27 = vpop.permute.xlu1 %333  ;;  %v3052_v28 = vpop.permute.xlu0 %328 }
  0xa7   : > { %v3054_v29 = vpop.permute.xlu1 %343  ;;  %v3056_v30 = vpop.permute.xlu0 %338 }
  0xab   : > { %v3058_v31 = vpop.permute.xlu1 %353  ;;  %v3060_v32 = vpop.permute.xlu0 %348 }
  0xaf   : > { %v3062_v33 = vpop.permute.xlu1 %363  ;;  %v3064_v34 = vpop.permute.xlu0 %358 }
  0xb4   : > { %v424_v35 = vpop.permute.xlu1 %423  ;;  %v420_v36 = vpop.permute.xlu0 %419 }
  0xb5   : > { %v487_v57 = vsub.f32 %v424_v35, %v3079_v52  ;;  %v486_v58 = vsub.f32 %v420_v36, %v3079_v52  ;;  %v390_v35 = vmul.f32 %v374_v8, %v374_v8  ;;  %v376_v36 = vsub.f32 %v3048_v26, %v3085_v55 }
  0xb7   : > { %v503_v4 = vmul.f32 %v487_v57, %v487_v57  ;;  %v502_v5 = vmul.f32 %v486_v58, %v486_v58  ;;  %v392_v1 = vmul.f32 %v376_v36, %v376_v36 }
  0xb8   : > { %v428_v37 = vpop.permute.xlu1 %427  ;;  %v432_v38 = vpop.permute.xlu0 %431 }
  0xb9   : > { %v488_v2 = vsub.f32 %v428_v37, %v3079_v52  ;;  %v489_v9 = vsub.f32 %v432_v38, %v3079_v52  ;;  %v519_v20 = vadd.f32 %v503_v4, %v387_v13  ;;  %v518_v21 = vadd.f32 %v502_v5, %v386_v12 }
  0xbb   : > { %v504_v17 = vmul.f32 %v488_v2, %v488_v2  ;;  %v505_v37 = vmul.f32 %v489_v9, %v489_v9  ;;  %v378_v2 = vsub.f32 %v3052_v28, %v3085_v55 }
  0xbc   : > { %v436_v39 = vpop.permute.xlu1 %435  ;;  %v440_v40 = vpop.permute.xlu0 %439 }
  0xbd   : > { %v490_v3 = vsub.f32 %v436_v39, %v3079_v52  ;;  %v491_v57 = vsub.f32 %v440_v40, %v3079_v52  ;;  %v521_v8 = vadd.f32 %v505_v37, %v389_v16  ;;  %v394_v13 = vmul.f32 %v378_v2, %v378_v2 }
  0xbe   : > { %v381_v2 = vsub.f32 %v3054_v29, %v3085_v55 }
  0xbf   : > { %v506_v18 = vmul.f32 %v490_v3, %v490_v3  ;;  %v507_v9 = vmul.f32 %v491_v57, %v491_v57 }
  0xc0   : > { %v444_v41 = vpop.permute.xlu1 %443  ;;  %v3066_v42 = vpop.permute.xlu0 %447 }
  0xc1   : > { %v492_v19 = vsub.f32 %v444_v41, %v3079_v52  ;;  %v520_v41 = vadd.f32 %v504_v17, %v388_v6  ;;  %v522_v56 = vadd.f32 %v506_v18, %v390_v35  ;;  %v493_v3 = vsub.f32 %v3066_v42, %v3079_v52 }
  0xc2   : > { %v393_v42 = vmul.f32 %v377_v0, %v377_v0 }
  0xc3   : > { %v508_v58 = vmul.f32 %v492_v19, %v492_v19 }
  0xc4   : > { %v452_v44 = vpop.permute.xlu1 %451  ;;  %v3069_v45 = vpop.permute.xlu0 %455 }
  0xc5   : > { %v494_v61 = vsub.f32 %v452_v44, %v3079_v52  ;;  %v524_v25 = vadd.f32 %v508_v58, %v392_v1 }
  0xc7   : > { %v510_v28 = vmul.f32 %v494_v61, %v494_v61 }
  0xc8   : > { %v3075_v48 = vpop.permute.xlu1 %459  ;;  %v3077_v49 = vpop.permute.xlu0 %463 }
  0xcc   : > { %v3081_v53 = vpop.permute.xlu1 %467  ;;  %v3083_v54 = vpop.permute.xlu0 %471 }
  0xcd   : > { %v498_v35 = vsub.f32 %v3081_v53, %v3079_v52  ;;  %v499_v29 = vsub.f32 %v3083_v54, %v3079_v52 }
  0xd0   : > { %v3089_v59 = vpop.permute.xlu1 %475  ;;  %v3091_v60 = vpop.permute.xlu0 %479 }
  0xd5   : > { %v536_v10 = vpop.permute.xlu1 %535  ;;  %v540_v11 = vpop.permute.xlu0 %539 }
  0xd6   : > { %v602_v14 = vsub.f32 %v536_v10, %v3094_v62  ;;  %v603_v15 = vsub.f32 %v540_v11, %v3094_v62  ;;  %v496_v10 = vsub.f32 %v3075_v48, %v3079_v52 }
  0xd8   : > { %v618_v22 = vmul.f32 %v602_v14, %v602_v14  ;;  %v619_v23 = vmul.f32 %v603_v15, %v603_v15  ;;  %v380_v14 = vsub.f32 %v3056_v30, %v3085_v55  ;;  %v509_v15 = vmul.f32 %v493_v3, %v493_v3 }
  0xd9   : > { %v544_v38 = vpop.permute.xlu1 %543  ;;  %v552_v39 = vpop.permute.xlu0 %551  ;;  %v526_v30 = vadd.f32 %v510_v28, %v394_v13 }
  0xda   : > { %v604_v46 = vsub.f32 %v544_v38, %v3094_v62  ;;  %v606_v47 = vsub.f32 %v552_v39, %v3094_v62  ;;  %v3111_v50 = vadd.f32 %v618_v22, %v518_v21  ;;  %v3113_v51 = vadd.f32 %v619_v23, %v519_v20 }
  0xdb   : > { %v523_v21 = vadd.f32 %v507_v9, %v391_v24  ;;  %v495_v22 = vsub.f32 %v3069_v45, %v3079_v52  ;;  %v512_v23 = vmul.f32 %v496_v10, %v496_v10  ;;  %v379_v38 = vsub.f32 %v3050_v27, %v3085_v55 }
  0xdc   : > { %v620_v63 = vmul.f32 %v604_v46, %v604_v46  ;;  %v622_v26 = vmul.f32 %v606_v47, %v606_v47  ;;  %656 = vmin.xlane.f32.xlu0 %v3111_v50  ;;  %658 = vmin.xlane.f32.xlu1 %v3113_v51  ;;  %v396_v39 = vmul.f32 %v380_v14, %v380_v14 }
  0xdd   : > { %v548_v40 = vpop.permute.xlu1 %547  ;;  %v560_v4 = vpop.permute.xlu0 %559  ;;  %v382_v24 = vsub.f32 %v3060_v32, %v3085_v55  ;;  %v525_v46 = vadd.f32 %v509_v15, %v393_v42  ;;  %v511_v58 = vmul.f32 %v495_v22, %v495_v22  ;;  %v497_v27 = vsub.f32 %v3077_v49, %v3079_v52 }
  0xde   : > { %v605_v44 = vsub.f32 %v548_v40, %v3094_v62  ;;  %v608_v5 = vsub.f32 %v560_v4, %v3094_v62  ;;  %v3127_v6 = vadd.f32 %v620_v63, %v520_v41  ;;  %v3129_v7 = vadd.f32 %v622_v26, %v522_v56 }
  0xdf   : > { %v528_v61 = vadd.f32 %v512_v23, %v396_v39  ;;  %v514_v63 = vmul.f32 %v498_v35, %v498_v35  ;;  %v500_v32 = vsub.f32 %v3089_v59, %v3079_v52  ;;  %v395_v1 = vmul.f32 %v379_v38, %v379_v38 }
  0xe0   : > { %v621_v11 = vmul.f32 %v605_v44, %v605_v44  ;;  %v624_v12 = vmul.f32 %v608_v5, %v608_v5  ;;  %660 = vmin.xlane.f32.xlu0 %v3127_v6  ;;  %664 = vmin.xlane.f32.xlu1 %v3129_v7  ;;  %v398_v3 = vmul.f32 %v382_v24, %v382_v24 }
  0xe1   : > { %v556_v17 = vpop.permute.xlu1 %555  ;;  %v568_v16 = vpop.permute.xlu0 %567  ;;  %v384_v40 = vsub.f32 %v3064_v34, %v3085_v55  ;;  %v527_v9 = vadd.f32 %v511_v58, %v395_v1  ;;  %v516_v28 = vmul.f32 %v500_v32, %v500_v32  ;;  %v397_v34 = vmul.f32 %v381_v2, %v381_v2 }
  0xe2   : > { %v607_v18 = vsub.f32 %v556_v17, %v3094_v62  ;;  %v610_v19 = vsub.f32 %v568_v16, %v3094_v62  ;;  %v3139_v48 = vadd.f32 %v621_v11, %v521_v8  ;;  %v3141_v20 = vadd.f32 %v624_v12, %v524_v25 }
  0xe3   : > { %v513_v25 = vmul.f32 %v497_v27, %v497_v27  ;;  %v530_v10 = vadd.f32 %v514_v63, %v398_v3  ;;  %v383_v42 = vsub.f32 %v3058_v31, %v3085_v55  ;;  %v400_v13 = vmul.f32 %v384_v40, %v384_v40 }
  0xe4   : > { %v623_v36 = vmul.f32 %v607_v18, %v607_v18  ;;  %v626_v37 = vmul.f32 %v610_v19, %v610_v19  ;;  %662 = vmin.xlane.f32.xlu0 %v3139_v48  ;;  %668 = vmin.xlane.f32.xlu1 %v3141_v20  ;;  %v501_v22 = vsub.f32 %v3091_v60, %v3079_v52 }
  0xe5   : > { %v564_v45 = vpop.permute.xlu1 %563  ;;  %v576_v47 = vpop.permute.xlu0 %575  ;;  %v529_v19 = vadd.f32 %v513_v25, %v397_v34  ;;  %v532_v23 = vadd.f32 %v516_v28, %v400_v13  ;;  %v399_v31 = vmul.f32 %v383_v42, %v383_v42 }
  0xe6   : > { %v609_v41 = vsub.f32 %v564_v45, %v3094_v62  ;;  %v612_v53 = vsub.f32 %v576_v47, %v3094_v62  ;;  %v3155_v56 = vadd.f32 %v623_v36, %v523_v21  ;;  %v3157_v57 = vadd.f32 %v626_v37, %v526_v30 }
  0xe7   : > { %v515_v21 = vmul.f32 %v499_v29, %v499_v29  ;;  %v385_v37 = vsub.f32 %v3062_v33, %v3085_v55  ;;  %v517_v52 = vmul.f32 %v501_v22, %v501_v22 }
  0xe8   : > { %v625_v26 = vmul.f32 %v609_v41, %v609_v41  ;;  %v628_v0 = vmul.f32 %v612_v53, %v612_v53  ;;  %666 = vmin.xlane.f32.xlu0 %v3155_v56  ;;  %672 = vmin.xlane.f32.xlu1 %v3157_v57 }
  0xe9   : > { %v572_v4 = vpop.permute.xlu1 %571  ;;  %v584_v49 = vpop.permute.xlu0 %583  ;;  %v401_v47 = vmul.f32 %v385_v37, %v385_v37 }
  0xea   : > { %v611_v44 = vsub.f32 %v572_v4, %v3094_v62  ;;  %v614_v59 = vsub.f32 %v584_v49, %v3094_v62  ;;  %v3171_v5 = vadd.f32 %v625_v26, %v525_v46  ;;  %v3173_v8 = vadd.f32 %v628_v0, %v528_v61 }
  0xeb   : > { %v531_v46 = vadd.f32 %v515_v21, %v399_v31  ;;  %v533_v33 = vadd.f32 %v517_v52, %v401_v47  ;;  %v652_v61 = vand.u32 127, %v366_v43 }
  0xec   : > { %v627_v11 = vmul.f32 %v611_v44, %v611_v44  ;;  %v630_v12 = vmul.f32 %v614_v59, %v614_v59  ;;  %670 = vmin.xlane.f32.xlu0 %v3171_v5  ;;  %676 = vmin.xlane.f32.xlu1 %v3173_v8 }
  0xed   : > { %v580_v14 = vpop.permute.xlu1 %579  ;;  %v592_v15 = vpop.permute.xlu0 %591  ;;  %v3208_v27 = vcvt.s32.f32 %v652_v61 }
  0xee   : > { %v613_v17 = vsub.f32 %v580_v14, %v3094_v62  ;;  %v616_v16 = vsub.f32 %v592_v15, %v3094_v62  ;;  %v3183_v18 = vadd.f32 %v627_v11, %v527_v9  ;;  %v3185_v54 = vadd.f32 %v630_v12, %v530_v10 }
  0xf0   : > { %v629_v35 = vmul.f32 %v613_v17, %v613_v17  ;;  %v632_v30 = vmul.f32 %v616_v16, %v616_v16  ;;  %674 = vmin.xlane.f32.xlu0 %v3183_v18  ;;  %680 = vmin.xlane.f32.xlu1 %v3185_v54 }
  0xf1   : > { %v588_v36 = vpop.permute.xlu1 %587 }
  0xf2   : > { %v615_v38 = vsub.f32 %v588_v36, %v3094_v62  ;;  %v3194_v39 = vadd.f32 %v629_v35, %v529_v19  ;;  %v3196_v24 = vadd.f32 %v632_v30, %v532_v23 }
  0xf4   : > { %v631_v60 = vmul.f32 %v615_v38, %v615_v38  ;;  %678 = vmin.xlane.f32.xlu0 %v3194_v39  ;;  %684 = vmin.xlane.f32.xlu1 %v3196_v24 }
  0xf5   : > { %v596_v45 = vpop.permute.xlu1 %595 }
  0xf6   : > { %v617_v41 = vsub.f32 %v596_v45, %v3094_v62  ;;  %v3201_v53 = vadd.f32 %v631_v60, %v531_v46 }
  0xf8   : > { %v633_v55 = vmul.f32 %v617_v41, %v617_v41  ;;  %682 = vmin.xlane.f32.xlu0 %v3201_v53 }
  0xfa   : > { %v3204_v58 = vadd.f32 %v633_v55, %v533_v33 }
  0xfc   : > { %686 = vmin.xlane.f32.xlu0 %v3204_v58 }
 0x169   : > { %v3210_v63 = vpop.xlane.xlu1 %658  ;;  %v3212_v32 = vpop.xlane.xlu0 %656 }
 0x16a   : > { %vm689_vm0 = vcmp.eq.f32.partialorder %v3113_v51, %v3210_v63  ;;  %vm688_vm1 = vcmp.eq.f32.partialorder %v3111_v50, %v3212_v32 }
 0x16b   : > { %v705_v62 = vsel %vm689_vm0, %v3208_v27, inf  ;;  %v704_v43 = vsel %vm688_vm1, %v3208_v27, inf }
 0x16c   : > { %722 = vmin.xlane.f32.xlu0 %v705_v62  ;;  %720 = vmin.xlane.f32.xlu1 %v704_v43 }
 0x16d   : > { %v3226_v26 = vpop.xlane.xlu1 %664  ;;  %v3228_v0 = vpop.xlane.xlu0 %660 }
 0x16e   : > { %vm690_vm2 = vcmp.eq.f32.partialorder %v3127_v6, %v3228_v0  ;;  %vm692_vm3 = vcmp.eq.f32.partialorder %v3129_v7, %v3226_v26 }
 0x16f   : > { %v706_v1 = vsel %vm690_vm2, %v3208_v27, inf  ;;  %v708_v40 = vsel %vm692_vm3, %v3208_v27, inf }
 0x170   : > { %724 = vmin.xlane.f32.xlu1 %v706_v1 }
 0x171   : > { %v3238_v2 = vpop.xlane.xlu1 %668  ;;  %v3240_v3 = vpop.xlane.xlu0 %662 }
 0x172   : > { %vm691_vm4 = vcmp.eq.f32.partialorder %v3139_v48, %v3240_v3  ;;  %vm694_vm5 = vcmp.eq.f32.partialorder %v3141_v20, %v3238_v2 }
 0x173   : > { %v707_v4 = vsel %vm691_vm4, %v3208_v27, inf  ;;  %v710_v59 = vsel %vm694_vm5, %v3208_v27, inf }
 0x174   : > { %728 = vmin.xlane.f32.xlu1 %v708_v40  ;;  %726 = vmin.xlane.f32.xlu0 %v707_v4 }
 0x175   : > { %v3254_v49 = vpop.xlane.xlu1 %672  ;;  %v3256_v44 = vpop.xlane.xlu0 %666 }
 0x176   : > { %vm693_vm6 = vcmp.eq.f32.partialorder %v3155_v56, %v3256_v44  ;;  %vm696_vm7 = vcmp.eq.f32.partialorder %v3157_v57, %v3254_v49 }
 0x177   : > { %v709_v9 = vsel %vm693_vm6, %v3208_v27, inf  ;;  %v712_v29 = vsel %vm696_vm7, %v3208_v27, inf }
 0x178   : > { %732 = vmin.xlane.f32.xlu1 %v710_v59  ;;  %730 = vmin.xlane.f32.xlu0 %v709_v9 }
 0x179   : > { %v3270_v25 = vpop.xlane.xlu1 %676  ;;  %v3272_v10 = vpop.xlane.xlu0 %670 }
 0x17a   : > { %vm695_vm8 = vcmp.eq.f32.partialorder %v3171_v5, %v3272_v10  ;;  %vm698_vm9 = vcmp.eq.f32.partialorder %v3173_v8, %v3270_v25 }
 0x17b   : > { %v711_v28 = vsel %vm695_vm8, %v3208_v27, inf  ;;  %v714_v34 = vsel %vm698_vm9, %v3208_v27, inf }
 0x17c   : > { %736 = vmin.xlane.f32.xlu1 %v712_v29  ;;  %734 = vmin.xlane.f32.xlu0 %v711_v28 }
 0x17d   : > { %v3286_v11 = vpop.xlane.xlu1 %680  ;;  %v3288_v12 = vpop.xlane.xlu0 %674 }
 0x17e   : > { %vm697_vm10 = vcmp.eq.f32.partialorder %v3183_v18, %v3288_v12  ;;  %vm4835_vm11 = vcmp.eq.f32.partialorder %v3185_v54, %v3286_v11 }
 0x17f   : > { %v713_v42 = vsel %vm697_vm10, %v3208_v27, inf  ;;  %v716_v15 = vsel %vm4835_vm11, %v3208_v27, inf }
 0x180   : > { %740 = vmin.xlane.f32.xlu1 %v714_v34  ;;  %738 = vmin.xlane.f32.xlu0 %v713_v42 }
 0x181   : > { %v3302_v13 = vpop.xlane.xlu1 %684  ;;  %v3304_v14 = vpop.xlane.xlu0 %678 }
 0x182   : > { %4908 = vst [vmem:[#allocation2_spill] sm:$0xff] %v3302_v13  ;;  %vm4833_vm12 = vcmp.eq.f32.partialorder %v3194_v39, %v3304_v14  ;;  %vm4832_vm13 = vcmp.eq.f32.partialorder %v3196_v24, %v3302_v13 }
 0x183   : > { %v715_v17 = vsel %vm4833_vm12, %v3208_v27, inf  ;;  %v718_v19 = vsel %vm4832_vm13, %v3208_v27, inf }
 0x184   : > { %744 = vmin.xlane.f32.xlu1 %v716_v15  ;;  %742 = vmin.xlane.f32.xlu0 %v715_v17 }
 0x185   : > { %v3318_v16 = vpop.xlane.xlu0 %682 }
 0x186   : > { %4909 = vst [vmem:[#allocation3_spill] sm:$0xff] %v3318_v16  ;;  %vm4831_vm14 = vcmp.eq.f32.partialorder %v3201_v53, %v3318_v16 }
 0x187   : > { %v717_v21 = vsel %vm4831_vm14, %v3208_v27, inf }
 0x188   : > { %748 = vmin.xlane.f32.xlu1 %v718_v19  ;;  %746 = vmin.xlane.f32.xlu0 %v717_v21 }
 0x189   : > { %v3330_v22 = vpop.xlane.xlu0 %686 }
 0x18a   : > { %4910 = vst [vmem:[#allocation4_spill] sm:$0xff] %v3330_v22  ;;  %vm4834_vm15 = vcmp.eq.f32.partialorder %v3204_v58, %v3330_v22 }
 0x18b   : > { %v719_v23 = vsel %vm4834_vm15, %v3208_v27, inf }
 0x18c   : > { %750 = vmin.xlane.f32.xlu0 %v719_v23 }
 0x1f9   : > { %v3338_v35 = vpop.xlane.xlu1 %720  ;;  %v3340_v30 = vpop.xlane.xlu0 %722 }
 0x1fa   : > { %4911 = vst [vmem:[#allocation5_spill] sm:$0xff] %v3338_v35  ;;  %4912 = vst [vmem:[#allocation6_spill] sm:$0xff] %v3340_v30  ;;  %vm752_vm14 = vcmp.eq.f32.partialorder %v3208_v27, %v3338_v35  ;;  %vm753_vm13 = vcmp.eq.f32.partialorder %v3208_v27, %v3340_v30 }
 0x1fb   : > { %vm768_vm12 = vmand %vm688_vm1, %vm752_vm14 }
 0x1fc   : > { %v3350_v31 = vsel %vm768_vm12, inf, %v3111_v50  ;;  %vm769_vm15 = vmand %vm689_vm0, %vm753_vm13 }
 0x1fd   : > { %800 = vmin.xlane.f32.xlu1 %v3350_v31  ;;  %v3356_v36 = vpop.xlane.xlu1 %724  ;;  %v3359_v37 = vsel %vm769_vm15, inf, %v3113_v51 }
 0x1fe   : > { %4913 = vst [vmem:[#allocation7_spill] sm:$0xff] %v3356_v36  ;;  %vm754_vm11 = vcmp.eq.f32.partialorder %v3208_v27, %v3356_v36  ;;  %802 = vmin.xlane.f32.xlu0 %v3359_v37 }
 0x1ff   : > { %vm770_vm1 = vmand %vm690_vm2, %vm754_vm11 }
 0x200   : > { %v3368_v50 = vsel %vm770_vm1, inf, %v3127_v6 }
 0x201   : > { %804 = vmin.xlane.f32.xlu1 %v3368_v50  ;;  %v3371_v38 = vpop.xlane.xlu1 %728  ;;  %v3373_v46 = vpop.xlane.xlu0 %726 }
 0x202   : > { %4914 = vst [vmem:[#allocation8_spill] sm:$0xff] %v3371_v38  ;;  %4915 = vst [vmem:[#allocation9_spill] sm:$0xff] %v3373_v46  ;;  %vm756_vm0 = vcmp.eq.f32.partialorder %v3208_v27, %v3371_v38  ;;  %vm755_vm12 = vcmp.eq.f32.partialorder %v3208_v27, %v3373_v46 }
 0x203   : > { %vm772_vm13 = vmand %vm692_vm3, %vm756_vm0 }
 0x204   : > { %v3383_v51 = vsel %vm772_vm13, inf, %v3129_v7  ;;  %vm771_vm2 = vmand %vm691_vm4, %vm755_vm12 }
 0x205   : > { %808 = vmin.xlane.f32.xlu1 %v3383_v51  ;;  %v3389_v6 = vpop.xlane.xlu1 %732  ;;  %v3392_v52 = vsel %vm771_vm2, inf, %v3139_v48  ;;  %v3394_v60 = vpop.xlane.xlu0 %730 }
 0x206   : > { %4916 = vst [vmem:[#allocation10_spill] sm:$0xff] %v3389_v6  ;;  %4917 = vst [vmem:[#allocation11_spill] sm:$0xff] %v3394_v60  ;;  %vm758_vm11 = vcmp.eq.f32.partialorder %v3208_v27, %v3389_v6  ;;  %806 = vmin.xlane.f32.xlu0 %v3392_v52  ;;  %vm757_vm3 = vcmp.eq.f32.partialorder %v3208_v27, %v3394_v60 }
 0x207   : > { %vm774_vm4 = vmand %vm694_vm5, %vm758_vm11  ;;  %vm4925_vm11 = vcmp.eq.f32.partialorder %v3194_v39, %v3304_v14 }
 0x208   : > { %v3405_v7 = vsel %vm774_vm4, inf, %v3141_v20  ;;  %vm773_vm14 = vmand %vm693_vm6, %vm757_vm3 }
 0x209   : > { %812 = vmin.xlane.f32.xlu1 %v3405_v7  ;;  %v3411_v48 = vpop.xlane.xlu1 %736  ;;  %v3414_v45 = vsel %vm773_vm14, inf, %v3155_v56  ;;  %v3416_v47 = vpop.xlane.xlu0 %734 }
 0x20a   : > { %4918 = vst [vmem:[#allocation12_spill] sm:$0xff] %v3411_v48  ;;  %4919 = vst [vmem:[#allocation13_spill] sm:$0xff] %v3416_v47  ;;  %vm760_vm15 = vcmp.eq.f32.partialorder %v3208_v27, %v3411_v48  ;;  %810 = vmin.xlane.f32.xlu0 %v3414_v45  ;;  %vm759_vm5 = vcmp.eq.f32.partialorder %v3208_v27, %v3416_v47 }
 0x20b   : > { %vm776_vm6 = vmand %vm696_vm7, %vm760_vm15  ;;  %vm4928_vm15 = vcmp.eq.f32.partialorder %v3196_v24, %v3302_v13 }
 0x20c   : > { %v3427_v20 = vsel %vm776_vm6, inf, %v3157_v57  ;;  %vm775_vm1 = vmand %vm695_vm8, %vm759_vm5  ;;  %vm4929_vm6 = vcmp.eq.f32.partialorder %v3201_v53, %v3318_v16 }
 0x20d   : > { %816 = vmin.xlane.f32.xlu1 %v3427_v20  ;;  %v3433_v56 = vpop.xlane.xlu1 %740  ;;  %v3436_v41 = vsel %vm775_vm1, inf, %v3171_v5  ;;  %v3438_v33 = vpop.xlane.xlu0 %738 }
 0x20e   : > { %4920 = vst [vmem:[#allocation14_spill] sm:$0xff] %v3433_v56  ;;  %4921 = vst [vmem:[#allocation15_spill] sm:$0xff] %v3438_v33  ;;  %vm762_vm0 = vcmp.eq.f32.partialorder %v3208_v27, %v3433_v56  ;;  %814 = vmin.xlane.f32.xlu0 %v3436_v41  ;;  %vm761_vm7 = vcmp.eq.f32.partialorder %v3208_v27, %v3438_v33 }
 0x20f   : > { %vm778_vm8 = vmand %vm698_vm9, %vm762_vm0 }
 0x210   : > { %v3449_v57 = vsel %vm778_vm8, inf, %v3173_v8  ;;  %vm777_vm12 = vmand %vm697_vm10, %vm761_vm7  ;;  %vm4924_vm10 = vcmp.eq.f32.partialorder %v3185_v54, %v3286_v11  ;;  %vm4931_vm7 = vcmp.eq.f32.partialorder %v3204_v58, %v3330_v22 }
 0x211   : > { %820 = vmin.xlane.f32.xlu1 %v3449_v57  ;;  %v3455_v5 = vpop.xlane.xlu1 %744  ;;  %v3458_v55 = vsel %vm777_vm12, inf, %v3183_v18  ;;  %v3460_v61 = vpop.xlane.xlu0 %742 }
 0x212   : > { %4922 = vst [vmem:[#allocation16_spill] sm:$0xff] %v3455_v5  ;;  %4923 = vst [vmem:[#allocation17_spill] sm:$0xff] %v3460_v61  ;;  %vm764_vm13 = vcmp.eq.f32.partialorder %v3208_v27, %v3455_v5  ;;  %818 = vmin.xlane.f32.xlu0 %v3458_v55  ;;  %vm763_vm9 = vcmp.eq.f32.partialorder %v3208_v27, %v3460_v61 }
 0x213   : > { %vm780_vm2 = vmand %vm4924_vm10, %vm764_vm13 }
 0x214   : > { %v3471_v8 = vsel %vm780_vm2, inf, %v3185_v54  ;;  %vm779_vm3 = vmand %vm4925_vm11, %vm763_vm9 }
 0x215   : > { %824 = vmin.xlane.f32.xlu1 %v3471_v8  ;;  %v3477_v18 = vpop.xlane.xlu1 %748  ;;  %v3480_v62 = vsel %vm779_vm3, inf, %v3194_v39  ;;  %v3482_v43 = vpop.xlane.xlu0 %746 }
 0x216   : > { %4926 = vst [vmem:[#allocation18_spill] sm:$0xff] %v3477_v18  ;;  %4927 = vst [vmem:[#allocation19_spill] sm:$0xff] %v3482_v43  ;;  %vm766_vm4 = vcmp.eq.f32.partialorder %v3208_v27, %v3477_v18  ;;  %822 = vmin.xlane.f32.xlu0 %v3480_v62  ;;  %vm765_vm14 = vcmp.eq.f32.partialorder %v3208_v27, %v3482_v43 }
 0x217   : > { %vm782_vm5 = vmand %vm4928_vm15, %vm766_vm4 }
 0x218   : > { %v3493_v54 = vsel %vm782_vm5, inf, %v3196_v24  ;;  %vm781_vm1 = vmand %vm4929_vm6, %vm765_vm14 }
 0x219   : > { %828 = vmin.xlane.f32.xlu1 %v3493_v54  ;;  %v3500_v39 = vsel %vm781_vm1, inf, %v3201_v53  ;;  %v3502_v1 = vpop.xlane.xlu0 %750 }
 0x21a   : > { %4930 = vst [vmem:[#allocation20_spill] sm:$0xff] %v3502_v1  ;;  %826 = vmin.xlane.f32.xlu0 %v3500_v39  ;;  %vm767_vm0 = vcmp.eq.f32.partialorder %v3208_v27, %v3502_v1 }
 0x21b   : > { %vm783_vm8 = vmand %vm4931_vm7, %vm767_vm0 }
 0x21c   : > { %v3511_v24 = vsel %vm783_vm8, inf, %v3204_v58 }
 0x21e   : > { %830 = vmin.xlane.f32.xlu0 %v3511_v24 }
 0x28a   : > { %v3514_v40 = vpop.xlane.xlu1 %800 }
 0x28b   : > { %v3516_v53 = vpop.xlane.xlu0 %802  ;;  %vm832_vm12 = vcmp.eq.f32.partialorder %v3350_v31, %v3514_v40 }
 0x28c   : > { %v848_v4 = vsel %vm832_vm12, %v3208_v27, inf  ;;  %vm833_vm13 = vcmp.eq.f32.partialorder %v3359_v37, %v3516_v53 }
 0x28d   : > { %864 = vmin.xlane.f32.xlu1 %v848_v4  ;;  %v849_v58 = vsel %vm833_vm13, %v3208_v27, inf }
 0x28e   : > { %866 = vmin.xlane.f32.xlu0 %v849_v58  ;;  %v3530_v59 = vpop.xlane.xlu1 %804 }
 0x28f   : > { %vm834_vm9 = vcmp.eq.f32.partialorder %v3368_v50, %v3530_v59 }
 0x290   : > { %v850_v9 = vsel %vm834_vm9, %v3208_v27, inf }
 0x291   : > { %868 = vmin.xlane.f32.xlu1 %v850_v9 }
 0x292   : > { %v3538_v29 = vpop.xlane.xlu1 %808 }
 0x293   : > { %v3540_v28 = vpop.xlane.xlu0 %806  ;;  %vm836_vm10 = vcmp.eq.f32.partialorder %v3383_v51, %v3538_v29 }
 0x294   : > { %v852_v34 = vsel %vm836_vm10, %v3208_v27, inf  ;;  %vm835_vm2 = vcmp.eq.f32.partialorder %v3392_v52, %v3540_v28 }
 0x295   : > { %872 = vmin.xlane.f32.xlu1 %v852_v34  ;;  %v851_v42 = vsel %vm835_vm2, %v3208_v27, inf }
 0x296   : > { %870 = vmin.xlane.f32.xlu0 %v851_v42  ;;  %v3554_v15 = vpop.xlane.xlu1 %812 }
 0x297   : > { %v3556_v17 = vpop.xlane.xlu0 %810  ;;  %vm838_vm11 = vcmp.eq.f32.partialorder %v3405_v7, %v3554_v15 }
 0x298   : > { %v854_v19 = vsel %vm838_vm11, %v3208_v27, inf  ;;  %vm837_vm3 = vcmp.eq.f32.partialorder %v3414_v45, %v3556_v17 }
 0x299   : > { %876 = vmin.xlane.f32.xlu1 %v854_v19  ;;  %v853_v21 = vsel %vm837_vm3, %v3208_v27, inf }
 0x29a   : > { %874 = vmin.xlane.f32.xlu0 %v853_v21  ;;  %v3570_v23 = vpop.xlane.xlu1 %816 }
 0x29b   : > { %v3572_v4 = vpop.xlane.xlu0 %814  ;;  %vm840_vm4 = vcmp.eq.f32.partialorder %v3427_v20, %v3570_v23 }
 0x29c   : > { %v856_v58 = vsel %vm840_vm4, %v3208_v27, inf  ;;  %vm839_vm14 = vcmp.eq.f32.partialorder %v3436_v41, %v3572_v4 }
 0x29d   : > { %880 = vmin.xlane.f32.xlu1 %v856_v58  ;;  %v855_v9 = vsel %vm839_vm14, %v3208_v27, inf }
 0x29e   : > { %878 = vmin.xlane.f32.xlu0 %v855_v9  ;;  %v3586_v34 = vpop.xlane.xlu1 %820 }
 0x29f   : > { %v3588_v42 = vpop.xlane.xlu0 %818  ;;  %vm842_vm15 = vcmp.eq.f32.partialorder %v3449_v57, %v3586_v34 }
 0x2a0   : > { %v858_v19 = vsel %vm842_vm15, %v3208_v27, inf  ;;  %vm841_vm5 = vcmp.eq.f32.partialorder %v3458_v55, %v3588_v42 }
 0x2a1   : > { %884 = vmin.xlane.f32.xlu1 %v858_v19  ;;  %v857_v21 = vsel %vm841_vm5, %v3208_v27, inf }
 0x2a2   : > { %882 = vmin.xlane.f32.xlu0 %v857_v21  ;;  %v3602_v58 = vpop.xlane.xlu1 %824 }
 0x2a3   : > { %v3604_v9 = vpop.xlane.xlu0 %822  ;;  %vm4846_vm6 = vcmp.eq.f32.partialorder %v3471_v8, %v3602_v58 }
 0x2a4   : > { %v860_v1 = vsel %vm4846_vm6, %v3208_v27, inf  ;;  %vm4843_vm1 = vcmp.eq.f32.partialorder %v3480_v62, %v3604_v9 }
 0x2a5   : > { %888 = vmin.xlane.f32.xlu1 %v860_v1  ;;  %v859_v19 = vsel %vm4843_vm1, %v3208_v27, inf }
 0x2a6   : > { %886 = vmin.xlane.f32.xlu0 %v859_v19  ;;  %v3618_v21 = vpop.xlane.xlu1 %828 }
 0x2a7   : > { %4932 = vst [vmem:[#allocation21_spill] sm:$0xff] %v3618_v21  ;;  %v3620_v18 = vpop.xlane.xlu0 %826  ;;  %vm4841_vm0 = vcmp.eq.f32.partialorder %v3493_v54, %v3618_v21 }
 0x2a8   : > { %v862_v22 = vsel %vm4841_vm0, %v3208_v27, inf  ;;  %vm4842_vm7 = vcmp.eq.f32.partialorder %v3500_v39, %v3620_v18 }
 0x2a9   : > { %892 = vmin.xlane.f32.xlu1 %v862_v22  ;;  %v861_v1 = vsel %vm4842_vm7, %v3208_v27, inf }
 0x2aa   : > { %890 = vmin.xlane.f32.xlu0 %v861_v1 }
 0x2ab   : > { %v3634_v19 = vpop.xlane.xlu0 %830 }
 0x2ac   : > { %4933 = vst [vmem:[#allocation22_spill] sm:$0xff] %v3634_v19  ;;  %vm4844_vm8 = vcmp.eq.f32.partialorder %v3511_v24, %v3634_v19 }
 0x2ad   : > { %v863_v13 = vsel %vm4844_vm8, %v3208_v27, inf }
 0x2ae   : > { %894 = vmin.xlane.f32.xlu0 %v863_v13 }
 0x31a   : > { %v3642_v43 = vpop.xlane.xlu1 %864 }
 0x31b   : > { %4934 = vst [vmem:[#allocation23_spill] sm:$0xff] %v3642_v43  ;;  %vm896_vm0 = vcmp.eq.f32.partialorder %v3208_v27, %v3642_v43  ;;  %v3646_v22 = vpop.xlane.xlu0 %866 }
 0x31c   : > { %4935 = vst [vmem:[#allocation24_spill] sm:$0xff] %v3646_v22  ;;  %vm897_vm7 = vcmp.eq.f32.partialorder %v3208_v27, %v3646_v22  ;;  %vm912_vm1 = vmand %vm832_vm12, %vm896_vm0 }
 0x31d   : > { %v3654_v1 = vsel %vm912_vm1, inf, %v3350_v31  ;;  %vm913_vm8 = vmand %vm833_vm13, %vm897_vm7 }
 0x31e   : > { %944 = vmin.xlane.f32.xlu1 %v3654_v1  ;;  %v3660_v13 = vpop.xlane.xlu1 %868  ;;  %v3663_v61 = vsel %vm913_vm8, inf, %v3359_v37 }
 0x31f   : > { %4936 = vst [vmem:[#allocation25_spill] sm:$0xff] %v3660_v13  ;;  %vm898_vm6 = vcmp.eq.f32.partialorder %v3208_v27, %v3660_v13  ;;  %946 = vmin.xlane.f32.xlu0 %v3663_v61 }
 0x320   : > { %vm914_vm12 = vmand %vm834_vm9, %vm898_vm6 }
 0x321   : > { %v3672_v31 = vsel %vm914_vm12, inf, %v3368_v50 }
 0x322   : > { %948 = vmin.xlane.f32.xlu1 %v3672_v31  ;;  %v3675_v5 = vpop.xlane.xlu1 %872 }
 0x323   : > { %4937 = vst [vmem:[#allocation26_spill] sm:$0xff] %v3675_v5  ;;  %vm900_vm13 = vcmp.eq.f32.partialorder %v3208_v27, %v3675_v5  ;;  %v3679_v37 = vpop.xlane.xlu0 %870 }
 0x324   : > { %4938 = vst [vmem:[#allocation27_spill] sm:$0xff] %v3679_v37  ;;  %vm899_vm1 = vcmp.eq.f32.partialorder %v3208_v27, %v3679_v37  ;;  %vm916_vm0 = vmand %vm836_vm10, %vm900_vm13 }
 0x325   : > { %v3687_v33 = vsel %vm916_vm0, inf, %v3383_v51  ;;  %vm915_vm9 = vmand %vm835_vm2, %vm899_vm1 }
 0x326   : > { %952 = vmin.xlane.f32.xlu1 %v3687_v33  ;;  %v3693_v50 = vpop.xlane.xlu1 %876  ;;  %v3696_v56 = vsel %vm915_vm9, inf, %v3392_v52 }
 0x327   : > { %4939 = vst [vmem:[#allocation28_spill] sm:$0xff] %v3693_v50  ;;  %vm902_vm6 = vcmp.eq.f32.partialorder %v3208_v27, %v3693_v50  ;;  %950 = vmin.xlane.f32.xlu0 %v3696_v56  ;;  %v3701_v47 = vpop.xlane.xlu0 %874 }
 0x328   : > { %4940 = vst [vmem:[#allocation29_spill] sm:$0xff] %v3701_v47  ;;  %vm901_vm10 = vcmp.eq.f32.partialorder %v3208_v27, %v3701_v47  ;;  %vm918_vm2 = vmand %vm838_vm11, %vm902_vm6  ;;  %vm4948_vm6 = vcmp.eq.f32.partialorder %v3480_v62, %v3604_v9 }
 0x329   : > { %v3709_v51 = vsel %vm918_vm2, inf, %v3405_v7  ;;  %vm917_vm7 = vmand %vm837_vm3, %vm901_vm10 }
 0x32a   : > { %956 = vmin.xlane.f32.xlu1 %v3709_v51  ;;  %v3715_v52 = vpop.xlane.xlu1 %880  ;;  %v3718_v48 = vsel %vm917_vm7, inf, %v3414_v45 }
 0x32b   : > { %4941 = vst [vmem:[#allocation30_spill] sm:$0xff] %v3715_v52  ;;  %vm904_vm8 = vcmp.eq.f32.partialorder %v3208_v27, %v3715_v52  ;;  %954 = vmin.xlane.f32.xlu0 %v3718_v48  ;;  %v3723_v60 = vpop.xlane.xlu0 %878 }
 0x32c   : > { %4942 = vst [vmem:[#allocation31_spill] sm:$0xff] %v3723_v60  ;;  %vm903_vm11 = vcmp.eq.f32.partialorder %v3208_v27, %v3723_v60  ;;  %vm920_vm3 = vmand %vm840_vm4, %vm904_vm8  ;;  %vm4951_vm8 = vcmp.eq.f32.partialorder %v3493_v54, %v3618_v21 }
 0x32d   : > { %v3731_v7 = vsel %vm920_vm3, inf, %v3427_v20  ;;  %vm919_vm12 = vmand %vm839_vm14, %vm903_vm11  ;;  %vm4952_vm3 = vcmp.eq.f32.partialorder %v3500_v39, %v3620_v18 }
 0x32e   : > { %960 = vmin.xlane.f32.xlu1 %v3731_v7  ;;  %v3737_v45 = vpop.xlane.xlu1 %884  ;;  %v3740_v52 = vsel %vm919_vm12, inf, %v3436_v41 }
 0x32f   : > { %4943 = vst [vmem:[#allocation32_spill] sm:$0xff] %v3737_v45  ;;  %vm906_vm13 = vcmp.eq.f32.partialorder %v3208_v27, %v3737_v45  ;;  %958 = vmin.xlane.f32.xlu0 %v3740_v52  ;;  %v3745_v60 = vpop.xlane.xlu0 %882 }
 0x330   : > { %4944 = vst [vmem:[#allocation33_spill] sm:$0xff] %v3745_v60  ;;  %vm905_vm4 = vcmp.eq.f32.partialorder %v3208_v27, %v3745_v60  ;;  %vm922_vm14 = vmand %vm842_vm15, %vm906_vm13 }
 0x331   : > { %v3753_v20 = vsel %vm922_vm14, inf, %v3449_v57  ;;  %vm921_vm1 = vmand %vm841_vm5, %vm905_vm4  ;;  %vm4947_vm5 = vcmp.eq.f32.partialorder %v3471_v8, %v3602_v58  ;;  %vm4954_vm4 = vcmp.eq.f32.partialorder %v3511_v24, %v3634_v19 }
 0x332   : > { %964 = vmin.xlane.f32.xlu1 %v3753_v20  ;;  %v3759_v41 = vpop.xlane.xlu1 %888  ;;  %v3762_v45 = vsel %vm921_vm1, inf, %v3458_v55 }
 0x333   : > { %4945 = vst [vmem:[#allocation34_spill] sm:$0xff] %v3759_v41  ;;  %vm908_vm0 = vcmp.eq.f32.partialorder %v3208_v27, %v3759_v41  ;;  %962 = vmin.xlane.f32.xlu0 %v3762_v45  ;;  %v3767_v60 = vpop.xlane.xlu0 %886 }
 0x334   : > { %4946 = vst [vmem:[#allocation35_spill] sm:$0xff] %v3767_v60  ;;  %vm907_vm15 = vcmp.eq.f32.partialorder %v3208_v27, %v3767_v60  ;;  %vm924_vm9 = vmand %vm4947_vm5, %vm908_vm0 }
 0x335   : > { %v3775_v57 = vsel %vm924_vm9, inf, %v3471_v8  ;;  %vm923_vm10 = vmand %vm4948_vm6, %vm907_vm15 }
 0x336   : > { %968 = vmin.xlane.f32.xlu1 %v3775_v57  ;;  %v3781_v55 = vpop.xlane.xlu1 %892  ;;  %v3784_v41 = vsel %vm923_vm10, inf, %v3480_v62 }
 0x337   : > { %4949 = vst [vmem:[#allocation36_spill] sm:$0xff] %v3781_v55  ;;  %vm910_vm2 = vcmp.eq.f32.partialorder %v3208_v27, %v3781_v55  ;;  %966 = vmin.xlane.f32.xlu0 %v3784_v41  ;;  %v3789_v60 = vpop.xlane.xlu0 %890 }
 0x338   : > { %4950 = vst [vmem:[#allocation37_spill] sm:$0xff] %v3789_v60  ;;  %vm909_vm7 = vcmp.eq.f32.partialorder %v3208_v27, %v3789_v60  ;;  %vm926_vm11 = vmand %vm4951_vm8, %vm910_vm2 }
 0x339   : > { %v3797_v8 = vsel %vm926_vm11, inf, %v3493_v54  ;;  %vm925_vm12 = vmand %vm4952_vm3, %vm909_vm7 }
 0x33a   : > { %972 = vmin.xlane.f32.xlu1 %v3797_v8  ;;  %v3804_v62 = vsel %vm925_vm12, inf, %v3500_v39 }
 0x33b   : > { %970 = vmin.xlane.f32.xlu0 %v3804_v62  ;;  %v3807_v55 = vpop.xlane.xlu0 %894 }
 0x33c   : > { %4953 = vst [vmem:[#allocation38_spill] sm:$0xff] %v3807_v55  ;;  %vm911_vm13 = vcmp.eq.f32.partialorder %v3208_v27, %v3807_v55 }
 0x33d   : > { %vm927_vm14 = vmand %vm4954_vm4, %vm911_vm13 }
 0x33e   : > { %v3815_v54 = vsel %vm927_vm14, inf, %v3511_v24 }
 0x33f   : > { %974 = vmin.xlane.f32.xlu0 %v3815_v54 }
 0x3ab   : > { %v3818_v21 = vpop.xlane.xlu1 %944 }
 0x3ac   : > { %vm976_vm1 = vcmp.eq.f32.partialorder %v3654_v1, %v3818_v21  ;;  %v3822_v39 = vpop.xlane.xlu0 %946 }
 0x3ad   : > { %vm977_vm0 = vcmp.eq.f32.partialorder %v3663_v61, %v3822_v39  ;;  %v992_v55 = vsel %vm976_vm1, %v3208_v27, inf }
 0x3ae   : > { %1008 = vmin.xlane.f32.xlu1 %v992_v55  ;;  %v993_v24 = vsel %vm977_vm0, %v3208_v27, inf }
 0x3af   : > { %1010 = vmin.xlane.f32.xlu0 %v993_v24  ;;  %v3834_v19 = vpop.xlane.xlu1 %948 }
 0x3b0   : > { %vm978_vm15 = vcmp.eq.f32.partialorder %v3672_v31, %v3834_v19 }
 0x3b1   : > { %v994_v60 = vsel %vm978_vm15, %v3208_v27, inf }
 0x3b2   : > { %1012 = vmin.xlane.f32.xlu1 %v994_v60 }
 0x3b3   : > { %v3842_v47 = vpop.xlane.xlu1 %952 }
 0x3b4   : > { %vm980_vm5 = vcmp.eq.f32.partialorder %v3687_v33, %v3842_v47  ;;  %v3846_v55 = vpop.xlane.xlu0 %950 }
 0x3b5   : > { %vm979_vm9 = vcmp.eq.f32.partialorder %v3696_v56, %v3846_v55  ;;  %v996_v24 = vsel %vm980_vm5, %v3208_v27, inf }
 0x3b6   : > { %1016 = vmin.xlane.f32.xlu1 %v996_v24  ;;  %v995_v60 = vsel %vm979_vm9, %v3208_v27, inf }
 0x3b7   : > { %1014 = vmin.xlane.f32.xlu0 %v995_v60  ;;  %v3858_v6 = vpop.xlane.xlu1 %956 }
 0x3b8   : > { %vm982_vm6 = vcmp.eq.f32.partialorder %v3709_v51, %v3858_v6  ;;  %v3862_v50 = vpop.xlane.xlu0 %954 }
 0x3b9   : > { %vm981_vm10 = vcmp.eq.f32.partialorder %v3718_v48, %v3862_v50  ;;  %v998_v24 = vsel %vm982_vm6, %v3208_v27, inf }
 0x3ba   : > { %1020 = vmin.xlane.f32.xlu1 %v998_v24  ;;  %v997_v60 = vsel %vm981_vm10, %v3208_v27, inf }
 0x3bb   : > { %1018 = vmin.xlane.f32.xlu0 %v997_v60  ;;  %v3874_v46 = vpop.xlane.xlu1 %960 }
 0x3bc   : > { %vm984_vm2 = vcmp.eq.f32.partialorder %v3731_v7, %v3874_v46  ;;  %v3878_v37 = vpop.xlane.xlu0 %958 }
 0x3bd   : > { %vm983_vm7 = vcmp.eq.f32.partialorder %v3740_v52, %v3878_v37  ;;  %v1000_v24 = vsel %vm984_vm2, %v3208_v27, inf }
 0x3be   : > { %1024 = vmin.xlane.f32.xlu1 %v1000_v24  ;;  %v999_v60 = vsel %vm983_vm7, %v3208_v27, inf }
 0x3bf   : > { %1022 = vmin.xlane.f32.xlu0 %v999_v60  ;;  %v3890_v38 = vpop.xlane.xlu1 %964 }
 0x3c0   : > { %vm986_vm8 = vcmp.eq.f32.partialorder %v3753_v20, %v3890_v38  ;;  %v3894_v5 = vpop.xlane.xlu0 %962 }
 0x3c1   : > { %vm985_vm11 = vcmp.eq.f32.partialorder %v3762_v45, %v3894_v5  ;;  %v1002_v24 = vsel %vm986_vm8, %v3208_v27, inf }
 0x3c2   : > { %1028 = vmin.xlane.f32.xlu1 %v1002_v24  ;;  %v1001_v60 = vsel %vm985_vm11, %v3208_v27, inf }
 0x3c3   : > { %1026 = vmin.xlane.f32.xlu0 %v1001_v60  ;;  %v3906_v36 = vpop.xlane.xlu1 %968 }
 0x3c4   : > { %vm4883_vm3 = vcmp.eq.f32.partialorder %v3775_v57, %v3906_v36  ;;  %v3910_v13 = vpop.xlane.xlu0 %966 }
 0x3c5   : > { %vm4880_vm12 = vcmp.eq.f32.partialorder %v3784_v41, %v3910_v13  ;;  %v1004_v24 = vsel %vm4883_vm3, %v3208_v27, inf }
 0x3c6   : > { %1032 = vmin.xlane.f32.xlu1 %v1004_v24  ;;  %v1003_v60 = vsel %vm4880_vm12, %v3208_v27, inf }
 0x3c7   : > { %1030 = vmin.xlane.f32.xlu0 %v1003_v60  ;;  %v3922_v30 = vpop.xlane.xlu1 %972 }
 0x3c8   : > { %4955 = vst [vmem:[#allocation39_spill] sm:$0xff] %v3922_v30  ;;  %vm4878_vm13 = vcmp.eq.f32.partialorder %v3797_v8, %v3922_v30  ;;  %v3926_v22 = vpop.xlane.xlu0 %970 }
 0x3c9   : > { %vm4879_vm4 = vcmp.eq.f32.partialorder %v3804_v62, %v3926_v22  ;;  %v1006_v24 = vsel %vm4878_vm13, %v3208_v27, inf }
 0x3ca   : > { %1036 = vmin.xlane.f32.xlu1 %v1006_v24  ;;  %v1005_v60 = vsel %vm4879_vm4, %v3208_v27, inf }
 0x3cb   : > { %1034 = vmin.xlane.f32.xlu0 %v1005_v60 }
 0x3cc   : > { %v3938_v35 = vpop.xlane.xlu0 %974 }
 0x3cd   : > { %4956 = vst [vmem:[#allocation40_spill] sm:$0xff] %v3938_v35  ;;  %vm4881_vm14 = vcmp.eq.f32.partialorder %v3815_v54, %v3938_v35 }
 0x3ce   : > { %v1007_v43 = vsel %vm4881_vm14, %v3208_v27, inf }
 0x3cf   : > { %1038 = vmin.xlane.f32.xlu0 %v1007_v43 }
 0x43b   : > { %v3946_v16 = vpop.xlane.xlu1 %1008 }
 0x43c   : > { %4957 = vst [vmem:[#allocation41_spill] sm:$0xff] %v3946_v16  ;;  %vm1040_vm13 = vcmp.eq.f32.partialorder %v3208_v27, %v3946_v16  ;;  %v3950_v24 = vpop.xlane.xlu0 %1010 }
 0x43d   : > { %4958 = vst [vmem:[#allocation42_spill] sm:$0xff] %v3950_v24  ;;  %vm1041_vm4 = vcmp.eq.f32.partialorder %v3208_v27, %v3950_v24  ;;  %vm1056_vm12 = vmand %vm976_vm1, %vm1040_vm13 }
 0x43e   : > { %v3958_v60 = vsel %vm1056_vm12, inf, %v3654_v1  ;;  %vm1057_vm14 = vmand %vm977_vm0, %vm1041_vm4 }
 0x43f   : > { %1088 = vmin.xlane.f32.xlu1 %v3958_v60  ;;  %v3964_v43 = vpop.xlane.xlu1 %1012  ;;  %v3967_v16 = vsel %vm1057_vm14, inf, %v3663_v61 }
 0x440   : > { %4959 = vst [vmem:[#allocation43_spill] sm:$0xff] %v3964_v43  ;;  %vm1042_vm3 = vcmp.eq.f32.partialorder %v3208_v27, %v3964_v43  ;;  %1090 = vmin.xlane.f32.xlu0 %v3967_v16 }
 0x441   : > { %vm1058_vm1 = vmand %vm978_vm15, %vm1042_vm3 }
 0x442   : > { %v3976_v1 = vsel %vm1058_vm1, inf, %v3672_v31 }
 0x443   : > { %1092 = vmin.xlane.f32.xlu1 %v3976_v1  ;;  %v3979_v24 = vpop.xlane.xlu1 %1016 }
 0x444   : > { %4960 = vst [vmem:[#allocation44_spill] sm:$0xff] %v3979_v24  ;;  %vm1044_vm0 = vcmp.eq.f32.partialorder %v3208_v27, %v3979_v24  ;;  %v3983_v61 = vpop.xlane.xlu0 %1014 }
 0x445   : > { %4961 = vst [vmem:[#allocation45_spill] sm:$0xff] %v3983_v61  ;;  %vm1043_vm12 = vcmp.eq.f32.partialorder %v3208_v27, %v3983_v61  ;;  %vm1060_vm13 = vmand %vm980_vm5, %vm1044_vm0 }
 0x446   : > { %v3991_v43 = vsel %vm1060_vm13, inf, %v3687_v33  ;;  %vm1059_vm15 = vmand %vm979_vm9, %vm1043_vm12 }
 0x447   : > { %1096 = vmin.xlane.f32.xlu1 %v3991_v43  ;;  %v3997_v31 = vpop.xlane.xlu1 %1020  ;;  %v4000_v24 = vsel %vm1059_vm15, inf, %v3696_v56 }
 0x448   : > { %4962 = vst [vmem:[#allocation46_spill] sm:$0xff] %v3997_v31  ;;  %vm1046_vm3 = vcmp.eq.f32.partialorder %v3208_v27, %v3997_v31  ;;  %1094 = vmin.xlane.f32.xlu0 %v4000_v24  ;;  %v4005_v61 = vpop.xlane.xlu0 %1018 }
 0x449   : > { %4963 = vst [vmem:[#allocation47_spill] sm:$0xff] %v4005_v61  ;;  %vm1045_vm5 = vcmp.eq.f32.partialorder %v3208_v27, %v4005_v61  ;;  %vm1062_vm9 = vmand %vm982_vm6, %vm1046_vm3  ;;  %vm4971_vm3 = vcmp.eq.f32.partialorder %v3784_v41, %v3910_v13 }
 0x44a   : > { %v4013_v33 = vsel %vm1062_vm9, inf, %v3709_v51  ;;  %vm1061_vm4 = vmand %vm981_vm10, %vm1045_vm5 }
 0x44b   : > { %1100 = vmin.xlane.f32.xlu1 %v4013_v33  ;;  %v4019_v56 = vpop.xlane.xlu1 %1024  ;;  %v4022_v31 = vsel %vm1061_vm4, inf, %v3718_v48 }
 0x44c   : > { %4964 = vst [vmem:[#allocation48_spill] sm:$0xff] %v4019_v56  ;;  %vm1048_vm14 = vcmp.eq.f32.partialorder %v3208_v27, %v4019_v56  ;;  %1098 = vmin.xlane.f32.xlu0 %v4022_v31  ;;  %v4027_v61 = vpop.xlane.xlu0 %1022 }
 0x44d   : > { %4965 = vst [vmem:[#allocation49_spill] sm:$0xff] %v4027_v61  ;;  %vm1047_vm6 = vcmp.eq.f32.partialorder %v3208_v27, %v4027_v61  ;;  %vm1064_vm10 = vmand %vm984_vm2, %vm1048_vm14  ;;  %vm4974_vm14 = vcmp.eq.f32.partialorder %v3797_v8, %v3922_v30 }
 0x44e   : > { %v4035_v51 = vsel %vm1064_vm10, inf, %v3731_v7  ;;  %vm1063_vm1 = vmand %vm983_vm7, %vm1047_vm6  ;;  %vm4975_vm10 = vcmp.eq.f32.partialorder %v3804_v62, %v3926_v22 }
 0x44f   : > { %1104 = vmin.xlane.f32.xlu1 %v4035_v51  ;;  %v4041_v48 = vpop.xlane.xlu1 %1028  ;;  %v4044_v56 = vsel %vm1063_vm1, inf, %v3740_v52 }
 0x450   : > { %4966 = vst [vmem:[#allocation50_spill] sm:$0xff] %v4041_v48  ;;  %vm1050_vm0 = vcmp.eq.f32.partialorder %v3208_v27, %v4041_v48  ;;  %1102 = vmin.xlane.f32.xlu0 %v4044_v56  ;;  %v4049_v61 = vpop.xlane.xlu0 %1026 }
 0x451   : > { %4967 = vst [vmem:[#allocation51_spill] sm:$0xff] %v4049_v61  ;;  %vm1049_vm2 = vcmp.eq.f32.partialorder %v3208_v27, %v4049_v61  ;;  %vm1066_vm7 = vmand %vm986_vm8, %vm1050_vm0 }
 0x452   : > { %v4057_v7 = vsel %vm1066_vm7, inf, %v3753_v20  ;;  %vm1065_vm12 = vmand %vm985_vm11, %vm1049_vm2  ;;  %vm4970_vm11 = vcmp.eq.f32.partialorder %v3775_v57, %v3906_v36  ;;  %vm4977_vm2 = vcmp.eq.f32.partialorder %v3815_v54, %v3938_v35 }
 0x453   : > { %1108 = vmin.xlane.f32.xlu1 %v4057_v7  ;;  %v4063_v52 = vpop.xlane.xlu1 %1032  ;;  %v4066_v48 = vsel %vm1065_vm12, inf, %v3762_v45  ;;  %vm1328_vm12 = vcmask 7168  }
 0x454   : > { %4968 = vst [vmem:[#allocation52_spill] sm:$0xff] %v4063_v52  ;;  %vm1052_vm13 = vcmp.eq.f32.partialorder %v3208_v27, %v4063_v52  ;;  %1106 = vmin.xlane.f32.xlu0 %v4066_v48  ;;  %v4071_v61 = vpop.xlane.xlu0 %1030 }
 0x455   : > { %4969 = vst [vmem:[#allocation53_spill] sm:$0xff] %v4071_v61  ;;  %vm1051_vm8 = vcmp.eq.f32.partialorder %v3208_v27, %v4071_v61  ;;  %vm1068_vm15 = vmand %vm4970_vm11, %vm1052_vm13  ;;  %vm1345_vm13 = vcmask 15360  }
 0x456   : > { %v4079_v20 = vsel %vm1068_vm15, inf, %v3775_v57  ;;  %vm1067_vm5 = vmand %vm4971_vm3, %vm1051_vm8  ;;  %vm1362_vm8 = vcmask 23552  }
 0x457   : > { %1112 = vmin.xlane.f32.xlu1 %v4079_v20  ;;  %v4085_v45 = vpop.xlane.xlu1 %1036  ;;  %v4088_v52 = vsel %vm1067_vm5, inf, %v3784_v41 }
 0x458   : > { %4972 = vst [vmem:[#allocation54_spill] sm:$0xff] %v4085_v45  ;;  %vm1054_vm9 = vcmp.eq.f32.partialorder %v3208_v27, %v4085_v45  ;;  %1110 = vmin.xlane.f32.xlu0 %v4088_v52  ;;  %v4093_v61 = vpop.xlane.xlu0 %1034 }
 0x459   : > { %4973 = vst [vmem:[#allocation55_spill] sm:$0xff] %v4093_v61  ;;  %vm1053_vm4 = vcmp.eq.f32.partialorder %v3208_v27, %v4093_v61  ;;  %vm1070_vm6 = vmand %vm4974_vm14, %vm1054_vm9 }
 0x45a   : > { %v4101_v57 = vsel %vm1070_vm6, inf, %v3797_v8  ;;  %vm1069_vm1 = vmand %vm4975_vm10, %vm1053_vm4 }
 0x45b   : > { %1116 = vmin.xlane.f32.xlu1 %v4101_v57  ;;  %v4108_v41 = vsel %vm1069_vm1, inf, %v3804_v62  ;;  %v1329_v62 = vsel %vm1328_vm12, %v3212_v32, %v3514_v40 }
 0x45c   : > { %1114 = vmin.xlane.f32.xlu0 %v4108_v41  ;;  %v4111_v45 = vpop.xlane.xlu0 %1038  ;;  %v1346_v35 = vsel %vm1345_vm13, %v1329_v62, %v3818_v21 }
 0x45d   : > { %4976 = vst [vmem:[#allocation56_spill] sm:$0xff] %v4111_v45  ;;  %vm1055_vm0 = vcmp.eq.f32.partialorder %v3208_v27, %v4111_v45  ;;  %v1330_v45 = vsel %vm1328_vm12, %v3210_v63, %v3516_v53  ;;  %v1331_v53 = vsel %vm1328_vm12, %v3228_v0, %v3530_v59  ;;  %v1333_v59 = vsel %vm1328_vm12, %v3226_v26, %v3538_v29 }
 0x45e   : > { %vm1071_vm7 = vmand %vm4977_vm2, %vm1055_vm0  ;;  %v1348_v21 = vsel %vm1345_vm13, %v1331_v53, %v3834_v19  ;;  %v1332_v19 = vsel %vm1328_vm12, %v3240_v3, %v3540_v28  ;;  %v1350_v62 = vsel %vm1345_vm13, %v1333_v59, %v3842_v47  ;;  %v1335_v29 = vsel %vm1328_vm12, %v3238_v2, %v3554_v15 }
 0x45f   : > { %v4119_v8 = vsel %vm1071_vm7, inf, %v3815_v54  ;;  %v1347_v54 = vsel %vm1345_vm13, %v1330_v45, %v3822_v39  ;;  %v1336_v59 = vsel %vm1328_vm12, %v3272_v10, %v3572_v4  ;;  %v1339_v4 = vsel %vm1328_vm12, %v3270_v25, %v3586_v34 }
 0x460   : > { %1118 = vmin.xlane.f32.xlu0 %v4119_v8 }
 0x4cc   : > { %v4130_v30 = vpop.xlane.xlu1 %1088 }
 0x4cd   : > { %vm1120_vm11 = vcmp.eq.f32.partialorder %v3958_v60, %v4130_v30  ;;  %v4138_v61 = vsel %vm1362_vm8, %v1346_v35, %v4130_v30  ;;  %v4140_v32 = vpop.xlane.xlu0 %1090 }
 0x4ce   : > { %vm1121_vm15 = vcmp.eq.f32.partialorder %v3967_v16, %v4140_v32  ;;  %v4146_v63 = vsel %vm1362_vm8, %v1347_v54, %v4140_v32  ;;  %v1136_v40 = vsel %vm1120_vm11, %v3208_v27, inf  ;;  %v4989_v32 = vld [vmem:[#allocation8_spill] sm:$0xff] }
 0x4cf   : > { %1152 = vmin.xlane.f32.xlu1 %v1136_v40  ;;  %v1137_v35 = vsel %vm1121_vm15, %v3208_v27, inf  ;;  %v1349_v40 = vsel %vm1345_vm13, %v1332_v19, %v3846_v55  ;;  %v1334_v55 = vsel %vm1328_vm12, %v3256_v44, %v3556_v17  ;;  %v1337_v17 = vsel %vm1328_vm12, %v3254_v49, %v3570_v23 }
 0x4d0   : > { %1154 = vmin.xlane.f32.xlu0 %v1137_v35  ;;  %v4161_v39 = vpop.xlane.xlu1 %1092  ;;  %v1352_v35 = vsel %vm1345_vm13, %v1335_v29, %v3858_v6  ;;  %v1354_v19 = vsel %vm1345_vm13, %v1337_v17, %v3874_v46  ;;  %v1356_v29 = vsel %vm1345_vm13, %v1339_v4, %v3890_v38 }
 0x4d1   : > { %vm1122_vm3 = vcmp.eq.f32.partialorder %v3976_v1, %v4161_v39  ;;  %v4167_v45 = vsel %vm1362_vm8, %v1348_v21, %v4161_v39 }
 0x4d2   : > { %v1138_v0 = vsel %vm1122_vm3, %v3208_v27, inf }
 0x4d3   : > { %1156 = vmin.xlane.f32.xlu1 %v1138_v0  ;;  %v1351_v0 = vsel %vm1345_vm13, %v1334_v55, %v3862_v50 }
 0x4d4   : > { %v4181_v54 = vpop.xlane.xlu1 %1096 }
 0x4d5   : > { %vm1124_vm5 = vcmp.eq.f32.partialorder %v3991_v43, %v4181_v54  ;;  %v4189_v53 = vsel %vm1362_vm8, %v1350_v62, %v4181_v54  ;;  %v4191_v26 = vpop.xlane.xlu0 %1094 }
 0x4d6   : > { %vm1123_vm9 = vcmp.eq.f32.partialorder %v4000_v24, %v4191_v26  ;;  %v4197_v3 = vsel %vm1362_vm8, %v1349_v40, %v4191_v26  ;;  %v1140_v47 = vsel %vm1124_vm5, %v3208_v27, inf  ;;  %v1353_v40 = vsel %vm1345_vm13, %v1336_v59, %v3878_v37 }
 0x4d7   : > { %1160 = vmin.xlane.f32.xlu1 %v1140_v47  ;;  %v1139_v28 = vsel %vm1123_vm9, %v3208_v27, inf  ;;  %v1338_v47 = vsel %vm1328_vm12, %v3288_v12, %v3588_v42 }
 0x4d8   : > { %1158 = vmin.xlane.f32.xlu0 %v1139_v28  ;;  %v4215_v21 = vpop.xlane.xlu1 %1100  ;;  %v1355_v55 = vsel %vm1345_vm13, %v1338_v47, %v3894_v5  ;;  %v1341_v5 = vsel %vm1328_vm12, %v3286_v11, %v3602_v58  ;;  %v4979_v47 = vld [vmem:[#allocation23_spill] sm:$0xff] }
 0x4d9   : > { %vm1126_vm4 = vcmp.eq.f32.partialorder %v4013_v33, %v4215_v21  ;;  %v4223_v2 = vsel %vm1362_vm8, %v1352_v35, %v4215_v21  ;;  %v4225_v15 = vpop.xlane.xlu0 %1098  ;;  %v1340_v35 = vsel %vm1328_vm12, %v3304_v14, %v3604_v9 }
 0x4da   : > { %vm1125_vm14 = vcmp.eq.f32.partialorder %v4022_v31, %v4225_v15  ;;  %v4231_v44 = vsel %vm1362_vm8, %v1351_v0, %v4225_v15  ;;  %v1142_v6 = vsel %vm1126_vm4, %v3208_v27, inf  ;;  %v1358_v0 = vsel %vm1345_vm13, %v1341_v5, %v3906_v36  ;;  %v4982_v5 = vld [vmem:[#allocation6_spill] sm:$0xff] }
 0x4db   : > { %1164 = vmin.xlane.f32.xlu1 %v1142_v6  ;;  %v1141_v50 = vsel %vm1125_vm14, %v3208_v27, inf  ;;  %v1357_v17 = vsel %vm1345_vm13, %v1340_v35, %v3910_v13  ;;  %v4978_v13 = vld [vmem:[#allocation3_spill] sm:$0xff]  ;;  %v4983_v35 = vld [vmem:[#allocation41_spill] sm:$0xff] }
 0x4dc   : > { %1162 = vmin.xlane.f32.xlu0 %v1141_v50  ;;  %v4249_v62 = vpop.xlane.xlu1 %1104  ;;  %v1342_v50 = vsel %vm1328_vm12, %v4978_v13, %v3620_v18 }
 0x4dd   : > { %vm1128_vm6 = vcmp.eq.f32.partialorder %v4035_v51, %v4249_v62  ;;  %v4257_v49 = vsel %vm1362_vm8, %v1354_v19, %v4249_v62  ;;  %v4259_v23 = vpop.xlane.xlu0 %1102  ;;  %v1359_v19 = vsel %vm1345_vm13, %v1342_v50, %v3926_v22 }
 0x4de   : > { %vm1127_vm10 = vcmp.eq.f32.partialorder %v4044_v56, %v4259_v23  ;;  %v4265_v10 = vsel %vm1362_vm8, %v1353_v40, %v4259_v23  ;;  %v1144_v46 = vsel %vm1128_vm6, %v3208_v27, inf }
 0x4df   : > { %1168 = vmin.xlane.f32.xlu1 %v1144_v46  ;;  %v1143_v37 = vsel %vm1127_vm10, %v3208_v27, inf }
 0x4e0   : > { %1166 = vmin.xlane.f32.xlu0 %v1143_v37  ;;  %v4283_v28 = vpop.xlane.xlu1 %1108 }
 0x4e1   : > { %vm4907_vm1 = vcmp.eq.f32.partialorder %v4057_v7, %v4283_v28  ;;  %v4291_v25 = vsel %vm1362_vm8, %v1356_v29, %v4283_v28  ;;  %v4293_v34 = vpop.xlane.xlu0 %1106  ;;  %v4980_v29 = vld [vmem:[#allocation5_spill] sm:$0xff] }
 0x4e2   : > { %vm4901_vm0 = vcmp.eq.f32.partialorder %v4066_v48, %v4293_v34  ;;  %v4299_v12 = vsel %vm1362_vm8, %v1355_v55, %v4293_v34  ;;  %v1146_v38 = vsel %vm4907_vm1, %v3208_v27, inf  ;;  %v1396_v55 = vsel %vm1328_vm12, %v4980_v29, %v4979_v47  ;;  %v4987_v29 = vld [vmem:[#allocation43_spill] sm:$0xff] }
 0x4e3   : > { %1172 = vmin.xlane.f32.xlu1 %v1146_v38  ;;  %v1145_v42 = vsel %vm4901_vm0, %v3208_v27, inf  ;;  %v4981_v38 = vld [vmem:[#allocation24_spill] sm:$0xff] }
 0x4e4   : > { %1170 = vmin.xlane.f32.xlu0 %v1145_v42  ;;  %v4317_v6 = vpop.xlane.xlu1 %1112  ;;  %v1397_v42 = vsel %vm1328_vm12, %v4982_v5, %v4981_v38 }
 0x4e5   : > { %vm4902_vm2 = vcmp.eq.f32.partialorder %v4079_v20, %v4317_v6  ;;  %v4325_v11 = vsel %vm1362_vm8, %v1358_v0, %v4317_v6  ;;  %v4327_v58 = vpop.xlane.xlu0 %1110  ;;  %v1412_v0 = vsel %vm1345_vm13, %v1396_v55, %v4983_v35 }
 0x4e6   : > { %vm4903_vm7 = vcmp.eq.f32.partialorder %v4088_v52, %v4327_v58  ;;  %v4333_v14 = vsel %vm1362_vm8, %v1357_v17, %v4327_v58  ;;  %v1148_v36 = vsel %vm4902_vm2, %v3208_v27, inf }
 0x4e7   : > { %1176 = vmin.xlane.f32.xlu1 %v1148_v36  ;;  %v1147_v9 = vsel %vm4903_vm7, %v3208_v27, inf  ;;  %v4984_v36 = vld [vmem:[#allocation42_spill] sm:$0xff] }
 0x4e8   : > { %1174 = vmin.xlane.f32.xlu0 %v1147_v9  ;;  %v4346_v59 = vpop.xlane.xlu1 %1116  ;;  %v1413_v9 = vsel %vm1345_vm13, %v1397_v42, %v4984_v36  ;;  %v4992_v36 = vld [vmem:[#allocation44_spill] sm:$0xff] }
 0x4e9   : > { %vm4906_vm0 = vcmp.eq.f32.partialorder %v4101_v57, %v4346_v59  ;;  %v4352_v40 = vpop.xlane.xlu0 %1114 }
 0x4ea   : > { %vm4904_vm2 = vcmp.eq.f32.partialorder %v4108_v41, %v4352_v40  ;;  %v4358_v46 = vsel %vm1362_vm8, %v1359_v19, %v4352_v40  ;;  %v1150_v18 = vsel %vm4906_vm0, %v3208_v27, inf }
 0x4eb   : > { %1180 = vmin.xlane.f32.xlu1 %v1150_v18  ;;  %v1149_v22 = vsel %vm4904_vm2, %v3208_v27, inf  ;;  %v4985_v18 = vld [vmem:[#allocation25_spill] sm:$0xff] }
 0x4ec   : > { %1178 = vmin.xlane.f32.xlu0 %v1149_v22  ;;  %v4986_v22 = vld [vmem:[#allocation7_spill] sm:$0xff] }
 0x4ed   : > { %v4368_v4 = vpop.xlane.xlu0 %1118 }
 0x4ee   : > { %vm4905_vm7 = vcmp.eq.f32.partialorder %v4119_v8, %v4368_v4 }
 0x4ef   : > { %v1151_v37 = vsel %vm4905_vm7, %v3208_v27, inf }
 0x4f0   : > { %1182 = vmin.xlane.f32.xlu0 %v1151_v37  ;;  %v1398_v37 = vsel %vm1328_vm12, %v4986_v22, %v4985_v18  ;;  %v4993_v18 = vld [vmem:[#allocation45_spill] sm:$0xff] }
 0x4f1   : > { %v1414_v55 = vsel %vm1345_vm13, %v1398_v37, %v4987_v29  ;;  %v4994_v29 = vld [vmem:[#allocation28_spill] sm:$0xff] }
 0x55c   : > { %v1153_v17 = vpop.xlane.xlu1 %1152 }
 0x55d   : > { %vm1184_vm2 = vcmp.eq.f32.partialorder %v3208_v27, %v1153_v17  ;;  %v4388_v13 = vsel %vm1362_vm8, %v1412_v0, %v1153_v17  ;;  %v1155_v50 = vpop.xlane.xlu0 %1154  ;;  %v4991_v0 = vld [vmem:[#allocation9_spill] sm:$0xff] }
 0x55e   : > { %vm1185_vm7 = vcmp.eq.f32.partialorder %v3208_v27, %v1155_v50  ;;  %v4392_v19 = vsel %vm1362_vm8, %v1413_v9, %v1155_v50  ;;  %vm1200_vm0 = vmand %vm1120_vm11, %vm1184_vm2 }
 0x55f   : > { %v4401_v47 = vsel %vm1200_vm0, inf, %v3958_v60  ;;  %vm1201_vm1 = vmand %vm1121_vm15, %vm1185_vm7  ;;  %v4988_v60 = vld [vmem:[#allocation26_spill] sm:$0xff] }
 0x560   : > { %1232 = vmin.xlane.f32.xlu1 %v4401_v47  ;;  %v1157_v38 = vpop.xlane.xlu1 %1156  ;;  %v4410_v30 = vsel %vm1201_vm1, inf, %v3967_v16  ;;  %v1400_v42 = vsel %vm1328_vm12, %v4989_v32, %v4988_v60  ;;  %v4990_v16 = vld [vmem:[#allocation27_spill] sm:$0xff]  ;;  %v4996_v32 = vld [vmem:[#allocation29_spill] sm:$0xff] }
 0x561   : > { %vm1186_vm11 = vcmp.eq.f32.partialorder %v3208_v27, %v1157_v38  ;;  %v4414_v5 = vsel %vm1362_vm8, %v1414_v55, %v1157_v38  ;;  %1234 = vmin.xlane.f32.xlu0 %v4410_v30  ;;  %v1399_v17 = vsel %vm1328_vm12, %v4991_v0, %v4990_v16  ;;  %v1416_v9 = vsel %vm1345_vm13, %v1400_v42, %v4992_v36  ;;  %v4995_v55 = vld [vmem:[#allocation10_spill] sm:$0xff]  ;;  %v4997_v42 = vld [vmem:[#allocation11_spill] sm:$0xff] }
 0x562   : > { %vm1202_vm15 = vmand %vm1122_vm3, %vm1186_vm11  ;;  %v1415_v39 = vsel %vm1345_vm13, %v1399_v17, %v4993_v18  ;;  %v1402_v38 = vsel %vm1328_vm12, %v4995_v55, %v4994_v29  ;;  %v1401_v16 = vsel %vm1328_vm12, %v4997_v42, %v4996_v32  ;;  %v4998_v0 = vld [vmem:[#allocation46_spill] sm:$0xff]  ;;  %v5002_v55 = vld [vmem:[#allocation31_spill] sm:$0xff] }
 0x563   : > { %v4424_v35 = vsel %vm1202_vm15, inf, %v3976_v1  ;;  %v1418_v17 = vsel %vm1345_vm13, %v1402_v38, %v4998_v0  ;;  %v5003_v38 = vld [vmem:[#allocation13_spill] sm:$0xff]  ;;  %v5004_v42 = vld [vmem:[#allocation48_spill] sm:$0xff] }
 0x564   : > { %1236 = vmin.xlane.f32.xlu1 %v4424_v35  ;;  %v1161_v50 = vpop.xlane.xlu1 %1160  ;;  %v1403_v32 = vsel %vm1328_vm12, %v5003_v38, %v5002_v55  ;;  %v5010_v38 = vld [vmem:[#allocation50_spill] sm:$0xff] }
 0x565   : > { %vm1188_vm3 = vcmp.eq.f32.partialorder %v3208_v27, %v1161_v50  ;;  %v4436_v22 = vsel %vm1362_vm8, %v1416_v9, %v1161_v50  ;;  %v1159_v1 = vpop.xlane.xlu0 %1158  ;;  %v4999_v9 = vld [vmem:[#allocation47_spill] sm:$0xff] }
 0x566   : > { %vm1187_vm1 = vcmp.eq.f32.partialorder %v3208_v27, %v1159_v1  ;;  %v4440_v37 = vsel %vm1362_vm8, %v1415_v39, %v1159_v1  ;;  %vm1204_vm0 = vmand %vm1124_vm5, %vm1188_vm3  ;;  %v5001_v39 = vld [vmem:[#allocation12_spill] sm:$0xff] }
 0x567   : > { %v4449_v60 = vsel %vm1204_vm0, inf, %v3991_v43  ;;  %vm1203_vm2 = vmand %vm1123_vm9, %vm1187_vm1  ;;  %v1417_v43 = vsel %vm1345_vm13, %v1401_v16, %v4999_v9  ;;  %vm5012_vm1 = vcmp.eq.f32.partialorder %v4057_v7, %v4283_v28 }
 0x568   : > { %1240 = vmin.xlane.f32.xlu1 %v4449_v60  ;;  %v1165_v54 = vpop.xlane.xlu1 %1164  ;;  %v4461_v36 = vsel %vm1203_vm2, inf, %v4000_v24  ;;  %v5000_v24 = vld [vmem:[#allocation30_spill] sm:$0xff]  ;;  %vm5015_vm2 = vcmp.eq.f32.partialorder %v4066_v48, %v4293_v34 }
 0x569   : > { %vm1190_vm5 = vcmp.eq.f32.partialorder %v3208_v27, %v1165_v54  ;;  %v4467_v26 = vsel %vm1362_vm8, %v1418_v17, %v1165_v54  ;;  %1238 = vmin.xlane.f32.xlu0 %v4461_v36  ;;  %v1163_v50 = vpop.xlane.xlu0 %1162  ;;  %v1404_v1 = vsel %vm1328_vm12, %v5001_v39, %v5000_v24  ;;  %v5005_v17 = vld [vmem:[#allocation49_spill] sm:$0xff] }
 0x56a   : > { %vm1189_vm9 = vcmp.eq.f32.partialorder %v3208_v27, %v1163_v50  ;;  %v4472_v18 = vsel %vm1362_vm8, %v1417_v43, %v1163_v50  ;;  %vm1206_vm7 = vmand %vm1126_vm4, %vm1190_vm5  ;;  %v1420_v16 = vsel %vm1345_vm13, %v1404_v1, %v5004_v42  ;;  %v5007_v43 = vld [vmem:[#allocation14_spill] sm:$0xff]  ;;  %v5008_v39 = vld [vmem:[#allocation33_spill] sm:$0xff] }
 0x56b   : > { %v4481_v29 = vsel %vm1206_vm7, inf, %v4013_v33  ;;  %vm1205_vm11 = vmand %vm1125_vm14, %vm1189_vm9  ;;  %v1419_v33 = vsel %vm1345_vm13, %v1403_v32, %v5005_v17  ;;  %v5009_v1 = vld [vmem:[#allocation15_spill] sm:$0xff] }
 0x56c   : > { %1244 = vmin.xlane.f32.xlu1 %v4481_v29  ;;  %v1169_v21 = vpop.xlane.xlu1 %1168  ;;  %v4493_v0 = vsel %vm1205_vm11, inf, %v4022_v31  ;;  %v5006_v31 = vld [vmem:[#allocation32_spill] sm:$0xff]  ;;  %v1405_v55 = vsel %vm1328_vm12, %v5009_v1, %v5008_v39  ;;  %vm5020_vm11 = vcmp.eq.f32.partialorder %v4079_v20, %v4317_v6  ;;  %v5024_v6 = vld [vmem:[#allocation55_spill] sm:$0xff] }
 0x56d   : > { %vm1192_vm4 = vcmp.eq.f32.partialorder %v3208_v27, %v1169_v21  ;;  %v4499_v15 = vsel %vm1362_vm8, %v1420_v16, %v1169_v21  ;;  %1242 = vmin.xlane.f32.xlu0 %v4493_v0  ;;  %v1167_v54 = vpop.xlane.xlu0 %1166  ;;  %v1406_v50 = vsel %vm1328_vm12, %v5007_v43, %v5006_v31  ;;  %v5011_v16 = vld [vmem:[#allocation51_spill] sm:$0xff]  ;;  %v5018_v1 = vld [vmem:[#allocation52_spill] sm:$0xff] }
 0x56e   : > { %vm1191_vm14 = vcmp.eq.f32.partialorder %v3208_v27, %v1167_v54  ;;  %v4504_v9 = vsel %vm1362_vm8, %v1419_v33, %v1167_v54  ;;  %vm1208_vm15 = vmand %vm1128_vm6, %vm1192_vm4  ;;  %v1422_v32 = vsel %vm1345_vm13, %v1406_v50, %v5010_v38  ;;  %v5014_v33 = vld [vmem:[#allocation16_spill] sm:$0xff]  ;;  %v5016_v43 = vld [vmem:[#allocation35_spill] sm:$0xff] }
 0x56f   : > { %v4513_v24 = vsel %vm1208_vm15, inf, %v4035_v51  ;;  %vm1207_vm3 = vmand %vm1127_vm10, %vm1191_vm14  ;;  %v1421_v51 = vsel %vm1345_vm13, %v1405_v55, %v5011_v16  ;;  %v5017_v50 = vld [vmem:[#allocation17_spill] sm:$0xff]  ;;  %vm5021_vm14 = vcmp.eq.f32.partialorder %v4088_v52, %v4327_v58 }
 0x570   : > { %1248 = vmin.xlane.f32.xlu1 %v4513_v24  ;;  %v1173_v62 = vpop.xlane.xlu1 %1172  ;;  %v4525_v42 = vsel %vm1207_vm3, inf, %v4044_v56  ;;  %v5013_v56 = vld [vmem:[#allocation34_spill] sm:$0xff]  ;;  %v1407_v39 = vsel %vm1328_vm12, %v5017_v50, %v5016_v43 }
 0x571   : > { %vm1194_vm6 = vcmp.eq.f32.partialorder %v3208_v27, %v1173_v62  ;;  %v4531_v23 = vsel %vm1362_vm8, %v1422_v32, %v1173_v62  ;;  %1246 = vmin.xlane.f32.xlu0 %v4525_v42  ;;  %v1171_v21 = vpop.xlane.xlu0 %1170  ;;  %v1408_v54 = vsel %vm1328_vm12, %v5014_v33, %v5013_v56  ;;  %v5019_v32 = vld [vmem:[#allocation53_spill] sm:$0xff] }
 0x572   : > { %vm1193_vm10 = vcmp.eq.f32.partialorder %v3208_v27, %v1171_v21  ;;  %v4536_v17 = vsel %vm1362_vm8, %v1421_v51, %v1171_v21  ;;  %vm1210_vm0 = vmand %vm5012_vm1, %vm1194_vm6  ;;  %v1424_v55 = vsel %vm1345_vm13, %v1408_v54, %v5018_v1  ;;  %v5022_v51 = vld [vmem:[#allocation37_spill] sm:$0xff]  ;;  %v5023_v21 = vld [vmem:[#allocation19_spill] sm:$0xff] }
 0x573   : > { %v4545_v31 = vsel %vm1210_vm0, inf, %v4057_v7  ;;  %vm1209_vm5 = vmand %vm5015_vm2, %vm1193_vm10  ;;  %v1423_v7 = vsel %vm1345_vm13, %v1407_v39, %v5019_v32  ;;  %v1409_v56 = vsel %vm1328_vm12, %v5023_v21, %v5022_v51  ;;  %vm5025_vm10 = vcmp.eq.f32.partialorder %v4101_v57, %v4346_v59 }
 0x574   : > { %1252 = vmin.xlane.f32.xlu1 %v4545_v31  ;;  %v1177_v28 = vpop.xlane.xlu1 %1176  ;;  %v4557_v38 = vsel %vm1209_vm5, inf, %v4066_v48  ;;  %v1425_v43 = vsel %vm1345_vm13, %v1409_v56, %v5024_v6  ;;  %vm5026_vm0 = vcmp.eq.f32.partialorder %v4108_v41, %v4352_v40 }
 0x575   : > { %vm1196_vm9 = vcmp.eq.f32.partialorder %v3208_v27, %v1177_v28  ;;  %v4563_v34 = vsel %vm1362_vm8, %v1424_v55, %v1177_v28  ;;  %1250 = vmin.xlane.f32.xlu0 %v4557_v38  ;;  %v1175_v62 = vpop.xlane.xlu0 %1174 }
 0x576   : > { %vm1195_vm7 = vcmp.eq.f32.partialorder %v3208_v27, %v1175_v62  ;;  %v4568_v16 = vsel %vm1362_vm8, %v1423_v7, %v1175_v62  ;;  %vm1212_vm4 = vmand %vm5020_vm11, %vm1196_vm9  ;;  %vm5027_vm9 = vcmp.eq.f32.partialorder %v4119_v8, %v4368_v4  ;;  %vm1379_vm11 = vcmask 31744  }
 0x577   : > { %v4574_v48 = vsel %vm1212_vm4, inf, %v4079_v20  ;;  %vm1211_vm15 = vmand %vm5021_vm14, %vm1195_vm7  ;;  %vm1464_vm4 = vcmask 39936  }
 0x578   : > { %1256 = vmin.xlane.f32.xlu1 %v4574_v48  ;;  %v4583_v33 = vpop.xlane.xlu1 %1180  ;;  %v4586_v54 = vsel %vm1211_vm15, inf, %v4088_v52 }
 0x579   : > { %vm1198_vm3 = vcmp.eq.f32.partialorder %v3208_v27, %v4583_v33  ;;  %1254 = vmin.xlane.f32.xlu0 %v4586_v54  ;;  %v1179_v20 = vpop.xlane.xlu0 %1178 }
 0x57a   : > { %vm1197_vm6 = vcmp.eq.f32.partialorder %v3208_v27, %v1179_v20  ;;  %v4595_v58 = vsel %vm1362_vm8, %v1425_v43, %v1179_v20  ;;  %vm1214_vm1 = vmand %vm5025_vm10, %vm1198_vm3 }
 0x57b   : > { %v4601_v52 = vsel %vm1214_vm1, inf, %v4101_v57  ;;  %vm1213_vm2 = vmand %vm5026_vm0, %vm1197_vm6 }
 0x57c   : > { %1260 = vmin.xlane.f32.xlu1 %v4601_v52  ;;  %v4608_v50 = vsel %vm1213_vm2, inf, %v4108_v41 }
 0x57d   : > { %1258 = vmin.xlane.f32.xlu0 %v4608_v50  ;;  %v4611_v39 = vpop.xlane.xlu0 %1182 }
 0x57e   : > { %vm1199_vm5 = vcmp.eq.f32.partialorder %v3208_v27, %v4611_v39 }
 0x57f   : > { %vm1215_vm7 = vmand %vm5027_vm9, %vm1199_vm5 }
 0x580   : > { %v4619_v57 = vsel %vm1215_vm7, inf, %v4119_v8 }
 0x581   : > { %1262 = vmin.xlane.f32.xlu0 %v4619_v57 }
 0x5ed   : > { %v1233_v41 = vpop.xlane.xlu1 %1232 }
 0x5ee   : > { %vm1264_vm14 = vcmp.eq.f32.partialorder %v4401_v47, %v1233_v41  ;;  %v1380_v40 = vsel %vm1379_vm11, %v4138_v61, %v1233_v41  ;;  %v1235_v8 = vpop.xlane.xlu0 %1234 }
 0x5ef   : > { %1465 = vst.msk [vmem:[%s4626_s26] sm:$0xff] %vm1464_vm4, %v1380_v40  ;;  %vm1265_vm15 = vcmp.eq.f32.partialorder %v4410_v30, %v1235_v8  ;;  %v1381_v1 = vsel %vm1379_vm11, %v4146_v63, %v1235_v8  ;;  %v1280_v55 = vsel %vm1264_vm14, %v3208_v27, inf  ;;  %v5029_v40 = vld [vmem:[#allocation2_spill] sm:$0xff] }
 0x5f0   : > { %1466 = vst.msk [vmem:[%s4626_s26 + $0x8] sm:$0xff] %vm1464_vm4, %v1381_v1  ;;  %1296 = vmin.xlane.f32.xlu1 %v1280_v55  ;;  %v1281_v28 = vsel %vm1265_vm15, %v3208_v27, inf  ;;  %v5030_v55 = vld [vmem:[#allocation39_spill] sm:$0xff] }
 0x5f1   : > { %1298 = vmin.xlane.f32.xlu0 %v1281_v28  ;;  %v1237_v47 = vpop.xlane.xlu1 %1236 }
 0x5f2   : > { %vm1266_vm3 = vcmp.eq.f32.partialorder %v4424_v35, %v1237_v47  ;;  %v1382_v61 = vsel %vm1379_vm11, %v4167_v45, %v1237_v47 }
 0x5f3   : > { %1467 = vst.msk [vmem:[%s4626_s26 + $0x10] sm:$0xff] %vm1464_vm4, %v1382_v61  ;;  %v1282_v63 = vsel %vm1266_vm3, %v3208_v27, inf }
 0x5f4   : > { %1300 = vmin.xlane.f32.xlu1 %v1282_v63 }
 0x5f5   : > { %v1241_v30 = vpop.xlane.xlu1 %1240 }
 0x5f6   : > { %vm1268_vm6 = vcmp.eq.f32.partialorder %v4449_v60, %v1241_v30  ;;  %v1384_v32 = vsel %vm1379_vm11, %v4189_v53, %v1241_v30  ;;  %v1239_v7 = vpop.xlane.xlu0 %1238  ;;  %v5031_v30 = vld [vmem:[#allocation22_spill] sm:$0xff] }
 0x5f7   : > { %1469 = vst.msk [vmem:[%s4626_s26 + $0x20] sm:$0xff] %vm1464_vm4, %v1384_v32  ;;  %vm1267_vm10 = vcmp.eq.f32.partialorder %v4461_v36, %v1239_v7  ;;  %v1383_v45 = vsel %vm1379_vm11, %v4197_v3, %v1239_v7  ;;  %v1284_v35 = vsel %vm1268_vm6, %v3208_v27, inf  ;;  %v5032_v32 = vld [vmem:[#allocation4_spill] sm:$0xff] }
 0x5f8   : > { %1468 = vst.msk [vmem:[%s4626_s26 + $0x18] sm:$0xff] %vm1464_vm4, %v1383_v45  ;;  %1304 = vmin.xlane.f32.xlu1 %v1284_v35  ;;  %v1283_v62 = vsel %vm1267_vm10, %v3208_v27, inf  ;;  %v5033_v7 = vld [vmem:[#allocation40_spill] sm:$0xff] }
 0x5f9   : > { %1302 = vmin.xlane.f32.xlu0 %v1283_v62  ;;  %v1245_v60 = vpop.xlane.xlu1 %1244 }
 0x5fa   : > { %vm1270_vm1 = vcmp.eq.f32.partialorder %v4481_v29, %v1245_v60  ;;  %v1386_v53 = vsel %vm1379_vm11, %v4223_v2, %v1245_v60  ;;  %v1243_v51 = vpop.xlane.xlu0 %1242 }
 0x5fb   : > { %1471 = vst.msk [vmem:[%s4626_s26 + $0x30] sm:$0xff] %vm1464_vm4, %v1386_v53  ;;  %vm1269_vm0 = vcmp.eq.f32.partialorder %v4493_v0, %v1243_v51  ;;  %v1385_v3 = vsel %vm1379_vm11, %v4231_v44, %v1243_v51  ;;  %v1286_v36 = vsel %vm1270_vm1, %v3208_v27, inf }
 0x5fc   : > { %1470 = vst.msk [vmem:[%s4626_s26 + $0x28] sm:$0xff] %vm1464_vm4, %v1385_v3  ;;  %1308 = vmin.xlane.f32.xlu1 %v1286_v36  ;;  %v1285_v21 = vsel %vm1269_vm0, %v3208_v27, inf }
 0x5fd   : > { %1306 = vmin.xlane.f32.xlu0 %v1285_v21  ;;  %v1249_v29 = vpop.xlane.xlu1 %1248 }
 0x5fe   : > { %vm1272_vm2 = vcmp.eq.f32.partialorder %v4513_v24, %v1249_v29  ;;  %v1388_v2 = vsel %vm1379_vm11, %v4257_v49, %v1249_v29  ;;  %v1247_v56 = vpop.xlane.xlu0 %1246 }
 0x5ff   : > { %1473 = vst.msk [vmem:[%s4626_s26 + $0x40] sm:$0xff] %vm1464_vm4, %v1388_v2  ;;  %vm1271_vm5 = vcmp.eq.f32.partialorder %v4525_v42, %v1247_v56  ;;  %v1387_v44 = vsel %vm1379_vm11, %v4265_v10, %v1247_v56  ;;  %v1288_v0 = vsel %vm1272_vm2, %v3208_v27, inf }
 0x600   : > { %1472 = vst.msk [vmem:[%s4626_s26 + $0x38] sm:$0xff] %vm1464_vm4, %v1387_v44  ;;  %1312 = vmin.xlane.f32.xlu1 %v1288_v0  ;;  %v1287_v6 = vsel %vm1271_vm5, %v3208_v27, inf }
 0x601   : > { %1310 = vmin.xlane.f32.xlu0 %v1287_v6  ;;  %v1253_v24 = vpop.xlane.xlu1 %1252 }
 0x602   : > { %vm1274_vm9 = vcmp.eq.f32.partialorder %v4545_v31, %v1253_v24  ;;  %v1390_v49 = vsel %vm1379_vm11, %v4291_v25, %v1253_v24  ;;  %v1251_v43 = vpop.xlane.xlu0 %1250 }
 0x603   : > { %1475 = vst.msk [vmem:[%s4626_s26 + $0x50] sm:$0xff] %vm1464_vm4, %v1390_v49  ;;  %vm1273_vm7 = vcmp.eq.f32.partialorder %v4557_v38, %v1251_v43  ;;  %v1389_v10 = vsel %vm1379_vm11, %v4299_v12, %v1251_v43  ;;  %v1290_v42 = vsel %vm1274_vm9, %v3208_v27, inf  ;;  %v5028_v38 = vld [vmem:[#allocation21_spill] sm:$0xff] }
 0x604   : > { %1474 = vst.msk [vmem:[%s4626_s26 + $0x48] sm:$0xff] %vm1464_vm4, %v1389_v10  ;;  %1316 = vmin.xlane.f32.xlu1 %v1290_v42  ;;  %v1289_v31 = vsel %vm1273_vm7, %v3208_v27, inf  ;;  %v1343_v12 = vsel %vm1328_vm12, %v5029_v40, %v5028_v38 }
 0x605   : > { %1314 = vmin.xlane.f32.xlu0 %v1289_v31  ;;  %v1257_v20 = vpop.xlane.xlu1 %1256 }
 0x606   : > { %vm1276_vm14 = vcmp.eq.f32.partialorder %v4574_v48, %v1257_v20  ;;  %v1392_v25 = vsel %vm1379_vm11, %v4325_v11, %v1257_v20  ;;  %v1255_v41 = vpop.xlane.xlu0 %1254  ;;  %v1360_v48 = vsel %vm1345_vm13, %v1343_v12, %v5030_v55 }
 0x607   : > { %1477 = vst.msk [vmem:[%s4626_s26 + $0x60] sm:$0xff] %vm1464_vm4, %v1392_v25  ;;  %vm1275_vm15 = vcmp.eq.f32.partialorder %v4586_v54, %v1255_v41  ;;  %v1391_v8 = vsel %vm1379_vm11, %v4333_v14, %v1255_v41  ;;  %v1292_v1 = vsel %vm1276_vm14, %v3208_v27, inf  ;;  %v1377_v28 = vsel %vm1362_vm8, %v1360_v48, %v4346_v59 }
 0x608   : > { %1476 = vst.msk [vmem:[%s4626_s26 + $0x58] sm:$0xff] %vm1464_vm4, %v1391_v8  ;;  %1320 = vmin.xlane.f32.xlu1 %v1292_v1  ;;  %v1291_v11 = vsel %vm1275_vm15, %v3208_v27, inf  ;;  %v1344_v59 = vsel %vm1328_vm12, %v5032_v32, %v5031_v30  ;;  %v5035_v30 = vld [vmem:[#allocation18_spill] sm:$0xff] }
 0x609   : > { %1318 = vmin.xlane.f32.xlu0 %v1291_v11  ;;  %v1261_v47 = vpop.xlane.xlu1 %1260  ;;  %v1361_v45 = vsel %vm1345_vm13, %v1344_v59, %v5033_v7 }
 0x60a   : > { %vm1278_vm3 = vcmp.eq.f32.partialorder %v4601_v52, %v1261_v47  ;;  %v1394_v14 = vsel %vm1379_vm11, %v1377_v28, %v1261_v47  ;;  %v1259_v54 = vpop.xlane.xlu0 %1258 }
 0x60b   : > { %1479 = vst.msk [vmem:[%s4626_s26 + $0x70] sm:$0xff] %vm1464_vm4, %v1394_v14  ;;  %vm1277_vm6 = vcmp.eq.f32.partialorder %v4608_v50, %v1259_v54  ;;  %v1393_v61 = vsel %vm1379_vm11, %v4358_v46, %v1259_v54  ;;  %v1294_v63 = vsel %vm1278_vm3, %v3208_v27, inf  ;;  %v1378_v50 = vsel %vm1362_vm8, %v1361_v45, %v4368_v4 }
 0x60c   : > { %1478 = vst.msk [vmem:[%s4626_s26 + $0x68] sm:$0xff] %vm1464_vm4, %v1393_v61  ;;  %1324 = vmin.xlane.f32.xlu1 %v1294_v63  ;;  %v1293_v52 = vsel %vm1277_vm6, %v3208_v27, inf }
 0x60d   : > { %1322 = vmin.xlane.f32.xlu0 %v1293_v52  ;;  %v5036_v52 = vld [vmem:[#allocation54_spill] sm:$0xff] }
 0x60e   : > { %v1263_v46 = vpop.xlane.xlu0 %1262 }
 0x60f   : > { %vm1279_vm10 = vcmp.eq.f32.partialorder %v4619_v57, %v1263_v46  ;;  %v1395_v35 = vsel %vm1379_vm11, %v1378_v50, %v1263_v46 }
 0x610   : > { %1480 = vst.msk [vmem:[%s4626_s26 + $0x78] sm:$0xff] %vm1464_vm4, %v1395_v35  ;;  %v1295_v62 = vsel %vm1279_vm10, %v3208_v27, inf }
 0x611   : > { %1326 = vmin.xlane.f32.xlu0 %v1295_v62 }
 0x67d   : > { %v1297_v60 = vpop.xlane.xlu1 %1296 }
 0x67e   : > { %v1444_v53 = vsel %vm1379_vm11, %v4388_v13, %v1297_v60  ;;  %v1299_v51 = vpop.xlane.xlu0 %1298 }
 0x67f   : > { %v2907_v3 = vtrunc.f32 %v1444_v53  ;;  %v1445_v36 = vsel %vm1379_vm11, %v4392_v19, %v1299_v51  ;;  %v5037_v51 = vld [vmem:[#allocation38_spill] sm:$0xff] }
 0x680   : > { %v2909_v4 = vtrunc.f32 %v1445_v36 }
 0x681   : > { %v2908_v27 = vcvt.f32.s32 %v2907_v3  ;;  %v1301_v57 = vpop.xlane.xlu1 %1300  ;;  %v5038_v3 = vld [vmem:[#allocation20_spill] sm:$0xff] }
 0x682   : > { %v2910_v21 = vcvt.f32.s32 %v2909_v4  ;;  %v1446_v13 = vsel %vm1379_vm11, %v4414_v5, %v1301_v57  ;;  %v1411_v36 = vsel %vm1328_vm12, %v5038_v3, %v5037_v51  ;;  %v5039_v4 = vld [vmem:[#allocation56_spill] sm:$0xff] }
 0x683   : > { %1497 = vst.msk [vmem:[%s4744_s29] sm:$0xff] %vm1464_vm4, %v2908_v27  ;;  %v2911_v29 = vtrunc.f32 %v1446_v13  ;;  %v1427_v27 = vsel %vm1345_vm13, %v1411_v36, %v5039_v4 }
 0x684   : > { %1498 = vst.msk [vmem:[%s4744_s29 + $0x8] sm:$0xff] %vm1464_vm4, %v2910_v21  ;;  %v1443_v21 = vsel %vm1362_vm8, %v1427_v27, %v4611_v39 }
 0x685   : > { %v2912_v19 = vcvt.f32.s32 %v2911_v29  ;;  %v1305_v2 = vpop.xlane.xlu1 %1304 }
 0x686   : > { %v1448_v56 = vsel %vm1379_vm11, %v4436_v22, %v1305_v2  ;;  %v1303_v44 = vpop.xlane.xlu0 %1302 }
 0x687   : > { %1499 = vst.msk [vmem:[%s4744_s29 + $0x10] sm:$0xff] %vm1464_vm4, %v2912_v19  ;;  %v2915_v0 = vtrunc.f32 %v1448_v56  ;;  %v1447_v6 = vsel %vm1379_vm11, %v4440_v37, %v1303_v44 }
 0x688   : > { %v2913_v5 = vtrunc.f32 %v1447_v6 }
 0x689   : > { %v2916_v24 = vcvt.f32.s32 %v2915_v0  ;;  %v1309_v49 = vpop.xlane.xlu1 %1308 }
 0x68a   : > { %v2914_v43 = vcvt.f32.s32 %v2913_v5  ;;  %v1450_v10 = vsel %vm1379_vm11, %v4467_v26, %v1309_v49  ;;  %v1307_v42 = vpop.xlane.xlu0 %1306 }
 0x68b   : > { %1501 = vst.msk [vmem:[%s4744_s29 + $0x20] sm:$0xff] %vm1464_vm4, %v2916_v24  ;;  %v2919_v22 = vtrunc.f32 %v1450_v10  ;;  %v1449_v31 = vsel %vm1379_vm11, %v4472_v18, %v1307_v42 }
 0x68c   : > { %1500 = vst.msk [vmem:[%s4744_s29 + $0x18] sm:$0xff] %vm1464_vm4, %v2914_v43  ;;  %v2917_v20 = vtrunc.f32 %v1449_v31 }
 0x68d   : > { %v2920_v37 = vcvt.f32.s32 %v2919_v22  ;;  %v1313_v25 = vpop.xlane.xlu1 %1312 }
 0x68e   : > { %v2918_v41 = vcvt.f32.s32 %v2917_v20  ;;  %v1452_v38 = vsel %vm1379_vm11, %v4499_v15, %v1313_v25  ;;  %v1311_v40 = vpop.xlane.xlu0 %1310 }
 0x68f   : > { %1503 = vst.msk [vmem:[%s4744_s29 + $0x30] sm:$0xff] %vm1464_vm4, %v2920_v37  ;;  %v2923_v26 = vtrunc.f32 %v1452_v38  ;;  %v1451_v12 = vsel %vm1379_vm11, %v4504_v9, %v1311_v40 }
 0x690   : > { %1502 = vst.msk [vmem:[%s4744_s29 + $0x28] sm:$0xff] %vm1464_vm4, %v2918_v41  ;;  %v2921_v18 = vtrunc.f32 %v1451_v12 }
 0x691   : > { %v2924_v8 = vcvt.f32.s32 %v2923_v26  ;;  %v1317_v1 = vpop.xlane.xlu1 %1316 }
 0x692   : > { %v2922_v55 = vcvt.f32.s32 %v2921_v18  ;;  %v1454_v48 = vsel %vm1379_vm11, %v4531_v23, %v1317_v1  ;;  %v1315_v11 = vpop.xlane.xlu0 %1314  ;;  %v5034_v23 = vld [vmem:[#allocation36_spill] sm:$0xff] }
 0x693   : > { %1505 = vst.msk [vmem:[%s4744_s29 + $0x40] sm:$0xff] %vm1464_vm4, %v2924_v8  ;;  %v2927_v15 = vtrunc.f32 %v1454_v48  ;;  %v1453_v28 = vsel %vm1379_vm11, %v4536_v17, %v1315_v11  ;;  %v1410_v32 = vsel %vm1328_vm12, %v5035_v30, %v5034_v23 }
 0x694   : > { %1504 = vst.msk [vmem:[%s4744_s29 + $0x38] sm:$0xff] %vm1464_vm4, %v2922_v55  ;;  %v2925_v9 = vtrunc.f32 %v1453_v28  ;;  %v1426_v7 = vsel %vm1345_vm13, %v1410_v32, %v5036_v52 }
 0x695   : > { %v2928_v47 = vcvt.f32.s32 %v2927_v15  ;;  %v1321_v14 = vpop.xlane.xlu1 %1320 }
 0x696   : > { %v2926_v54 = vcvt.f32.s32 %v2925_v9  ;;  %v1456_v61 = vsel %vm1379_vm11, %v4563_v34, %v1321_v14  ;;  %v1319_v63 = vpop.xlane.xlu0 %1318  ;;  %v1442_v34 = vsel %vm1362_vm8, %v1426_v7, %v4583_v33 }
 0x697   : > { %1507 = vst.msk [vmem:[%s4744_s29 + $0x50] sm:$0xff] %vm1464_vm4, %v2928_v47  ;;  %v2931_v59 = vtrunc.f32 %v1456_v61  ;;  %v1455_v17 = vsel %vm1379_vm11, %v4568_v16, %v1319_v63 }
 0x698   : > { %1506 = vst.msk [vmem:[%s4744_s29 + $0x48] sm:$0xff] %vm1464_vm4, %v2926_v54  ;;  %v2929_v45 = vtrunc.f32 %v1455_v17 }
 0x699   : > { %v2932_v50 = vcvt.f32.s32 %v2931_v59  ;;  %v1325_v46 = vpop.xlane.xlu1 %1324 }
 0x69a   : > { %v2930_v35 = vcvt.f32.s32 %v2929_v45  ;;  %v1458_v62 = vsel %vm1379_vm11, %v1442_v34, %v1325_v46  ;;  %v1323_v60 = vpop.xlane.xlu0 %1322 }
 0x69b   : > { %1509 = vst.msk [vmem:[%s4744_s29 + $0x60] sm:$0xff] %vm1464_vm4, %v2932_v50  ;;  %v2935_v16 = vtrunc.f32 %v1458_v62  ;;  %v1457_v53 = vsel %vm1379_vm11, %v4595_v58, %v1323_v60 }
 0x69c   : > { %1508 = vst.msk [vmem:[%s4744_s29 + $0x58] sm:$0xff] %vm1464_vm4, %v2930_v35  ;;  %v2933_v33 = vtrunc.f32 %v1457_v53 }
 0x69d   : > { %v2936_v57 = vcvt.f32.s32 %v2935_v16 }
 0x69e   : > { %v2934_v13 = vcvt.f32.s32 %v2933_v33  ;;  %v1327_v29 = vpop.xlane.xlu0 %1326 }
 0x69f   : > { %1511 = vst.msk [vmem:[%s4744_s29 + $0x70] sm:$0xff] %vm1464_vm4, %v2936_v57  ;;  %v1459_v58 = vsel %vm1379_vm11, %v1443_v21, %v1327_v29 }
 0x6a0   : > { %1510 = vst.msk [vmem:[%s4744_s29 + $0x68] sm:$0xff] %vm1464_vm4, %v2934_v13  ;;  %v2937_v19 = vtrunc.f32 %v1459_v58 }
 0x6a2   : > { %v2938_v2 = vcvt.f32.s32 %v2937_v19 }
 0x6a4   : > { %1512 = vst.msk [vmem:[%s4744_s29 + $0x78] sm:$0xff] %vm1464_vm4, %v2938_v2 }
 0x6a5 PF: > { %s14_s14 = sadd.s32 1, %s2994_s14   ;;  %s5040_s12 = smov %s2990_s13 }
 0x6a6   : > { %p11_p5 = scmp.ge.s32.totalorder %s14_s14, 4   ;;  %s5041_s13 = smov %s5043_s15 }
 0x6a8   :  { %13 = sbr.rel (!%p11_p5) target bundleno = 2 (0x2), region = 81 }

// kernel: _lambda_.5
= control target key start
LH: loop header
LB: loop body
LE: loop exit
PB: predicated region body
PF: predicated region fallthrough
CT: control target
= control target key end

     0   :  { %9 = vsyncpa [#allocation3], 0  ;;  %s7264_s0 = inlined_call_operand.vmem [shape: f32[4,128,3], index: 0, kind: input, shape index: {}]   ;;  %s7265_s1 = inlined_call_operand.vmem [shape: f32[4,3,128], index: 1, kind: input, shape index: {}]   ;;  %s7266_s2 = inlined_call_operand.hbm [shape: f32[4,128,8], index: 2, kind: output, shape index: {0}]   ;;  %s7267_s3 = inlined_call_operand.vmem [shape: s32[4,128,8], index: 3, kind: output, shape index: {1}]  }
   0x1   :  { %11 = vsyncpa [#allocation3 + $0x1], 0  ;;  %s4266_s12 = smov 0   ;;  %s4268_s13 = smov 0  }
   0x2   :  { %s4270_s14 = smov 0   ;;  %s4272_s15 = smov 0  }
   0x3   :  { %s4274_s16 = smov 0   ;;  %s4276_s17 = smov 0  }
   0x4 LB: > { %s4043_s18 = sadd.s32 4294967295, %s4238_s17   ;;  %s4044_s19 = sadd.s32 4294967294, %s4238_s17   ;;  %s4238_s17 = sphi %s4276_s17, %s17_s17   ;;  %s4234_s16 = sphi %s4274_s16, %s7807_s16   ;;  %s4230_s15 = sphi %s4272_s15, %s7806_s15   ;;  %s4226_s14 = sphi %s4270_s14, %s7805_s14   ;;  %s4222_s13 = sphi %s4268_s13, %s7804_s13   ;;  %s4218_s12 = sphi %s4266_s12, %s7803_s12  }
   0x5   : > { %s36_s20 = sadd.s32 1, %s4234_s16  ;;  %s101_s21 = sadd.s32 1, %s4226_s14 }
   0x6   : > { %p38_p0 = scmp.ge.s32.totalorder %s36_s20, 4  ;;  %p111_p1 = scmp.ne.s32.totalorder %s4226_s14, %s4222_s13 }
   0x7   : > { %p112_p2 = scmp.eq.s32.totalorder %s4043_s18, 3  ;;  %p117_p3 = scmp.ne.s32.totalorder %s4222_s13, %s4218_s12 }
   0x8   : > { %s7809_s20 = smov (%p38_p0, %s36_s20), 0  ;;  %p118_p5 = scmp.eq.s32.totalorder %s4044_s19, 3 }
   0x9   : > { %p4306_p4 = por %p112_p2, %p111_p1  ;;  %s96_s23 = ssub.s32 %s4234_s16, %s7809_s20 }
   0xa   : > { %p4047_p6 = scmp.ge.s32.totalorder %s4238_s17, 1  ;;  %p99_p7 = scmp.eq.s32.totalorder %s96_s23, 0 }
   0xb   : > { %p4313_p8 = por %p118_p5, %p117_p3  ;;  %p187_p9 = scmp.lt.s32.totalorder %s4238_s17, 5 }
   0xc   : > { %s4319_s25 = scalar_select %p99_p7, %s4226_s14, %s101_s21  }
   0xd   : > { %p188_p10 = pnand %p4047_p6, %p187_p9 }
   0xf   : > { %191 = sbr.rel (%p188_p10) target bundleno = 2577 (0xa11), region = 28 }
  0x16   : > { %p232_p11 = scmp.lt.s32.totalorder %s4230_s15, 3  ;;  %v4240_v0 = vmov 0   ;;  %v4241_v17 = vmov 1   ;;  %v4242_v18 = vmov 2   ;;  %v356_v43 = vlaneseq  ;;  %s217_s8 = sand.u32 1, %s4222_s13  }
  0x17   : > { %4155 = vset.pattern.permute.xlu1 %v4240_v0  ;;  %4154 = vset.pattern.permute.xlu0 %v4240_v0  ;;  %s4048_s9 = sshll.u32 %s217_s8, 7  ;;  %s4061_s11 = sshll.u32 %s4230_s15, 11 }
  0x18   : > { %s4323_s26 = scalar_select %p232_p11, %s4230_s15, 3  ;;  %v357_v46 = vshrl.u32 %v356_v43, 7 }
  0x19   : > { %s6993_s10 = scalar_lea.vmem [#allocation2], %s4048_s9  ;;  %s7117_s23 = scalar_lea.hbm %s7266_s2, %s4061_s11 }
  0x1a   : > { %s4059_s27 = sshll.u32 %s4323_s26, 7  ;;  %s4051_s4 = sshll.u32 %s4323_s26, 2  ;;  %v474_v47 = vsub.s32 1, %v357_v46  ;;  %v358_v50 = vsub.s32 0, %v357_v46  ;;  %v590_v56 = vsub.s32 2, %v357_v46 }
  0x1b   : > { %s239_s30 = scalar_lea.vmem %s7264_s0, %s4059_s27  ;;  %s247_s7 = scalar_lea.vmem %s7265_s1, %s4051_s4 }
  0x1c   : > { %v261_v1 = vld [vmem:[%s239_s30 + $0x10] sm:$0xff]  ;;  %v259_v2 = vld [vmem:[%s239_s30] sm:$0xff]  ;;  %v262_v3 = vld [vmem:[%s239_s30 + $0x18] sm:$0xff]  ;;  %s3905_s18 = sshll.u32 %s6993_s10, 4  ;;  %s7123_s28 = scalar_lea.sflag [#allocation3], %s217_s8  ;;  %s7119_s18 = int_to_ptr.vmem [resolvable:$true] %s3905_s18 }
  0x1d   : > { %288 = vperm.xlu1 %4155, %v261_v1   ;;  %278 = vperm.xlu0 %4154, %v259_v2   ;;  %v260_v4 = vld [vmem:[%s239_s30 + $0x8] sm:$0xff]  ;;  %v263_v6 = vld [vmem:[%s239_s30 + $0x20] sm:$0xff]  ;;  %v266_v7 = vld [vmem:[%s239_s30 + $0x38] sm:$0xff]  ;;  %s4160_s29 = scalar_lea.vmem %s7119_s18, 2048  ;;  %s4243_s15 = smov [#allocation2]  }
  0x1e   : > { %v264_v5 = vld [vmem:[%s239_s30 + $0x28] sm:$0xff]  ;;  %v265_v8 = vld [vmem:[%s239_s30 + $0x30] sm:$0xff]  ;;  %v267_v10 = vld [vmem:[%s239_s30 + $0x40] sm:$0xff]  ;;  %p4161_p12 = scmp.ne.s32.totalorder %s7119_s18, %s4160_s29 }
  0x1f   : > { %v268_v9 = vld [vmem:[%s239_s30 + $0x48] sm:$0xff]  ;;  %v270_v11 = vld [vmem:[%s239_s30 + $0x58] sm:$0xff]  ;;  %v269_v12 = vld [vmem:[%s239_s30 + $0x50] sm:$0xff] }
  0x20   : > { %v272_v13 = vld [vmem:[%s239_s30 + $0x68] sm:$0xff]  ;;  %v271_v14 = vld [vmem:[%s239_s30 + $0x60] sm:$0xff]  ;;  %v274_v15 = vld [vmem:[%s239_s30 + $0x78] sm:$0xff]  ;;  %p4162_p13 = pnand %p4161_p12, %p4306_p4 }
  0x21   : > { %293 = vperm.xlu1 %4155, %v262_v3   ;;  %283 = vperm.xlu0 %4154, %v260_v4   ;;  %v273_v16 = vld [vmem:[%s239_s30 + $0x70] sm:$0xff]  ;;  %v275_v51 = vld [vmem:[%s247_s7] sm:$0x7]  ;;  %s4164_s30 = sshll.u32 %s4243_s15, 4  ;;  %s4165_s30 = int_to_ptr.vmem [resolvable:$false] %s4164_s30 }
  0x22   : > { %v4364_v52 = vrot.slane %v275_v51, %v474_v47  ;;  %v4370_v55 = vrot.slane %v275_v51, %v358_v50  ;;  %v4379_v62 = vrot.slane %v275_v51, %v590_v56  ;;  %p4163_p0 = pneg %p4162_p13  ;;  %s4166_s4 = scalar_lea.vmem %s4165_s30, 4096 }
  0x23   : > { %p4167_p1 = scmp.lt.s32.totalorder %s7119_s18, %s4165_s30  ;;  %p4168_p2 = scmp.lt.s32.totalorder %s4166_s4, %s4160_s29 }
  0x25   : > { %303 = vperm.xlu1 %4155, %v264_v5   ;;  %298 = vperm.xlu0 %4154, %v263_v6   ;;  %p4169_p3 = por %p4168_p2, %p4167_p1 }
  0x27   : > { %p4170_p5 = pnand %p4169_p3, %p4163_p0 }
  0x29   : > { %313 = vperm.xlu1 %4155, %v266_v7   ;;  %308 = vperm.xlu0 %4154, %v265_v8  }
  0x2d   : > { %323 = vperm.xlu1 %4155, %v268_v9   ;;  %318 = vperm.xlu0 %4154, %v267_v10  }
  0x31   : > { %333 = vperm.xlu1 %4155, %v270_v11   ;;  %328 = vperm.xlu0 %4154, %v269_v12  }
  0x35   : > { %343 = vperm.xlu1 %4155, %v272_v13   ;;  %338 = vperm.xlu0 %4154, %v271_v14  }
  0x39   : > { %353 = vperm.xlu1 %4155, %v274_v15   ;;  %348 = vperm.xlu0 %4154, %v273_v16  }
  0x3d   : > { %4157 = vset.pattern.permute.xlu1 %v4241_v17  ;;  %4156 = vset.pattern.permute.xlu0 %v4241_v17 }
  0x3e   : > { %413 = vperm.xlu1 %4157, %v260_v4   ;;  %409 = vperm.xlu0 %4156, %v259_v2  }
  0x42   : > { %417 = vperm.xlu1 %4157, %v261_v1   ;;  %421 = vperm.xlu0 %4156, %v262_v3  }
  0x46   : > { %425 = vperm.xlu1 %4157, %v263_v6   ;;  %429 = vperm.xlu0 %4156, %v264_v5  }
  0x4a   : > { %433 = vperm.xlu1 %4157, %v265_v8   ;;  %437 = vperm.xlu0 %4156, %v266_v7  }
  0x4e   : > { %441 = vperm.xlu1 %4157, %v267_v10   ;;  %445 = vperm.xlu0 %4156, %v268_v9  }
  0x52   : > { %449 = vperm.xlu1 %4157, %v269_v12   ;;  %453 = vperm.xlu0 %4156, %v270_v11  }
  0x56   : > { %457 = vperm.xlu1 %4157, %v271_v14   ;;  %461 = vperm.xlu0 %4156, %v272_v13  }
  0x5a   : > { %465 = vperm.xlu1 %4157, %v273_v16   ;;  %469 = vperm.xlu0 %4156, %v274_v15  }
  0x5e   : > { %4158 = vset.pattern.permute.xlu1 %v4242_v18  ;;  %4159 = vset.pattern.permute.xlu0 %v4242_v18 }
  0x5f   : > { %525 = vperm.xlu1 %4158, %v259_v2   ;;  %529 = vperm.xlu0 %4159, %v260_v4  }
  0x63   : > { %533 = vperm.xlu1 %4158, %v261_v1   ;;  %541 = vperm.xlu0 %4159, %v263_v6  }
  0x67   : > { %537 = vperm.xlu1 %4158, %v262_v3   ;;  %549 = vperm.xlu0 %4159, %v265_v8  }
  0x6b   : > { %545 = vperm.xlu1 %4158, %v264_v5   ;;  %557 = vperm.xlu0 %4159, %v267_v10  }
  0x6f   : > { %553 = vperm.xlu1 %4158, %v266_v7   ;;  %565 = vperm.xlu0 %4159, %v269_v12  }
  0x73   : > { %561 = vperm.xlu1 %4158, %v268_v9   ;;  %573 = vperm.xlu0 %4159, %v271_v14  }
  0x77   : > { %569 = vperm.xlu1 %4158, %v270_v11   ;;  %581 = vperm.xlu0 %4159, %v273_v16  }
  0x7b   : > { %577 = vperm.xlu1 %4158, %v272_v13  }
  0x7f   : > { %585 = vperm.xlu1 %4158, %v274_v15  }
  0x9c   : > { %v289_v19 = vpop.permute.xlu1 %288  ;;  %v279_v20 = vpop.permute.xlu0 %278 }
  0x9d   : > { %v362_v61 = vsub.f32 %v289_v19, %v4370_v55  ;;  %v360_v63 = vsub.f32 %v279_v20, %v4370_v55 }
  0x9f   : > { %v378_v6 = vmul.f32 %v362_v61, %v362_v61  ;;  %v376_v12 = vmul.f32 %v360_v63, %v360_v63 }
  0xa0   : > { %v294_v21 = vpop.permute.xlu1 %293  ;;  %v284_v22 = vpop.permute.xlu0 %283 }
  0xa1   : > { %v361_v0 = vsub.f32 %v284_v22, %v4370_v55  ;;  %v363_v1 = vsub.f32 %v294_v21, %v4370_v55 }
  0xa3   : > { %v377_v13 = vmul.f32 %v361_v0, %v361_v0  ;;  %v379_v16 = vmul.f32 %v363_v1, %v363_v1 }
  0xa4   : > { %v304_v23 = vpop.permute.xlu1 %303  ;;  %v299_v24 = vpop.permute.xlu0 %298 }
  0xa5   : > { %v365_v7 = vsub.f32 %v304_v23, %v4370_v55  ;;  %v364_v8 = vsub.f32 %v299_v24, %v4370_v55 }
  0xa7   : > { %v381_v24 = vmul.f32 %v365_v7, %v365_v7 }
  0xa8   : > { %v4331_v25 = vpop.permute.xlu1 %313  ;;  %v4333_v26 = vpop.permute.xlu0 %308 }
  0xa9   : > { %v367_v0 = vsub.f32 %v4331_v25, %v4370_v55 }
  0xac   : > { %v4335_v27 = vpop.permute.xlu1 %323  ;;  %v4337_v28 = vpop.permute.xlu0 %318 }
  0xb0   : > { %v4339_v29 = vpop.permute.xlu1 %333  ;;  %v4341_v30 = vpop.permute.xlu0 %328 }
  0xb4   : > { %v4343_v31 = vpop.permute.xlu1 %343  ;;  %v4345_v32 = vpop.permute.xlu0 %338 }
  0xb8   : > { %v4347_v33 = vpop.permute.xlu1 %353  ;;  %v4349_v34 = vpop.permute.xlu0 %348 }
  0xbd   : > { %v414_v35 = vpop.permute.xlu1 %413  ;;  %v410_v36 = vpop.permute.xlu0 %409 }
  0xbe   : > { %v477_v57 = vsub.f32 %v414_v35, %v4364_v52  ;;  %v476_v58 = vsub.f32 %v410_v36, %v4364_v52  ;;  %v380_v35 = vmul.f32 %v364_v8, %v364_v8  ;;  %v366_v36 = vsub.f32 %v4333_v26, %v4370_v55 }
  0xc0   : > { %v493_v4 = vmul.f32 %v477_v57, %v477_v57  ;;  %v492_v5 = vmul.f32 %v476_v58, %v476_v58  ;;  %v382_v1 = vmul.f32 %v366_v36, %v366_v36 }
  0xc1   : > { %v418_v37 = vpop.permute.xlu1 %417  ;;  %v422_v38 = vpop.permute.xlu0 %421 }
  0xc2   : > { %v478_v2 = vsub.f32 %v418_v37, %v4364_v52  ;;  %v479_v9 = vsub.f32 %v422_v38, %v4364_v52  ;;  %v509_v20 = vadd.f32 %v493_v4, %v377_v13  ;;  %v508_v21 = vadd.f32 %v492_v5, %v376_v12 }
  0xc4   : > { %v494_v17 = vmul.f32 %v478_v2, %v478_v2  ;;  %v495_v37 = vmul.f32 %v479_v9, %v479_v9  ;;  %v368_v2 = vsub.f32 %v4337_v28, %v4370_v55 }
  0xc5   : > { %v426_v39 = vpop.permute.xlu1 %425  ;;  %v430_v40 = vpop.permute.xlu0 %429 }
  0xc6   : > { %v480_v3 = vsub.f32 %v426_v39, %v4364_v52  ;;  %v481_v57 = vsub.f32 %v430_v40, %v4364_v52  ;;  %v511_v8 = vadd.f32 %v495_v37, %v379_v16  ;;  %v384_v13 = vmul.f32 %v368_v2, %v368_v2 }
  0xc7   : > { %v371_v2 = vsub.f32 %v4339_v29, %v4370_v55 }
  0xc8   : > { %v496_v18 = vmul.f32 %v480_v3, %v480_v3  ;;  %v497_v9 = vmul.f32 %v481_v57, %v481_v57 }
  0xc9   : > { %v434_v41 = vpop.permute.xlu1 %433  ;;  %v4351_v42 = vpop.permute.xlu0 %437 }
  0xca   : > { %v482_v19 = vsub.f32 %v434_v41, %v4364_v52  ;;  %v510_v41 = vadd.f32 %v494_v17, %v378_v6  ;;  %v512_v56 = vadd.f32 %v496_v18, %v380_v35  ;;  %v483_v3 = vsub.f32 %v4351_v42, %v4364_v52 }
  0xcb   : > { %v383_v42 = vmul.f32 %v367_v0, %v367_v0 }
  0xcc   : > { %v498_v58 = vmul.f32 %v482_v19, %v482_v19 }
  0xcd   : > { %v442_v44 = vpop.permute.xlu1 %441  ;;  %v4354_v45 = vpop.permute.xlu0 %445 }
  0xce   : > { %v484_v61 = vsub.f32 %v442_v44, %v4364_v52  ;;  %v514_v25 = vadd.f32 %v498_v58, %v382_v1 }
  0xd0   : > { %v500_v28 = vmul.f32 %v484_v61, %v484_v61 }
  0xd1   : > { %v4360_v48 = vpop.permute.xlu1 %449  ;;  %v4362_v49 = vpop.permute.xlu0 %453 }
  0xd5   : > { %v4366_v53 = vpop.permute.xlu1 %457  ;;  %v4368_v54 = vpop.permute.xlu0 %461 }
  0xd6   : > { %v488_v35 = vsub.f32 %v4366_v53, %v4364_v52  ;;  %v489_v29 = vsub.f32 %v4368_v54, %v4364_v52 }
  0xd9   : > { %v4374_v59 = vpop.permute.xlu1 %465  ;;  %v4376_v60 = vpop.permute.xlu0 %469 }
  0xde   : > { %v526_v10 = vpop.permute.xlu1 %525  ;;  %v530_v11 = vpop.permute.xlu0 %529 }
  0xdf   : > { %v592_v14 = vsub.f32 %v526_v10, %v4379_v62  ;;  %v593_v15 = vsub.f32 %v530_v11, %v4379_v62  ;;  %v486_v10 = vsub.f32 %v4360_v48, %v4364_v52 }
  0xe1   : > { %v608_v22 = vmul.f32 %v592_v14, %v592_v14  ;;  %v609_v23 = vmul.f32 %v593_v15, %v593_v15  ;;  %v370_v14 = vsub.f32 %v4341_v30, %v4370_v55  ;;  %v499_v15 = vmul.f32 %v483_v3, %v483_v3 }
  0xe2   : > { %v534_v38 = vpop.permute.xlu1 %533  ;;  %v542_v39 = vpop.permute.xlu0 %541  ;;  %v516_v30 = vadd.f32 %v500_v28, %v384_v13 }
  0xe3   : > { %v594_v46 = vsub.f32 %v534_v38, %v4379_v62  ;;  %v596_v47 = vsub.f32 %v542_v39, %v4379_v62  ;;  %v4396_v50 = vadd.f32 %v608_v22, %v508_v21  ;;  %v4398_v51 = vadd.f32 %v609_v23, %v509_v20 }
  0xe4   : > { %v513_v21 = vadd.f32 %v497_v9, %v381_v24  ;;  %v485_v22 = vsub.f32 %v4354_v45, %v4364_v52  ;;  %v502_v23 = vmul.f32 %v486_v10, %v486_v10  ;;  %v369_v38 = vsub.f32 %v4335_v27, %v4370_v55 }
  0xe5   : > { %v610_v63 = vmul.f32 %v594_v46, %v594_v46  ;;  %v612_v26 = vmul.f32 %v596_v47, %v596_v47  ;;  %646 = vmin.xlane.f32.xlu0 %v4396_v50  ;;  %648 = vmin.xlane.f32.xlu1 %v4398_v51  ;;  %v386_v39 = vmul.f32 %v370_v14, %v370_v14 }
  0xe6   : > { %v538_v40 = vpop.permute.xlu1 %537  ;;  %v550_v4 = vpop.permute.xlu0 %549  ;;  %v372_v24 = vsub.f32 %v4345_v32, %v4370_v55  ;;  %v515_v46 = vadd.f32 %v499_v15, %v383_v42  ;;  %v501_v58 = vmul.f32 %v485_v22, %v485_v22  ;;  %v487_v27 = vsub.f32 %v4362_v49, %v4364_v52 }
  0xe7   : > { %v595_v44 = vsub.f32 %v538_v40, %v4379_v62  ;;  %v598_v5 = vsub.f32 %v550_v4, %v4379_v62  ;;  %v4412_v6 = vadd.f32 %v610_v63, %v510_v41  ;;  %v4414_v7 = vadd.f32 %v612_v26, %v512_v56 }
  0xe8   : > { %v518_v61 = vadd.f32 %v502_v23, %v386_v39  ;;  %v504_v63 = vmul.f32 %v488_v35, %v488_v35  ;;  %v490_v32 = vsub.f32 %v4374_v59, %v4364_v52  ;;  %v385_v1 = vmul.f32 %v369_v38, %v369_v38 }
  0xe9   : > { %v611_v11 = vmul.f32 %v595_v44, %v595_v44  ;;  %v614_v12 = vmul.f32 %v598_v5, %v598_v5  ;;  %650 = vmin.xlane.f32.xlu0 %v4412_v6  ;;  %654 = vmin.xlane.f32.xlu1 %v4414_v7  ;;  %v388_v3 = vmul.f32 %v372_v24, %v372_v24 }
  0xea   : > { %v546_v17 = vpop.permute.xlu1 %545  ;;  %v558_v16 = vpop.permute.xlu0 %557  ;;  %v374_v40 = vsub.f32 %v4349_v34, %v4370_v55  ;;  %v517_v9 = vadd.f32 %v501_v58, %v385_v1  ;;  %v506_v28 = vmul.f32 %v490_v32, %v490_v32  ;;  %v387_v34 = vmul.f32 %v371_v2, %v371_v2 }
  0xeb   : > { %v597_v18 = vsub.f32 %v546_v17, %v4379_v62  ;;  %v600_v19 = vsub.f32 %v558_v16, %v4379_v62  ;;  %v4424_v48 = vadd.f32 %v611_v11, %v511_v8  ;;  %v4426_v20 = vadd.f32 %v614_v12, %v514_v25 }
  0xec   : > { %v503_v25 = vmul.f32 %v487_v27, %v487_v27  ;;  %v520_v10 = vadd.f32 %v504_v63, %v388_v3  ;;  %v373_v42 = vsub.f32 %v4343_v31, %v4370_v55  ;;  %v390_v13 = vmul.f32 %v374_v40, %v374_v40 }
  0xed   : > { %v613_v36 = vmul.f32 %v597_v18, %v597_v18  ;;  %v616_v37 = vmul.f32 %v600_v19, %v600_v19  ;;  %652 = vmin.xlane.f32.xlu0 %v4424_v48  ;;  %658 = vmin.xlane.f32.xlu1 %v4426_v20  ;;  %v491_v22 = vsub.f32 %v4376_v60, %v4364_v52 }
  0xee   : > { %v554_v45 = vpop.permute.xlu1 %553  ;;  %v566_v47 = vpop.permute.xlu0 %565  ;;  %v519_v19 = vadd.f32 %v503_v25, %v387_v34  ;;  %v522_v23 = vadd.f32 %v506_v28, %v390_v13  ;;  %v389_v31 = vmul.f32 %v373_v42, %v373_v42 }
  0xef   : > { %v599_v41 = vsub.f32 %v554_v45, %v4379_v62  ;;  %v602_v53 = vsub.f32 %v566_v47, %v4379_v62  ;;  %v4440_v56 = vadd.f32 %v613_v36, %v513_v21  ;;  %v4442_v57 = vadd.f32 %v616_v37, %v516_v30 }
  0xf0   : > { %v505_v21 = vmul.f32 %v489_v29, %v489_v29  ;;  %v375_v37 = vsub.f32 %v4347_v33, %v4370_v55  ;;  %v507_v52 = vmul.f32 %v491_v22, %v491_v22 }
  0xf1   : > { %v615_v26 = vmul.f32 %v599_v41, %v599_v41  ;;  %v618_v0 = vmul.f32 %v602_v53, %v602_v53  ;;  %656 = vmin.xlane.f32.xlu0 %v4440_v56  ;;  %662 = vmin.xlane.f32.xlu1 %v4442_v57 }
  0xf2   : > { %v562_v4 = vpop.permute.xlu1 %561  ;;  %v574_v49 = vpop.permute.xlu0 %573  ;;  %v391_v47 = vmul.f32 %v375_v37, %v375_v37 }
  0xf3   : > { %v601_v44 = vsub.f32 %v562_v4, %v4379_v62  ;;  %v604_v59 = vsub.f32 %v574_v49, %v4379_v62  ;;  %v4456_v5 = vadd.f32 %v615_v26, %v515_v46  ;;  %v4458_v8 = vadd.f32 %v618_v0, %v518_v61 }
  0xf4   : > { %v521_v46 = vadd.f32 %v505_v21, %v389_v31  ;;  %v523_v33 = vadd.f32 %v507_v52, %v391_v47  ;;  %v642_v61 = vand.u32 127, %v356_v43 }
  0xf5   : > { %v617_v11 = vmul.f32 %v601_v44, %v601_v44  ;;  %v620_v12 = vmul.f32 %v604_v59, %v604_v59  ;;  %660 = vmin.xlane.f32.xlu0 %v4456_v5  ;;  %666 = vmin.xlane.f32.xlu1 %v4458_v8 }
  0xf6   : > { %v570_v14 = vpop.permute.xlu1 %569  ;;  %v582_v15 = vpop.permute.xlu0 %581  ;;  %v4493_v27 = vcvt.s32.f32 %v642_v61 }
  0xf7   : > { %v603_v17 = vsub.f32 %v570_v14, %v4379_v62  ;;  %v606_v16 = vsub.f32 %v582_v15, %v4379_v62  ;;  %v4468_v18 = vadd.f32 %v617_v11, %v517_v9  ;;  %v4470_v54 = vadd.f32 %v620_v12, %v520_v10 }
  0xf9   : > { %v619_v35 = vmul.f32 %v603_v17, %v603_v17  ;;  %v622_v30 = vmul.f32 %v606_v16, %v606_v16  ;;  %664 = vmin.xlane.f32.xlu0 %v4468_v18  ;;  %670 = vmin.xlane.f32.xlu1 %v4470_v54 }
  0xfa   : > { %v578_v36 = vpop.permute.xlu1 %577 }
  0xfb   : > { %v605_v38 = vsub.f32 %v578_v36, %v4379_v62  ;;  %v4479_v39 = vadd.f32 %v619_v35, %v519_v19  ;;  %v4481_v24 = vadd.f32 %v622_v30, %v522_v23 }
  0xfd   : > { %v621_v60 = vmul.f32 %v605_v38, %v605_v38  ;;  %668 = vmin.xlane.f32.xlu0 %v4479_v39  ;;  %674 = vmin.xlane.f32.xlu1 %v4481_v24 }
  0xfe   : > { %v586_v45 = vpop.permute.xlu1 %585 }
  0xff   : > { %v607_v41 = vsub.f32 %v586_v45, %v4379_v62  ;;  %v4486_v53 = vadd.f32 %v621_v60, %v521_v46 }
 0x101   : > { %v623_v55 = vmul.f32 %v607_v41, %v607_v41  ;;  %672 = vmin.xlane.f32.xlu0 %v4486_v53 }
 0x103   : > { %v4489_v58 = vadd.f32 %v623_v55, %v523_v33 }
 0x105   : > { %676 = vmin.xlane.f32.xlu0 %v4489_v58 }
 0x172   : > { %v4495_v63 = vpop.xlane.xlu1 %648  ;;  %v4497_v32 = vpop.xlane.xlu0 %646 }
 0x173   : > { %vm679_vm0 = vcmp.eq.f32.partialorder %v4398_v51, %v4495_v63  ;;  %vm678_vm1 = vcmp.eq.f32.partialorder %v4396_v50, %v4497_v32 }
 0x174   : > { %v695_v62 = vsel %vm679_vm0, %v4493_v27, inf  ;;  %v694_v43 = vsel %vm678_vm1, %v4493_v27, inf }
 0x175   : > { %712 = vmin.xlane.f32.xlu0 %v695_v62  ;;  %710 = vmin.xlane.f32.xlu1 %v694_v43 }
 0x176   : > { %v4511_v26 = vpop.xlane.xlu1 %654  ;;  %v4513_v0 = vpop.xlane.xlu0 %650 }
 0x177   : > { %vm680_vm2 = vcmp.eq.f32.partialorder %v4412_v6, %v4513_v0  ;;  %vm682_vm3 = vcmp.eq.f32.partialorder %v4414_v7, %v4511_v26 }
 0x178   : > { %v696_v1 = vsel %vm680_vm2, %v4493_v27, inf  ;;  %v698_v40 = vsel %vm682_vm3, %v4493_v27, inf }
 0x179   : > { %714 = vmin.xlane.f32.xlu1 %v696_v1 }
 0x17a   : > { %v4523_v2 = vpop.xlane.xlu1 %658  ;;  %v4525_v3 = vpop.xlane.xlu0 %652 }
 0x17b   : > { %vm681_vm4 = vcmp.eq.f32.partialorder %v4424_v48, %v4525_v3  ;;  %vm684_vm5 = vcmp.eq.f32.partialorder %v4426_v20, %v4523_v2 }
 0x17c   : > { %v697_v4 = vsel %vm681_vm4, %v4493_v27, inf  ;;  %v700_v59 = vsel %vm684_vm5, %v4493_v27, inf }
 0x17d   : > { %718 = vmin.xlane.f32.xlu1 %v698_v40  ;;  %716 = vmin.xlane.f32.xlu0 %v697_v4 }
 0x17e   : > { %v4539_v49 = vpop.xlane.xlu1 %662  ;;  %v4541_v44 = vpop.xlane.xlu0 %656 }
 0x17f   : > { %7461 = vst [vmem:[#allocation5_spill] sm:$0xff] %v4539_v49  ;;  %7462 = vst [vmem:[#allocation6_spill] sm:$0xff] %v4541_v44  ;;  %vm683_vm6 = vcmp.eq.f32.partialorder %v4440_v56, %v4541_v44  ;;  %vm686_vm7 = vcmp.eq.f32.partialorder %v4442_v57, %v4539_v49 }
 0x180   : > { %v699_v9 = vsel %vm683_vm6, %v4493_v27, inf  ;;  %v702_v29 = vsel %vm686_vm7, %v4493_v27, inf }
 0x181   : > { %722 = vmin.xlane.f32.xlu1 %v700_v59  ;;  %720 = vmin.xlane.f32.xlu0 %v699_v9 }
 0x182   : > { %v4555_v25 = vpop.xlane.xlu1 %666  ;;  %v4557_v10 = vpop.xlane.xlu0 %660 }
 0x183   : > { %7463 = vst [vmem:[#allocation7_spill] sm:$0xff] %v4555_v25  ;;  %7464 = vst [vmem:[#allocation8_spill] sm:$0xff] %v4557_v10  ;;  %vm685_vm8 = vcmp.eq.f32.partialorder %v4456_v5, %v4557_v10  ;;  %vm688_vm9 = vcmp.eq.f32.partialorder %v4458_v8, %v4555_v25 }
 0x184   : > { %v701_v28 = vsel %vm685_vm8, %v4493_v27, inf  ;;  %v704_v34 = vsel %vm688_vm9, %v4493_v27, inf }
 0x185   : > { %726 = vmin.xlane.f32.xlu1 %v702_v29  ;;  %724 = vmin.xlane.f32.xlu0 %v701_v28 }
 0x186   : > { %v4571_v11 = vpop.xlane.xlu1 %670  ;;  %v4573_v12 = vpop.xlane.xlu0 %664 }
 0x187   : > { %7465 = vst [vmem:[#allocation9_spill] sm:$0xff] %v4571_v11  ;;  %7466 = vst [vmem:[#allocation10_spill] sm:$0xff] %v4573_v12  ;;  %vm687_vm10 = vcmp.eq.f32.partialorder %v4468_v18, %v4573_v12  ;;  %vm7272_vm11 = vcmp.eq.f32.partialorder %v4470_v54, %v4571_v11 }
 0x188   : > { %v703_v42 = vsel %vm687_vm10, %v4493_v27, inf  ;;  %v706_v15 = vsel %vm7272_vm11, %v4493_v27, inf }
 0x189   : > { %730 = vmin.xlane.f32.xlu1 %v704_v34  ;;  %728 = vmin.xlane.f32.xlu0 %v703_v42 }
 0x18a   : > { %v4587_v13 = vpop.xlane.xlu1 %674  ;;  %v4589_v14 = vpop.xlane.xlu0 %668 }
 0x18b   : > { %7467 = vst [vmem:[#allocation11_spill] sm:$0xff] %v4587_v13  ;;  %7468 = vst [vmem:[#allocation12_spill] sm:$0xff] %v4589_v14  ;;  %vm7270_vm12 = vcmp.eq.f32.partialorder %v4479_v39, %v4589_v14  ;;  %vm7269_vm13 = vcmp.eq.f32.partialorder %v4481_v24, %v4587_v13 }
 0x18c   : > { %v705_v17 = vsel %vm7270_vm12, %v4493_v27, inf  ;;  %v708_v19 = vsel %vm7269_vm13, %v4493_v27, inf }
 0x18d   : > { %734 = vmin.xlane.f32.xlu1 %v706_v15  ;;  %732 = vmin.xlane.f32.xlu0 %v705_v17 }
 0x18e   : > { %v4603_v16 = vpop.xlane.xlu0 %672 }
 0x18f   : > { %7469 = vst [vmem:[#allocation13_spill] sm:$0xff] %v4603_v16  ;;  %vm7268_vm14 = vcmp.eq.f32.partialorder %v4486_v53, %v4603_v16 }
 0x190   : > { %v707_v21 = vsel %vm7268_vm14, %v4493_v27, inf }
 0x191   : > { %738 = vmin.xlane.f32.xlu1 %v708_v19  ;;  %736 = vmin.xlane.f32.xlu0 %v707_v21 }
 0x192   : > { %v4615_v22 = vpop.xlane.xlu0 %676 }
 0x193   : > { %7470 = vst [vmem:[#allocation14_spill] sm:$0xff] %v4615_v22  ;;  %vm7271_vm15 = vcmp.eq.f32.partialorder %v4489_v58, %v4615_v22 }
 0x194   : > { %v709_v23 = vsel %vm7271_vm15, %v4493_v27, inf }
 0x195   : > { %740 = vmin.xlane.f32.xlu0 %v709_v23 }
 0x202   : > { %v4623_v35 = vpop.xlane.xlu1 %710  ;;  %v4625_v30 = vpop.xlane.xlu0 %712 }
 0x203   : > { %7471 = vst [vmem:[#allocation15_spill] sm:$0xff] %v4623_v35  ;;  %7472 = vst [vmem:[#allocation16_spill] sm:$0xff] %v4625_v30  ;;  %vm742_vm14 = vcmp.eq.f32.partialorder %v4493_v27, %v4623_v35  ;;  %vm743_vm13 = vcmp.eq.f32.partialorder %v4493_v27, %v4625_v30 }
 0x204   : > { %vm758_vm12 = vmand %vm678_vm1, %vm742_vm14 }
 0x205   : > { %v4635_v31 = vsel %vm758_vm12, inf, %v4396_v50  ;;  %vm759_vm15 = vmand %vm679_vm0, %vm743_vm13 }
 0x206   : > { %790 = vmin.xlane.f32.xlu1 %v4635_v31  ;;  %v4641_v36 = vpop.xlane.xlu1 %714  ;;  %v4644_v37 = vsel %vm759_vm15, inf, %v4398_v51 }
 0x207   : > { %7473 = vst [vmem:[#allocation17_spill] sm:$0xff] %v4641_v36  ;;  %vm744_vm11 = vcmp.eq.f32.partialorder %v4493_v27, %v4641_v36  ;;  %792 = vmin.xlane.f32.xlu0 %v4644_v37 }
 0x208   : > { %vm760_vm1 = vmand %vm680_vm2, %vm744_vm11 }
 0x209   : > { %v4653_v50 = vsel %vm760_vm1, inf, %v4412_v6 }
 0x20a   : > { %794 = vmin.xlane.f32.xlu1 %v4653_v50  ;;  %v4656_v38 = vpop.xlane.xlu1 %718  ;;  %v4658_v46 = vpop.xlane.xlu0 %716 }
 0x20b   : > { %7474 = vst [vmem:[#allocation18_spill] sm:$0xff] %v4656_v38  ;;  %7475 = vst [vmem:[#allocation19_spill] sm:$0xff] %v4658_v46  ;;  %vm746_vm0 = vcmp.eq.f32.partialorder %v4493_v27, %v4656_v38  ;;  %vm745_vm12 = vcmp.eq.f32.partialorder %v4493_v27, %v4658_v46 }
 0x20c   : > { %vm762_vm13 = vmand %vm682_vm3, %vm746_vm0 }
 0x20d   : > { %v4668_v51 = vsel %vm762_vm13, inf, %v4414_v7  ;;  %vm761_vm2 = vmand %vm681_vm4, %vm745_vm12 }
 0x20e   : > { %798 = vmin.xlane.f32.xlu1 %v4668_v51  ;;  %v4674_v6 = vpop.xlane.xlu1 %722  ;;  %v4677_v52 = vsel %vm761_vm2, inf, %v4424_v48  ;;  %v4679_v60 = vpop.xlane.xlu0 %720 }
 0x20f   : > { %7476 = vst [vmem:[#allocation20_spill] sm:$0xff] %v4674_v6  ;;  %7477 = vst [vmem:[#allocation21_spill] sm:$0xff] %v4679_v60  ;;  %vm748_vm11 = vcmp.eq.f32.partialorder %v4493_v27, %v4674_v6  ;;  %796 = vmin.xlane.f32.xlu0 %v4677_v52  ;;  %vm747_vm3 = vcmp.eq.f32.partialorder %v4493_v27, %v4679_v60 }
 0x210   : > { %vm764_vm4 = vmand %vm684_vm5, %vm748_vm11  ;;  %vm7485_vm11 = vcmp.eq.f32.partialorder %v4479_v39, %v4589_v14 }
 0x211   : > { %v4690_v7 = vsel %vm764_vm4, inf, %v4426_v20  ;;  %vm763_vm14 = vmand %vm683_vm6, %vm747_vm3 }
 0x212   : > { %802 = vmin.xlane.f32.xlu1 %v4690_v7  ;;  %v4696_v48 = vpop.xlane.xlu1 %726  ;;  %v4699_v45 = vsel %vm763_vm14, inf, %v4440_v56  ;;  %v4701_v47 = vpop.xlane.xlu0 %724 }
 0x213   : > { %7478 = vst [vmem:[#allocation22_spill] sm:$0xff] %v4696_v48  ;;  %7479 = vst [vmem:[#allocation23_spill] sm:$0xff] %v4701_v47  ;;  %vm750_vm15 = vcmp.eq.f32.partialorder %v4493_v27, %v4696_v48  ;;  %800 = vmin.xlane.f32.xlu0 %v4699_v45  ;;  %vm749_vm5 = vcmp.eq.f32.partialorder %v4493_v27, %v4701_v47 }
 0x214   : > { %vm766_vm6 = vmand %vm686_vm7, %vm750_vm15  ;;  %vm7488_vm15 = vcmp.eq.f32.partialorder %v4481_v24, %v4587_v13 }
 0x215   : > { %v4712_v20 = vsel %vm766_vm6, inf, %v4442_v57  ;;  %vm765_vm1 = vmand %vm685_vm8, %vm749_vm5  ;;  %vm7489_vm6 = vcmp.eq.f32.partialorder %v4486_v53, %v4603_v16 }
 0x216   : > { %806 = vmin.xlane.f32.xlu1 %v4712_v20  ;;  %v4718_v56 = vpop.xlane.xlu1 %730  ;;  %v4721_v41 = vsel %vm765_vm1, inf, %v4456_v5  ;;  %v4723_v33 = vpop.xlane.xlu0 %728 }
 0x217   : > { %7480 = vst [vmem:[#allocation24_spill] sm:$0xff] %v4718_v56  ;;  %7481 = vst [vmem:[#allocation25_spill] sm:$0xff] %v4723_v33  ;;  %vm752_vm0 = vcmp.eq.f32.partialorder %v4493_v27, %v4718_v56  ;;  %804 = vmin.xlane.f32.xlu0 %v4721_v41  ;;  %vm751_vm7 = vcmp.eq.f32.partialorder %v4493_v27, %v4723_v33 }
 0x218   : > { %vm768_vm8 = vmand %vm688_vm9, %vm752_vm0 }
 0x219   : > { %v4734_v57 = vsel %vm768_vm8, inf, %v4458_v8  ;;  %vm767_vm12 = vmand %vm687_vm10, %vm751_vm7  ;;  %vm7484_vm10 = vcmp.eq.f32.partialorder %v4470_v54, %v4571_v11  ;;  %vm7491_vm7 = vcmp.eq.f32.partialorder %v4489_v58, %v4615_v22 }
 0x21a   : > { %810 = vmin.xlane.f32.xlu1 %v4734_v57  ;;  %v4740_v5 = vpop.xlane.xlu1 %734  ;;  %v4743_v55 = vsel %vm767_vm12, inf, %v4468_v18  ;;  %v4745_v61 = vpop.xlane.xlu0 %732 }
 0x21b   : > { %7482 = vst [vmem:[#allocation26_spill] sm:$0xff] %v4740_v5  ;;  %7483 = vst [vmem:[#allocation27_spill] sm:$0xff] %v4745_v61  ;;  %vm754_vm13 = vcmp.eq.f32.partialorder %v4493_v27, %v4740_v5  ;;  %808 = vmin.xlane.f32.xlu0 %v4743_v55  ;;  %vm753_vm9 = vcmp.eq.f32.partialorder %v4493_v27, %v4745_v61 }
 0x21c   : > { %vm770_vm2 = vmand %vm7484_vm10, %vm754_vm13 }
 0x21d   : > { %v4756_v8 = vsel %vm770_vm2, inf, %v4470_v54  ;;  %vm769_vm3 = vmand %vm7485_vm11, %vm753_vm9 }
 0x21e   : > { %814 = vmin.xlane.f32.xlu1 %v4756_v8  ;;  %v4762_v18 = vpop.xlane.xlu1 %738  ;;  %v4765_v62 = vsel %vm769_vm3, inf, %v4479_v39  ;;  %v4767_v43 = vpop.xlane.xlu0 %736 }
 0x21f   : > { %7486 = vst [vmem:[#allocation28_spill] sm:$0xff] %v4762_v18  ;;  %7487 = vst [vmem:[#allocation29_spill] sm:$0xff] %v4767_v43  ;;  %vm756_vm4 = vcmp.eq.f32.partialorder %v4493_v27, %v4762_v18  ;;  %812 = vmin.xlane.f32.xlu0 %v4765_v62  ;;  %vm755_vm14 = vcmp.eq.f32.partialorder %v4493_v27, %v4767_v43 }
 0x220   : > { %vm772_vm5 = vmand %vm7488_vm15, %vm756_vm4 }
 0x221   : > { %v4778_v54 = vsel %vm772_vm5, inf, %v4481_v24  ;;  %vm771_vm1 = vmand %vm7489_vm6, %vm755_vm14 }
 0x222   : > { %818 = vmin.xlane.f32.xlu1 %v4778_v54  ;;  %v4785_v39 = vsel %vm771_vm1, inf, %v4486_v53  ;;  %v4787_v1 = vpop.xlane.xlu0 %740 }
 0x223   : > { %7490 = vst [vmem:[#allocation30_spill] sm:$0xff] %v4787_v1  ;;  %816 = vmin.xlane.f32.xlu0 %v4785_v39  ;;  %vm757_vm0 = vcmp.eq.f32.partialorder %v4493_v27, %v4787_v1 }
 0x224   : > { %vm773_vm8 = vmand %vm7491_vm7, %vm757_vm0 }
 0x225   : > { %v4796_v24 = vsel %vm773_vm8, inf, %v4489_v58 }
 0x227   : > { %820 = vmin.xlane.f32.xlu0 %v4796_v24 }
 0x293   : > { %v4799_v40 = vpop.xlane.xlu1 %790 }
 0x294   : > { %v4801_v53 = vpop.xlane.xlu0 %792  ;;  %vm822_vm12 = vcmp.eq.f32.partialorder %v4635_v31, %v4799_v40 }
 0x295   : > { %v838_v4 = vsel %vm822_vm12, %v4493_v27, inf  ;;  %vm823_vm13 = vcmp.eq.f32.partialorder %v4644_v37, %v4801_v53 }
 0x296   : > { %854 = vmin.xlane.f32.xlu1 %v838_v4  ;;  %v839_v58 = vsel %vm823_vm13, %v4493_v27, inf }
 0x297   : > { %856 = vmin.xlane.f32.xlu0 %v839_v58  ;;  %v4815_v59 = vpop.xlane.xlu1 %794 }
 0x298   : > { %vm824_vm9 = vcmp.eq.f32.partialorder %v4653_v50, %v4815_v59 }
 0x299   : > { %v840_v9 = vsel %vm824_vm9, %v4493_v27, inf }
 0x29a   : > { %858 = vmin.xlane.f32.xlu1 %v840_v9 }
 0x29b   : > { %v4823_v29 = vpop.xlane.xlu1 %798 }
 0x29c   : > { %v4825_v28 = vpop.xlane.xlu0 %796  ;;  %vm826_vm10 = vcmp.eq.f32.partialorder %v4668_v51, %v4823_v29 }
 0x29d   : > { %v842_v34 = vsel %vm826_vm10, %v4493_v27, inf  ;;  %vm825_vm2 = vcmp.eq.f32.partialorder %v4677_v52, %v4825_v28 }
 0x29e   : > { %862 = vmin.xlane.f32.xlu1 %v842_v34  ;;  %v841_v42 = vsel %vm825_vm2, %v4493_v27, inf }
 0x29f   : > { %860 = vmin.xlane.f32.xlu0 %v841_v42  ;;  %v4839_v15 = vpop.xlane.xlu1 %802 }
 0x2a0   : > { %v4841_v17 = vpop.xlane.xlu0 %800  ;;  %vm828_vm11 = vcmp.eq.f32.partialorder %v4690_v7, %v4839_v15 }
 0x2a1   : > { %v844_v19 = vsel %vm828_vm11, %v4493_v27, inf  ;;  %vm827_vm3 = vcmp.eq.f32.partialorder %v4699_v45, %v4841_v17 }
 0x2a2   : > { %866 = vmin.xlane.f32.xlu1 %v844_v19  ;;  %v843_v21 = vsel %vm827_vm3, %v4493_v27, inf }
 0x2a3   : > { %864 = vmin.xlane.f32.xlu0 %v843_v21  ;;  %v4855_v23 = vpop.xlane.xlu1 %806 }
 0x2a4   : > { %7492 = vst [vmem:[#allocation31_spill] sm:$0xff] %v4855_v23  ;;  %v4857_v4 = vpop.xlane.xlu0 %804  ;;  %vm830_vm4 = vcmp.eq.f32.partialorder %v4712_v20, %v4855_v23 }
 0x2a5   : > { %7493 = vst [vmem:[#allocation32_spill] sm:$0xff] %v4857_v4  ;;  %v846_v58 = vsel %vm830_vm4, %v4493_v27, inf  ;;  %vm829_vm14 = vcmp.eq.f32.partialorder %v4721_v41, %v4857_v4 }
 0x2a6   : > { %870 = vmin.xlane.f32.xlu1 %v846_v58  ;;  %v845_v9 = vsel %vm829_vm14, %v4493_v27, inf }
 0x2a7   : > { %868 = vmin.xlane.f32.xlu0 %v845_v9  ;;  %v4871_v34 = vpop.xlane.xlu1 %810 }
 0x2a8   : > { %7494 = vst [vmem:[#allocation33_spill] sm:$0xff] %v4871_v34  ;;  %v4873_v42 = vpop.xlane.xlu0 %808  ;;  %vm832_vm15 = vcmp.eq.f32.partialorder %v4734_v57, %v4871_v34 }
 0x2a9   : > { %7495 = vst [vmem:[#allocation34_spill] sm:$0xff] %v4873_v42  ;;  %v848_v19 = vsel %vm832_vm15, %v4493_v27, inf  ;;  %vm831_vm5 = vcmp.eq.f32.partialorder %v4743_v55, %v4873_v42 }
 0x2aa   : > { %874 = vmin.xlane.f32.xlu1 %v848_v19  ;;  %v847_v21 = vsel %vm831_vm5, %v4493_v27, inf }
 0x2ab   : > { %872 = vmin.xlane.f32.xlu0 %v847_v21  ;;  %v4887_v58 = vpop.xlane.xlu1 %814 }
 0x2ac   : > { %7496 = vst [vmem:[#allocation35_spill] sm:$0xff] %v4887_v58  ;;  %v4889_v9 = vpop.xlane.xlu0 %812  ;;  %vm7283_vm6 = vcmp.eq.f32.partialorder %v4756_v8, %v4887_v58 }
 0x2ad   : > { %7497 = vst [vmem:[#allocation36_spill] sm:$0xff] %v4889_v9  ;;  %v850_v1 = vsel %vm7283_vm6, %v4493_v27, inf  ;;  %vm7280_vm1 = vcmp.eq.f32.partialorder %v4765_v62, %v4889_v9 }
 0x2ae   : > { %878 = vmin.xlane.f32.xlu1 %v850_v1  ;;  %v849_v19 = vsel %vm7280_vm1, %v4493_v27, inf }
 0x2af   : > { %876 = vmin.xlane.f32.xlu0 %v849_v19  ;;  %v4903_v21 = vpop.xlane.xlu1 %818 }
 0x2b0   : > { %7498 = vst [vmem:[#allocation37_spill] sm:$0xff] %v4903_v21  ;;  %v4905_v18 = vpop.xlane.xlu0 %816  ;;  %vm7278_vm0 = vcmp.eq.f32.partialorder %v4778_v54, %v4903_v21 }
 0x2b1   : > { %7499 = vst [vmem:[#allocation38_spill] sm:$0xff] %v4905_v18  ;;  %v852_v22 = vsel %vm7278_vm0, %v4493_v27, inf  ;;  %vm7279_vm7 = vcmp.eq.f32.partialorder %v4785_v39, %v4905_v18 }
 0x2b2   : > { %882 = vmin.xlane.f32.xlu1 %v852_v22  ;;  %v851_v1 = vsel %vm7279_vm7, %v4493_v27, inf }
 0x2b3   : > { %880 = vmin.xlane.f32.xlu0 %v851_v1 }
 0x2b4   : > { %v4919_v19 = vpop.xlane.xlu0 %820 }
 0x2b5   : > { %7500 = vst [vmem:[#allocation39_spill] sm:$0xff] %v4919_v19  ;;  %vm7281_vm8 = vcmp.eq.f32.partialorder %v4796_v24, %v4919_v19 }
 0x2b6   : > { %v853_v13 = vsel %vm7281_vm8, %v4493_v27, inf }
 0x2b7   : > { %884 = vmin.xlane.f32.xlu0 %v853_v13 }
 0x323   : > { %v4927_v43 = vpop.xlane.xlu1 %854 }
 0x324   : > { %7501 = vst [vmem:[#allocation40_spill] sm:$0xff] %v4927_v43  ;;  %vm886_vm0 = vcmp.eq.f32.partialorder %v4493_v27, %v4927_v43  ;;  %v4931_v22 = vpop.xlane.xlu0 %856 }
 0x325   : > { %7502 = vst [vmem:[#allocation41_spill] sm:$0xff] %v4931_v22  ;;  %vm887_vm7 = vcmp.eq.f32.partialorder %v4493_v27, %v4931_v22  ;;  %vm902_vm1 = vmand %vm822_vm12, %vm886_vm0 }
 0x326   : > { %v4939_v1 = vsel %vm902_vm1, inf, %v4635_v31  ;;  %vm903_vm8 = vmand %vm823_vm13, %vm887_vm7 }
 0x327   : > { %934 = vmin.xlane.f32.xlu1 %v4939_v1  ;;  %v4945_v13 = vpop.xlane.xlu1 %858  ;;  %v4948_v61 = vsel %vm903_vm8, inf, %v4644_v37 }
 0x328   : > { %7503 = vst [vmem:[#allocation42_spill] sm:$0xff] %v4945_v13  ;;  %vm888_vm6 = vcmp.eq.f32.partialorder %v4493_v27, %v4945_v13  ;;  %936 = vmin.xlane.f32.xlu0 %v4948_v61 }
 0x329   : > { %vm904_vm12 = vmand %vm824_vm9, %vm888_vm6 }
 0x32a   : > { %v4957_v31 = vsel %vm904_vm12, inf, %v4653_v50 }
 0x32b   : > { %938 = vmin.xlane.f32.xlu1 %v4957_v31  ;;  %v4960_v5 = vpop.xlane.xlu1 %862 }
 0x32c   : > { %7504 = vst [vmem:[#allocation43_spill] sm:$0xff] %v4960_v5  ;;  %vm890_vm13 = vcmp.eq.f32.partialorder %v4493_v27, %v4960_v5  ;;  %v4964_v37 = vpop.xlane.xlu0 %860 }
 0x32d   : > { %7505 = vst [vmem:[#allocation44_spill] sm:$0xff] %v4964_v37  ;;  %vm889_vm1 = vcmp.eq.f32.partialorder %v4493_v27, %v4964_v37  ;;  %vm906_vm0 = vmand %vm826_vm10, %vm890_vm13 }
 0x32e   : > { %v4972_v33 = vsel %vm906_vm0, inf, %v4668_v51  ;;  %vm905_vm9 = vmand %vm825_vm2, %vm889_vm1 }
 0x32f   : > { %942 = vmin.xlane.f32.xlu1 %v4972_v33  ;;  %v4978_v50 = vpop.xlane.xlu1 %866  ;;  %v4981_v56 = vsel %vm905_vm9, inf, %v4677_v52 }
 0x330   : > { %7506 = vst [vmem:[#allocation45_spill] sm:$0xff] %v4978_v50  ;;  %vm892_vm6 = vcmp.eq.f32.partialorder %v4493_v27, %v4978_v50  ;;  %940 = vmin.xlane.f32.xlu0 %v4981_v56  ;;  %v4986_v47 = vpop.xlane.xlu0 %864 }
 0x331   : > { %7507 = vst [vmem:[#allocation46_spill] sm:$0xff] %v4986_v47  ;;  %vm891_vm10 = vcmp.eq.f32.partialorder %v4493_v27, %v4986_v47  ;;  %vm908_vm2 = vmand %vm828_vm11, %vm892_vm6  ;;  %vm7515_vm6 = vcmp.eq.f32.partialorder %v4765_v62, %v4889_v9 }
 0x332   : > { %v4994_v51 = vsel %vm908_vm2, inf, %v4690_v7  ;;  %vm907_vm7 = vmand %vm827_vm3, %vm891_vm10 }
 0x333   : > { %946 = vmin.xlane.f32.xlu1 %v4994_v51  ;;  %v5000_v52 = vpop.xlane.xlu1 %870  ;;  %v5003_v48 = vsel %vm907_vm7, inf, %v4699_v45 }
 0x334   : > { %7508 = vst [vmem:[#allocation47_spill] sm:$0xff] %v5000_v52  ;;  %vm894_vm8 = vcmp.eq.f32.partialorder %v4493_v27, %v5000_v52  ;;  %944 = vmin.xlane.f32.xlu0 %v5003_v48  ;;  %v5008_v60 = vpop.xlane.xlu0 %868 }
 0x335   : > { %7509 = vst [vmem:[#allocation48_spill] sm:$0xff] %v5008_v60  ;;  %vm893_vm11 = vcmp.eq.f32.partialorder %v4493_v27, %v5008_v60  ;;  %vm910_vm3 = vmand %vm830_vm4, %vm894_vm8  ;;  %vm7518_vm8 = vcmp.eq.f32.partialorder %v4778_v54, %v4903_v21 }
 0x336   : > { %v5016_v7 = vsel %vm910_vm3, inf, %v4712_v20  ;;  %vm909_vm12 = vmand %vm829_vm14, %vm893_vm11  ;;  %vm7519_vm3 = vcmp.eq.f32.partialorder %v4785_v39, %v4905_v18 }
 0x337   : > { %950 = vmin.xlane.f32.xlu1 %v5016_v7  ;;  %v5022_v45 = vpop.xlane.xlu1 %874  ;;  %v5025_v52 = vsel %vm909_vm12, inf, %v4721_v41 }
 0x338   : > { %7510 = vst [vmem:[#allocation49_spill] sm:$0xff] %v5022_v45  ;;  %vm896_vm13 = vcmp.eq.f32.partialorder %v4493_v27, %v5022_v45  ;;  %948 = vmin.xlane.f32.xlu0 %v5025_v52  ;;  %v5030_v60 = vpop.xlane.xlu0 %872 }
 0x339   : > { %7511 = vst [vmem:[#allocation50_spill] sm:$0xff] %v5030_v60  ;;  %vm895_vm4 = vcmp.eq.f32.partialorder %v4493_v27, %v5030_v60  ;;  %vm912_vm14 = vmand %vm832_vm15, %vm896_vm13 }
 0x33a   : > { %v5038_v20 = vsel %vm912_vm14, inf, %v4734_v57  ;;  %vm911_vm1 = vmand %vm831_vm5, %vm895_vm4  ;;  %vm7514_vm5 = vcmp.eq.f32.partialorder %v4756_v8, %v4887_v58  ;;  %vm7521_vm4 = vcmp.eq.f32.partialorder %v4796_v24, %v4919_v19 }
 0x33b   : > { %954 = vmin.xlane.f32.xlu1 %v5038_v20  ;;  %v5044_v41 = vpop.xlane.xlu1 %878  ;;  %v5047_v45 = vsel %vm911_vm1, inf, %v4743_v55 }
 0x33c   : > { %7512 = vst [vmem:[#allocation51_spill] sm:$0xff] %v5044_v41  ;;  %vm898_vm0 = vcmp.eq.f32.partialorder %v4493_v27, %v5044_v41  ;;  %952 = vmin.xlane.f32.xlu0 %v5047_v45  ;;  %v5052_v60 = vpop.xlane.xlu0 %876 }
 0x33d   : > { %7513 = vst [vmem:[#allocation52_spill] sm:$0xff] %v5052_v60  ;;  %vm897_vm15 = vcmp.eq.f32.partialorder %v4493_v27, %v5052_v60  ;;  %vm914_vm9 = vmand %vm7514_vm5, %vm898_vm0 }
 0x33e   : > { %v5060_v57 = vsel %vm914_vm9, inf, %v4756_v8  ;;  %vm913_vm10 = vmand %vm7515_vm6, %vm897_vm15 }
 0x33f   : > { %958 = vmin.xlane.f32.xlu1 %v5060_v57  ;;  %v5066_v55 = vpop.xlane.xlu1 %882  ;;  %v5069_v41 = vsel %vm913_vm10, inf, %v4765_v62 }
 0x340   : > { %7516 = vst [vmem:[#allocation53_spill] sm:$0xff] %v5066_v55  ;;  %vm900_vm2 = vcmp.eq.f32.partialorder %v4493_v27, %v5066_v55  ;;  %956 = vmin.xlane.f32.xlu0 %v5069_v41  ;;  %v5074_v60 = vpop.xlane.xlu0 %880 }
 0x341   : > { %7517 = vst [vmem:[#allocation54_spill] sm:$0xff] %v5074_v60  ;;  %vm899_vm7 = vcmp.eq.f32.partialorder %v4493_v27, %v5074_v60  ;;  %vm916_vm11 = vmand %vm7518_vm8, %vm900_vm2 }
 0x342   : > { %v5082_v8 = vsel %vm916_vm11, inf, %v4778_v54  ;;  %vm915_vm12 = vmand %vm7519_vm3, %vm899_vm7 }
 0x343   : > { %962 = vmin.xlane.f32.xlu1 %v5082_v8  ;;  %v5089_v62 = vsel %vm915_vm12, inf, %v4785_v39 }
 0x344   : > { %960 = vmin.xlane.f32.xlu0 %v5089_v62  ;;  %v5092_v55 = vpop.xlane.xlu0 %884 }
 0x345   : > { %7520 = vst [vmem:[#allocation55_spill] sm:$0xff] %v5092_v55  ;;  %vm901_vm13 = vcmp.eq.f32.partialorder %v4493_v27, %v5092_v55 }
 0x346   : > { %vm917_vm14 = vmand %vm7521_vm4, %vm901_vm13 }
 0x347   : > { %v5100_v54 = vsel %vm917_vm14, inf, %v4796_v24 }
 0x348   : > { %964 = vmin.xlane.f32.xlu0 %v5100_v54 }
 0x3b4   : > { %v5103_v21 = vpop.xlane.xlu1 %934 }
 0x3b5   : > { %v5105_v39 = vpop.xlane.xlu0 %936  ;;  %vm966_vm1 = vcmp.eq.f32.partialorder %v4939_v1, %v5103_v21 }
 0x3b6   : > { %v982_v55 = vsel %vm966_vm1, %v4493_v27, inf  ;;  %vm967_vm0 = vcmp.eq.f32.partialorder %v4948_v61, %v5105_v39 }
 0x3b7   : > { %998 = vmin.xlane.f32.xlu1 %v982_v55  ;;  %v983_v24 = vsel %vm967_vm0, %v4493_v27, inf }
 0x3b8   : > { %1000 = vmin.xlane.f32.xlu0 %v983_v24  ;;  %v5119_v19 = vpop.xlane.xlu1 %938 }
 0x3b9   : > { %vm968_vm15 = vcmp.eq.f32.partialorder %v4957_v31, %v5119_v19 }
 0x3ba   : > { %v984_v60 = vsel %vm968_vm15, %v4493_v27, inf }
 0x3bb   : > { %1002 = vmin.xlane.f32.xlu1 %v984_v60 }
 0x3bc   : > { %v5127_v47 = vpop.xlane.xlu1 %942 }
 0x3bd   : > { %v5129_v55 = vpop.xlane.xlu0 %940  ;;  %vm970_vm5 = vcmp.eq.f32.partialorder %v4972_v33, %v5127_v47 }
 0x3be   : > { %v986_v24 = vsel %vm970_vm5, %v4493_v27, inf  ;;  %vm969_vm9 = vcmp.eq.f32.partialorder %v4981_v56, %v5129_v55 }
 0x3bf   : > { %1006 = vmin.xlane.f32.xlu1 %v986_v24  ;;  %v985_v60 = vsel %vm969_vm9, %v4493_v27, inf }
 0x3c0   : > { %1004 = vmin.xlane.f32.xlu0 %v985_v60  ;;  %v5143_v6 = vpop.xlane.xlu1 %946 }
 0x3c1   : > { %7522 = vst [vmem:[#allocation56_spill] sm:$0xff] %v5143_v6  ;;  %v5145_v50 = vpop.xlane.xlu0 %944  ;;  %vm972_vm6 = vcmp.eq.f32.partialorder %v4994_v51, %v5143_v6 }
 0x3c2   : > { %7523 = vst [vmem:[#allocation57_spill] sm:$0xff] %v5145_v50  ;;  %v988_v46 = vsel %vm972_vm6, %v4493_v27, inf  ;;  %vm971_vm10 = vcmp.eq.f32.partialorder %v5003_v48, %v5145_v50 }
 0x3c3   : > { %1010 = vmin.xlane.f32.xlu1 %v988_v46  ;;  %v987_v24 = vsel %vm971_vm10, %v4493_v27, inf }
 0x3c4   : > { %1008 = vmin.xlane.f32.xlu0 %v987_v24  ;;  %v5159_v60 = vpop.xlane.xlu1 %950 }
 0x3c5   : > { %7524 = vst [vmem:[#allocation58_spill] sm:$0xff] %v5159_v60  ;;  %v5161_v37 = vpop.xlane.xlu0 %948  ;;  %vm974_vm2 = vcmp.eq.f32.partialorder %v5016_v7, %v5159_v60 }
 0x3c6   : > { %7525 = vst [vmem:[#allocation59_spill] sm:$0xff] %v5161_v37  ;;  %v990_v38 = vsel %vm974_vm2, %v4493_v27, inf  ;;  %vm973_vm7 = vcmp.eq.f32.partialorder %v5025_v52, %v5161_v37 }
 0x3c7   : > { %1014 = vmin.xlane.f32.xlu1 %v990_v38  ;;  %v989_v46 = vsel %vm973_vm7, %v4493_v27, inf }
 0x3c8   : > { %1012 = vmin.xlane.f32.xlu0 %v989_v46  ;;  %v5175_v24 = vpop.xlane.xlu1 %954 }
 0x3c9   : > { %7526 = vst [vmem:[#allocation60_spill] sm:$0xff] %v5175_v24  ;;  %v5177_v5 = vpop.xlane.xlu0 %952  ;;  %vm976_vm8 = vcmp.eq.f32.partialorder %v5038_v20, %v5175_v24 }
 0x3ca   : > { %7527 = vst [vmem:[#allocation61_spill] sm:$0xff] %v5177_v5  ;;  %v992_v36 = vsel %vm976_vm8, %v4493_v27, inf  ;;  %vm975_vm11 = vcmp.eq.f32.partialorder %v5047_v45, %v5177_v5 }
 0x3cb   : > { %1018 = vmin.xlane.f32.xlu1 %v992_v36  ;;  %v991_v38 = vsel %vm975_vm11, %v4493_v27, inf }
 0x3cc   : > { %1016 = vmin.xlane.f32.xlu0 %v991_v38  ;;  %v5191_v46 = vpop.xlane.xlu1 %958 }
 0x3cd   : > { %7528 = vst [vmem:[#allocation62_spill] sm:$0xff] %v5191_v46  ;;  %v5193_v13 = vpop.xlane.xlu0 %956  ;;  %vm7320_vm3 = vcmp.eq.f32.partialorder %v5060_v57, %v5191_v46 }
 0x3ce   : > { %7529 = vst [vmem:[#allocation63_spill] sm:$0xff] %v5193_v13  ;;  %v994_v30 = vsel %vm7320_vm3, %v4493_v27, inf  ;;  %vm7317_vm12 = vcmp.eq.f32.partialorder %v5069_v41, %v5193_v13 }
 0x3cf   : > { %1022 = vmin.xlane.f32.xlu1 %v994_v30  ;;  %v993_v36 = vsel %vm7317_vm12, %v4493_v27, inf }
 0x3d0   : > { %1020 = vmin.xlane.f32.xlu0 %v993_v36  ;;  %v5207_v38 = vpop.xlane.xlu1 %962 }
 0x3d1   : > { %7530 = vst [vmem:[#allocation64_spill] sm:$0xff] %v5207_v38  ;;  %v5209_v22 = vpop.xlane.xlu0 %960  ;;  %vm7315_vm13 = vcmp.eq.f32.partialorder %v5082_v8, %v5207_v38 }
 0x3d2   : > { %7531 = vst [vmem:[#allocation65_spill] sm:$0xff] %v5209_v22  ;;  %v996_v35 = vsel %vm7315_vm13, %v4493_v27, inf  ;;  %vm7316_vm4 = vcmp.eq.f32.partialorder %v5089_v62, %v5209_v22 }
 0x3d3   : > { %1026 = vmin.xlane.f32.xlu1 %v996_v35  ;;  %v995_v30 = vsel %vm7316_vm4, %v4493_v27, inf }
 0x3d4   : > { %1024 = vmin.xlane.f32.xlu0 %v995_v30 }
 0x3d5   : > { %v5223_v36 = vpop.xlane.xlu0 %964 }
 0x3d6   : > { %7532 = vst [vmem:[#allocation66_spill] sm:$0xff] %v5223_v36  ;;  %vm7318_vm14 = vcmp.eq.f32.partialorder %v5100_v54, %v5223_v36 }
 0x3d7   : > { %v997_v43 = vsel %vm7318_vm14, %v4493_v27, inf }
 0x3d8   : > { %1028 = vmin.xlane.f32.xlu0 %v997_v43 }
 0x444   : > { %v5231_v16 = vpop.xlane.xlu1 %998 }
 0x445   : > { %7533 = vst [vmem:[#allocation67_spill] sm:$0xff] %v5231_v16  ;;  %vm1030_vm13 = vcmp.eq.f32.partialorder %v4493_v27, %v5231_v16  ;;  %v5235_v35 = vpop.xlane.xlu0 %1000 }
 0x446   : > { %7534 = vst [vmem:[#allocation68_spill] sm:$0xff] %v5235_v35  ;;  %vm1031_vm4 = vcmp.eq.f32.partialorder %v4493_v27, %v5235_v35  ;;  %vm1046_vm12 = vmand %vm966_vm1, %vm1030_vm13 }
 0x447   : > { %v5243_v30 = vsel %vm1046_vm12, inf, %v4939_v1  ;;  %vm1047_vm14 = vmand %vm967_vm0, %vm1031_vm4 }
 0x448   : > { %1078 = vmin.xlane.f32.xlu1 %v5243_v30  ;;  %v5249_v43 = vpop.xlane.xlu1 %1002  ;;  %v5252_v16 = vsel %vm1047_vm14, inf, %v4948_v61 }
 0x449   : > { %7535 = vst [vmem:[#allocation69_spill] sm:$0xff] %v5249_v43  ;;  %vm1032_vm3 = vcmp.eq.f32.partialorder %v4493_v27, %v5249_v43  ;;  %1080 = vmin.xlane.f32.xlu0 %v5252_v16 }
 0x44a   : > { %vm1048_vm1 = vmand %vm968_vm15, %vm1032_vm3 }
 0x44b   : > { %v5261_v1 = vsel %vm1048_vm1, inf, %v4957_v31 }
 0x44c   : > { %1082 = vmin.xlane.f32.xlu1 %v5261_v1  ;;  %v5264_v35 = vpop.xlane.xlu1 %1006 }
 0x44d   : > { %7536 = vst [vmem:[#allocation70_spill] sm:$0xff] %v5264_v35  ;;  %vm1034_vm0 = vcmp.eq.f32.partialorder %v4493_v27, %v5264_v35  ;;  %v5268_v61 = vpop.xlane.xlu0 %1004 }
 0x44e   : > { %7537 = vst [vmem:[#allocation71_spill] sm:$0xff] %v5268_v61  ;;  %vm1033_vm12 = vcmp.eq.f32.partialorder %v4493_v27, %v5268_v61  ;;  %vm1050_vm13 = vmand %vm970_vm5, %vm1034_vm0 }
 0x44f   : > { %v5276_v43 = vsel %vm1050_vm13, inf, %v4972_v33  ;;  %vm1049_vm15 = vmand %vm969_vm9, %vm1033_vm12 }
 0x450   : > { %1086 = vmin.xlane.f32.xlu1 %v5276_v43  ;;  %v5282_v31 = vpop.xlane.xlu1 %1010  ;;  %v5285_v35 = vsel %vm1049_vm15, inf, %v4981_v56 }
 0x451   : > { %7538 = vst [vmem:[#allocation72_spill] sm:$0xff] %v5282_v31  ;;  %vm1036_vm3 = vcmp.eq.f32.partialorder %v4493_v27, %v5282_v31  ;;  %1084 = vmin.xlane.f32.xlu0 %v5285_v35  ;;  %v5290_v61 = vpop.xlane.xlu0 %1008 }
 0x452   : > { %7539 = vst [vmem:[#allocation73_spill] sm:$0xff] %v5290_v61  ;;  %vm1035_vm5 = vcmp.eq.f32.partialorder %v4493_v27, %v5290_v61  ;;  %vm1052_vm9 = vmand %vm972_vm6, %vm1036_vm3  ;;  %vm7547_vm3 = vcmp.eq.f32.partialorder %v5069_v41, %v5193_v13 }
 0x453   : > { %v5298_v33 = vsel %vm1052_vm9, inf, %v4994_v51  ;;  %vm1051_vm4 = vmand %vm971_vm10, %vm1035_vm5 }
 0x454   : > { %1090 = vmin.xlane.f32.xlu1 %v5298_v33  ;;  %v5304_v56 = vpop.xlane.xlu1 %1014  ;;  %v5307_v31 = vsel %vm1051_vm4, inf, %v5003_v48 }
 0x455   : > { %7540 = vst [vmem:[#allocation74_spill] sm:$0xff] %v5304_v56  ;;  %vm1038_vm14 = vcmp.eq.f32.partialorder %v4493_v27, %v5304_v56  ;;  %1088 = vmin.xlane.f32.xlu0 %v5307_v31  ;;  %v5312_v61 = vpop.xlane.xlu0 %1012 }
 0x456   : > { %7541 = vst [vmem:[#allocation75_spill] sm:$0xff] %v5312_v61  ;;  %vm1037_vm6 = vcmp.eq.f32.partialorder %v4493_v27, %v5312_v61  ;;  %vm1054_vm10 = vmand %vm974_vm2, %vm1038_vm14  ;;  %vm7550_vm14 = vcmp.eq.f32.partialorder %v5082_v8, %v5207_v38 }
 0x457   : > { %v5320_v51 = vsel %vm1054_vm10, inf, %v5016_v7  ;;  %vm1053_vm1 = vmand %vm973_vm7, %vm1037_vm6  ;;  %vm7551_vm10 = vcmp.eq.f32.partialorder %v5089_v62, %v5209_v22 }
 0x458   : > { %1094 = vmin.xlane.f32.xlu1 %v5320_v51  ;;  %v5326_v48 = vpop.xlane.xlu1 %1018  ;;  %v5329_v56 = vsel %vm1053_vm1, inf, %v5025_v52 }
 0x459   : > { %7542 = vst [vmem:[#allocation76_spill] sm:$0xff] %v5326_v48  ;;  %vm1040_vm0 = vcmp.eq.f32.partialorder %v4493_v27, %v5326_v48  ;;  %1092 = vmin.xlane.f32.xlu0 %v5329_v56  ;;  %v5334_v61 = vpop.xlane.xlu0 %1016 }
 0x45a   : > { %7543 = vst [vmem:[#allocation77_spill] sm:$0xff] %v5334_v61  ;;  %vm1039_vm2 = vcmp.eq.f32.partialorder %v4493_v27, %v5334_v61  ;;  %vm1056_vm7 = vmand %vm976_vm8, %vm1040_vm0 }
 0x45b   : > { %v5342_v7 = vsel %vm1056_vm7, inf, %v5038_v20  ;;  %vm1055_vm12 = vmand %vm975_vm11, %vm1039_vm2  ;;  %vm7546_vm11 = vcmp.eq.f32.partialorder %v5060_v57, %v5191_v46  ;;  %vm7553_vm2 = vcmp.eq.f32.partialorder %v5100_v54, %v5223_v36 }
 0x45c   : > { %1098 = vmin.xlane.f32.xlu1 %v5342_v7  ;;  %v5348_v52 = vpop.xlane.xlu1 %1022  ;;  %v5351_v48 = vsel %vm1055_vm12, inf, %v5047_v45 }
 0x45d   : > { %7544 = vst [vmem:[#allocation78_spill] sm:$0xff] %v5348_v52  ;;  %vm1042_vm13 = vcmp.eq.f32.partialorder %v4493_v27, %v5348_v52  ;;  %1096 = vmin.xlane.f32.xlu0 %v5351_v48  ;;  %v5356_v61 = vpop.xlane.xlu0 %1020 }
 0x45e   : > { %7545 = vst [vmem:[#allocation79_spill] sm:$0xff] %v5356_v61  ;;  %vm1041_vm8 = vcmp.eq.f32.partialorder %v4493_v27, %v5356_v61  ;;  %vm1058_vm15 = vmand %vm7546_vm11, %vm1042_vm13 }
 0x45f   : > { %v5364_v20 = vsel %vm1058_vm15, inf, %v5060_v57  ;;  %vm1057_vm5 = vmand %vm7547_vm3, %vm1041_vm8 }
 0x460   : > { %1102 = vmin.xlane.f32.xlu1 %v5364_v20  ;;  %v5370_v45 = vpop.xlane.xlu1 %1026  ;;  %v5373_v52 = vsel %vm1057_vm5, inf, %v5069_v41 }
 0x461   : > { %7548 = vst [vmem:[#allocation80_spill] sm:$0xff] %v5370_v45  ;;  %vm1044_vm9 = vcmp.eq.f32.partialorder %v4493_v27, %v5370_v45  ;;  %1100 = vmin.xlane.f32.xlu0 %v5373_v52  ;;  %v5378_v61 = vpop.xlane.xlu0 %1024 }
 0x462   : > { %7549 = vst [vmem:[#allocation81_spill] sm:$0xff] %v5378_v61  ;;  %vm1043_vm4 = vcmp.eq.f32.partialorder %v4493_v27, %v5378_v61  ;;  %vm1060_vm6 = vmand %vm7550_vm14, %vm1044_vm9 }
 0x463   : > { %v5386_v57 = vsel %vm1060_vm6, inf, %v5082_v8  ;;  %vm1059_vm1 = vmand %vm7551_vm10, %vm1043_vm4 }
 0x464   : > { %1106 = vmin.xlane.f32.xlu1 %v5386_v57  ;;  %v5393_v41 = vsel %vm1059_vm1, inf, %v5089_v62 }
 0x465   : > { %1104 = vmin.xlane.f32.xlu0 %v5393_v41  ;;  %v5396_v45 = vpop.xlane.xlu0 %1028 }
 0x466   : > { %7552 = vst [vmem:[#allocation82_spill] sm:$0xff] %v5396_v45  ;;  %vm1045_vm0 = vcmp.eq.f32.partialorder %v4493_v27, %v5396_v45 }
 0x467   : > { %vm1061_vm7 = vmand %vm7553_vm2, %vm1045_vm0 }
 0x468   : > { %v5404_v8 = vsel %vm1061_vm7, inf, %v5100_v54 }
 0x469   : > { %1108 = vmin.xlane.f32.xlu0 %v5404_v8 }
 0x4d5   : > { %v5407_v38 = vpop.xlane.xlu1 %1078 }
 0x4d6   : > { %v5409_v62 = vpop.xlane.xlu0 %1080  ;;  %vm1110_vm12 = vcmp.eq.f32.partialorder %v5243_v30, %v5407_v38 }
 0x4d7   : > { %v1126_v45 = vsel %vm1110_vm12, %v4493_v27, inf  ;;  %vm1111_vm13 = vcmp.eq.f32.partialorder %v5252_v16, %v5409_v62 }
 0x4d8   : > { %1142 = vmin.xlane.f32.xlu1 %v1126_v45  ;;  %v1127_v54 = vsel %vm1111_vm13, %v4493_v27, inf }
 0x4d9   : > { %1144 = vmin.xlane.f32.xlu0 %v1127_v54  ;;  %v5423_v36 = vpop.xlane.xlu1 %1082 }
 0x4da   : > { %vm1112_vm8 = vcmp.eq.f32.partialorder %v5261_v1, %v5423_v36 }
 0x4db   : > { %v1128_v61 = vsel %vm1112_vm8, %v4493_v27, inf }
 0x4dc   : > { %1146 = vmin.xlane.f32.xlu1 %v1128_v61 }
 0x4dd   : > { %v5431_v22 = vpop.xlane.xlu1 %1086 }
 0x4de   : > { %v5433_v45 = vpop.xlane.xlu0 %1084  ;;  %vm1114_vm11 = vcmp.eq.f32.partialorder %v5276_v43, %v5431_v22 }
 0x4df   : > { %v1130_v54 = vsel %vm1114_vm11, %v4493_v27, inf  ;;  %vm1113_vm15 = vcmp.eq.f32.partialorder %v5285_v35, %v5433_v45 }
 0x4e0   : > { %1150 = vmin.xlane.f32.xlu1 %v1130_v54  ;;  %v1129_v61 = vsel %vm1113_vm15, %v4493_v27, inf }
 0x4e1   : > { %1148 = vmin.xlane.f32.xlu0 %v1129_v61  ;;  %v5447_v18 = vpop.xlane.xlu1 %1090 }
 0x4e2   : > { %7554 = vst [vmem:[#allocation83_spill] sm:$0xff] %v5447_v18  ;;  %v5449_v13 = vpop.xlane.xlu0 %1088  ;;  %vm1116_vm3 = vcmp.eq.f32.partialorder %v5298_v33, %v5447_v18 }
 0x4e3   : > { %7555 = vst [vmem:[#allocation84_spill] sm:$0xff] %v5449_v13  ;;  %v1132_v46 = vsel %vm1116_vm3, %v4493_v27, inf  ;;  %vm1115_vm5 = vcmp.eq.f32.partialorder %v5307_v31, %v5449_v13 }
 0x4e4   : > { %1154 = vmin.xlane.f32.xlu1 %v1132_v46  ;;  %v1131_v54 = vsel %vm1115_vm5, %v4493_v27, inf }
 0x4e5   : > { %1152 = vmin.xlane.f32.xlu0 %v1131_v54  ;;  %v5463_v61 = vpop.xlane.xlu1 %1094 }
 0x4e6   : > { %7556 = vst [vmem:[#allocation85_spill] sm:$0xff] %v5463_v61  ;;  %v5465_v14 = vpop.xlane.xlu0 %1092  ;;  %vm1118_vm9 = vcmp.eq.f32.partialorder %v5320_v51, %v5463_v61 }
 0x4e7   : > { %7557 = vst [vmem:[#allocation86_spill] sm:$0xff] %v5465_v14  ;;  %v1134_v9 = vsel %vm1118_vm9, %v4493_v27, inf  ;;  %vm1117_vm4 = vcmp.eq.f32.partialorder %v5329_v56, %v5465_v14 }
 0x4e8   : > { %1158 = vmin.xlane.f32.xlu1 %v1134_v9  ;;  %v1133_v46 = vsel %vm1117_vm4, %v4493_v27, inf }
 0x4e9   : > { %1156 = vmin.xlane.f32.xlu0 %v1133_v46  ;;  %v5479_v54 = vpop.xlane.xlu1 %1098 }
 0x4ea   : > { %7558 = vst [vmem:[#allocation87_spill] sm:$0xff] %v5479_v54  ;;  %v5481_v11 = vpop.xlane.xlu0 %1096  ;;  %vm1120_vm14 = vcmp.eq.f32.partialorder %v5342_v7, %v5479_v54 }
 0x4eb   : > { %7559 = vst [vmem:[#allocation88_spill] sm:$0xff] %v5481_v11  ;;  %v1136_v58 = vsel %vm1120_vm14, %v4493_v27, inf  ;;  %vm1119_vm6 = vcmp.eq.f32.partialorder %v5351_v48, %v5481_v11 }
 0x4ec   : > { %1162 = vmin.xlane.f32.xlu1 %v1136_v58  ;;  %v1135_v9 = vsel %vm1119_vm6, %v4493_v27, inf }
 0x4ed   : > { %1160 = vmin.xlane.f32.xlu0 %v1135_v9  ;;  %v5495_v46 = vpop.xlane.xlu1 %1102 }
 0x4ee   : > { %7560 = vst [vmem:[#allocation89_spill] sm:$0xff] %v5495_v46  ;;  %v5497_v5 = vpop.xlane.xlu0 %1100  ;;  %vm7357_vm10 = vcmp.eq.f32.partialorder %v5364_v20, %v5495_v46 }
 0x4ef   : > { %7561 = vst [vmem:[#allocation90_spill] sm:$0xff] %v5497_v5  ;;  %v1138_v24 = vsel %vm7357_vm10, %v4493_v27, inf  ;;  %vm7354_vm1 = vcmp.eq.f32.partialorder %v5373_v52, %v5497_v5 }
 0x4f0   : > { %1166 = vmin.xlane.f32.xlu1 %v1138_v24  ;;  %v1137_v58 = vsel %vm7354_vm1, %v4493_v27, inf }
 0x4f1   : > { %1164 = vmin.xlane.f32.xlu0 %v1137_v58  ;;  %v5511_v9 = vpop.xlane.xlu1 %1106 }
 0x4f2   : > { %7562 = vst [vmem:[#allocation91_spill] sm:$0xff] %v5511_v9  ;;  %v5513_v12 = vpop.xlane.xlu0 %1104  ;;  %vm7352_vm0 = vcmp.eq.f32.partialorder %v5386_v57, %v5511_v9 }
 0x4f3   : > { %7563 = vst [vmem:[#allocation92_spill] sm:$0xff] %v5513_v12  ;;  %v1140_v42 = vsel %vm7352_vm0, %v4493_v27, inf  ;;  %vm7353_vm2 = vcmp.eq.f32.partialorder %v5393_v41, %v5513_v12 }
 0x4f4   : > { %1170 = vmin.xlane.f32.xlu1 %v1140_v42  ;;  %v1139_v24 = vsel %vm7353_vm2, %v4493_v27, inf }
 0x4f5   : > { %1168 = vmin.xlane.f32.xlu0 %v1139_v24 }
 0x4f6   : > { %v5527_v58 = vpop.xlane.xlu0 %1108 }
 0x4f7   : > { %7564 = vst [vmem:[#allocation93_spill] sm:$0xff] %v5527_v58  ;;  %vm7355_vm7 = vcmp.eq.f32.partialorder %v5404_v8, %v5527_v58 }
 0x4f8   : > { %v1141_v25 = vsel %vm7355_vm7, %v4493_v27, inf }
 0x4f9   : > { %1172 = vmin.xlane.f32.xlu0 %v1141_v25 }
 0x565   : > { %v5535_v34 = vpop.xlane.xlu1 %1142 }
 0x566   : > { %7565 = vst [vmem:[#allocation94_spill] sm:$0xff] %v5535_v34  ;;  %vm1174_vm0 = vcmp.eq.f32.partialorder %v4493_v27, %v5535_v34  ;;  %v5539_v42 = vpop.xlane.xlu0 %1144 }
 0x567   : > { %7566 = vst [vmem:[#allocation95_spill] sm:$0xff] %v5539_v42  ;;  %vm1175_vm2 = vcmp.eq.f32.partialorder %v4493_v27, %v5539_v42  ;;  %vm1190_vm1 = vmand %vm1110_vm12, %vm1174_vm0 }
 0x568   : > { %v5547_v24 = vsel %vm1190_vm1, inf, %v5243_v30  ;;  %vm1191_vm7 = vmand %vm1111_vm13, %vm1175_vm2 }
 0x569   : > { %1222 = vmin.xlane.f32.xlu1 %v5547_v24  ;;  %v5553_v25 = vpop.xlane.xlu1 %1146  ;;  %v5556_v34 = vsel %vm1191_vm7, inf, %v5252_v16 }
 0x56a   : > { %7567 = vst [vmem:[#allocation96_spill] sm:$0xff] %v5553_v25  ;;  %vm1176_vm10 = vcmp.eq.f32.partialorder %v4493_v27, %v5553_v25  ;;  %1224 = vmin.xlane.f32.xlu0 %v5556_v34 }
 0x56b   : > { %vm1192_vm12 = vmand %vm1112_vm8, %vm1176_vm10 }
 0x56c   : > { %v5565_v30 = vsel %vm1192_vm12, inf, %v5261_v1 }
 0x56d   : > { %1226 = vmin.xlane.f32.xlu1 %v5565_v30  ;;  %v5568_v42 = vpop.xlane.xlu1 %1150 }
 0x56e   : > { %7568 = vst [vmem:[#allocation97_spill] sm:$0xff] %v5568_v42  ;;  %vm1178_vm13 = vcmp.eq.f32.partialorder %v4493_v27, %v5568_v42  ;;  %v5572_v16 = vpop.xlane.xlu0 %1148 }
 0x56f   : > { %7569 = vst [vmem:[#allocation98_spill] sm:$0xff] %v5572_v16  ;;  %vm1177_vm1 = vcmp.eq.f32.partialorder %v4493_v27, %v5572_v16  ;;  %vm1194_vm0 = vmand %vm1114_vm11, %vm1178_vm13 }
 0x570   : > { %v5580_v25 = vsel %vm1194_vm0, inf, %v5276_v43  ;;  %vm1193_vm8 = vmand %vm1113_vm15, %vm1177_vm1 }
 0x571   : > { %1230 = vmin.xlane.f32.xlu1 %v5580_v25  ;;  %v5586_v1 = vpop.xlane.xlu1 %1154  ;;  %v5589_v42 = vsel %vm1193_vm8, inf, %v5285_v35 }
 0x572   : > { %7570 = vst [vmem:[#allocation99_spill] sm:$0xff] %v5586_v1  ;;  %vm1180_vm10 = vcmp.eq.f32.partialorder %v4493_v27, %v5586_v1  ;;  %1228 = vmin.xlane.f32.xlu0 %v5589_v42  ;;  %v5594_v16 = vpop.xlane.xlu0 %1152 }
 0x573   : > { %7571 = vst [vmem:[#allocation100_spill] sm:$0xff] %v5594_v16  ;;  %vm1179_vm11 = vcmp.eq.f32.partialorder %v4493_v27, %v5594_v16  ;;  %vm1196_vm15 = vmand %vm1116_vm3, %vm1180_vm10  ;;  %vm7579_vm10 = vcmp.eq.f32.partialorder %v5373_v52, %v5497_v5 }
 0x574   : > { %v5602_v43 = vsel %vm1196_vm15, inf, %v5298_v33  ;;  %vm1195_vm2 = vmand %vm1115_vm5, %vm1179_vm11 }
 0x575   : > { %1234 = vmin.xlane.f32.xlu1 %v5602_v43  ;;  %v5608_v35 = vpop.xlane.xlu1 %1158  ;;  %v5611_v1 = vsel %vm1195_vm2, inf, %v5307_v31 }
 0x576   : > { %7572 = vst [vmem:[#allocation101_spill] sm:$0xff] %v5608_v35  ;;  %vm1182_vm7 = vcmp.eq.f32.partialorder %v4493_v27, %v5608_v35  ;;  %1232 = vmin.xlane.f32.xlu0 %v5611_v1  ;;  %v5616_v16 = vpop.xlane.xlu0 %1156 }
 0x577   : > { %7573 = vst [vmem:[#allocation102_spill] sm:$0xff] %v5616_v16  ;;  %vm1181_vm3 = vcmp.eq.f32.partialorder %v4493_v27, %v5616_v16  ;;  %vm1198_vm5 = vmand %vm1118_vm9, %vm1182_vm7  ;;  %vm7582_vm7 = vcmp.eq.f32.partialorder %v5386_v57, %v5511_v9 }
 0x578   : > { %v5624_v33 = vsel %vm1198_vm5, inf, %v5320_v51  ;;  %vm1197_vm12 = vmand %vm1117_vm4, %vm1181_vm3  ;;  %vm7583_vm5 = vcmp.eq.f32.partialorder %v5393_v41, %v5513_v12 }
 0x579   : > { %1238 = vmin.xlane.f32.xlu1 %v5624_v33  ;;  %v5630_v31 = vpop.xlane.xlu1 %1162  ;;  %v5633_v35 = vsel %vm1197_vm12, inf, %v5329_v56 }
 0x57a   : > { %7574 = vst [vmem:[#allocation103_spill] sm:$0xff] %v5630_v31  ;;  %vm1184_vm13 = vcmp.eq.f32.partialorder %v4493_v27, %v5630_v31  ;;  %1236 = vmin.xlane.f32.xlu0 %v5633_v35  ;;  %v5638_v16 = vpop.xlane.xlu0 %1160 }
 0x57b   : > { %7575 = vst [vmem:[#allocation104_spill] sm:$0xff] %v5638_v16  ;;  %vm1183_vm9 = vcmp.eq.f32.partialorder %v4493_v27, %v5638_v16  ;;  %vm1200_vm4 = vmand %vm1120_vm14, %vm1184_vm13 }
 0x57c   : > { %v5646_v51 = vsel %vm1200_vm4, inf, %v5342_v7  ;;  %vm1199_vm1 = vmand %vm1119_vm6, %vm1183_vm9  ;;  %vm7578_vm6 = vcmp.eq.f32.partialorder %v5364_v20, %v5495_v46  ;;  %vm7585_vm9 = vcmp.eq.f32.partialorder %v5404_v8, %v5527_v58 }
 0x57d   : > { %1242 = vmin.xlane.f32.xlu1 %v5646_v51  ;;  %v5652_v56 = vpop.xlane.xlu1 %1166  ;;  %v5655_v31 = vsel %vm1199_vm1, inf, %v5351_v48 }
 0x57e   : > { %7576 = vst [vmem:[#allocation105_spill] sm:$0xff] %v5652_v56  ;;  %vm1186_vm0 = vcmp.eq.f32.partialorder %v4493_v27, %v5652_v56  ;;  %1240 = vmin.xlane.f32.xlu0 %v5655_v31  ;;  %v5660_v16 = vpop.xlane.xlu0 %1164 }
 0x57f   : > { %7577 = vst [vmem:[#allocation106_spill] sm:$0xff] %v5660_v16  ;;  %vm1185_vm14 = vcmp.eq.f32.partialorder %v4493_v27, %v5660_v16  ;;  %vm1202_vm8 = vmand %vm7578_vm6, %vm1186_vm0 }
 0x580   : > { %v5668_v7 = vsel %vm1202_vm8, inf, %v5364_v20  ;;  %vm1201_vm11 = vmand %vm7579_vm10, %vm1185_vm14 }
 0x581   : > { %1246 = vmin.xlane.f32.xlu1 %v5668_v7  ;;  %v5674_v48 = vpop.xlane.xlu1 %1170  ;;  %v5677_v56 = vsel %vm1201_vm11, inf, %v5373_v52 }
 0x582   : > { %7580 = vst [vmem:[#allocation107_spill] sm:$0xff] %v5674_v48  ;;  %vm1188_vm15 = vcmp.eq.f32.partialorder %v4493_v27, %v5674_v48  ;;  %1244 = vmin.xlane.f32.xlu0 %v5677_v56  ;;  %v5682_v16 = vpop.xlane.xlu0 %1168 }
 0x583   : > { %7581 = vst [vmem:[#allocation108_spill] sm:$0xff] %v5682_v16  ;;  %vm1187_vm2 = vcmp.eq.f32.partialorder %v4493_v27, %v5682_v16  ;;  %vm1204_vm3 = vmand %vm7582_vm7, %vm1188_vm15 }
 0x584   : > { %v5690_v20 = vsel %vm1204_vm3, inf, %v5386_v57  ;;  %vm1203_vm12 = vmand %vm7583_vm5, %vm1187_vm2 }
 0x585   : > { %1250 = vmin.xlane.f32.xlu1 %v5690_v20  ;;  %v5697_v52 = vsel %vm1203_vm12, inf, %v5393_v41 }
 0x586   : > { %1248 = vmin.xlane.f32.xlu0 %v5697_v52  ;;  %v5700_v48 = vpop.xlane.xlu0 %1172 }
 0x587   : > { %7584 = vst [vmem:[#allocation109_spill] sm:$0xff] %v5700_v48  ;;  %vm1189_vm13 = vcmp.eq.f32.partialorder %v4493_v27, %v5700_v48 }
 0x588   : > { %vm1205_vm4 = vmand %vm7585_vm9, %vm1189_vm13 }
 0x589   : > { %v5708_v57 = vsel %vm1205_vm4, inf, %v5404_v8 }
 0x58a   : > { %1252 = vmin.xlane.f32.xlu0 %v5708_v57 }
 0x5f6   : > { %v5711_v9 = vpop.xlane.xlu1 %1222 }
 0x5f7   : > { %v5713_v41 = vpop.xlane.xlu0 %1224  ;;  %vm1254_vm1 = vcmp.eq.f32.partialorder %v5547_v24, %v5711_v9 }
 0x5f8   : > { %v1270_v48 = vsel %vm1254_vm1, %v4493_v27, inf  ;;  %vm1255_vm0 = vcmp.eq.f32.partialorder %v5556_v34, %v5713_v41 }
 0x5f9   : > { %1286 = vmin.xlane.f32.xlu1 %v1270_v48  ;;  %v1271_v8 = vsel %vm1255_vm0, %v4493_v27, inf }
 0x5fa   : > { %1288 = vmin.xlane.f32.xlu0 %v1271_v8  ;;  %v5727_v58 = vpop.xlane.xlu1 %1226 }
 0x5fb   : > { %vm1256_vm14 = vcmp.eq.f32.partialorder %v5565_v30, %v5727_v58 }
 0x5fc   : > { %v1272_v16 = vsel %vm1256_vm14, %v4493_v27, inf }
 0x5fd   : > { %1290 = vmin.xlane.f32.xlu1 %v1272_v16 }
 0x5fe   : > { %v5735_v12 = vpop.xlane.xlu1 %1230 }
 0x5ff   : > { %v5737_v48 = vpop.xlane.xlu0 %1228  ;;  %vm1258_vm6 = vcmp.eq.f32.partialorder %v5580_v25, %v5735_v12 }
 0x600   : > { %7586 = vst [vmem:[#allocation110_spill] sm:$0xff] %v5737_v48  ;;  %v1274_v8 = vsel %vm1258_vm6, %v4493_v27, inf  ;;  %vm1257_vm8 = vcmp.eq.f32.partialorder %v5589_v42, %v5737_v48 }
 0x601   : > { %1294 = vmin.xlane.f32.xlu1 %v1274_v8  ;;  %v1273_v16 = vsel %vm1257_vm8, %v4493_v27, inf }
 0x602   : > { %1292 = vmin.xlane.f32.xlu0 %v1273_v16  ;;  %v5751_v5 = vpop.xlane.xlu1 %1234 }
 0x603   : > { %7587 = vst [vmem:[#allocation111_spill] sm:$0xff] %v5751_v5  ;;  %v5753_v46 = vpop.xlane.xlu0 %1232  ;;  %vm1260_vm10 = vcmp.eq.f32.partialorder %v5602_v43, %v5751_v5 }
 0x604   : > { %7588 = vst [vmem:[#allocation112_spill] sm:$0xff] %v5753_v46  ;;  %v1276_v11 = vsel %vm1260_vm10, %v4493_v27, inf  ;;  %vm1259_vm11 = vcmp.eq.f32.partialorder %v5611_v1, %v5753_v46 }
 0x605   : > { %1298 = vmin.xlane.f32.xlu1 %v1276_v11  ;;  %v1275_v8 = vsel %vm1259_vm11, %v4493_v27, inf }
 0x606   : > { %1296 = vmin.xlane.f32.xlu0 %v1275_v8  ;;  %v5767_v16 = vpop.xlane.xlu1 %1238 }
 0x607   : > { %7589 = vst [vmem:[#allocation113_spill] sm:$0xff] %v5767_v16  ;;  %v5769_v54 = vpop.xlane.xlu0 %1236  ;;  %vm1262_vm15 = vcmp.eq.f32.partialorder %v5624_v33, %v5767_v16 }
 0x608   : > { %7590 = vst [vmem:[#allocation114_spill] sm:$0xff] %v5769_v54  ;;  %v1278_v14 = vsel %vm1262_vm15, %v4493_v27, inf  ;;  %vm1261_vm2 = vcmp.eq.f32.partialorder %v5633_v35, %v5769_v54 }
 0x609   : > { %1302 = vmin.xlane.f32.xlu1 %v1278_v14  ;;  %v1277_v11 = vsel %vm1261_vm2, %v4493_v27, inf }
 0x60a   : > { %1300 = vmin.xlane.f32.xlu0 %v1277_v11  ;;  %v5783_v8 = vpop.xlane.xlu1 %1242 }
 0x60b   : > { %7591 = vst [vmem:[#allocation115_spill] sm:$0xff] %v5783_v8  ;;  %v5785_v61 = vpop.xlane.xlu0 %1240  ;;  %vm1264_vm7 = vcmp.eq.f32.partialorder %v5646_v51, %v5783_v8 }
 0x60c   : > { %7592 = vst [vmem:[#allocation116_spill] sm:$0xff] %v5785_v61  ;;  %v1280_v37 = vsel %vm1264_vm7, %v4493_v27, inf  ;;  %vm1263_vm3 = vcmp.eq.f32.partialorder %v5655_v31, %v5785_v61 }
 0x60d   : > { %1306 = vmin.xlane.f32.xlu1 %v1280_v37  ;;  %v1279_v14 = vsel %vm1263_vm3, %v4493_v27, inf }
 0x60e   : > { %1304 = vmin.xlane.f32.xlu0 %v1279_v14  ;;  %v5799_v11 = vpop.xlane.xlu1 %1246 }
 0x60f   : > { %7593 = vst [vmem:[#allocation117_spill] sm:$0xff] %v5799_v11  ;;  %v5801_v60 = vpop.xlane.xlu0 %1244  ;;  %vm7394_vm5 = vcmp.eq.f32.partialorder %v5668_v7, %v5799_v11 }
 0x610   : > { %7594 = vst [vmem:[#allocation118_spill] sm:$0xff] %v5801_v60  ;;  %v1282_v10 = vsel %vm7394_vm5, %v4493_v27, inf  ;;  %vm7391_vm12 = vcmp.eq.f32.partialorder %v5677_v56, %v5801_v60 }
 0x611   : > { %1310 = vmin.xlane.f32.xlu1 %v1282_v10  ;;  %v1281_v37 = vsel %vm7391_vm12, %v4493_v27, inf }
 0x612   : > { %1308 = vmin.xlane.f32.xlu0 %v1281_v37  ;;  %v5815_v14 = vpop.xlane.xlu1 %1250 }
 0x613   : > { %7595 = vst [vmem:[#allocation119_spill] sm:$0xff] %v5815_v14  ;;  %v5817_v4 = vpop.xlane.xlu0 %1248  ;;  %vm7389_vm13 = vcmp.eq.f32.partialorder %v5690_v20, %v5815_v14 }
 0x614   : > { %7596 = vst [vmem:[#allocation120_spill] sm:$0xff] %v5817_v4  ;;  %v1284_v13 = vsel %vm7389_vm13, %v4493_v27, inf  ;;  %vm7390_vm9 = vcmp.eq.f32.partialorder %v5697_v52, %v5817_v4 }
 0x615   : > { %1314 = vmin.xlane.f32.xlu1 %v1284_v13  ;;  %v1283_v10 = vsel %vm7390_vm9, %v4493_v27, inf }
 0x616   : > { %1312 = vmin.xlane.f32.xlu0 %v1283_v10 }
 0x617   : > { %v5831_v37 = vpop.xlane.xlu0 %1252 }
 0x618   : > { %7597 = vst [vmem:[#allocation121_spill] sm:$0xff] %v5831_v37  ;;  %vm7392_vm4 = vcmp.eq.f32.partialorder %v5708_v57, %v5831_v37 }
 0x619   : > { %v1285_v49 = vsel %vm7392_vm4, %v4493_v27, inf }
 0x61a   : > { %1316 = vmin.xlane.f32.xlu0 %v1285_v49 }
 0x686   : > { %v5839_v23 = vpop.xlane.xlu1 %1286 }
 0x687   : > { %7598 = vst [vmem:[#allocation122_spill] sm:$0xff] %v5839_v23  ;;  %vm1318_vm13 = vcmp.eq.f32.partialorder %v4493_v27, %v5839_v23  ;;  %v5843_v13 = vpop.xlane.xlu0 %1288 }
 0x688   : > { %7599 = vst [vmem:[#allocation123_spill] sm:$0xff] %v5843_v13  ;;  %vm1319_vm9 = vcmp.eq.f32.partialorder %v4493_v27, %v5843_v13  ;;  %vm1334_vm12 = vmand %vm1254_vm1, %vm1318_vm13 }
 0x689   : > { %v5851_v10 = vsel %vm1334_vm12, inf, %v5547_v24  ;;  %vm1335_vm4 = vmand %vm1255_vm0, %vm1319_vm9 }
 0x68a   : > { %1366 = vmin.xlane.f32.xlu1 %v5851_v10  ;;  %v5857_v49 = vpop.xlane.xlu1 %1290  ;;  %v5860_v23 = vsel %vm1335_vm4, inf, %v5556_v34 }
 0x68b   : > { %7600 = vst [vmem:[#allocation124_spill] sm:$0xff] %v5857_v49  ;;  %vm1320_vm5 = vcmp.eq.f32.partialorder %v4493_v27, %v5857_v49  ;;  %1368 = vmin.xlane.f32.xlu0 %v5860_v23 }
 0x68c   : > { %vm1336_vm1 = vmand %vm1256_vm14, %vm1320_vm5 }
 0x68d   : > { %v5869_v24 = vsel %vm1336_vm1, inf, %v5565_v30 }
 0x68e   : > { %1370 = vmin.xlane.f32.xlu1 %v5869_v24  ;;  %v5872_v13 = vpop.xlane.xlu1 %1294 }
 0x68f   : > { %7601 = vst [vmem:[#allocation125_spill] sm:$0xff] %v5872_v13  ;;  %vm1322_vm0 = vcmp.eq.f32.partialorder %v4493_v27, %v5872_v13  ;;  %v5876_v34 = vpop.xlane.xlu0 %1292 }
 0x690   : > { %7602 = vst [vmem:[#allocation126_spill] sm:$0xff] %v5876_v34  ;;  %vm1321_vm12 = vcmp.eq.f32.partialorder %v4493_v27, %v5876_v34  ;;  %vm1338_vm13 = vmand %vm1258_vm6, %vm1322_vm0 }
 0x691   : > { %v5884_v49 = vsel %vm1338_vm13, inf, %v5580_v25  ;;  %vm1337_vm14 = vmand %vm1257_vm8, %vm1321_vm12 }
 0x692   : > { %1374 = vmin.xlane.f32.xlu1 %v5884_v49  ;;  %v5890_v30 = vpop.xlane.xlu1 %1298  ;;  %v5893_v13 = vsel %vm1337_vm14, inf, %v5589_v42 }
 0x693   : > { %7603 = vst [vmem:[#allocation127_spill] sm:$0xff] %v5890_v30  ;;  %vm1324_vm5 = vcmp.eq.f32.partialorder %v4493_v27, %v5890_v30  ;;  %1372 = vmin.xlane.f32.xlu0 %v5893_v13  ;;  %v5898_v34 = vpop.xlane.xlu0 %1296 }
 0x694   : > { %7604 = vst [vmem:[#allocation128_spill] sm:$0xff] %v5898_v34  ;;  %vm1323_vm6 = vcmp.eq.f32.partialorder %v4493_v27, %v5898_v34  ;;  %vm1340_vm8 = vmand %vm1260_vm10, %vm1324_vm5  ;;  %vm7612_vm5 = vcmp.eq.f32.partialorder %v5677_v56, %v5801_v60 }
 0x695   : > { %v5906_v25 = vsel %vm1340_vm8, inf, %v5602_v43  ;;  %vm1339_vm9 = vmand %vm1259_vm11, %vm1323_vm6 }
 0x696   : > { %1378 = vmin.xlane.f32.xlu1 %v5906_v25  ;;  %v5912_v42 = vpop.xlane.xlu1 %1302  ;;  %v5915_v30 = vsel %vm1339_vm9, inf, %v5611_v1 }
 0x697   : > { %7605 = vst [vmem:[#allocation129_spill] sm:$0xff] %v5912_v42  ;;  %vm1326_vm4 = vcmp.eq.f32.partialorder %v4493_v27, %v5912_v42  ;;  %1376 = vmin.xlane.f32.xlu0 %v5915_v30  ;;  %v5920_v34 = vpop.xlane.xlu0 %1300 }
 0x698   : > { %7606 = vst [vmem:[#allocation130_spill] sm:$0xff] %v5920_v34  ;;  %vm1325_vm10 = vcmp.eq.f32.partialorder %v4493_v27, %v5920_v34  ;;  %vm1342_vm11 = vmand %vm1262_vm15, %vm1326_vm4  ;;  %vm7615_vm4 = vcmp.eq.f32.partialorder %v5690_v20, %v5815_v14 }
 0x699   : > { %v5928_v43 = vsel %vm1342_vm11, inf, %v5624_v33  ;;  %vm1341_vm1 = vmand %vm1261_vm2, %vm1325_vm10  ;;  %vm7616_vm11 = vcmp.eq.f32.partialorder %v5697_v52, %v5817_v4 }
 0x69a   : > { %1382 = vmin.xlane.f32.xlu1 %v5928_v43  ;;  %v5934_v1 = vpop.xlane.xlu1 %1306  ;;  %v5937_v42 = vsel %vm1341_vm1, inf, %v5633_v35 }
 0x69b   : > { %7607 = vst [vmem:[#allocation131_spill] sm:$0xff] %v5934_v1  ;;  %vm1328_vm0 = vcmp.eq.f32.partialorder %v4493_v27, %v5934_v1  ;;  %1380 = vmin.xlane.f32.xlu0 %v5937_v42  ;;  %v5942_v34 = vpop.xlane.xlu0 %1304 }
 0x69c   : > { %7608 = vst [vmem:[#allocation132_spill] sm:$0xff] %v5942_v34  ;;  %vm1327_vm15 = vcmp.eq.f32.partialorder %v4493_v27, %v5942_v34  ;;  %vm1344_vm2 = vmand %vm1264_vm7, %vm1328_vm0 }
 0x69d   : > { %v5950_v33 = vsel %vm1344_vm2, inf, %v5646_v51  ;;  %vm1343_vm12 = vmand %vm1263_vm3, %vm1327_vm15  ;;  %vm7611_vm3 = vcmp.eq.f32.partialorder %v5668_v7, %v5799_v11  ;;  %vm7618_vm15 = vcmp.eq.f32.partialorder %v5708_v57, %v5831_v37 }
 0x69e   : > { %1386 = vmin.xlane.f32.xlu1 %v5950_v33  ;;  %v5956_v35 = vpop.xlane.xlu1 %1310  ;;  %v5959_v1 = vsel %vm1343_vm12, inf, %v5655_v31 }
 0x69f   : > { %7609 = vst [vmem:[#allocation133_spill] sm:$0xff] %v5956_v35  ;;  %vm1330_vm13 = vcmp.eq.f32.partialorder %v4493_v27, %v5956_v35  ;;  %1384 = vmin.xlane.f32.xlu0 %v5959_v1  ;;  %v5964_v34 = vpop.xlane.xlu0 %1308 }
 0x6a0   : > { %7610 = vst [vmem:[#allocation134_spill] sm:$0xff] %v5964_v34  ;;  %vm1329_vm7 = vcmp.eq.f32.partialorder %v4493_v27, %v5964_v34  ;;  %vm1346_vm14 = vmand %vm7611_vm3, %vm1330_vm13 }
 0x6a1   : > { %v5972_v51 = vsel %vm1346_vm14, inf, %v5668_v7  ;;  %vm1345_vm6 = vmand %vm7612_vm5, %vm1329_vm7 }
 0x6a2   : > { %1390 = vmin.xlane.f32.xlu1 %v5972_v51  ;;  %v5978_v31 = vpop.xlane.xlu1 %1314  ;;  %v5981_v35 = vsel %vm1345_vm6, inf, %v5677_v56 }
 0x6a3   : > { %7613 = vst [vmem:[#allocation135_spill] sm:$0xff] %v5978_v31  ;;  %vm1332_vm8 = vcmp.eq.f32.partialorder %v4493_v27, %v5978_v31  ;;  %1388 = vmin.xlane.f32.xlu0 %v5981_v35  ;;  %v5986_v34 = vpop.xlane.xlu0 %1312 }
 0x6a4   : > { %7614 = vst [vmem:[#allocation136_spill] sm:$0xff] %v5986_v34  ;;  %vm1331_vm9 = vcmp.eq.f32.partialorder %v4493_v27, %v5986_v34  ;;  %vm1348_vm10 = vmand %vm7615_vm4, %vm1332_vm8 }
 0x6a5   : > { %v5994_v7 = vsel %vm1348_vm10, inf, %v5690_v20  ;;  %vm1347_vm1 = vmand %vm7616_vm11, %vm1331_vm9 }
 0x6a6   : > { %1394 = vmin.xlane.f32.xlu1 %v5994_v7  ;;  %v6001_v56 = vsel %vm1347_vm1, inf, %v5697_v52 }
 0x6a7   : > { %1392 = vmin.xlane.f32.xlu0 %v6001_v56  ;;  %v6004_v31 = vpop.xlane.xlu0 %1316 }
 0x6a8   : > { %7617 = vst [vmem:[#allocation137_spill] sm:$0xff] %v6004_v31  ;;  %vm1333_vm0 = vcmp.eq.f32.partialorder %v4493_v27, %v6004_v31 }
 0x6a9   : > { %vm1349_vm2 = vmand %vm7618_vm15, %vm1333_vm0 }
 0x6aa   : > { %v6012_v20 = vsel %vm1349_vm2, inf, %v5708_v57 }
 0x6ab   : > { %1396 = vmin.xlane.f32.xlu0 %v6012_v20 }
 0x717   : > { %v6015_v14 = vpop.xlane.xlu1 %1366 }
 0x718   : > { %vm1398_vm12 = vcmp.eq.f32.partialorder %v5851_v10, %v6015_v14  ;;  %v6019_v52 = vpop.xlane.xlu0 %1368 }
 0x719   : > { %vm1399_vm13 = vcmp.eq.f32.partialorder %v5860_v23, %v6019_v52  ;;  %v1414_v31 = vsel %vm1398_vm12, %v4493_v27, inf }
 0x71a   : > { %1430 = vmin.xlane.f32.xlu1 %v1414_v31  ;;  %v1415_v57 = vsel %vm1399_vm13, %v4493_v27, inf }
 0x71b   : > { %1432 = vmin.xlane.f32.xlu0 %v1415_v57  ;;  %v6031_v37 = vpop.xlane.xlu1 %1370 }
 0x71c   : > { %vm1400_vm7 = vcmp.eq.f32.partialorder %v5869_v24, %v6031_v37 }
 0x71d   : > { %v1416_v34 = vsel %vm1400_vm7, %v4493_v27, inf }
 0x71e   : > { %1434 = vmin.xlane.f32.xlu1 %v1416_v34 }
 0x71f   : > { %v6039_v4 = vpop.xlane.xlu1 %1374 }
 0x720   : > { %vm1402_vm3 = vcmp.eq.f32.partialorder %v5884_v49, %v6039_v4  ;;  %v6043_v31 = vpop.xlane.xlu0 %1372 }
 0x721   : > { %vm1401_vm14 = vcmp.eq.f32.partialorder %v5893_v13, %v6043_v31  ;;  %v1418_v57 = vsel %vm1402_vm3, %v4493_v27, inf }
 0x722   : > { %1438 = vmin.xlane.f32.xlu1 %v1418_v57  ;;  %v1417_v34 = vsel %vm1401_vm14, %v4493_v27, inf }
 0x723   : > { %1436 = vmin.xlane.f32.xlu0 %v1417_v34  ;;  %v6055_v60 = vpop.xlane.xlu1 %1378 }
 0x724   : > { %vm1404_vm5 = vcmp.eq.f32.partialorder %v5906_v25, %v6055_v60  ;;  %v6059_v11 = vpop.xlane.xlu0 %1376 }
 0x725   : > { %vm1403_vm6 = vcmp.eq.f32.partialorder %v5915_v30, %v6059_v11  ;;  %v1420_v57 = vsel %vm1404_vm5, %v4493_v27, inf }
 0x726   : > { %1442 = vmin.xlane.f32.xlu1 %v1420_v57  ;;  %v1419_v34 = vsel %vm1403_vm6, %v4493_v27, inf }
 0x727   : > { %1440 = vmin.xlane.f32.xlu0 %v1419_v34  ;;  %v6071_v61 = vpop.xlane.xlu1 %1382 }
 0x728   : > { %vm1406_vm8 = vcmp.eq.f32.partialorder %v5928_v43, %v6071_v61  ;;  %v6075_v8 = vpop.xlane.xlu0 %1380 }
 0x729   : > { %vm1405_vm9 = vcmp.eq.f32.partialorder %v5937_v42, %v6075_v8  ;;  %v1422_v57 = vsel %vm1406_vm8, %v4493_v27, inf }
 0x72a   : > { %1446 = vmin.xlane.f32.xlu1 %v1422_v57  ;;  %v1421_v34 = vsel %vm1405_vm9, %v4493_v27, inf }
 0x72b   : > { %1444 = vmin.xlane.f32.xlu0 %v1421_v34  ;;  %v6087_v54 = vpop.xlane.xlu1 %1386 }
 0x72c   : > { %vm1408_vm4 = vcmp.eq.f32.partialorder %v5950_v33, %v6087_v54  ;;  %v6091_v16 = vpop.xlane.xlu0 %1384 }
 0x72d   : > { %vm1407_vm10 = vcmp.eq.f32.partialorder %v5959_v1, %v6091_v16  ;;  %v1424_v57 = vsel %vm1408_vm4, %v4493_v27, inf }
 0x72e   : > { %1450 = vmin.xlane.f32.xlu1 %v1424_v57  ;;  %v1423_v34 = vsel %vm1407_vm10, %v4493_v27, inf }
 0x72f   : > { %1448 = vmin.xlane.f32.xlu0 %v1423_v34  ;;  %v6103_v46 = vpop.xlane.xlu1 %1390 }
 0x730   : > { %vm7431_vm11 = vcmp.eq.f32.partialorder %v5972_v51, %v6103_v46  ;;  %v6107_v5 = vpop.xlane.xlu0 %1388 }
 0x731   : > { %vm7428_vm1 = vcmp.eq.f32.partialorder %v5981_v35, %v6107_v5  ;;  %v1426_v57 = vsel %vm7431_vm11, %v4493_v27, inf }
 0x732   : > { %1454 = vmin.xlane.f32.xlu1 %v1426_v57  ;;  %v1425_v34 = vsel %vm7428_vm1, %v4493_v27, inf }
 0x733   : > { %1452 = vmin.xlane.f32.xlu0 %v1425_v34  ;;  %v6119_v18 = vpop.xlane.xlu1 %1394 }
 0x734   : > { %7619 = vst [vmem:[#allocation138_spill] sm:$0xff] %v6119_v18  ;;  %vm7426_vm0 = vcmp.eq.f32.partialorder %v5994_v7, %v6119_v18  ;;  %v6123_v50 = vpop.xlane.xlu0 %1392 }
 0x735   : > { %vm7427_vm15 = vcmp.eq.f32.partialorder %v6001_v56, %v6123_v50  ;;  %v1428_v57 = vsel %vm7426_vm0, %v4493_v27, inf }
 0x736   : > { %1458 = vmin.xlane.f32.xlu1 %v1428_v57  ;;  %v1427_v34 = vsel %vm7427_vm15, %v4493_v27, inf }
 0x737   : > { %1456 = vmin.xlane.f32.xlu0 %v1427_v34 }
 0x738   : > { %v6135_v48 = vpop.xlane.xlu0 %1396 }
 0x739   : > { %7620 = vst [vmem:[#allocation139_spill] sm:$0xff] %v6135_v48  ;;  %vm7429_vm2 = vcmp.eq.f32.partialorder %v6012_v20, %v6135_v48 }
 0x73a   : > { %v1429_v6 = vsel %vm7429_vm2, %v4493_v27, inf }
 0x73b   : > { %1460 = vmin.xlane.f32.xlu0 %v1429_v6 }
 0x7a7   : > { %v6143_v44 = vpop.xlane.xlu1 %1430 }
 0x7a8   : > { %7621 = vst [vmem:[#allocation140_spill] sm:$0xff] %v6143_v44  ;;  %vm1462_vm0 = vcmp.eq.f32.partialorder %v4493_v27, %v6143_v44  ;;  %v6147_v57 = vpop.xlane.xlu0 %1432 }
 0x7a9   : > { %7622 = vst [vmem:[#allocation141_spill] sm:$0xff] %v6147_v57  ;;  %vm1463_vm15 = vcmp.eq.f32.partialorder %v4493_v27, %v6147_v57  ;;  %vm1478_vm1 = vmand %vm1398_vm12, %vm1462_vm0 }
 0x7aa   : > { %v6155_v34 = vsel %vm1478_vm1, inf, %v5851_v10  ;;  %vm1479_vm2 = vmand %vm1399_vm13, %vm1463_vm15 }
 0x7ab   : > { %1510 = vmin.xlane.f32.xlu1 %v6155_v34  ;;  %v6161_v6 = vpop.xlane.xlu1 %1434  ;;  %v6164_v44 = vsel %vm1479_vm2, inf, %v5860_v23 }
 0x7ac   : > { %7623 = vst [vmem:[#allocation142_spill] sm:$0xff] %v6161_v6  ;;  %vm1464_vm11 = vcmp.eq.f32.partialorder %v4493_v27, %v6161_v6  ;;  %1512 = vmin.xlane.f32.xlu0 %v6164_v44 }
 0x7ad   : > { %vm1480_vm12 = vmand %vm1400_vm7, %vm1464_vm11 }
 0x7ae   : > { %v6173_v10 = vsel %vm1480_vm12, inf, %v5869_v24 }
 0x7af   : > { %1514 = vmin.xlane.f32.xlu1 %v6173_v10  ;;  %v6176_v57 = vpop.xlane.xlu1 %1438 }
 0x7b0   : > { %7624 = vst [vmem:[#allocation143_spill] sm:$0xff] %v6176_v57  ;;  %vm1466_vm13 = vcmp.eq.f32.partialorder %v4493_v27, %v6176_v57  ;;  %v6180_v23 = vpop.xlane.xlu0 %1436 }
 0x7b1   : > { %7625 = vst [vmem:[#allocation144_spill] sm:$0xff] %v6180_v23  ;;  %vm1465_vm1 = vcmp.eq.f32.partialorder %v4493_v27, %v6180_v23  ;;  %vm1482_vm0 = vmand %vm1402_vm3, %vm1466_vm13 }
 0x7b2   : > { %v6188_v6 = vsel %vm1482_vm0, inf, %v5884_v49  ;;  %vm1481_vm7 = vmand %vm1401_vm14, %vm1465_vm1 }
 0x7b3   : > { %1518 = vmin.xlane.f32.xlu1 %v6188_v6  ;;  %v6194_v24 = vpop.xlane.xlu1 %1442  ;;  %v6197_v57 = vsel %vm1481_vm7, inf, %v5893_v13 }
 0x7b4   : > { %7626 = vst [vmem:[#allocation145_spill] sm:$0xff] %v6194_v24  ;;  %vm1468_vm11 = vcmp.eq.f32.partialorder %v4493_v27, %v6194_v24  ;;  %1516 = vmin.xlane.f32.xlu0 %v6197_v57  ;;  %v6202_v23 = vpop.xlane.xlu0 %1440 }
 0x7b5   : > { %7627 = vst [vmem:[#allocation146_spill] sm:$0xff] %v6202_v23  ;;  %vm1467_vm3 = vcmp.eq.f32.partialorder %v4493_v27, %v6202_v23  ;;  %vm1484_vm14 = vmand %vm1404_vm5, %vm1468_vm11  ;;  %vm7635_vm11 = vcmp.eq.f32.partialorder %v5981_v35, %v6107_v5 }
 0x7b6   : > { %v6210_v49 = vsel %vm1484_vm14, inf, %v5906_v25  ;;  %vm1483_vm15 = vmand %vm1403_vm6, %vm1467_vm3 }
 0x7b7   : > { %1522 = vmin.xlane.f32.xlu1 %v6210_v49  ;;  %v6216_v13 = vpop.xlane.xlu1 %1446  ;;  %v6219_v24 = vsel %vm1483_vm15, inf, %v5915_v30 }
 0x7b8   : > { %7628 = vst [vmem:[#allocation147_spill] sm:$0xff] %v6216_v13  ;;  %vm1470_vm2 = vcmp.eq.f32.partialorder %v4493_v27, %v6216_v13  ;;  %1520 = vmin.xlane.f32.xlu0 %v6219_v24  ;;  %v6224_v23 = vpop.xlane.xlu0 %1444 }
 0x7b9   : > { %7629 = vst [vmem:[#allocation148_spill] sm:$0xff] %v6224_v23  ;;  %vm1469_vm5 = vcmp.eq.f32.partialorder %v4493_v27, %v6224_v23  ;;  %vm1486_vm6 = vmand %vm1406_vm8, %vm1470_vm2  ;;  %vm7638_vm2 = vcmp.eq.f32.partialorder %v5994_v7, %v6119_v18 }
 0x7ba   : > { %v6232_v25 = vsel %vm1486_vm6, inf, %v5928_v43  ;;  %vm1485_vm12 = vmand %vm1405_vm9, %vm1469_vm5  ;;  %vm7639_vm6 = vcmp.eq.f32.partialorder %v6001_v56, %v6123_v50 }
 0x7bb   : > { %1526 = vmin.xlane.f32.xlu1 %v6232_v25  ;;  %v6238_v30 = vpop.xlane.xlu1 %1450  ;;  %v6241_v13 = vsel %vm1485_vm12, inf, %v5937_v42 }
 0x7bc   : > { %7630 = vst [vmem:[#allocation149_spill] sm:$0xff] %v6238_v30  ;;  %vm1472_vm13 = vcmp.eq.f32.partialorder %v4493_v27, %v6238_v30  ;;  %1524 = vmin.xlane.f32.xlu0 %v6241_v13  ;;  %v6246_v23 = vpop.xlane.xlu0 %1448 }
 0x7bd   : > { %7631 = vst [vmem:[#allocation150_spill] sm:$0xff] %v6246_v23  ;;  %vm1471_vm8 = vcmp.eq.f32.partialorder %v4493_v27, %v6246_v23  ;;  %vm1488_vm9 = vmand %vm1408_vm4, %vm1472_vm13 }
 0x7be   : > { %v6254_v43 = vsel %vm1488_vm9, inf, %v5950_v33  ;;  %vm1487_vm1 = vmand %vm1407_vm10, %vm1471_vm8  ;;  %vm7634_vm10 = vcmp.eq.f32.partialorder %v5972_v51, %v6103_v46  ;;  %vm7641_vm8 = vcmp.eq.f32.partialorder %v6012_v20, %v6135_v48 }
 0x7bf   : > { %1530 = vmin.xlane.f32.xlu1 %v6254_v43  ;;  %v6260_v42 = vpop.xlane.xlu1 %1454  ;;  %v6263_v30 = vsel %vm1487_vm1, inf, %v5959_v1  ;;  %vm1750_vm1 = vcmask 7168  }
 0x7c0   : > { %7632 = vst [vmem:[#allocation151_spill] sm:$0xff] %v6260_v42  ;;  %vm1474_vm0 = vcmp.eq.f32.partialorder %v4493_v27, %v6260_v42  ;;  %1528 = vmin.xlane.f32.xlu0 %v6263_v30  ;;  %v6268_v23 = vpop.xlane.xlu0 %1452 }
 0x7c1   : > { %7633 = vst [vmem:[#allocation152_spill] sm:$0xff] %v6268_v23  ;;  %vm1473_vm4 = vcmp.eq.f32.partialorder %v4493_v27, %v6268_v23  ;;  %vm1490_vm7 = vmand %vm7634_vm10, %vm1474_vm0  ;;  %vm1767_vm0 = vcmask 15360   ;;  %vm1801_vm10 = vcmask 31744  }
 0x7c2   : > { %v6276_v33 = vsel %vm1490_vm7, inf, %v5972_v51  ;;  %vm1489_vm3 = vmand %vm7635_vm11, %vm1473_vm4  ;;  %vm1784_vm4 = vcmask 23552   ;;  %vm1818_vm7 = vcmask 39936   ;;  %vm1835_vm11 = vcmask 48128  }
 0x7c3   : > { %1534 = vmin.xlane.f32.xlu1 %v6276_v33  ;;  %v6282_v1 = vpop.xlane.xlu1 %1458  ;;  %v6285_v42 = vsel %vm1489_vm3, inf, %v5981_v35 }
 0x7c4   : > { %7636 = vst [vmem:[#allocation153_spill] sm:$0xff] %v6282_v1  ;;  %vm1476_vm14 = vcmp.eq.f32.partialorder %v4493_v27, %v6282_v1  ;;  %1532 = vmin.xlane.f32.xlu0 %v6285_v42  ;;  %v6290_v23 = vpop.xlane.xlu0 %1456 }
 0x7c5   : > { %7637 = vst [vmem:[#allocation154_spill] sm:$0xff] %v6290_v23  ;;  %vm1475_vm15 = vcmp.eq.f32.partialorder %v4493_v27, %v6290_v23  ;;  %vm1492_vm5 = vmand %vm7638_vm2, %vm1476_vm14 }
 0x7c6   : > { %v6298_v51 = vsel %vm1492_vm5, inf, %v5994_v7  ;;  %vm1491_vm12 = vmand %vm7639_vm6, %vm1475_vm15 }
 0x7c7   : > { %1538 = vmin.xlane.f32.xlu1 %v6298_v51  ;;  %v6305_v35 = vsel %vm1491_vm12, inf, %v6001_v56  ;;  %v1751_v56 = vsel %vm1750_vm1, %v4497_v32, %v4799_v40 }
 0x7c8   : > { %1536 = vmin.xlane.f32.xlu0 %v6305_v35  ;;  %v6308_v1 = vpop.xlane.xlu0 %1460  ;;  %v1768_v48 = vsel %vm1767_vm0, %v1751_v56, %v5103_v21 }
 0x7c9   : > { %7640 = vst [vmem:[#allocation155_spill] sm:$0xff] %v6308_v1  ;;  %vm1477_vm13 = vcmp.eq.f32.partialorder %v4493_v27, %v6308_v1  ;;  %v1752_v1 = vsel %vm1750_vm1, %v4495_v63, %v4801_v53  ;;  %v1785_v18 = vsel %vm1784_vm4, %v1768_v48, %v5407_v38  ;;  %v1753_v63 = vsel %vm1750_vm1, %v4513_v0, %v4815_v59 }
 0x7ca   : > { %vm1493_vm9 = vmand %vm7641_vm8, %vm1477_vm13  ;;  %v1802_v32 = vsel %vm1801_vm10, %v1785_v18, %v5711_v9 }
 0x7cb   : > { %v6316_v7 = vsel %vm1493_vm9, inf, %v6012_v20  ;;  %v1769_v20 = vsel %vm1767_vm0, %v1752_v1, %v5105_v39  ;;  %v1819_v53 = vsel %vm1818_vm7, %v1802_v32, %v6015_v14  ;;  %v1770_v39 = vsel %vm1767_vm0, %v1753_v63, %v5119_v19  ;;  %v7643_v1 = vld [vmem:[#allocation56_spill] sm:$0xff] }
 0x7cc   : > { %1540 = vmin.xlane.f32.xlu0 %v6316_v7  ;;  %v1786_v23 = vsel %vm1784_vm4, %v1769_v20, %v5409_v62  ;;  %v1787_v59 = vsel %vm1784_vm4, %v1770_v39, %v5423_v36  ;;  %v7644_v20 = vld [vmem:[#allocation110_spill] sm:$0xff] }
 0x7cd   : > { %v1803_v40 = vsel %vm1801_vm10, %v1786_v23, %v5713_v41  ;;  %v1804_v9 = vsel %vm1801_vm10, %v1787_v59, %v5727_v58  ;;  %v1755_v41 = vsel %vm1750_vm1, %v4511_v26, %v4823_v29  ;;  %v1754_v58 = vsel %vm1750_vm1, %v4525_v3, %v4825_v28  ;;  %v7648_v59 = vld [vmem:[#allocation5_spill] sm:$0xff] }
 0x7ce   : > { %v1820_v38 = vsel %vm1818_vm7, %v1803_v40, %v6019_v52  ;;  %v1821_v48 = vsel %vm1818_vm7, %v1804_v9, %v6031_v37  ;;  %v1772_v52 = vsel %vm1767_vm0, %v1755_v41, %v5127_v47  ;;  %v1771_v26 = vsel %vm1767_vm0, %v1754_v58, %v5129_v55  ;;  %v7642_v55 = vld [vmem:[#allocation6_spill] sm:$0xff]  ;;  %v7649_v9 = vld [vmem:[#allocation84_spill] sm:$0xff]  ;;  %v7650_v41 = vld [vmem:[#allocation111_spill] sm:$0xff] }
 0x7cf   : > { %v1789_v29 = vsel %vm1784_vm4, %v1772_v52, %v5431_v22  ;;  %v1757_v47 = vsel %vm1750_vm1, %v4523_v2, %v4839_v15  ;;  %v1788_v28 = vsel %vm1784_vm4, %v1771_v26, %v5433_v45  ;;  %v1756_v22 = vsel %vm1750_vm1, %v7642_v55, %v4841_v17  ;;  %v7645_v45 = vld [vmem:[#allocation57_spill] sm:$0xff]  ;;  %v7651_v52 = vld [vmem:[#allocation32_spill] sm:$0xff] }
 0x7d0   : > { %v1806_v37 = vsel %vm1801_vm10, %v1789_v29, %v5735_v12  ;;  %v1774_v56 = vsel %vm1767_vm0, %v1757_v47, %v7643_v1  ;;  %v1805_v32 = vsel %vm1801_vm10, %v1788_v28, %v7644_v20  ;;  %v1773_v63 = vsel %vm1767_vm0, %v1756_v22, %v7645_v45  ;;  %v7652_v26 = vld [vmem:[#allocation8_spill] sm:$0xff]  ;;  %v7655_v1 = vld [vmem:[#allocation59_spill] sm:$0xff]  ;;  %v7656_v45 = vld [vmem:[#allocation85_spill] sm:$0xff] }
 0x7d1   : > { %v1823_v2 = vsel %vm1818_vm7, %v1806_v37, %v6039_v4  ;;  %v1822_v12 = vsel %vm1818_vm7, %v1805_v32, %v6043_v31  ;;  %v1758_v29 = vsel %vm1750_vm1, %v7652_v26, %v7651_v52  ;;  %v7654_v28 = vld [vmem:[#allocation112_spill] sm:$0xff]  ;;  %v7664_v26 = vld [vmem:[#allocation114_spill] sm:$0xff] }
 0x838   : > { %v6342_v21 = vpop.xlane.xlu1 %1510 }
 0x839   : > { %vm1542_vm3 = vcmp.eq.f32.partialorder %v6155_v34, %v6342_v21  ;;  %v6352_v0 = vsel %vm1835_vm11, %v1819_v53, %v6342_v21  ;;  %v6354_v18 = vpop.xlane.xlu0 %1512  ;;  %v7646_v53 = vld [vmem:[#allocation83_spill] sm:$0xff] }
 0x83a   : > { %vm1543_vm14 = vcmp.eq.f32.partialorder %v6164_v44, %v6354_v18  ;;  %v6362_v19 = vsel %vm1835_vm11, %v1820_v38, %v6354_v18  ;;  %v1558_v62 = vsel %vm1542_vm3, %v4493_v27, inf  ;;  %v1791_v4 = vsel %vm1784_vm4, %v1774_v56, %v7646_v53  ;;  %v7647_v38 = vld [vmem:[#allocation31_spill] sm:$0xff] }
 0x83b   : > { %1574 = vmin.xlane.f32.xlu1 %v1558_v62  ;;  %v1559_v36 = vsel %vm1543_vm14, %v4493_v27, inf  ;;  %v1759_v62 = vsel %vm1750_vm1, %v7648_v59, %v7647_v38  ;;  %v1775_v56 = vsel %vm1767_vm0, %v1758_v29, %v7655_v1  ;;  %v7658_v53 = vld [vmem:[#allocation7_spill] sm:$0xff]  ;;  %v7660_v59 = vld [vmem:[#allocation113_spill] sm:$0xff] }
 0x83c   : > { %1576 = vmin.xlane.f32.xlu0 %v1559_v36  ;;  %v6379_v14 = vpop.xlane.xlu1 %1514  ;;  %v1790_v36 = vsel %vm1784_vm4, %v1773_v63, %v7649_v9 }
 0x83d   : > { %vm1544_vm15 = vcmp.eq.f32.partialorder %v6173_v10, %v6379_v14  ;;  %v6390_v23 = vsel %vm1835_vm11, %v1821_v48, %v6379_v14  ;;  %v1808_v48 = vsel %vm1801_vm10, %v1791_v4, %v7650_v41  ;;  %v1807_v37 = vsel %vm1801_vm10, %v1790_v36, %v7654_v28  ;;  %v7661_v36 = vld [vmem:[#allocation34_spill] sm:$0xff]  ;;  %v7665_v28 = vld [vmem:[#allocation61_spill] sm:$0xff] }
 0x83e   : > { %v1560_v3 = vsel %vm1544_vm15, %v4493_v27, inf  ;;  %v1825_v55 = vsel %vm1818_vm7, %v1808_v48, %v6055_v60  ;;  %v1824_v20 = vsel %vm1818_vm7, %v1807_v37, %v6059_v11  ;;  %v7662_v41 = vld [vmem:[#allocation10_spill] sm:$0xff] }
 0x83f   : > { %1578 = vmin.xlane.f32.xlu1 %v1560_v3  ;;  %v7653_v3 = vld [vmem:[#allocation58_spill] sm:$0xff]  ;;  %v1760_v48 = vsel %vm1750_vm1, %v7662_v41, %v7661_v36 }
 0x840   : > { %v6416_v15 = vpop.xlane.xlu1 %1518  ;;  %v1776_v47 = vsel %vm1767_vm0, %v1759_v62, %v7653_v3  ;;  %v1777_v37 = vsel %vm1767_vm0, %v1760_v48, %v7665_v28  ;;  %v7673_v41 = vld [vmem:[#allocation62_spill] sm:$0xff] }
 0x841   : > { %vm1546_vm2 = vcmp.eq.f32.partialorder %v6188_v6, %v6416_v15  ;;  %v6426_v17 = vsel %vm1835_vm11, %v1823_v2, %v6416_v15  ;;  %v6428_v40 = vpop.xlane.xlu0 %1516  ;;  %v1793_v60 = vsel %vm1784_vm4, %v1776_v47, %v7656_v45  ;;  %v7727_v15 = vld [vmem:[#allocation23_spill] sm:$0xff] }
 0x842   : > { %vm1545_vm5 = vcmp.eq.f32.partialorder %v6197_v57, %v6428_v40  ;;  %v6436_v39 = vsel %vm1835_vm11, %v1822_v12, %v6428_v40  ;;  %v1562_v31 = vsel %vm1546_vm2, %v4493_v27, inf  ;;  %v7657_v12 = vld [vmem:[#allocation33_spill] sm:$0xff]  ;;  %v1810_v62 = vsel %vm1801_vm10, %v1793_v60, %v7660_v59  ;;  %v7667_v60 = vld [vmem:[#allocation35_spill] sm:$0xff] }
 0x843   : > { %1582 = vmin.xlane.f32.xlu1 %v1562_v31  ;;  %v1561_v58 = vsel %vm1545_vm5, %v4493_v27, inf  ;;  %v1761_v4 = vsel %vm1750_vm1, %v7658_v53, %v7657_v12  ;;  %v7659_v31 = vld [vmem:[#allocation86_spill] sm:$0xff]  ;;  %v1827_v3 = vsel %vm1818_vm7, %v1810_v62, %v6071_v61  ;;  %v7669_v53 = vld [vmem:[#allocation88_spill] sm:$0xff] }
 0x844   : > { %1580 = vmin.xlane.f32.xlu0 %v1561_v58  ;;  %v6462_v22 = vpop.xlane.xlu1 %1522  ;;  %v1792_v38 = vsel %vm1784_vm4, %v1775_v56, %v7659_v31  ;;  %v7663_v58 = vld [vmem:[#allocation60_spill] sm:$0xff]  ;;  %v7670_v31 = vld [vmem:[#allocation115_spill] sm:$0xff] }
 0x845   : > { %vm1548_vm6 = vcmp.eq.f32.partialorder %v6210_v49, %v6462_v22  ;;  %v6472_v32 = vsel %vm1835_vm11, %v1825_v55, %v6462_v22  ;;  %v6474_v2 = vpop.xlane.xlu0 %1520  ;;  %v1778_v52 = vsel %vm1767_vm0, %v1761_v4, %v7663_v58  ;;  %v1809_v29 = vsel %vm1801_vm10, %v1792_v38, %v7664_v26  ;;  %v7671_v62 = vld [vmem:[#allocation36_spill] sm:$0xff]  ;;  %v7740_v22 = vld [vmem:[#allocation25_spill] sm:$0xff] }
 0x846   : > { %vm7458_vm12 = vcmp.eq.f32.partialorder %v6219_v24, %v6474_v2  ;;  %v6482_v63 = vsel %vm1835_vm11, %v1824_v20, %v6474_v2  ;;  %v1564_v11 = vsel %vm1548_vm6, %v4493_v27, inf  ;;  %v1826_v55 = vsel %vm1818_vm7, %v1809_v29, %v6075_v8  ;;  %v7666_v20 = vld [vmem:[#allocation87_spill] sm:$0xff]  ;;  %v7674_v58 = vld [vmem:[#allocation116_spill] sm:$0xff] }
 0x847   : > { %1586 = vmin.xlane.f32.xlu1 %v1564_v11  ;;  %v1563_v9 = vsel %vm7458_vm12, %v4493_v27, inf  ;;  %v1795_v61 = vsel %vm1784_vm4, %v1778_v52, %v7666_v20  ;;  %v7668_v11 = vld [vmem:[#allocation9_spill] sm:$0xff]  ;;  %v1794_v4 = vsel %vm1784_vm4, %v1777_v37, %v7669_v53 }
 0x848   : > { %1584 = vmin.xlane.f32.xlu0 %v1563_v9  ;;  %v6508_v47 = vpop.xlane.xlu1 %1526  ;;  %v1763_v12 = vsel %vm1750_vm1, %v7668_v11, %v7667_v60  ;;  %v1812_v38 = vsel %vm1801_vm10, %v1795_v61, %v7670_v31  ;;  %v7672_v9 = vld [vmem:[#allocation12_spill] sm:$0xff]  ;;  %v1811_v52 = vsel %vm1801_vm10, %v1794_v4, %v7674_v58  ;;  %v7676_v61 = vld [vmem:[#allocation89_spill] sm:$0xff]  ;;  %v7677_v60 = vld [vmem:[#allocation90_spill] sm:$0xff] }
 0x849   : > { %vm7453_vm13 = vcmp.eq.f32.partialorder %v6232_v25, %v6508_v47  ;;  %v6518_v1 = vsel %vm1835_vm11, %v1827_v3, %v6508_v47  ;;  %v6520_v56 = vpop.xlane.xlu0 %1524  ;;  %v1762_v36 = vsel %vm1750_vm1, %v7672_v9, %v7671_v62  ;;  %v1780_v48 = vsel %vm1767_vm0, %v1763_v12, %v7673_v41  ;;  %v7675_v3 = vld [vmem:[#allocation63_spill] sm:$0xff]  ;;  %v7678_v12 = vld [vmem:[#allocation117_spill] sm:$0xff]  ;;  %v7679_v31 = vld [vmem:[#allocation118_spill] sm:$0xff] }
 0x84a   : > { %vm7449_vm8 = vcmp.eq.f32.partialorder %v6241_v13, %v6520_v56  ;;  %v6528_v45 = vsel %vm1835_vm11, %v1826_v55, %v6520_v56  ;;  %v1566_v8 = vsel %vm7453_vm13, %v4493_v27, inf  ;;  %v1829_v26 = vsel %vm1818_vm7, %v1812_v38, %v6087_v54  ;;  %v7680_v9 = vld [vmem:[#allocation38_spill] sm:$0xff] }
 0x84b   : > { %1590 = vmin.xlane.f32.xlu1 %v1566_v8  ;;  %v1565_v59 = vsel %vm7449_vm8, %v4493_v27, inf  ;;  %v1779_v28 = vsel %vm1767_vm0, %v1762_v36, %v7675_v3  ;;  %v1828_v37 = vsel %vm1818_vm7, %v1811_v52, %v6091_v16  ;;  %v1797_v54 = vsel %vm1784_vm4, %v1780_v48, %v7676_v61  ;;  %v7681_v36 = vld [vmem:[#allocation13_spill] sm:$0xff] }
 0x84c   : > { %1588 = vmin.xlane.f32.xlu0 %v1565_v59  ;;  %v6554_v29 = vpop.xlane.xlu1 %1530  ;;  %v1796_v11 = vsel %vm1784_vm4, %v1779_v28, %v7677_v60  ;;  %v1814_v53 = vsel %vm1801_vm10, %v1797_v54, %v7678_v12  ;;  %v1764_v41 = vsel %vm1750_vm1, %v7681_v36, %v7680_v9  ;;  %v7683_v28 = vld [vmem:[#allocation92_spill] sm:$0xff]  ;;  %v7686_v9 = vld [vmem:[#allocation15_spill] sm:$0xff] }
 0x84d   : > { %vm7450_vm9 = vcmp.eq.f32.partialorder %v6254_v43, %v6554_v29  ;;  %v6564_v55 = vsel %vm1835_vm11, %v1829_v26, %v6554_v29  ;;  %v6566_v20 = vpop.xlane.xlu0 %1528  ;;  %v1813_v38 = vsel %vm1801_vm10, %v1796_v11, %v7679_v31  ;;  %v1831_v59 = vsel %vm1818_vm7, %v1814_v53, %v6103_v46  ;;  %v7682_v46 = vld [vmem:[#allocation65_spill] sm:$0xff]  ;;  %v7684_v54 = vld [vmem:[#allocation120_spill] sm:$0xff] }
 0x84e   : > { %vm7451_vm8 = vcmp.eq.f32.partialorder %v6263_v30, %v6566_v20  ;;  %v6574_v8 = vsel %vm1835_vm11, %v1828_v37, %v6566_v20  ;;  %v1568_v16 = vsel %vm7450_vm9, %v4493_v27, inf  ;;  %v1830_v48 = vsel %vm1818_vm7, %v1813_v38, %v6107_v5 }
 0x84f   : > { %1594 = vmin.xlane.f32.xlu1 %v1568_v16  ;;  %v1567_v4 = vsel %vm7451_vm8, %v4493_v27, inf  ;;  %v1781_v26 = vsel %vm1767_vm0, %v1764_v41, %v7682_v46  ;;  %v7687_v41 = vld [vmem:[#allocation41_spill] sm:$0xff] }
 0x850   : > { %1592 = vmin.xlane.f32.xlu0 %v1567_v4  ;;  %v6592_v62 = vpop.xlane.xlu1 %1534  ;;  %v1798_v37 = vsel %vm1784_vm4, %v1781_v26, %v7683_v28  ;;  %v7689_v26 = vld [vmem:[#allocation67_spill] sm:$0xff]  ;;  %v7690_v28 = vld [vmem:[#allocation68_spill] sm:$0xff] }
 0x851   : > { %vm7452_vm9 = vcmp.eq.f32.partialorder %v6276_v33, %v6592_v62  ;;  %v6603_v58 = vsel %vm1835_vm11, %v1831_v59, %v6592_v62  ;;  %v6605_v52 = vpop.xlane.xlu0 %1532  ;;  %v1815_v16 = vsel %vm1801_vm10, %v1798_v37, %v7684_v54  ;;  %v7685_v59 = vld [vmem:[#allocation40_spill] sm:$0xff] }
 0x852   : > { %vm7454_vm8 = vcmp.eq.f32.partialorder %v6285_v42, %v6605_v52  ;;  %v6613_v3 = vsel %vm1835_vm11, %v1830_v48, %v6605_v52  ;;  %v1570_v5 = vsel %vm7452_vm9, %v4493_v27, inf  ;;  %v1832_v11 = vsel %vm1818_vm7, %v1815_v16, %v6123_v50  ;;  %v7688_v48 = vld [vmem:[#allocation16_spill] sm:$0xff]  ;;  %v7692_v16 = vld [vmem:[#allocation95_spill] sm:$0xff] }
 0x853   : > { %1598 = vmin.xlane.f32.xlu1 %v1570_v5  ;;  %v1569_v61 = vsel %vm7454_vm8, %v4493_v27, inf  ;;  %v1869_v36 = vsel %vm1750_vm1, %v7686_v9, %v7685_v59  ;;  %v1870_v46 = vsel %vm1750_vm1, %v7688_v48, %v7687_v41  ;;  %v7695_v59 = vld [vmem:[#allocation17_spill] sm:$0xff]  ;;  %v7696_v41 = vld [vmem:[#allocation123_spill] sm:$0xff] }
 0x854   : > { %1596 = vmin.xlane.f32.xlu0 %v1569_v61  ;;  %v6627_v60 = vpop.xlane.xlu1 %1538  ;;  %v1885_v5 = vsel %vm1767_vm0, %v1869_v36, %v7689_v26  ;;  %v1886_v37 = vsel %vm1767_vm0, %v1870_v46, %v7690_v28  ;;  %v7691_v61 = vld [vmem:[#allocation94_spill] sm:$0xff]  ;;  %v7697_v36 = vld [vmem:[#allocation140_spill] sm:$0xff]  ;;  %v7698_v28 = vld [vmem:[#allocation69_spill] sm:$0xff] }
 0x855   : > { %vm7457_vm9 = vcmp.eq.f32.partialorder %v6298_v51, %v6627_v60  ;;  %v6633_v12 = vpop.xlane.xlu0 %1536  ;;  %v1901_v54 = vsel %vm1784_vm4, %v1885_v5, %v7691_v61  ;;  %v7699_v61 = vld [vmem:[#allocation141_spill] sm:$0xff] }
 0x856   : > { %vm7456_vm13 = vcmp.eq.f32.partialorder %v6305_v35, %v6633_v12  ;;  %v6639_v53 = vsel %vm1835_vm11, %v1832_v11, %v6633_v12  ;;  %v1572_v4 = vsel %vm7457_vm9, %v4493_v27, inf  ;;  %v1902_v11 = vsel %vm1784_vm4, %v1886_v37, %v7692_v16 }
 0x857   : > { %1602 = vmin.xlane.f32.xlu1 %v1572_v4  ;;  %v1571_v50 = vsel %vm7456_vm13, %v4493_v27, inf  ;;  %v7693_v4 = vld [vmem:[#allocation122_spill] sm:$0xff]  ;;  %v1918_v48 = vsel %vm1801_vm10, %v1902_v11, %v7696_v41  ;;  %v7702_v41 = vld [vmem:[#allocation43_spill] sm:$0xff] }
 0x858   : > { %1600 = vmin.xlane.f32.xlu0 %v1571_v50  ;;  %v1917_v50 = vsel %vm1801_vm10, %v1901_v54, %v7693_v4  ;;  %v1934_v37 = vsel %vm1818_vm7, %v1918_v48, %v7699_v61  ;;  %v7700_v4 = vld [vmem:[#allocation96_spill] sm:$0xff]  ;;  %v7703_v48 = vld [vmem:[#allocation18_spill] sm:$0xff] }
 0x859   : > { %v6649_v31 = vpop.xlane.xlu0 %1540  ;;  %v1933_v26 = vsel %vm1818_vm7, %v1917_v50, %v7697_v36  ;;  %v7701_v50 = vld [vmem:[#allocation124_spill] sm:$0xff]  ;;  %v1873_v36 = vsel %vm1750_vm1, %v7703_v48, %v7702_v41  ;;  %v7711_v48 = vld [vmem:[#allocation125_spill] sm:$0xff] }
 0x85a   : > { %vm7455_vm8 = vcmp.eq.f32.partialorder %v6316_v7, %v6649_v31 }
 0x85b   : > { %v1573_v38 = vsel %vm7455_vm8, %v4493_v27, inf }
 0x85c   : > { %1604 = vmin.xlane.f32.xlu0 %v1573_v38  ;;  %v7694_v38 = vld [vmem:[#allocation42_spill] sm:$0xff] }
 0x85d   : > { %v1871_v9 = vsel %vm1750_vm1, %v7695_v59, %v7694_v38 }
 0x85e   : > { %v1887_v5 = vsel %vm1767_vm0, %v1871_v9, %v7698_v28 }
 0x85f   : > { %v1903_v38 = vsel %vm1784_vm4, %v1887_v5, %v7700_v4  ;;  %v7705_v5 = vld [vmem:[#allocation44_spill] sm:$0xff]  ;;  %v7708_v4 = vld [vmem:[#allocation71_spill] sm:$0xff] }
 0x860   : > { %v1919_v59 = vsel %vm1801_vm10, %v1903_v38, %v7701_v50  ;;  %v7709_v50 = vld [vmem:[#allocation97_spill] sm:$0xff] }
 0x8c8   : > { %v1575_v46 = vpop.xlane.xlu1 %1574 }
 0x8c9   : > { %vm1606_vm8 = vcmp.eq.f32.partialorder %v4493_v27, %v1575_v46  ;;  %v6686_v54 = vsel %vm1835_vm11, %v1933_v26, %v1575_v46  ;;  %v1577_v16 = vpop.xlane.xlu0 %1576  ;;  %v7704_v26 = vld [vmem:[#allocation142_spill] sm:$0xff] }
 0x8ca   : > { %vm1607_vm13 = vcmp.eq.f32.partialorder %v4493_v27, %v1577_v16  ;;  %v6692_v11 = vsel %vm1835_vm11, %v1934_v37, %v1577_v16  ;;  %vm1622_vm9 = vmand %vm1542_vm3, %vm1606_vm8  ;;  %v1935_v46 = vsel %vm1818_vm7, %v1919_v59, %v7704_v26  ;;  %v7707_v37 = vld [vmem:[#allocation70_spill] sm:$0xff] }
 0x8cb   : > { %v6700_v9 = vsel %vm1622_vm9, inf, %v6155_v34  ;;  %vm1623_vm12 = vmand %vm1543_vm14, %vm1607_vm13  ;;  %v7706_v34 = vld [vmem:[#allocation19_spill] sm:$0xff]  ;;  %v1889_v18 = vsel %vm1767_vm0, %v1873_v36, %v7707_v37  ;;  %v7710_v59 = vld [vmem:[#allocation98_spill] sm:$0xff] }
 0x8cc   : > { %1654 = vmin.xlane.f32.xlu1 %v6700_v9  ;;  %v1579_v21 = vpop.xlane.xlu1 %1578  ;;  %v6712_v28 = vsel %vm1623_vm12, inf, %v6164_v44  ;;  %v1872_v61 = vsel %vm1750_vm1, %v7706_v34, %v7705_v5  ;;  %v1905_v44 = vsel %vm1784_vm4, %v1889_v18, %v7709_v50  ;;  %v7714_v34 = vld [vmem:[#allocation46_spill] sm:$0xff] }
 0x8cd   : > { %vm1608_vm3 = vcmp.eq.f32.partialorder %v4493_v27, %v1579_v21  ;;  %v6721_v16 = vsel %vm1835_vm11, %v1935_v46, %v1579_v21  ;;  %1656 = vmin.xlane.f32.xlu0 %v6712_v28  ;;  %v1888_v38 = vsel %vm1767_vm0, %v1872_v61, %v7708_v4  ;;  %v1921_v36 = vsel %vm1801_vm10, %v1905_v44, %v7711_v48  ;;  %v7712_v46 = vld [vmem:[#allocation45_spill] sm:$0xff]  ;;  %v7713_v21 = vld [vmem:[#allocation20_spill] sm:$0xff]  ;;  %v7716_v18 = vld [vmem:[#allocation126_spill] sm:$0xff] }
 0x8ce   : > { %vm1624_vm14 = vmand %vm1544_vm15, %vm1608_vm3  ;;  %v1904_v41 = vsel %vm1784_vm4, %v1888_v38, %v7710_v59  ;;  %v1875_v5 = vsel %vm1750_vm1, %v7713_v21, %v7712_v46  ;;  %v7715_v61 = vld [vmem:[#allocation21_spill] sm:$0xff]  ;;  %v7717_v4 = vld [vmem:[#allocation143_spill] sm:$0xff]  ;;  %vm7738_vm3 = vcmp.eq.f32.partialorder %v6219_v24, %v6474_v2 }
 0x8cf   : > { %v6736_v26 = vsel %vm1624_vm14, inf, %v6173_v10  ;;  %v1874_v37 = vsel %vm1750_vm1, %v7715_v61, %v7714_v34  ;;  %v1920_v14 = vsel %vm1801_vm10, %v1904_v41, %v7716_v18  ;;  %v1937_v38 = vsel %vm1818_vm7, %v1921_v36, %v7717_v4  ;;  %v7718_v44 = vld [vmem:[#allocation72_spill] sm:$0xff]  ;;  %v7720_v34 = vld [vmem:[#allocation73_spill] sm:$0xff]  ;;  %v7721_v61 = vld [vmem:[#allocation99_spill] sm:$0xff] }
 0x8d0   : > { %1658 = vmin.xlane.f32.xlu1 %v6736_v26  ;;  %v1583_v50 = vpop.xlane.xlu1 %1582  ;;  %v1891_v10 = vsel %vm1767_vm0, %v1875_v5, %v7718_v44  ;;  %v7719_v59 = vld [vmem:[#allocation144_spill] sm:$0xff]  ;;  %v1890_v41 = vsel %vm1767_vm0, %v1874_v37, %v7720_v34  ;;  %v7722_v5 = vld [vmem:[#allocation47_spill] sm:$0xff] }
 0x8d1   : > { %v1936_v48 = vsel %vm1818_vm7, %v1920_v14, %v7719_v59  ;;  %vm1610_vm15 = vcmp.eq.f32.partialorder %v4493_v27, %v1583_v50  ;;  %v6755_v46 = vsel %vm1835_vm11, %v1937_v38, %v1583_v50  ;;  %v1581_v21 = vpop.xlane.xlu0 %1580  ;;  %v1907_v36 = vsel %vm1784_vm4, %v1891_v10, %v7721_v61  ;;  %v7723_v14 = vld [vmem:[#allocation22_spill] sm:$0xff]  ;;  %v7724_v38 = vld [vmem:[#allocation100_spill] sm:$0xff]  ;;  %v7725_v37 = vld [vmem:[#allocation127_spill] sm:$0xff] }
 0x8d2   : > { %vm1609_vm12 = vcmp.eq.f32.partialorder %v4493_v27, %v1581_v21  ;;  %v6763_v18 = vsel %vm1835_vm11, %v1936_v48, %v1581_v21  ;;  %vm1626_vm13 = vmand %vm1546_vm2, %vm1610_vm15  ;;  %v1877_v4 = vsel %vm1750_vm1, %v7723_v14, %v7722_v5  ;;  %v1906_v50 = vsel %vm1784_vm4, %v1890_v41, %v7724_v38  ;;  %v7726_v59 = vld [vmem:[#allocation48_spill] sm:$0xff]  ;;  %v7729_v61 = vld [vmem:[#allocation145_spill] sm:$0xff] }
 0x8d3   : > { %v1923_v44 = vsel %vm1801_vm10, %v1907_v36, %v7725_v37  ;;  %v6776_v10 = vsel %vm1626_vm13, inf, %v6188_v6  ;;  %vm1625_vm8 = vmand %vm1545_vm5, %vm1609_vm12  ;;  %v1876_v48 = vsel %vm1750_vm1, %v7727_v15, %v7726_v59  ;;  %v7728_v21 = vld [vmem:[#allocation128_spill] sm:$0xff]  ;;  %v7730_v5 = vld [vmem:[#allocation74_spill] sm:$0xff]  ;;  %vm7747_vm12 = vcmp.eq.f32.partialorder %v6232_v25, %v6508_v47 }
 0x8d4   : > { %v1922_v34 = vsel %vm1801_vm10, %v1906_v50, %v7728_v21  ;;  %v1939_v41 = vsel %vm1818_vm7, %v1923_v44, %v7729_v61  ;;  %1662 = vmin.xlane.f32.xlu1 %v6776_v10  ;;  %v1587_v36 = vpop.xlane.xlu1 %1586  ;;  %v6790_v6 = vsel %vm1625_vm8, inf, %v6197_v57  ;;  %v1893_v40 = vsel %vm1767_vm0, %v1877_v4, %v7730_v5  ;;  %v7731_v14 = vld [vmem:[#allocation146_spill] sm:$0xff]  ;;  %v7732_v44 = vld [vmem:[#allocation75_spill] sm:$0xff]  ;;  %v7733_v15 = vld [vmem:[#allocation101_spill] sm:$0xff] }
 0x8d5   : > { %v1938_v38 = vsel %vm1818_vm7, %v1922_v34, %v7731_v14  ;;  %vm1612_vm2 = vcmp.eq.f32.partialorder %v4493_v27, %v1587_v36  ;;  %v6798_v37 = vsel %vm1835_vm11, %v1939_v41, %v1587_v36  ;;  %1660 = vmin.xlane.f32.xlu0 %v6790_v6  ;;  %v1585_v50 = vpop.xlane.xlu0 %1584  ;;  %v1892_v59 = vsel %vm1767_vm0, %v1876_v48, %v7732_v44  ;;  %v7734_v21 = vld [vmem:[#allocation49_spill] sm:$0xff]  ;;  %v7735_v34 = vld [vmem:[#allocation24_spill] sm:$0xff]  ;;  %v7736_v41 = vld [vmem:[#allocation102_spill] sm:$0xff] }
 0x8d6   : > { %v1909_v57 = vsel %vm1784_vm4, %v1893_v40, %v7733_v15  ;;  %vm1611_vm5 = vcmp.eq.f32.partialorder %v4493_v27, %v1585_v50  ;;  %v6807_v4 = vsel %vm1835_vm11, %v1938_v38, %v1585_v50  ;;  %vm1628_vm9 = vmand %vm1548_vm6, %vm1612_vm2  ;;  %v1879_v61 = vsel %vm1750_vm1, %v7735_v34, %v7734_v21  ;;  %v7737_v48 = vld [vmem:[#allocation129_spill] sm:$0xff]  ;;  %v7739_v14 = vld [vmem:[#allocation50_spill] sm:$0xff] }
 0x8d7   : > { %v1908_v36 = vsel %vm1784_vm4, %v1892_v59, %v7736_v41  ;;  %v1925_v5 = vsel %vm1801_vm10, %v1909_v57, %v7737_v48  ;;  %v6820_v40 = vsel %vm1628_vm9, inf, %v6210_v49  ;;  %vm1627_vm14 = vmand %vm7738_vm3, %vm1611_vm5  ;;  %v1878_v38 = vsel %vm1750_vm1, %v7740_v22, %v7739_v14  ;;  %v7741_v50 = vld [vmem:[#allocation130_spill] sm:$0xff]  ;;  %v7742_v15 = vld [vmem:[#allocation147_spill] sm:$0xff] }
 0x8d8   : > { %v1924_v44 = vsel %vm1801_vm10, %v1908_v36, %v7741_v50  ;;  %v1941_v59 = vsel %vm1818_vm7, %v1925_v5, %v7742_v15  ;;  %1666 = vmin.xlane.f32.xlu1 %v6820_v40  ;;  %v1591_v57 = vpop.xlane.xlu1 %1590  ;;  %v6834_v49 = vsel %vm1627_vm14, inf, %v6219_v24  ;;  %v7743_v21 = vld [vmem:[#allocation76_spill] sm:$0xff]  ;;  %v7745_v5 = vld [vmem:[#allocation77_spill] sm:$0xff]  ;;  %v7746_v22 = vld [vmem:[#allocation103_spill] sm:$0xff]  ;;  %vm7752_vm8 = vcmp.eq.f32.partialorder %v6241_v13, %v6520_v56 }
 0x8d9   : > { %v1895_v2 = vsel %vm1767_vm0, %v1879_v61, %v7743_v21  ;;  %v7744_v34 = vld [vmem:[#allocation148_spill] sm:$0xff]  ;;  %vm1614_vm6 = vcmp.eq.f32.partialorder %v4493_v27, %v1591_v57  ;;  %v6842_v48 = vsel %vm1835_vm11, %v1941_v59, %v1591_v57  ;;  %1664 = vmin.xlane.f32.xlu0 %v6834_v49  ;;  %v1589_v36 = vpop.xlane.xlu0 %1588  ;;  %v1894_v14 = vsel %vm1767_vm0, %v1878_v38, %v7745_v5  ;;  %v7748_v50 = vld [vmem:[#allocation51_spill] sm:$0xff] }
 0x8da   : > { %v1940_v41 = vsel %vm1818_vm7, %v1924_v44, %v7744_v34  ;;  %v1911_v24 = vsel %vm1784_vm4, %v1895_v2, %v7746_v22  ;;  %vm1613_vm15 = vcmp.eq.f32.partialorder %v4493_v27, %v1589_v36  ;;  %vm1630_vm13 = vmand %vm7747_vm12, %vm1614_vm6  ;;  %v7749_v44 = vld [vmem:[#allocation26_spill] sm:$0xff]  ;;  %v7750_v59 = vld [vmem:[#allocation104_spill] sm:$0xff]  ;;  %vm7761_vm3 = vcmp.eq.f32.partialorder %v6254_v43, %v6554_v29 }
 0x8db   : > { %v6851_v61 = vsel %vm1835_vm11, %v1940_v41, %v1589_v36  ;;  %v1881_v15 = vsel %vm1750_vm1, %v7749_v44, %v7748_v50  ;;  %v1910_v57 = vsel %vm1784_vm4, %v1894_v14, %v7750_v59  ;;  %v7751_v38 = vld [vmem:[#allocation131_spill] sm:$0xff]  ;;  %v6864_v2 = vsel %vm1630_vm13, inf, %v6232_v25  ;;  %vm1629_vm2 = vmand %vm7752_vm8, %vm1613_vm15  ;;  %v7753_v34 = vld [vmem:[#allocation52_spill] sm:$0xff] }
 0x8dc   : > { %v1927_v21 = vsel %vm1801_vm10, %v1911_v24, %v7751_v38  ;;  %v7754_v47 = vld [vmem:[#allocation27_spill] sm:$0xff]  ;;  %v7755_v36 = vld [vmem:[#allocation132_spill] sm:$0xff]  ;;  %v7756_v22 = vld [vmem:[#allocation149_spill] sm:$0xff]  ;;  %1670 = vmin.xlane.f32.xlu1 %v6864_v2  ;;  %v1595_v24 = vpop.xlane.xlu1 %1594  ;;  %v6878_v25 = vsel %vm1629_vm2, inf, %v6241_v13  ;;  %vm7764_vm6 = vcmp.eq.f32.partialorder %v6263_v30, %v6566_v20  ;;  %vm7771_vm8 = vcmp.eq.f32.partialorder %v6276_v33, %v6592_v62 }
 0x8dd   : > { %v1880_v41 = vsel %vm1750_vm1, %v7754_v47, %v7753_v34  ;;  %v1926_v5 = vsel %vm1801_vm10, %v1910_v57, %v7755_v36  ;;  %v1943_v14 = vsel %vm1818_vm7, %v1927_v21, %v7756_v22  ;;  %v7757_v50 = vld [vmem:[#allocation78_spill] sm:$0xff]  ;;  %vm1616_vm5 = vcmp.eq.f32.partialorder %v4493_v27, %v1595_v24  ;;  %1668 = vmin.xlane.f32.xlu0 %v6878_v25  ;;  %v1593_v57 = vpop.xlane.xlu0 %1592  ;;  %v7759_v21 = vld [vmem:[#allocation79_spill] sm:$0xff]  ;;  %v7760_v47 = vld [vmem:[#allocation105_spill] sm:$0xff] }
 0x8de   : > { %v1897_v56 = vsel %vm1767_vm0, %v1881_v15, %v7757_v50  ;;  %v7758_v44 = vld [vmem:[#allocation150_spill] sm:$0xff]  ;;  %v6886_v38 = vsel %vm1835_vm11, %v1943_v14, %v1595_v24  ;;  %v1896_v34 = vsel %vm1767_vm0, %v1880_v41, %v7759_v21  ;;  %vm1615_vm9 = vcmp.eq.f32.partialorder %v4493_v27, %v1593_v57  ;;  %vm1632_vm14 = vmand %vm7761_vm3, %vm1616_vm5  ;;  %v7763_v22 = vld [vmem:[#allocation133_spill] sm:$0xff] }
 0x8df   : > { %v1942_v59 = vsel %vm1818_vm7, %v1926_v5, %v7758_v44  ;;  %v1913_v13 = vsel %vm1784_vm4, %v1897_v56, %v7760_v47  ;;  %v7762_v36 = vld [vmem:[#allocation106_spill] sm:$0xff]  ;;  %v6905_v41 = vsel %vm1632_vm14, inf, %v6254_v43  ;;  %vm1631_vm15 = vmand %vm7764_vm6, %vm1615_vm9  ;;  %v7766_v56 = vld [vmem:[#allocation151_spill] sm:$0xff]  ;;  %vm7773_vm5 = vcmp.eq.f32.partialorder %v6285_v42, %v6605_v52 }
 0x8e0   : > { %v6895_v15 = vsel %vm1835_vm11, %v1942_v59, %v1593_v57  ;;  %v1912_v5 = vsel %vm1784_vm4, %v1896_v34, %v7762_v36  ;;  %v1929_v14 = vsel %vm1801_vm10, %v1913_v13, %v7763_v22  ;;  %v7765_v24 = vld [vmem:[#allocation134_spill] sm:$0xff]  ;;  %1674 = vmin.xlane.f32.xlu1 %v6905_v41  ;;  %v1599_v44 = vpop.xlane.xlu1 %1598  ;;  %v6916_v59 = vsel %vm1631_vm15, inf, %v6263_v30  ;;  %v7768_v21 = vld [vmem:[#allocation29_spill] sm:$0xff]  ;;  %v7769_v34 = vld [vmem:[#allocation152_spill] sm:$0xff] }
 0x8e1   : > { %v1928_v50 = vsel %vm1801_vm10, %v1912_v5, %v7765_v24  ;;  %v1945_v29 = vsel %vm1818_vm7, %v1929_v14, %v7766_v56  ;;  %v7767_v57 = vld [vmem:[#allocation54_spill] sm:$0xff]  ;;  %vm1618_vm12 = vcmp.eq.f32.partialorder %v4493_v27, %v1599_v44  ;;  %1672 = vmin.xlane.f32.xlu0 %v6916_v59  ;;  %v1597_v13 = vpop.xlane.xlu0 %1596  ;;  %v7770_v36 = vld [vmem:[#allocation81_spill] sm:$0xff]  ;;  %v7772_v22 = vld [vmem:[#allocation108_spill] sm:$0xff]  ;;  %vm7776_vm6 = vcmp.eq.f32.partialorder %v6298_v51, %v6627_v60 }
 0x8e2   : > { %v1882_v43 = vsel %vm1750_vm1, %v7768_v21, %v7767_v57  ;;  %v1944_v20 = vsel %vm1818_vm7, %v1928_v50, %v7769_v34  ;;  %v6925_v47 = vsel %vm1835_vm11, %v1945_v29, %v1599_v44  ;;  %vm1617_vm13 = vcmp.eq.f32.partialorder %v4493_v27, %v1597_v13  ;;  %vm1634_vm2 = vmand %vm7771_vm8, %vm1618_vm12  ;;  %v7774_v50 = vld [vmem:[#allocation136_spill] sm:$0xff]  ;;  %v7775_v44 = vld [vmem:[#allocation154_spill] sm:$0xff] }
 0x8e3   : > { %v1898_v5 = vsel %vm1767_vm0, %v1882_v43, %v7770_v36  ;;  %v6932_v30 = vsel %vm1835_vm11, %v1944_v20, %v1597_v13  ;;  %v6940_v24 = vsel %vm1634_vm2, inf, %v6276_v33  ;;  %vm1633_vm9 = vmand %vm7773_vm5, %vm1617_vm13  ;;  %vm7777_vm12 = vcmp.eq.f32.partialorder %v6305_v35, %v6633_v12 }
 0x8e4   : > { %v1914_v14 = vsel %vm1784_vm4, %v1898_v5, %v7772_v22  ;;  %1678 = vmin.xlane.f32.xlu1 %v6940_v24  ;;  %v6948_v29 = vpop.xlane.xlu1 %1602  ;;  %v6951_v62 = vsel %vm1633_vm9, inf, %v6285_v42  ;;  %vm7778_vm2 = vcmp.eq.f32.partialorder %v6316_v7, %v6649_v31  ;;  %vm1852_vm9 = vcmask 56320  }
 0x8e5   : > { %v1930_v56 = vsel %vm1801_vm10, %v1914_v14, %v7774_v50  ;;  %vm1620_vm3 = vcmp.eq.f32.partialorder %v4493_v27, %v6948_v29  ;;  %1676 = vmin.xlane.f32.xlu0 %v6951_v62  ;;  %v1601_v33 = vpop.xlane.xlu0 %1600 }
 0x8e6   : > { %v1946_v57 = vsel %vm1818_vm7, %v1930_v56, %v7775_v44  ;;  %vm1619_vm14 = vcmp.eq.f32.partialorder %v4493_v27, %v1601_v33  ;;  %vm1636_vm15 = vmand %vm7776_vm6, %vm1620_vm3  ;;  %vm1985_vm3 = vcmask 64512  }
 0x8e7   : > { %v6960_v52 = vsel %vm1835_vm11, %v1946_v57, %v1601_v33  ;;  %v6966_v42 = vsel %vm1636_vm15, inf, %v6298_v51  ;;  %vm1635_vm13 = vmand %vm7777_vm12, %vm1619_vm14  ;;  %v7779_v33 = vld [vmem:[#allocation37_spill] sm:$0xff] }
 0x8e8   : > { %1682 = vmin.xlane.f32.xlu1 %v6966_v42  ;;  %v6973_v21 = vsel %vm1635_vm13, inf, %v6305_v35 }
 0x8e9   : > { %1680 = vmin.xlane.f32.xlu0 %v6973_v21  ;;  %v6976_v43 = vpop.xlane.xlu0 %1604 }
 0x8ea   : > { %vm1621_vm8 = vcmp.eq.f32.partialorder %v4493_v27, %v6976_v43 }
 0x8eb   : > { %vm1637_vm5 = vmand %vm7778_vm2, %vm1621_vm8 }
 0x8ec   : > { %v6984_v51 = vsel %vm1637_vm5, inf, %v6316_v7 }
 0x8ed   : > { %1684 = vmin.xlane.f32.xlu0 %v6984_v51 }
 0x959   : > { %v1655_v35 = vpop.xlane.xlu1 %1654 }
 0x95a   : > { %vm1686_vm14 = vcmp.eq.f32.partialorder %v6700_v9, %v1655_v35  ;;  %v1853_v12 = vsel %vm1852_vm9, %v6352_v0, %v1655_v35  ;;  %v1657_v34 = vpop.xlane.xlu0 %1656  ;;  %v7780_v35 = vld [vmem:[#allocation11_spill] sm:$0xff] }
 0x95b   : > { %1986 = vst.msk [vmem:[%s6993_s10] sm:$0xff] %vm1985_vm3, %v1853_v12  ;;  %vm1687_vm6 = vcmp.eq.f32.partialorder %v6712_v28, %v1657_v34  ;;  %v1854_v7 = vsel %vm1852_vm9, %v6362_v19, %v1657_v34  ;;  %v1702_v20 = vsel %vm1686_vm14, %v4493_v27, inf  ;;  %v1765_v12 = vsel %vm1750_vm1, %v7780_v35, %v7779_v33 }
 0x95c   : > { %1987 = vst.msk [vmem:[%s6993_s10 + $0x8] sm:$0xff] %vm1985_vm3, %v1854_v7  ;;  %1718 = vmin.xlane.f32.xlu1 %v1702_v20  ;;  %v1703_v0 = vsel %vm1687_vm6, %v4493_v27, inf  ;;  %v7782_v7 = vld [vmem:[#allocation91_spill] sm:$0xff] }
 0x95d   : > { %1720 = vmin.xlane.f32.xlu0 %v1703_v0  ;;  %v1659_v9 = vpop.xlane.xlu1 %1658 }
 0x95e   : > { %vm1688_vm15 = vcmp.eq.f32.partialorder %v6736_v26, %v1659_v9  ;;  %v1855_v13 = vsel %vm1852_vm9, %v6390_v23, %v1659_v9  ;;  %v7783_v9 = vld [vmem:[#allocation119_spill] sm:$0xff] }
 0x95f   : > { %1988 = vst.msk [vmem:[%s6993_s10 + $0x10] sm:$0xff] %vm1985_vm3, %v1855_v13  ;;  %v1704_v19 = vsel %vm1688_vm15, %v4493_v27, inf }
 0x960   : > { %1722 = vmin.xlane.f32.xlu1 %v1704_v19 }
 0x961   : > { %v1663_v28 = vpop.xlane.xlu1 %1662 }
 0x962   : > { %vm1690_vm12 = vcmp.eq.f32.partialorder %v6776_v10, %v1663_v28  ;;  %v1857_v36 = vsel %vm1852_vm9, %v6426_v17, %v1663_v28  ;;  %v1661_v5 = vpop.xlane.xlu0 %1660 }
 0x963   : > { %1990 = vst.msk [vmem:[%s6993_s10 + $0x20] sm:$0xff] %vm1985_vm3, %v1857_v36  ;;  %vm1689_vm13 = vcmp.eq.f32.partialorder %v6790_v6, %v1661_v5  ;;  %v1856_v23 = vsel %vm1852_vm9, %v6436_v39, %v1661_v5  ;;  %v1706_v26 = vsel %vm1690_vm12, %v4493_v27, inf  ;;  %v7784_v36 = vld [vmem:[#allocation138_spill] sm:$0xff]  ;;  %v7785_v5 = vld [vmem:[#allocation39_spill] sm:$0xff] }
 0x964   : > { %1989 = vst.msk [vmem:[%s6993_s10 + $0x18] sm:$0xff] %vm1985_vm3, %v1856_v23  ;;  %1726 = vmin.xlane.f32.xlu1 %v1706_v26  ;;  %v1705_v22 = vsel %vm1689_vm13, %v4493_v27, inf  ;;  %v7786_v23 = vld [vmem:[#allocation14_spill] sm:$0xff] }
 0x965   : > { %1724 = vmin.xlane.f32.xlu0 %v1705_v22  ;;  %v1667_v10 = vpop.xlane.xlu1 %1666  ;;  %v1766_v26 = vsel %vm1750_vm1, %v7786_v23, %v7785_v5  ;;  %v7787_v22 = vld [vmem:[#allocation66_spill] sm:$0xff] }
 0x966   : > { %vm1692_vm8 = vcmp.eq.f32.partialorder %v6820_v40, %v1667_v10  ;;  %v1859_v17 = vsel %vm1852_vm9, %v6472_v32, %v1667_v10  ;;  %v1665_v14 = vpop.xlane.xlu0 %1664  ;;  %v1783_v10 = vsel %vm1767_vm0, %v1766_v26, %v7787_v22 }
 0x967   : > { %1992 = vst.msk [vmem:[%s6993_s10 + $0x30] sm:$0xff] %vm1985_vm3, %v1859_v17  ;;  %vm1691_vm2 = vcmp.eq.f32.partialorder %v6834_v49, %v1665_v14  ;;  %v1858_v39 = vsel %vm1852_vm9, %v6482_v63, %v1665_v14  ;;  %v1708_v6 = vsel %vm1692_vm8, %v4493_v27, inf }
 0x968   : > { %1991 = vst.msk [vmem:[%s6993_s10 + $0x28] sm:$0xff] %vm1985_vm3, %v1858_v39  ;;  %1730 = vmin.xlane.f32.xlu1 %v1708_v6  ;;  %v1707_v50 = vsel %vm1691_vm2, %v4493_v27, inf  ;;  %v7788_v39 = vld [vmem:[#allocation93_spill] sm:$0xff] }
 0x969   : > { %1728 = vmin.xlane.f32.xlu0 %v1707_v50  ;;  %v1671_v40 = vpop.xlane.xlu1 %1670  ;;  %v1800_v6 = vsel %vm1784_vm4, %v1783_v10, %v7788_v39 }
 0x96a   : > { %vm1694_vm5 = vcmp.eq.f32.partialorder %v6864_v2, %v1671_v40  ;;  %v1861_v32 = vsel %vm1852_vm9, %v6518_v1, %v1671_v40  ;;  %v1669_v56 = vpop.xlane.xlu0 %1668  ;;  %v7789_v40 = vld [vmem:[#allocation121_spill] sm:$0xff] }
 0x96b   : > { %1994 = vst.msk [vmem:[%s6993_s10 + $0x40] sm:$0xff] %vm1985_vm3, %v1861_v32  ;;  %vm1693_vm14 = vcmp.eq.f32.partialorder %v6878_v25, %v1669_v56  ;;  %v1860_v63 = vsel %vm1852_vm9, %v6528_v45, %v1669_v56  ;;  %v1710_v49 = vsel %vm1694_vm5, %v4493_v27, inf  ;;  %v7790_v56 = vld [vmem:[#allocation139_spill] sm:$0xff] }
 0x96c   : > { %1993 = vst.msk [vmem:[%s6993_s10 + $0x38] sm:$0xff] %vm1985_vm3, %v1860_v63  ;;  %1734 = vmin.xlane.f32.xlu1 %v1710_v49  ;;  %v1709_v44 = vsel %vm1693_vm14, %v4493_v27, inf }
 0x96d   : > { %1732 = vmin.xlane.f32.xlu0 %v1709_v44  ;;  %v1675_v2 = vpop.xlane.xlu1 %1674 }
 0x96e   : > { %vm1696_vm6 = vcmp.eq.f32.partialorder %v6905_v41, %v1675_v2  ;;  %v1863_v1 = vsel %vm1852_vm9, %v6564_v55, %v1675_v2  ;;  %v1673_v57 = vpop.xlane.xlu0 %1672  ;;  %v7781_v41 = vld [vmem:[#allocation64_spill] sm:$0xff] }
 0x96f   : > { %1996 = vst.msk [vmem:[%s6993_s10 + $0x50] sm:$0xff] %vm1985_vm3, %v1863_v1  ;;  %vm1695_vm15 = vcmp.eq.f32.partialorder %v6916_v59, %v1673_v57  ;;  %v1862_v45 = vsel %vm1852_vm9, %v6574_v8, %v1673_v57  ;;  %v1712_v25 = vsel %vm1696_vm6, %v4493_v27, inf  ;;  %v1782_v34 = vsel %vm1767_vm0, %v1765_v12, %v7781_v41 }
 0x970   : > { %1995 = vst.msk [vmem:[%s6993_s10 + $0x48] sm:$0xff] %vm1985_vm3, %v1862_v45  ;;  %1738 = vmin.xlane.f32.xlu1 %v1712_v25  ;;  %v1711_v55 = vsel %vm1695_vm15, %v4493_v27, inf  ;;  %v1799_v8 = vsel %vm1784_vm4, %v1782_v34, %v7782_v7 }
 0x971   : > { %1736 = vmin.xlane.f32.xlu0 %v1711_v55  ;;  %v1679_v59 = vpop.xlane.xlu1 %1678  ;;  %v1816_v13 = vsel %vm1801_vm10, %v1799_v8, %v7783_v9 }
 0x972   : > { %vm1698_vm12 = vcmp.eq.f32.partialorder %v6940_v24, %v1679_v59  ;;  %v1865_v20 = vsel %vm1852_vm9, %v6603_v58, %v1679_v59  ;;  %v1677_v0 = vpop.xlane.xlu0 %1676  ;;  %v1833_v24 = vsel %vm1818_vm7, %v1816_v13, %v7784_v36 }
 0x973   : > { %1998 = vst.msk [vmem:[%s6993_s10 + $0x60] sm:$0xff] %vm1985_vm3, %v1865_v20  ;;  %vm1697_vm13 = vcmp.eq.f32.partialorder %v6951_v62, %v1677_v0  ;;  %v1864_v19 = vsel %vm1852_vm9, %v6613_v3, %v1677_v0  ;;  %v1714_v28 = vsel %vm1698_vm12, %v4493_v27, inf  ;;  %v1850_v62 = vsel %vm1835_vm11, %v1833_v24, %v6627_v60 }
 0x974   : > { %1997 = vst.msk [vmem:[%s6993_s10 + $0x58] sm:$0xff] %vm1985_vm3, %v1864_v19  ;;  %1742 = vmin.xlane.f32.xlu1 %v1714_v28  ;;  %v1713_v58 = vsel %vm1697_vm13, %v4493_v27, inf }
 0x975   : > { %1740 = vmin.xlane.f32.xlu0 %v1713_v58  ;;  %v1683_v3 = vpop.xlane.xlu1 %1682 }
 0x976   : > { %vm1700_vm8 = vcmp.eq.f32.partialorder %v6966_v42, %v1683_v3  ;;  %v1867_v17 = vsel %vm1852_vm9, %v1850_v62, %v1683_v3  ;;  %v1681_v14 = vpop.xlane.xlu0 %1680  ;;  %v1817_v42 = vsel %vm1801_vm10, %v1800_v6, %v7789_v40 }
 0x977   : > { %2000 = vst.msk [vmem:[%s6993_s10 + $0x70] sm:$0xff] %vm1985_vm3, %v1867_v17  ;;  %vm1699_vm2 = vcmp.eq.f32.partialorder %v6973_v21, %v1681_v14  ;;  %v1866_v60 = vsel %vm1852_vm9, %v6639_v53, %v1681_v14  ;;  %v1716_v50 = vsel %vm1700_vm8, %v4493_v27, inf  ;;  %v1834_v63 = vsel %vm1818_vm7, %v1817_v42, %v7790_v56 }
 0x978   : > { %1999 = vst.msk [vmem:[%s6993_s10 + $0x68] sm:$0xff] %vm1985_vm3, %v1866_v60  ;;  %1746 = vmin.xlane.f32.xlu1 %v1716_v50  ;;  %v1715_v32 = vsel %vm1699_vm2, %v4493_v27, inf  ;;  %v1851_v53 = vsel %vm1835_vm11, %v1834_v63, %v6649_v31 }
 0x979   : > { %1744 = vmin.xlane.f32.xlu0 %v1715_v32 }
 0x97a   : > { %v1685_v21 = vpop.xlane.xlu0 %1684 }
 0x97b   : > { %vm1701_vm5 = vcmp.eq.f32.partialorder %v6984_v51, %v1685_v21  ;;  %v1868_v49 = vsel %vm1852_vm9, %v1851_v53, %v1685_v21 }
 0x97c   : > { %2001 = vst.msk [vmem:[%s6993_s10 + $0x78] sm:$0xff] %vm1985_vm3, %v1868_v49  ;;  %v1717_v44 = vsel %vm1701_vm5, %v4493_v27, inf }
 0x97d   : > { %1748 = vmin.xlane.f32.xlu0 %v1717_v44 }
 0x97e   : > { %4173 = shalt.err (!%p4170_p5)
}
 0x97f   : > { %s4174_s5 = scalar_lea.hbm %s7117_s23, 2048  ;;  %s4178_s8 = scalar_lea.hbm %s7266_s2, 8192 }
 0x980   : > { %p4175_p6 = scmp.ne.s32.totalorder %s7117_s23, %s4174_s5  ;;  %p4179_p10 = scmp.lt.u32.totalorder %s7117_s23, %s7266_s2 }
 0x981   : > { %p4180_p11 = scmp.lt.u32.totalorder %s4178_s8, %s4174_s5  ;;  %p4182_p13 = scmp.lt.u32.totalorder %s4174_s5, %s7117_s23 }
 0x982   : > { %p4176_p7 = pnand %p4175_p6, %p4306_p4 }
 0x983   : > { %p4181_p12 = por %p4180_p11, %p4179_p10 }
 0x984   : > { %p4177_p9 = pneg %p4176_p7 }
 0x985   : > { %p4183_p0 = por %p4182_p13, %p4181_p12 }
 0x987   : > { %p4184_p1 = pnand %p4183_p0, %p4177_p9 }
 0x989   : > { %4187 = shalt.err (!%p4184_p1)
}
 0x98a   : > { %s4244_s11 = smov 128   ;;  %s4245_s19 = smov 8   ;;  %v7791_v17 = vld [vmem:[#allocation53_spill] sm:$0xff]  ;;  %v7792_v14 = vld [vmem:[#allocation28_spill] sm:$0xff]  ;;  %v7794_v40 = vld [vmem:[#allocation107_spill] sm:$0xff] }
 0x98b   : > { %4094 = dma.vmem_to_hbm [thread:$0]  (%p4306_p4), %s7119_s18, 2048, %s7117_s23, %s7123_s28, %s4244_s11, %s4244_s11, %s4245_s19   ;;  %v7793_v6 = vld [vmem:[#allocation80_spill] sm:$0xff]  ;;  %v7795_v63 = vld [vmem:[#allocation135_spill] sm:$0xff]  ;;  %v7796_v44 = vld [vmem:[#allocation153_spill] sm:$0xff] }
 0x98c   : > { %s7156_s15 = scalar_lea.vmem %s7267_s3, %s4059_s27 }
 0x9e9   : > { %v1719_v27 = vpop.xlane.xlu1 %1718 }
 0x9ea   : > { %v1965_v31 = vsel %vm1852_vm9, %v6686_v54, %v1719_v27  ;;  %v1721_v51 = vpop.xlane.xlu0 %1720 }
 0x9eb   : > { %v4062_v2 = vtrunc.f32 %v1965_v31  ;;  %v1966_v1 = vsel %vm1852_vm9, %v6692_v11, %v1721_v51  ;;  %v7797_v51 = vld [vmem:[#allocation55_spill] sm:$0xff] }
 0x9ec   : > { %v4064_v57 = vtrunc.f32 %v1966_v1 }
 0x9ed   : > { %v4063_v45 = vcvt.f32.s32 %v4062_v2  ;;  %v1723_v25 = vpop.xlane.xlu1 %1722 }
 0x9ee   : > { %v4065_v33 = vcvt.f32.s32 %v4064_v57  ;;  %v1967_v54 = vsel %vm1852_vm9, %v6721_v16, %v1723_v25  ;;  %v7799_v25 = vld [vmem:[#allocation82_spill] sm:$0xff] }
 0x9ef   : > { %2018 = vst.msk [vmem:[%s7156_s15] sm:$0xff] %vm1985_vm3, %v4063_v45  ;;  %v4066_v11 = vtrunc.f32 %v1967_v54 }
 0x9f0   : > { %2019 = vst.msk [vmem:[%s7156_s15 + $0x8] sm:$0xff] %vm1985_vm3, %v4065_v33 }
 0x9f1   : > { %v4067_v35 = vcvt.f32.s32 %v4066_v11  ;;  %v1727_v12 = vpop.xlane.xlu1 %1726 }
 0x9f2   : > { %v1969_v55 = vsel %vm1852_vm9, %v6755_v46, %v1727_v12  ;;  %v1725_v41 = vpop.xlane.xlu0 %1724 }
 0x9f3   : > { %2020 = vst.msk [vmem:[%s7156_s15 + $0x10] sm:$0xff] %vm1985_vm3, %v4067_v35  ;;  %v4070_v34 = vtrunc.f32 %v1969_v55  ;;  %v1968_v59 = vsel %vm1852_vm9, %v6763_v18, %v1725_v41  ;;  %v7800_v35 = vld [vmem:[#allocation109_spill] sm:$0xff] }
 0x9f4   : > { %v4068_v16 = vtrunc.f32 %v1968_v59  ;;  %v7801_v41 = vld [vmem:[#allocation137_spill] sm:$0xff] }
 0x9f5   : > { %v4071_v7 = vcvt.f32.s32 %v4070_v34  ;;  %v1731_v8 = vpop.xlane.xlu1 %1730 }
 0x9f6   : > { %v4069_v20 = vcvt.f32.s32 %v4068_v16  ;;  %v1971_v0 = vsel %vm1852_vm9, %v6798_v37, %v1731_v8  ;;  %v1729_v9 = vpop.xlane.xlu0 %1728  ;;  %v7802_v16 = vld [vmem:[#allocation155_spill] sm:$0xff] }
 0x9f7   : > { %2022 = vst.msk [vmem:[%s7156_s15 + $0x20] sm:$0xff] %vm1985_vm3, %v4071_v7  ;;  %v4074_v46 = vtrunc.f32 %v1971_v0  ;;  %v1970_v13 = vsel %vm1852_vm9, %v6807_v4, %v1729_v9 }
 0x9f8   : > { %2021 = vst.msk [vmem:[%s7156_s15 + $0x18] sm:$0xff] %vm1985_vm3, %v4069_v20  ;;  %v4072_v19 = vtrunc.f32 %v1970_v13 }
 0x9f9   : > { %v4075_v18 = vcvt.f32.s32 %v4074_v46  ;;  %v1735_v28 = vpop.xlane.xlu1 %1734 }
 0x9fa   : > { %v4073_v36 = vcvt.f32.s32 %v4072_v19  ;;  %v1973_v24 = vsel %vm1852_vm9, %v6842_v48, %v1735_v28  ;;  %v1733_v58 = vpop.xlane.xlu0 %1732 }
 0x9fb   : > { %2024 = vst.msk [vmem:[%s7156_s15 + $0x30] sm:$0xff] %vm1985_vm3, %v4075_v18  ;;  %v4078_v37 = vtrunc.f32 %v1973_v24  ;;  %v1972_v5 = vsel %vm1852_vm9, %v6851_v61, %v1733_v58  ;;  %v1883_v61 = vsel %vm1750_vm1, %v7792_v14, %v7791_v17 }
 0x9fc   : > { %2023 = vst.msk [vmem:[%s7156_s15 + $0x28] sm:$0xff] %vm1985_vm3, %v4073_v36  ;;  %v4076_v4 = vtrunc.f32 %v1972_v5  ;;  %v1899_v60 = vsel %vm1767_vm0, %v1883_v61, %v7793_v6 }
 0x9fd   : > { %v4079_v23 = vcvt.f32.s32 %v4078_v37  ;;  %v1739_v26 = vpop.xlane.xlu1 %1738  ;;  %v1915_v42 = vsel %vm1784_vm4, %v1899_v60, %v7794_v40 }
 0x9fe   : > { %v4077_v62 = vcvt.f32.s32 %v4076_v4  ;;  %v1975_v3 = vsel %vm1852_vm9, %v6886_v38, %v1739_v26  ;;  %v1737_v22 = vpop.xlane.xlu0 %1736  ;;  %v1931_v53 = vsel %vm1801_vm10, %v1915_v42, %v7795_v63 }
 0x9ff   : > { %2026 = vst.msk [vmem:[%s7156_s15 + $0x40] sm:$0xff] %vm1985_vm3, %v4079_v23  ;;  %v4082_v48 = vtrunc.f32 %v1975_v3  ;;  %v1974_v10 = vsel %vm1852_vm9, %v6895_v15, %v1737_v22  ;;  %v1947_v27 = vsel %vm1818_vm7, %v1931_v53, %v7796_v44 }
 0xa00   : > { %2025 = vst.msk [vmem:[%s7156_s15 + $0x38] sm:$0xff] %vm1985_vm3, %v4077_v62  ;;  %v4080_v39 = vtrunc.f32 %v1974_v10  ;;  %v1963_v1 = vsel %vm1835_vm11, %v1947_v27, %v6948_v29 }
 0xa01   : > { %v4083_v38 = vcvt.f32.s32 %v4082_v48  ;;  %v1743_v50 = vpop.xlane.xlu1 %1742 }
 0xa02   : > { %v4081_v32 = vcvt.f32.s32 %v4080_v39  ;;  %v1977_v15 = vsel %vm1852_vm9, %v6925_v47, %v1743_v50  ;;  %v1741_v56 = vpop.xlane.xlu0 %1740  ;;  %v7798_v47 = vld [vmem:[#allocation30_spill] sm:$0xff] }
 0xa03   : > { %2028 = vst.msk [vmem:[%s7156_s15 + $0x50] sm:$0xff] %vm1985_vm3, %v4083_v38  ;;  %v4086_v21 = vtrunc.f32 %v1977_v15  ;;  %v1976_v49 = vsel %vm1852_vm9, %v6932_v30, %v1741_v56  ;;  %v1884_v2 = vsel %vm1750_vm1, %v7798_v47, %v7797_v51 }
 0xa04   : > { %2027 = vst.msk [vmem:[%s7156_s15 + $0x48] sm:$0xff] %vm1985_vm3, %v4081_v32  ;;  %v4084_v31 = vtrunc.f32 %v1976_v49  ;;  %v1900_v33 = vsel %vm1767_vm0, %v1884_v2, %v7799_v25 }
 0xa05   : > { %v4087_v57 = vcvt.f32.s32 %v4086_v21  ;;  %v1747_v45 = vpop.xlane.xlu1 %1746  ;;  %v1916_v12 = vsel %vm1784_vm4, %v1900_v33, %v7800_v35 }
 0xa06   : > { %v4085_v30 = vcvt.f32.s32 %v4084_v31  ;;  %v1979_v54 = vsel %vm1852_vm9, %v1963_v1, %v1747_v45  ;;  %v1745_v11 = vpop.xlane.xlu0 %1744  ;;  %v1932_v34 = vsel %vm1801_vm10, %v1916_v12, %v7801_v41 }
 0xa07   : > { %2030 = vst.msk [vmem:[%s7156_s15 + $0x60] sm:$0xff] %vm1985_vm3, %v4087_v57  ;;  %v4090_v55 = vtrunc.f32 %v1979_v54  ;;  %v1978_v29 = vsel %vm1852_vm9, %v6960_v52, %v1745_v11  ;;  %v1948_v7 = vsel %vm1818_vm7, %v1932_v34, %v7802_v16 }
 0xa08   : > { %2029 = vst.msk [vmem:[%s7156_s15 + $0x58] sm:$0xff] %vm1985_vm3, %v4085_v30  ;;  %v4088_v59 = vtrunc.f32 %v1978_v29  ;;  %v1964_v20 = vsel %vm1835_vm11, %v1948_v7, %v6976_v43 }
 0xa09   : > { %v4091_v8 = vcvt.f32.s32 %v4090_v55 }
 0xa0a   : > { %v4089_v0 = vcvt.f32.s32 %v4088_v59  ;;  %v1749_v9 = vpop.xlane.xlu0 %1748 }
 0xa0b   : > { %2032 = vst.msk [vmem:[%s7156_s15 + $0x70] sm:$0xff] %vm1985_vm3, %v4091_v8  ;;  %v1980_v46 = vsel %vm1852_vm9, %v1964_v20, %v1749_v9 }
 0xa0c   : > { %2031 = vst.msk [vmem:[%s7156_s15 + $0x68] sm:$0xff] %vm1985_vm3, %v4089_v0  ;;  %v4092_v52 = vtrunc.f32 %v1980_v46 }
 0xa0e   : > { %v4093_v13 = vcvt.f32.s32 %v4092_v52 }
 0xa10   : > { %2033 = vst.msk [vmem:[%s7156_s15 + $0x78] sm:$0xff] %vm1985_vm3, %v4093_v13 }
 0xa11 PF: > { %p4100_p4 = scmp.ge.s32.totalorder %s4238_s17, 2  ;;  %s3924_s22 = sand.u32 1, %s4218_s12  }
 0xa12   : > { %s3925_s26 = scalar_lea.sflag [#allocation3], %s3924_s22 }
 0xa13   : > { %p4097_p2 = pnand %p4100_p4, %p4313_p8 }
 0xa15   : > { %4213 = dma.done.wait (!%p4097_p2), %s3925_s26, 2048  }
 0xa16   : > { %4215 = vsyncadd (!%p4097_p2), %s3925_s26, 4294965248  ;;  %s17_s17 = sadd.s32 1, %s4238_s17   ;;  %s7803_s12 = smov %s4222_s13 }
 0xa17   : > { %p14_p3 = scmp.ge.s32.totalorder %s17_s17, 6   ;;  %s7804_s13 = smov %s4226_s14 }
 0xa18   : > { %s7805_s14 = smov %s4319_s25  ;;  %s7806_s15 = smov %s4234_s16 }
 0xa19   : > { %s7807_s16 = smov %s7809_s20  ;;  %16 = sbr.rel (!%p14_p3) target bundleno = 4 (0x4), region = 86 }
 0xa20   :  { %3942 = vsyncpa [#allocation3], 1 }
 0xa21   :  { %3944 = vsyncpa [#allocation3 + $0x1], 1 }

// kernel: _lambda_.7
= control target key start
LH: loop header
LB: loop body
LE: loop exit
PB: predicated region body
PF: predicated region fallthrough
CT: control target
= control target key end

     0   :  { %18 = vsyncpa [#allocation3], 0  ;;  %s1651_s0 = inlined_call_operand.vmem [shape: f32[2,32,128], index: 0, kind: input, shape index: {}]   ;;  %s1652_s1 = inlined_call_operand.vmem [shape: f32[2,32,128], index: 1, kind: input, shape index: {}]   ;;  %s1653_s2 = inlined_call_operand.vmem [shape: f32[2,32,128], index: 2, kind: input, shape index: {}]   ;;  %s1654_s3 = inlined_call_operand.vmem [shape: f32[2,3,128], index: 3, kind: input, shape index: {}]   ;;  %s1655_s4 = inlined_call_operand.vmem [shape: bf16[32,96], index: 4, kind: input, shape index: {}]   ;;  %s1656_s5 = inlined_call_operand.vmem [shape: f32[32,3], index: 5, kind: input, shape index: {}]   ;;  %s1657_s6 = inlined_call_operand.vmem [shape: f32[32,1], index: 6, kind: input, shape index: {}, may-alias: {6,8}]   ;;  %s1658_s7 = inlined_call_operand.vmem [shape: bf16[32,32], index: 7, kind: input, shape index: {}]   ;;  %s1659_s8 = inlined_call_operand.vmem [shape: f32[32,1], index: 8, kind: input, shape index: {}, may-alias: {6,8}]   ;;  %s1660_s9 = inlined_call_operand.vmem [shape: f32[3,32], index: 9, kind: input, shape index: {}]   ;;  %s1661_s10 = inlined_call_operand.vmem [shape: f32[3,1], index: 10, kind: input, shape index: {}]   ;;  %s1662_s11 = inlined_call_operand.hbm [shape: f32[2,32,128], index: 11, kind: output, shape index: {0}]   ;;  %s1663_s12 = inlined_call_operand.vmem [shape: f32[2,3,128], index: 12, kind: output, shape index: {1}]  }
   0x1   :  { %20 = vsyncpa [#allocation3 + $0x1], 0  ;;  %s1447_s21 = smov 0   ;;  %s1449_s22 = smov 0  }
   0x2   :  { %s1451_s23 = smov 0   ;;  %s1453_s24 = smov 0  }
   0x3   :  { %s1455_s25 = smov 0   ;;  %s1457_s26 = smov 0  }
   0x4 LB: > { %1668 = sst [smem:[#allocation5_spill]] %s1359_s23  ;;  %s1127_s27 = sadd.s32 4294967295, %s1371_s26   ;;  %s1371_s26 = sphi %s1457_s26, %s26_s26   ;;  %s1367_s25 = sphi %s1455_s25, %s1678_s25   ;;  %s1363_s24 = sphi %s1453_s24, %s1677_s24   ;;  %s1359_s23 = sphi %s1451_s23, %s1676_s23   ;;  %s1355_s22 = sphi %s1449_s22, %s1680_s22   ;;  %s1351_s21 = sphi %s1447_s21, %s1679_s21  }
   0x5   : > { %1669 = sst [smem:[#allocation6_spill]] %s1367_s25  ;;  %s1128_s28 = sadd.s32 4294967294, %s1371_s26  }
   0x6   : > { %s38_s29 = sadd.s32 1, %s1367_s25  ;;  %s306_s30 = sadd.s32 1, %s1359_s23 }
   0x7   : > { %p40_p0 = scmp.ge.s32.totalorder %s38_s29, 2  ;;  %p316_p1 = scmp.ne.s32.totalorder %s1359_s23, %s1355_s22 }
   0x8   : > { %p317_p2 = scmp.eq.s32.totalorder %s1127_s27, 1  ;;  %p322_p3 = scmp.ne.s32.totalorder %s1355_s22, %s1351_s21 }
   0x9   : > { %s1682_s29 = smov (%p40_p0, %s38_s29), 0  ;;  %p323_p5 = scmp.eq.s32.totalorder %s1128_s28, 1 }
   0xa   : > { %1670 = sst [smem:[#allocation7_spill]] %s1682_s29  ;;  %p1487_p4 = por %p317_p2, %p316_p1 }
   0xb   : > { %s301_s14 = ssub.s32 %s1367_s25, %s1682_s29  ;;  %p1131_p6 = scmp.ge.s32.totalorder %s1371_s26, 1 }
   0xc   : > { %p304_p7 = scmp.eq.s32.totalorder %s301_s14, 0  ;;  %p1494_p8 = por %p323_p5, %p322_p3 }
   0xd   : > { %p433_p9 = scmp.lt.s32.totalorder %s1371_s26, 3 }
   0xe   : > { %s1500_s16 = scalar_select %p304_p7, %s1359_s23, %s306_s30  }
   0xf   : > { %p434_p10 = pnand %p1131_p6, %p433_p9 }
  0x10   : > { %1673 = sst [smem:[#allocation8_spill]] %s1500_s16  ;;  %p508_p11 = scmp.lt.s32.totalorder (!%p434_p10), %s1363_s24, 1  ;;  %v1289_v0 = vld [vmem:[%s1655_s4] sm:$0xff] (!%p434_p10)   ;;  %vm612_vm0 = vcmask (!%p434_p10), 785408   ;;  %v1373_v2 = vmov (!%p434_p10), 1   ;;  %v1374_v3 = vmov (!%p434_p10), 2   ;;  %v594_v45 = vlaneseq (!%p434_p10) }
  0x11   : > { %437 = sbr.rel (%p434_p10) target bundleno = 735 (0x2df), region = 64  ;;  %1188 = vmatprep.mubr.msk.bf16.mxu0 (!%p434_p10), %vm612_vm0, %v1289_v0  ;;  %v570_v1 = vld [vmem:[%s1656_s5] sm:$0xff] (!%p434_p10)  ;;  %1280 = vset.pattern.permute.xlu1 (!%p434_p10), %v1373_v2  ;;  %v571_v4 = vld [vmem:[%s1656_s5 + $0x8] sm:$0xff] (!%p434_p10)  ;;  %v573_v5 = vld [vmem:[%s1656_s5 + $0x18] sm:$0xff] (!%p434_p10)  ;;  %v1375_v17 = vmov (!%p434_p10), 0   ;;  %vm796_vm1 = vcmask (!%p434_p10), 261120  }
  0x12   : > { %1282 = vset.pattern.permute.xlu0 (!%p434_p10), %v1374_v3  ;;  %669 = vperm.xlu1 (!%p434_p10), %1280, %v570_v1   ;;  %v572_v24 = vld [vmem:[%s1656_s5 + $0x10] sm:$0xff] (!%p434_p10)  ;;  %v724_v26 = vld [vmem:[%s1657_s6] sm:$0xff] (!%p434_p10)  ;;  %v1290_v27 = vld [vmem:[%s1655_s4 + $0x8] sm:$0xff] (!%p434_p10)   ;;  %v595_v47 = vshrl.u32 (!%p434_p10), %v594_v45, 7  ;;  %vm1377_vm2 = vmmov (!%p434_p10), 0   ;;  %s496_s23 = sand.u32 (!%p434_p10), 1, %s1355_s22  }
  0x13   : > { %697 = vperm.xlu0 (!%p434_p10), %1282, %v570_v1   ;;  %v727_v28 = vld [vmem:[%s1657_s6 + $0x18] sm:$0xff] (!%p434_p10)  ;;  %v763_v29 = vld [vmem:[%s1659_s8 + $0x8] sm:$0xff] (!%p434_p10)  ;;  %v726_v32 = vld [vmem:[%s1657_s6 + $0x10] sm:$0xff] (!%p434_p10)  ;;  %s1132_s29 = sshll.u32 (!%p434_p10), %s496_s23, 5 }
  0x14   : > { %v725_v30 = vld [vmem:[%s1657_s6 + $0x8] sm:$0xff] (!%p434_p10)  ;;  %v765_v31 = vld [vmem:[%s1659_s8 + $0x18] sm:$0xff] (!%p434_p10)  ;;  %v762_v33 = vld [vmem:[%s1659_s8] sm:$0xff] (!%p434_p10)  ;;  %v596_v49 = vsub.s32 (!%p434_p10), 0, %v595_v47  ;;  %v686_v51 = vsub.s32 (!%p434_p10), 1, %v595_v47  ;;  %v714_v54 = vsub.s32 (!%p434_p10), 2, %v595_v47 }
  0x15   : > { %v764_v34 = vld [vmem:[%s1659_s8 + $0x10] sm:$0xff] (!%p434_p10)  ;;  %v861_v35 = vld [vmem:[%s1661_s10] sm:$0x7] (!%p434_p10) }
  0x16   : > { %673 = vperm.xlu1 (!%p434_p10), %1280, %v571_v4   ;;  %v1291_v36 = vld [vmem:[%s1658_s7] sm:$0xff] (!%p434_p10)  }
  0x17   : > { %1285 = vset.pattern.permute.xlu0 (!%p434_p10), %v1373_v2  ;;  %1196 = vmatprep.mubr.msk.bf16.mxu1 (!%p434_p10), %vm796_vm1, %v1291_v36  ;;  %v1292_v36 = vld [vmem:[%s1658_s7 + $0x8] sm:$0xff] (!%p434_p10)  }
  0x18   : > { %s1507_s19 = scalar_select %p508_p11, %s1363_s24, 1  ;;  %681 = vperm.xlu0 %1285, %v573_v5  }
  0x1a   : > { %s1155_s28 = sshll.u32 %s1507_s19, 5  ;;  %1281 = vset.pattern.permute.xlu1 %v1375_v17 }
  0x1b   : > { %s515_s17 = scalar_lea.vmem %s1651_s0, %s1155_s28  ;;  %s523_s25 = scalar_lea.vmem %s1652_s1, %s1155_s28  ;;  %591 = vperm.xlu1 %1281, %v573_v5  }
  0x1c   : > { %v547_v6 = vld [vmem:[%s515_s17] sm:$0xff]  ;;  %v548_v7 = vld [vmem:[%s515_s17 + $0x8] sm:$0xff]  ;;  %v549_v8 = vld [vmem:[%s515_s17 + $0x10] sm:$0xff]  ;;  %s531_s16 = scalar_lea.vmem %s1653_s2, %s1155_s28  ;;  %1286 = vset.pattern.permute.xlu0 %v1375_v17  ;;  %s1667_s28 = sshll.u32 %s1507_s19, 2 }
  0x1d   : > { %v551_v9 = vpack.c.bf16 %v548_v7, %v547_v6  ;;  %v550_v10 = vld [vmem:[%s515_s17 + $0x18] sm:$0xff]  ;;  %v553_v12 = vld [vmem:[%s523_s25] sm:$0xff]  ;;  %v554_v13 = vld [vmem:[%s523_s25 + $0x8] sm:$0xff]  ;;  %576 = vperm.xlu0 %1286, %v570_v1   ;;  %s538_s18 = scalar_lea.vmem %s1654_s3, %s1667_s28  ;;  %s1158_s17 = sshll.u32 %s1363_s24, 9 }
  0x1e   : > { %v552_v11 = vpack.c.bf16 %v550_v10, %v549_v8  ;;  %v557_v14 = vpack.c.bf16 %v554_v13, %v553_v12  ;;  %v555_v15 = vld [vmem:[%s523_s25 + $0x10] sm:$0xff]  ;;  %v556_v16 = vld [vmem:[%s523_s25 + $0x18] sm:$0xff]  ;;  %v559_v19 = vld [vmem:[%s531_s16] sm:$0xff]  ;;  %s1595_s27 = scalar_lea.hbm %s1662_s11, %s1158_s17 }
  0x1f   : > { %1176 = vmatprep.subr.bf16.mxu0 %v551_v9  ;;  %v558_v18 = vpack.c.bf16 %v556_v16, %v555_v15  ;;  %v560_v20 = vld [vmem:[%s531_s16 + $0x8] sm:$0xff]  ;;  %1283 = vset.pattern.permute.xlu1 %v1374_v3  ;;  %v561_v22 = vld [vmem:[%s531_s16 + $0x10] sm:$0xff]  ;;  %v562_v23 = vld [vmem:[%s531_s16 + $0x18] sm:$0xff]  ;;  %s498_s16 = scalar_lea.vmem [#allocation2], %s1132_s29  ;;  %s1599_s29 = scalar_lea.sflag [#allocation3], %s496_s23 }
  0x20   : > { %1177 = vmatpush3.bf16.msra.mxu0 %v551_v9  ;;  %701 = vperm.xlu1 %1283, %v571_v4   ;;  %v563_v21 = vpack.c.bf16 %v560_v20, %v559_v19  ;;  %v564_v25 = vpack.c.bf16 %v562_v23, %v561_v22  ;;  %v1573_v50 = vld [vmem:[%s538_s18] sm:$0x7]  ;;  %s964_s14 = sshll.u32 %s498_s16, 4  ;;  %s1589_s14 = int_to_ptr.vmem [resolvable:$true] %s964_s14 }
  0x21   : > { %1178 = vmatprep.subr.bf16.mxu0 %v552_v11  ;;  %581 = vperm.xlu0 %1286, %v571_v4   ;;  %v597_v53 = vrot.slane %v1573_v50, %v596_v49  ;;  %v687_v57 = vrot.slane %v1573_v50, %v686_v51  ;;  %v715_v58 = vrot.slane %v1573_v50, %v714_v54  ;;  %s1293_s28 = scalar_lea.vmem %s1589_s14, 512 }
  0x22   : > { %p1294_p12 = scmp.ne.s32.totalorder %s1589_s14, %s1293_s28 }
  0x24   : > { %1179 = vmatpush3.bf16.msra.mxu0 %v552_v11  ;;  %1284 = vset.pattern.permute.xlu1 %v1373_v2  ;;  %p1295_p13 = pnand %p1294_p12, %p1487_p4 }
  0x25   : > { %1180 = vmatprep.subr.bf16.mxu0 %v557_v14  ;;  %677 = vperm.xlu1 %1284, %v572_v24  }
  0x26   : > { %586 = vperm.xlu0 %1286, %v572_v24   ;;  %p1296_p0 = pneg %p1295_p13 }
  0x28   : > { %1181 = vmatpush3.bf16.msra.mxu0 %v557_v14 }
  0x29   : > { %1182 = vmatprep.subr.bf16.mxu0 %v558_v18  ;;  %1287 = vset.pattern.permute.xlu1 %v1374_v3 }
  0x2a   : > { %705 = vperm.xlu1 %1287, %v572_v24   ;;  %730 = vperm.xlu0 %1286, %v724_v26  }
  0x2c   : > { %1183 = vmatpush3.bf16.msra.mxu0 %v558_v18 }
  0x2d   : > { %1184 = vmatprep.subr.bf16.mxu0 %v563_v21 }
  0x2e   : > { %709 = vperm.xlu1 %1287, %v573_v5   ;;  %745 = vperm.xlu0 %1286, %v727_v28  }
  0x30   : > { %1185 = vmatpush3.bf16.msra.mxu0 %v563_v21 }
  0x31   : > { %1186 = vmatprep.subr.bf16.mxu0 %v564_v25 }
  0x32   : > { %1288 = vset.pattern.permute.xlu1 %v1375_v17  ;;  %773 = vperm.xlu0 %1286, %v763_v29  }
  0x33   : > { %735 = vperm.xlu1 %1288, %v725_v30  }
  0x34   : > { %1187 = vmatpush3.bf16.msra.mxu0 %v564_v25 }
  0x36   : > { %783 = vperm.xlu0 %1286, %v765_v31  }
  0x37   : > { %1189 = vmatmul.mubr.msk.bf16.vlgmr.msra.gmra.mrb[0].mxu0 %vm612_vm0, %v1290_v27  ;;  %740 = vperm.xlu1 %1288, %v726_v32  }
  0x3b   : > { %768 = vperm.xlu1 %1288, %v762_v33  }
  0x3f   : > { %778 = vperm.xlu1 %1288, %v764_v34  }
  0x43   : > { %864 = vperm.xlu1 %1288, %v861_v35  }
  0x91   : > { %v670_v37 = vpop.permute.xlu1 %669 }
  0x92   : > { %v698_v40 = vpop.permute.xlu0 %697  ;;  %v688_v2 = vmul.f32 %v687_v57, %v670_v37  ;;  %v1376_v37 = vmov 0.0|0.0  }
  0x93   : > { %v716_v12 = vmul.f32 %v715_v58, %v698_v40 }
  0x95   : > { %v674_v38 = vpop.permute.xlu1 %673 }
  0x96   : > { %v689_v13 = vmul.f32 %v687_v57, %v674_v38  ;;  %v1378_v38 = vmov 0.0  }
  0x97   : > { %v682_v42 = vpop.permute.xlu0 %681 }
  0x98   : > { %v691_v7 = vmul.f32 %v687_v57, %v682_v42 }
  0x9a   : > { %v592_v39 = vpop.permute.xlu1 %591 }
  0x9b   : > { %v601_v62 = vmul.f32 %v597_v53, %v592_v39 }
  0x9c   : > { %v577_v44 = vpop.permute.xlu0 %576 }
  0x9d   : > { %v598_v59 = vmul.f32 %v597_v53, %v577_v44 }
  0x9f   : > { %v702_v41 = vpop.permute.xlu1 %701 }
  0xa0   : > { %v582_v48 = vpop.permute.xlu0 %581  ;;  %v717_v19 = vmul.f32 %v715_v58, %v702_v41 }
  0xa1   : > { %v599_v3 = vmul.f32 %v597_v53, %v582_v48 }
  0xa4   : > { %v678_v43 = vpop.permute.xlu1 %677 }
  0xa5   : > { %v587_v55 = vpop.permute.xlu0 %586  ;;  %v690_v63 = vmul.f32 %v687_v57, %v678_v43 }
  0xa6   : > { %v600_v56 = vmul.f32 %v597_v53, %v587_v55 }
  0xa9   : > { %v706_v46 = vpop.permute.xlu1 %705  ;;  %v731_v4 = vpop.permute.xlu0 %730 }
  0xaa   : > { %v718_v8 = vmul.f32 %v715_v58, %v706_v46 }
  0xad   : > { %v710_v52 = vpop.permute.xlu1 %709  ;;  %v746_v25 = vpop.permute.xlu0 %745 }
  0xae   : > { %v719_v16 = vmul.f32 %v715_v58, %v710_v52  ;;  %v860_v58 = vld [vmem:[%s1660_s9] sm:$0x7] }
  0xb1   : > { %v774_v40 = vpop.permute.xlu0 %773 }
  0xb2   : > { %v736_v60 = vpop.permute.xlu1 %735 }
  0xb5   : > { %v784_v45 = vpop.permute.xlu0 %783 }
  0xb6   : > { %v741_v20 = vpop.permute.xlu1 %740 }
  0xba   : > { %v769_v39 = vpop.permute.xlu1 %768 }
  0xbe   : > { %v779_v41 = vpop.permute.xlu1 %778 }
 0x10a   : > { %v1190_v61 = vpop.f32.mrb[0].mxu0 }
 0x10b   : > { %v662_v0 = vadd.f32 %v1190_v61, %v600_v56  ;;  %v653_v1 = vpop.f32.mrb[1].mxu0 }
 0x10c   : > { %v654_v5 = vadd.f32 %v653_v1, %v598_v59  ;;  %v1191_v6 = vpop.f32.mrb[2].mxu0 }
 0x10d   : > { %v694_v9 = vadd.f32 %v690_v63, %v662_v0  ;;  %v665_v10 = vadd.f32 %v1191_v6, %v601_v62  ;;  %v656_v11 = vpop.f32.mrb[3].mxu0 }
 0x10e   : > { %v692_v14 = vadd.f32 %v688_v2, %v654_v5  ;;  %v657_v15 = vadd.f32 %v656_v11, %v599_v3 }
 0x10f   : > { %v722_v17 = vadd.f32 %v718_v8, %v694_v9  ;;  %v695_v18 = vadd.f32 %v691_v7, %v665_v10 }
 0x110   : > { %v720_v21 = vadd.f32 %v716_v12, %v692_v14  ;;  %v693_v22 = vadd.f32 %v689_v13, %v657_v15 }
 0x111   : > { %v723_v23 = vadd.f32 %v719_v16, %v695_v18  ;;  %v750_v24 = vadd.f32 %v741_v20, %v722_v17 }
 0x112   : > { %v721_v26 = vadd.f32 %v717_v19, %v693_v22  ;;  %v748_v27 = vadd.f32 %v731_v4, %v720_v21 }
 0x113   : > { %v751_v28 = vadd.f32 %v746_v25, %v723_v23  ;;  %v754_v30 = vmax.f32 %v750_v24, 0.0 }
 0x114   : > { %v749_v29 = vadd.f32 %v736_v60, %v721_v26  ;;  %v752_v32 = vmax.f32 %v748_v27, 0.0 }
 0x115   : > { %v755_v31 = vmax.f32 %v751_v28, 0.0 }
 0x116   : > { %v753_v33 = vmax.f32 %v749_v29, 0.0 }
 0x117   : > { %v761_v34 = vpack.c.bf16 %v755_v31, %v754_v30 }
 0x118   : > { %v760_v35 = vpack.c.bf16 %v753_v33, %v752_v32 }
 0x11a   : > { %1192 = vmatprep.subr.bf16.mxu1 %v760_v35 }
 0x11b   : > { %1193 = vmatpush3.bf16.msra.mxu1 %v760_v35 }
 0x11c   : > { %1194 = vmatprep.subr.bf16.mxu1 %v761_v34 }
 0x11f   : > { %1195 = vmatpush3.bf16.msra.mxu1 %v761_v34 }
 0x120   : > { %1211 = vmatprep.subr.bf16.mxu1 %v1376_v37 }
 0x122   : > { %1197 = vmatmul.mubr.msk.bf16.vlgmr.msra.gmra.mrb[0].mxu1 %vm796_vm1, %v1292_v36 }
 0x123   : > { %1208 = vmatprep.mubr.msk.f32.mxu1 %vm1377_vm2, %v1378_v38 }
 0x1f5   : > { %v1198_v42 = vpop.f32.mrb[0].mxu1 }
 0x1f6   : > { %v846_v43 = vadd.f32 %v1198_v42, %v779_v41  ;;  %v837_v44 = vpop.f32.mrb[1].mxu1 }
 0x1f7   : > { %v838_v46 = vadd.f32 %v837_v44, %v769_v39  ;;  %v1199_v47 = vpop.f32.mrb[2].mxu1 }
 0x1f8   : > { %v854_v48 = vmax.f32 %v846_v43, 0.0  ;;  %v849_v49 = vadd.f32 %v1199_v47, %v784_v45  ;;  %v840_v51 = vpop.f32.mrb[3].mxu1 }
 0x1f9   : > { %v852_v52 = vmax.f32 %v838_v46, 0.0  ;;  %v841_v53 = vadd.f32 %v840_v51, %v774_v40 }
 0x1fa   : > { %858 = vst [vmem:[%s498_s16 + $0x10] sm:$0xff] %v854_v48  ;;  %v855_v54 = vmax.f32 %v849_v49, 0.0 }
 0x1fb   : > { %856 = vst [vmem:[%s498_s16] sm:$0xff] %v852_v52  ;;  %v853_v55 = vmax.f32 %v841_v53, 0.0 }
 0x1fc   : > { %859 = vst [vmem:[%s498_s16 + $0x18] sm:$0xff] %v855_v54  ;;  %v1215_v56 = vpack.c.bf16 %v855_v54, %v854_v48 }
 0x1fd   : > { %857 = vst [vmem:[%s498_s16 + $0x8] sm:$0xff] %v853_v55  ;;  %v1212_v57 = vpack.c.bf16 %v853_v55, %v852_v52  ;;  %s1379_s16 = smov [#allocation2]  }
 0x1fe   : > { %s1297_s25 = sshll.u32 %s1379_s16, 4  ;;  %s1298_s25 = int_to_ptr.vmem [resolvable:$false] %s1297_s25 }
 0x1ff   : > { %1213 = vmatpush3.bf16.msra.mxu1 %v1212_v57  ;;  %s1299_s30 = scalar_lea.vmem %s1298_s25, 1024  ;;  %p1300_p1 = scmp.lt.s32.totalorder %s1589_s14, %s1298_s25 }
 0x200   : > { %1214 = vmatprep.subr.bf16.mxu1 %v1376_v37  ;;  %p1301_p2 = scmp.lt.s32.totalorder %s1299_s30, %s1293_s28 }
 0x202   : > { %p1302_p3 = por %p1301_p2, %p1300_p1 }
 0x203   : > { %1216 = vmatpush3.bf16.msra.mxu1 %v1215_v56 }
 0x204   : > { %p1303_p5 = pnand %p1302_p3, %p1296_p0 }
 0x206   : > { %1209 = vmatmul.mubr.msk.f32.vlgmr.msra.gmra.mrb[4].mxu1 %vm796_vm1, %v860_v58 }
 0x207   : > { %1306 = shalt.err (!%p1303_p5)
}
 0x208   : > { %s1307_s24 = scalar_lea.hbm %s1595_s27, 512  ;;  %s1311_s18 = scalar_lea.hbm %s1662_s11, 1024 }
 0x209   : > { %p1308_p6 = scmp.ne.s32.totalorder %s1595_s27, %s1307_s24  ;;  %p1312_p10 = scmp.lt.u32.totalorder %s1595_s27, %s1662_s11 }
 0x20a   : > { %p1313_p11 = scmp.lt.u32.totalorder %s1311_s18, %s1307_s24  ;;  %p1315_p13 = scmp.lt.u32.totalorder %s1307_s24, %s1595_s27 }
 0x20b   : > { %p1309_p7 = pnand %p1308_p6, %p1487_p4 }
 0x20c   : > { %p1314_p12 = por %p1313_p11, %p1312_p10 }
 0x20d   : > { %p1310_p9 = pneg %p1309_p7 }
 0x20e   : > { %p1316_p0 = por %p1315_p13, %p1314_p12 }
 0x210   : > { %p1317_p1 = pnand %p1316_p0, %p1310_p9 }
 0x212   : > { %1320 = shalt.err (!%p1317_p1)
}
 0x213   : > { %s1380_s28 = smov 128   ;;  %s1381_s25 = smov 8   ;;  %v865_v59 = vpop.permute.xlu1 %864 }
 0x214   : > { %1217 = dma.vmem_to_hbm [thread:$0]  (%p1487_p4), %s1589_s14, 512, %s1595_s27, %s1599_s29, %s1380_s28, %s1380_s28, %s1381_s25  }
 0x215   : > { %s1674_s30 = sshll.u32 %s1507_s19, 2 }
 0x216   : > { %s545_s24 = scalar_lea.vmem %s1663_s12, %s1674_s30 }
 0x2d9   : > { %v936_v60 = vpop.f32.mrb[4].mxu1 }
 0x2da   : > { %v937_v61 = vadd.f32 %v936_v60, %v865_v59  ;;  %v1210_v62 = vpop.f32.mrb[5].mxu1 }
 0x2dc   : > { %v940_v63 = vadd.f32 %v937_v61, %v1573_v50 }
 0x2de   : > { %941 = vst [vmem:[%s545_s24] sm:$0x7] %v940_v63 }
 0x2df PF: > { %p1223_p2 = scmp.ge.s32.totalorder %s1371_s26, 2  ;;  %s982_s18 = sand.u32 1, %s1351_s21  }
 0x2e0   : > { %s983_s13 = scalar_lea.sflag [#allocation3], %s982_s18 }
 0x2e1   : > { %p1220_p4 = pnand %p1223_p2, %p1494_p8 }
 0x2e3   : > { %1346 = dma.done.wait (!%p1220_p4), %s983_s13, 512  }
 0x2e4   : > { %1348 = vsyncadd (!%p1220_p4), %s983_s13, 4294966784  ;;  %s26_s26 = sadd.s32 1, %s1371_s26   ;;  %s1675_s19 = sld [smem:[#allocation5_spill]] }
 0x2e5   : > { %p23_p3 = scmp.ge.s32.totalorder %s26_s26, 4   ;;  %s1676_s23 = sld [smem:[#allocation8_spill]] }
 0x2e6   : > { %s1677_s24 = sld [smem:[#allocation6_spill]]  ;;  %s1678_s25 = sld [smem:[#allocation7_spill]] }
 0x2e7   : > { %s1679_s21 = smov %s1355_s22  ;;  %25 = sbr.rel (!%p23_p3) target bundleno = 4 (0x4), region = 120 }
 0x2ea   : > { %s1680_s22 = smov %s1675_s19 }
 0x2ee   :  { %998 = vsyncpa [#allocation3], 1 }
 0x2ef   :  { %1000 = vsyncpa [#allocation3 + $0x1], 1 }

// kernel: _lambda_.6
= control target key start
LH: loop header
LB: loop body
LE: loop exit
PB: predicated region body
PF: predicated region fallthrough
CT: control target
= control target key end

     0   :  { %s2476_s21 = smov 0   ;;  %s2478_s22 = smov 0   ;;  %s3476_s0 = inlined_call_operand.vmem [shape: f32[4,32,128], index: 0, kind: input, shape index: {}]   ;;  %s3477_s1 = inlined_call_operand.vmem [shape: f32[4,3,128], index: 1, kind: input, shape index: {}]   ;;  %s3478_s2 = inlined_call_operand.vmem [shape: bf16[4,8,32,128], index: 2, kind: input, shape index: {}]   ;;  %s3479_s3 = inlined_call_operand.vmem [shape: f32[4,8,3,128], index: 3, kind: input, shape index: {}]   ;;  %s3480_s4 = inlined_call_operand.vmem [shape: bf16[32,32], index: 4, kind: input, shape index: {}]   ;;  %s3481_s5 = inlined_call_operand.vmem [shape: bf16[32,32], index: 5, kind: input, shape index: {}]   ;;  %s3482_s6 = inlined_call_operand.vmem [shape: f32[32,3], index: 6, kind: input, shape index: {}]   ;;  %s3483_s7 = inlined_call_operand.vmem [shape: f32[32,1], index: 7, kind: input, shape index: {}, may-alias: {7,9,11}]   ;;  %s3484_s8 = inlined_call_operand.vmem [shape: bf16[32,32], index: 8, kind: input, shape index: {}]   ;;  %s3485_s9 = inlined_call_operand.vmem [shape: f32[32,1], index: 9, kind: input, shape index: {}, may-alias: {7,9,11}]   ;;  %s3486_s10 = inlined_call_operand.vmem [shape: bf16[32,32], index: 10, kind: input, shape index: {}]   ;;  %s3487_s11 = inlined_call_operand.vmem [shape: f32[32,1], index: 11, kind: input, shape index: {}, may-alias: {7,9,11}]   ;;  %s3488_s12 = inlined_call_operand.vmem [shape: f32[4,32,128], index: 12, kind: output, shape index: {}]  }
   0x1   :  { %s2480_s23 = smov 0  }
   0x2 LB: > { %s34_s24 = sadd.s32 1, %s2402_s22  ;;  %p2209_p0 = scmp.ge.s32.totalorder %s2406_s23, 1  ;;  %s2406_s23 = sphi %s2480_s23, %s22_s23   ;;  %s2402_s22 = sphi %s2478_s22, %s3610_s22   ;;  %s2398_s21 = sphi %s2476_s21, %s3609_s21  }
   0x3   : > { %p36_p1 = scmp.ge.s32.totalorder %s34_s24, 4  ;;  %p425_p2 = scmp.lt.s32.totalorder %s2406_s23, 5 }
   0x5   : > { %s3612_s24 = smov (%p36_p1, %s34_s24), 0  ;;  %p426_p3 = pnand %p2209_p0, %p425_p2 }
   0x7   : > { %429 = sbr.rel (%p426_p3) target bundleno = 772 (0x304), region = 68 }
   0xe   : > { %p496_p4 = scmp.lt.s32.totalorder %s2398_s21, 3  ;;  %v2364_v0 = vld [vmem:[%s3480_s4] sm:$0xff]   ;;  %vm585_vm0 = vcmask 261120   ;;  %v3489_v1 = vmov 0   ;;  %v2519_v3 = vld [vmem:[%s3482_s6 + $0x8] sm:$0xff]  ;;  %v2409_v19 = vmov 1   ;;  %v661_v48 = vlaneseq }
   0xf   : > { %2318 = vmatprep.mubr.msk.bf16.mxu0 %vm585_vm0, %v2364_v0  ;;  %931 = vmatprep.mubr.bf16.mxu1 %v3489_v1  ;;  %v2509_v2 = vld [vmem:[%s3482_s6] sm:$0xff]  ;;  %v552_v10 = vld [vmem:[%s3483_s7 + $0x8] sm:$0xff]  ;;  %v554_v20 = vld [vmem:[%s3483_s7 + $0x18] sm:$0xff]  ;;  %v2410_v34 = vmov 2  }
  0x10   : > { %s3614_s21 = smov (!%p496_p4, %s2398_s21), 3  ;;  %2350 = vset.pattern.permute.xlu1 %v3489_v1  ;;  %2349 = vset.pattern.permute.xlu0 %v3489_v1  ;;  %v551_v4 = vld [vmem:[%s3483_s7] sm:$0xff]  ;;  %v2365_v16 = vld [vmem:[%s3480_s4 + $0x8] sm:$0xff]   ;;  %v553_v27 = vld [vmem:[%s3483_s7 + $0x10] sm:$0xff]  ;;  %v662_v49 = vshrl.u32 %v661_v48, 7 }
  0x11   : > { %s2504_s27 = sshll.u32 %s3614_s21, 5  ;;  %643 = vperm.xlu1 %2350, %v2509_v2   ;;  %s2307_s19 = sshll.u32 %s3614_s21, 7  ;;  %557 = vperm.xlu0 %2349, %v551_v4   ;;  %v2366_v17 = vld [vmem:[%s3481_s5] sm:$0xff]   ;;  %v2371_v30 = vld [vmem:[%s3481_s5 + $0x8] sm:$0xff]   ;;  %v545_v32 = vld [vmem:[%s3482_s6 + $0x10] sm:$0xff] }
  0x12   : > { %s503_s14 = scalar_lea.vmem %s3476_s0, %s2504_s27  ;;  %s2528_s26 = scalar_lea.vmem %s3478_s2, %s2307_s19  ;;  %v546_v36 = vld [vmem:[%s3482_s6 + $0x18] sm:$0xff]  ;;  %v1451_v37 = vld [vmem:[%s3485_s9] sm:$0xff]  ;;  %v1452_v38 = vld [vmem:[%s3485_s9 + $0x8] sm:$0xff]  ;;  %v663_v53 = vsub.s32 0, %v662_v49  ;;  %v691_v58 = vsub.s32 1, %v662_v49 }
  0x13   : > { %v536_v5 = vld [vmem:[%s503_s14] sm:$0xff]  ;;  %v537_v6 = vld [vmem:[%s503_s14 + $0x8] sm:$0xff]  ;;  %v538_v7 = vld [vmem:[%s503_s14 + $0x10] sm:$0xff]  ;;  %s2212_s16 = sshll.u32 %s3614_s21, 2  ;;  %s526_s28 = scalar_lea.vmem %s3479_s3, %s2504_s27 }
  0x14   : > { %v540_v8 = vpack.c.bf16 %v537_v6, %v536_v5  ;;  %v539_v9 = vld [vmem:[%s503_s14 + $0x18] sm:$0xff]  ;;  %v2360_v11 = vld [vmem:[%s2528_s26 + $0x10] sm:$0xff]   ;;  %v2361_v13 = vld [vmem:[%s2528_s26] sm:$0xff]   ;;  %s510_s19 = scalar_lea.vmem %s3477_s1, %s2212_s16 }
  0x15   : > { %v541_v12 = vpack.c.bf16 %v539_v9, %v538_v7  ;;  %648 = vperm.xlu1 %2350, %v2519_v3   ;;  %899 = vmatprep.subr.bf16.mxu1 %v2360_v11  ;;  %v2362_v14 = vld [vmem:[%s2528_s26 + $0x18] sm:$0xff]   ;;  %v2363_v15 = vld [vmem:[%s2528_s26 + $0x8] sm:$0xff]   ;;  %v2367_v18 = vld [vmem:[%s2528_s26 + $0x30] sm:$0xff]  }
  0x16   : > { %2314 = vmatprep.subr.bf16.mxu0 %v540_v8  ;;  %900 = vmatpush1.bf16.msra.mxu1 %v2361_v13  ;;  %v2368_v21 = vld [vmem:[%s2528_s26 + $0x20] sm:$0xff]   ;;  %v2369_v22 = vld [vmem:[%s2528_s26 + $0x38] sm:$0xff]   ;;  %v2370_v23 = vld [vmem:[%s2528_s26 + $0x28] sm:$0xff]  }
  0x17   : > { %2315 = vmatpush3.bf16.msra.mxu0 %v540_v8  ;;  %901 = vmatprep.subr.bf16.mxu1 %v2362_v14  ;;  %v2372_v24 = vld [vmem:[%s2528_s26 + $0x50] sm:$0xff]   ;;  %v2373_v25 = vld [vmem:[%s2528_s26 + $0x40] sm:$0xff]   ;;  %v2374_v26 = vld [vmem:[%s2528_s26 + $0x58] sm:$0xff]  }
  0x18   : > { %2316 = vmatprep.subr.bf16.mxu0 %v541_v12  ;;  %562 = vperm.xlu0 %2349, %v552_v10   ;;  %v2376_v28 = vld [vmem:[%s2528_s26 + $0x70] sm:$0xff]   ;;  %v2375_v29 = vld [vmem:[%s2528_s26 + $0x48] sm:$0xff]   ;;  %v2377_v31 = vld [vmem:[%s2528_s26 + $0x60] sm:$0xff]  }
  0x19   : > { %2351 = vset.pattern.permute.xlu1 %v2409_v19  ;;  %v2378_v33 = vld [vmem:[%s2528_s26 + $0x78] sm:$0xff]   ;;  %v2379_v35 = vld [vmem:[%s2528_s26 + $0x68] sm:$0xff]   ;;  %v1453_v41 = vld [vmem:[%s3485_s9 + $0x10] sm:$0xff] }
  0x1a   : > { %678 = vperm.xlu1 %2351, %v2519_v3   ;;  %902 = vmatpush1.bf16.msra.mxu1 %v2363_v15  ;;  %v1454_v40 = vld [vmem:[%s3485_s9 + $0x18] sm:$0xff]  ;;  %v1756_v42 = vld [vmem:[%s3487_s11 + $0x8] sm:$0xff]  ;;  %v1755_v44 = vld [vmem:[%s3487_s11] sm:$0xff] }
  0x1b   : > { %2317 = vmatpush3.bf16.msra.mxu0 %v541_v12  ;;  %1005 = vmatprep.subr.bf16.mxu1 %v2372_v24  ;;  %v1758_v45 = vld [vmem:[%s3487_s11 + $0x18] sm:$0xff]  ;;  %v1757_v46 = vld [vmem:[%s3487_s11 + $0x10] sm:$0xff]  ;;  %v542_v52 = vld [vmem:[%s510_s19] sm:$0x7]  ;;  %s3454_s19 = scalar_lea.vmem %s3488_s12, %s2504_s27 }
  0x1c   : > { %952 = vmatprep.subr.bf16.mxu0 %v2367_v18  ;;  %572 = vperm.xlu0 %2349, %v554_v20   ;;  %v864_v54 = vld [vmem:[%s526_s28] sm:$0x7]  ;;  %v2267_v55 = vld [vmem:[%s526_s28 + $0x4] sm:$0x7]  ;;  %v2268_v56 = vld [vmem:[%s526_s28 + $0x8] sm:$0x7]  ;;  %v2642_v0 = vrot.slane %v542_v52, %v663_v53  ;;  %v2656_v10 = vrot.slane %v542_v52, %v691_v58 }
  0x1d   : > { %2276 = vmatmul.mubr.msk.bf16.vlgmr.msra.gmra.mrb[0].mxu1 %vm585_vm0, %v2366_v17  ;;  %v2269_v57 = vld [vmem:[%s526_s28 + $0xc] sm:$0x7]  ;;  %v2270_v59 = vld [vmem:[%s526_s28 + $0x10] sm:$0x7]  ;;  %v2271_v60 = vld [vmem:[%s526_s28 + $0x14] sm:$0x7]  ;;  %v2646_v4 = vrot.slane %v2267_v55, %v663_v53  ;;  %v2648_v5 = vrot.slane %v2268_v56, %v663_v53  ;;  %v2658_v11 = vrot.slane %v864_v54, %v691_v58  ;;  %v2660_v12 = vrot.slane %v2267_v55, %v691_v58 }
  0x1e   : > { %2319 = vmatmul.mubr.msk.bf16.vlgmr.msra.gmra.mrb[0].mxu0 %vm585_vm0, %v2365_v16  ;;  %941 = vmatprep.mubr.bf16.mxu1 %v3489_v1  ;;  %v2272_v63 = vld [vmem:[%s526_s28 + $0x18] sm:$0x7]  ;;  %v2650_v6 = vrot.slane %v2269_v57, %v663_v53  ;;  %v2652_v7 = vrot.slane %v2270_v59, %v663_v53  ;;  %v2654_v8 = vrot.slane %v2271_v60, %v663_v53  ;;  %v2273_v9 = vld [vmem:[%s526_s28 + $0x1c] sm:$0x7] }
  0x1f   : > { %953 = vmatpush1.bf16.msra.mxu0 %v2368_v21  ;;  %984 = vmatprep.mubr.bf16.mxu0 %v3489_v1  ;;  %v2662_v13 = vrot.slane %v2272_v63, %v663_v53  ;;  %v2664_v14 = vrot.slane %v2268_v56, %v691_v58  ;;  %v2666_v15 = vrot.slane %v2269_v57, %v691_v58 }
  0x20   : > { %954 = vmatprep.subr.bf16.mxu0 %v2369_v22  ;;  %1006 = vmatpush1.bf16.msra.mxu1 %v2373_v25  ;;  %v2668_v16 = vrot.slane %v2270_v59, %v691_v58  ;;  %v2676_v20 = vrot.slane %v2273_v9, %v663_v53  ;;  %v2678_v21 = vrot.slane %v2273_v9, %v691_v58 }
  0x21   : > { %2352 = vset.pattern.permute.xlu1 %v3489_v1  ;;  %1007 = vmatprep.subr.bf16.mxu1 %v2374_v26 }
  0x22   : > { %567 = vperm.xlu1 %2352, %v553_v27   ;;  %2353 = vset.pattern.permute.xlu0 %v2410_v34 }
  0x23   : > { %955 = vmatpush1.bf16.msra.mxu0 %v2370_v23  ;;  %702 = vperm.xlu0 %2353, %v2509_v2  }
  0x24   : > { %1058 = vmatprep.subr.bf16.mxu0 %v2376_v28  ;;  %1008 = vmatpush1.bf16.msra.mxu1 %v2375_v29 }
  0x25   : > { %2277 = vmatmul.mubr.msk.bf16.gmra.mrb[4].mxu1 %vm585_vm0, %v2371_v30 }
  0x26   : > { %2278 = vmatmul.mubr.msk.bf16.vlgmr.msra.gmra.mrb[4].mxu0 %vm585_vm0, %v2366_v17  ;;  %1037 = vmatprep.mubr.bf16.mxu1 %v3489_v1 }
  0x27   : > { %994 = vmatprep.mubr.bf16.mxu0 %v3489_v1  ;;  %1059 = vmatpush1.bf16.msra.mxu0 %v2377_v31 }
  0x28   : > { %1060 = vmatprep.subr.bf16.mxu0 %v2378_v33  ;;  %653 = vperm.xlu1 %2352, %v545_v32  }
  0x29   : > { %2354 = vset.pattern.permute.xlu0 %v2409_v19 }
  0x2a   : > { %674 = vperm.xlu0 %2354, %v2509_v2   ;;  %v719_v2 = vsub.s32 2, %v662_v49 }
  0x2b   : > { %1061 = vmatpush1.bf16.msra.mxu0 %v2379_v35 }
  0x2c   : > { %658 = vperm.xlu1 %2352, %v546_v36   ;;  %v2672_v18 = vrot.slane %v542_v52, %v719_v2  ;;  %v2684_v24 = vrot.slane %v864_v54, %v719_v2  ;;  %v2686_v25 = vrot.slane %v2268_v56, %v719_v2  ;;  %v2688_v26 = vrot.slane %v2270_v59, %v719_v2 }
  0x2d   : > { %2280 = vmatmul.mubr.msk.bf16.vlgmr.msra.gmra.mrb[8].mxu1 %vm585_vm0, %v2366_v17  ;;  %v2690_v27 = vrot.slane %v2272_v63, %v719_v2  ;;  %v2692_v28 = vrot.slane %v2267_v55, %v719_v2  ;;  %v2694_v29 = vrot.slane %v2269_v57, %v719_v2  ;;  %v2698_v31 = vrot.slane %v2273_v9, %v719_v2 }
  0x2e   : > { %2279 = vmatmul.mubr.msk.bf16.gmra.mrb[8].mxu0 %vm585_vm0, %v2371_v30  ;;  %1047 = vmatprep.mubr.bf16.mxu1 %v3489_v1 }
  0x2f   : > { %1090 = vmatprep.mubr.bf16.mxu0 %v3489_v1  ;;  %686 = vperm.xlu0 %2354, %v546_v36  }
  0x30   : > { %2355 = vset.pattern.permute.xlu1 %v2410_v34 }
  0x31   : > { %706 = vperm.xlu1 %2355, %v2519_v3   ;;  %v2644_v3 = vrot.slane %v864_v54, %v663_v53 }
  0x33   : > { %2358 = vset.pattern.permute.xlu0 %v3489_v1 }
  0x34   : > { %1457 = vperm.xlu0 %2358, %v1451_v37  }
  0x35   : > { %2356 = vset.pattern.permute.xlu1 %v2409_v19  ;;  %2281 = vmatmul.mubr.msk.bf16.gmra.mrb[12].mxu1 %vm585_vm0, %v2371_v30  ;;  %v2674_v19 = vrot.slane %v2272_v63, %v691_v58 }
  0x36   : > { %2282 = vmatmul.mubr.msk.bf16.vlgmr.msra.gmra.mrb[12].mxu0 %vm585_vm0, %v2366_v17  ;;  %682 = vperm.xlu1 %2356, %v545_v32   ;;  %v2670_v17 = vrot.slane %v2271_v60, %v691_v58 }
  0x37   : > { %1100 = vmatprep.mubr.bf16.mxu0 %v3489_v1  ;;  %1523 = vmatprep.mubr.bf16.mxu1 %v3489_v1 }
  0x38   : > { %1472 = vperm.xlu0 %2358, %v1454_v40  }
  0x3a   : > { %2357 = vset.pattern.permute.xlu1 %v2410_v34 }
  0x3b   : > { %710 = vperm.xlu1 %2357, %v545_v32  }
  0x3c   : > { %1766 = vperm.xlu0 %2358, %v1756_v42  }
  0x3e   : > { %2283 = vmatmul.mubr.msk.bf16.gmra.mrb[16].mxu0 %vm585_vm0, %v2371_v30  ;;  %v2696_v30 = vrot.slane %v2271_v60, %v719_v2 }
  0x3f   : > { %1576 = vmatprep.mubr.bf16.mxu0 %v3489_v1  ;;  %714 = vperm.xlu1 %2357, %v546_v36  }
  0x40   : > { %1776 = vperm.xlu0 %2358, %v1758_v45  }
  0x43   : > { %2359 = vset.pattern.permute.xlu1 %v3489_v1 }
  0x44   : > { %1462 = vperm.xlu1 %2359, %v1452_v38  }
  0x48   : > { %1467 = vperm.xlu1 %2359, %v1453_v41  }
  0x4c   : > { %1761 = vperm.xlu1 %2359, %v1755_v44  }
  0x50   : > { %1771 = vperm.xlu1 %2359, %v1757_v46  }
  0x90   : > { %v2602_v39 = vpop.permute.xlu1 %643  ;;  %v2634_v50 = vpop.permute.xlu0 %557 }
  0x91   : > { %v2702_v32 = vmul.f32 %v2642_v0, %v2602_v39  ;;  %v2706_v33 = vmul.f32 %v2644_v3, %v2602_v39  ;;  %v2710_v34 = vmul.f32 %v2646_v4, %v2602_v39  ;;  %v2714_v35 = vmul.f32 %v2648_v5, %v2602_v39 }
  0x92   : > { %v2718_v36 = vmul.f32 %v2650_v6, %v2602_v39  ;;  %v2722_v37 = vmul.f32 %v2652_v7, %v2602_v39  ;;  %v2726_v38 = vmul.f32 %v2654_v8, %v2602_v39  ;;  %v2730_v40 = vmul.f32 %v2662_v13, %v2602_v39 }
  0x93   : > { %v2748_v48 = vmul.f32 %v2676_v20, %v2602_v39 }
  0x94   : > { %v2613_v43 = vpop.permute.xlu1 %648  ;;  %3491 = vst [vmem:[#allocation2_spill] sm:$0xff] %v2722_v37  ;;  %3492 = vst [vmem:[#allocation3_spill] sm:$0xff] %v2726_v38 }
  0x95   : > { %3493 = vst [vmem:[#allocation4_spill] sm:$0xff] %v2730_v40  ;;  %v2736_v44 = vmul.f32 %v2642_v0, %v2613_v43  ;;  %v2740_v45 = vmul.f32 %v2644_v3, %v2613_v43  ;;  %v2744_v46 = vmul.f32 %v2646_v4, %v2613_v43  ;;  %3494 = vst [vmem:[#allocation5_spill] sm:$0xff] %v2748_v48 }
  0x96   : > { %v2752_v49 = vmul.f32 %v2648_v5, %v2613_v43  ;;  %v2756_v52 = vmul.f32 %v2650_v6, %v2613_v43  ;;  %v2760_v53 = vmul.f32 %v2652_v7, %v2613_v43  ;;  %v2764_v54 = vmul.f32 %v2654_v8, %v2613_v43 }
  0x97   : > { %v2638_v61 = vpop.permute.xlu0 %562  ;;  %v2776_v56 = vmul.f32 %v2662_v13, %v2613_v43  ;;  %v2780_v57 = vmul.f32 %v2676_v20, %v2613_v43 }
  0x98   : > { %3495 = vst [vmem:[#allocation6_spill] sm:$0xff] %v2756_v52  ;;  %3496 = vst [vmem:[#allocation7_spill] sm:$0xff] %v2760_v53 }
  0x99   : > { %v2624_v47 = vpop.permute.xlu1 %678  ;;  %3497 = vst [vmem:[#allocation8_spill] sm:$0xff] %v2764_v54  ;;  %3498 = vst [vmem:[#allocation9_spill] sm:$0xff] %v2776_v56 }
  0x9a   : > { %v2768_v39 = vmul.f32 %v2656_v10, %v2624_v47  ;;  %v2772_v55 = vmul.f32 %v2658_v11, %v2624_v47  ;;  %3499 = vst [vmem:[#allocation10_spill] sm:$0xff] %v2780_v57  ;;  %v2784_v58 = vmul.f32 %v2660_v12, %v2624_v47  ;;  %v2788_v59 = vmul.f32 %v2664_v14, %v2624_v47 }
  0x9b   : > { %v2680_v22 = vpop.permute.xlu0 %572  ;;  %v2792_v60 = vmul.f32 %v2666_v15, %v2624_v47  ;;  %v2796_v63 = vmul.f32 %v2668_v16, %v2624_v47  ;;  %v2804_v2 = vmul.f32 %v2670_v17, %v2624_v47  ;;  %v2808_v9 = vmul.f32 %v2674_v19, %v2624_v47 }
  0x9c   : > { %3500 = vst [vmem:[#allocation11_spill] sm:$0xff] %v2788_v59  ;;  %v2812_v1 = vmul.f32 %v2678_v21, %v2624_v47 }
  0x9d   : > { %3501 = vst [vmem:[#allocation12_spill] sm:$0xff] %v2792_v60  ;;  %3502 = vst [vmem:[#allocation13_spill] sm:$0xff] %v2796_v63 }
  0x9e   : > { %3503 = vst [vmem:[#allocation14_spill] sm:$0xff] %v2804_v2  ;;  %3504 = vst [vmem:[#allocation15_spill] sm:$0xff] %v2808_v9 }
  0x9f   : > { %3505 = vst [vmem:[#allocation16_spill] sm:$0xff] %v2812_v1 }
  0xa1   : > { %v2636_v51 = vpop.permute.xlu1 %567 }
  0xa2   : > { %v703_v42 = vpop.permute.xlu0 %702 }
  0xa3   : > { %v2815_v57 = vmul.f32 %v2672_v18, %v703_v42  ;;  %v2832_v47 = vmul.f32 %v2684_v24, %v703_v42  ;;  %v2835_v1 = vmul.f32 %v2686_v25, %v703_v42  ;;  %v2838_v54 = vmul.f32 %v2688_v26, %v703_v42 }
  0xa4   : > { %v2849_v38 = vmul.f32 %v2690_v27, %v703_v42  ;;  %v2852_v60 = vmul.f32 %v2692_v28, %v703_v42  ;;  %v2855_v37 = vmul.f32 %v2694_v29, %v703_v42 }
  0xa5   : > { %3507 = vst [vmem:[#allocation18_spill] sm:$0xff] %v2838_v54 }
  0xa6   : > { %3510 = vst [vmem:[#allocation21_spill] sm:$0xff] %v2849_v38  ;;  %3511 = vst [vmem:[#allocation22_spill] sm:$0xff] %v2852_v60  ;;  %v2870_v38 = vmul.f32 %v2696_v30, %v703_v42 }
  0xa7   : > { %v2640_v62 = vpop.permute.xlu1 %653  ;;  %3512 = vst [vmem:[#allocation23_spill] sm:$0xff] %v2855_v37 }
  0xa8   : > { %v2800_v43 = vmul.f32 %v2642_v0, %v2640_v62  ;;  %v2819_v56 = vmul.f32 %v2644_v3, %v2640_v62  ;;  %v2823_v48 = vmul.f32 %v2646_v4, %v2640_v62  ;;  %v2827_v2 = vmul.f32 %v2648_v5, %v2640_v62  ;;  %3515 = vst [vmem:[#allocation26_spill] sm:$0xff] %v2870_v38 }
  0xa9   : > { %v675_v40 = vpop.permute.xlu0 %674  ;;  %v2842_v63 = vmul.f32 %v2650_v6, %v2640_v62  ;;  %v2846_v53 = vmul.f32 %v2652_v7, %v2640_v62 }
  0xaa   : > { %3506 = vst [vmem:[#allocation17_spill] sm:$0xff] %v2827_v2  ;;  %v2905_v38 = vmul.f32 %v2656_v10, %v675_v40  ;;  %v2966_v2 = vmul.f32 %v2678_v21, %v675_v40 }
  0xab   : > { %v2682_v23 = vpop.permute.xlu1 %658  ;;  %3508 = vst [vmem:[#allocation19_spill] sm:$0xff] %v2842_v63  ;;  %3509 = vst [vmem:[#allocation20_spill] sm:$0xff] %v2846_v53  ;;  %v2863_v63 = vmul.f32 %v2654_v8, %v2640_v62  ;;  %v2867_v53 = vmul.f32 %v2662_v13, %v2640_v62 }
  0xac   : > { %v2859_v54 = vmul.f32 %v2642_v0, %v2682_v23  ;;  %v2874_v60 = vmul.f32 %v2644_v3, %v2682_v23  ;;  %v2878_v37 = vmul.f32 %v2646_v4, %v2682_v23  ;;  %v2882_v0 = vmul.f32 %v2648_v5, %v2682_v23  ;;  %3532 = vst [vmem:[#allocation43_spill] sm:$0xff] %v2966_v2 }
  0xad   : > { %3513 = vst [vmem:[#allocation24_spill] sm:$0xff] %v2863_v63  ;;  %3514 = vst [vmem:[#allocation25_spill] sm:$0xff] %v2867_v53  ;;  %v2886_v63 = vmul.f32 %v2650_v6, %v2682_v23  ;;  %v2890_v53 = vmul.f32 %v2652_v7, %v2682_v23  ;;  %v2894_v3 = vmul.f32 %v2654_v8, %v2682_v23 }
  0xae   : > { %3516 = vst [vmem:[#allocation27_spill] sm:$0xff] %v2882_v0  ;;  %v2898_v4 = vmul.f32 %v2676_v20, %v2640_v62  ;;  %v2902_v5 = vmul.f32 %v2662_v13, %v2682_v23  ;;  %v2908_v6 = vmul.f32 %v2658_v11, %v675_v40  ;;  %v2912_v7 = vmul.f32 %v2676_v20, %v2682_v23  ;;  %v687_v62 = vpop.permute.xlu0 %686 }
  0xaf   : > { %3517 = vst [vmem:[#allocation28_spill] sm:$0xff] %v2886_v63  ;;  %3518 = vst [vmem:[#allocation29_spill] sm:$0xff] %v2890_v53  ;;  %v2915_v8 = vmul.f32 %v2698_v31, %v703_v42  ;;  %v2923_v13 = vmul.f32 %v2664_v14, %v675_v40  ;;  %v2929_v53 = vmul.f32 %v2668_v16, %v675_v40 }
  0xb0   : > { %v2732_v41 = vpop.permute.xlu1 %706  ;;  %3519 = vst [vmem:[#allocation30_spill] sm:$0xff] %v2894_v3  ;;  %3520 = vst [vmem:[#allocation31_spill] sm:$0xff] %v2898_v4  ;;  %v2920_v4 = vmul.f32 %v2660_v12, %v675_v40  ;;  %v2940_v42 = vmul.f32 %v2670_v17, %v675_v40  ;;  %v2982_v59 = vmul.f32 %v2668_v16, %v687_v62 }
  0xb1   : > { %3521 = vst [vmem:[#allocation32_spill] sm:$0xff] %v2902_v5  ;;  %3522 = vst [vmem:[#allocation33_spill] sm:$0xff] %v2912_v7  ;;  %v2926_v5 = vmul.f32 %v2666_v15, %v675_v40  ;;  %v2933_v20 = vmul.f32 %v2672_v18, %v2732_v41  ;;  %v2937_v23 = vmul.f32 %v2684_v24, %v2732_v41 }
  0xb2   : > { %3523 = vst [vmem:[#allocation34_spill] sm:$0xff] %v2915_v8  ;;  %3524 = vst [vmem:[#allocation35_spill] sm:$0xff] %v2929_v53  ;;  %v2943_v7 = vmul.f32 %v2674_v19, %v675_v40  ;;  %v2947_v8 = vmul.f32 %v2686_v25, %v2732_v41  ;;  %v2951_v63 = vmul.f32 %v2688_v26, %v2732_v41 }
  0xb3   : > { %3525 = vst [vmem:[#allocation36_spill] sm:$0xff] %v2940_v42  ;;  %v2955_v0 = vmul.f32 %v2692_v28, %v2732_v41  ;;  %v2959_v53 = vmul.f32 %v2694_v29, %v2732_v41  ;;  %v696_v42 = vmul.f32 %v2656_v10, %v687_v62  ;;  %3537 = vst [vmem:[#allocation48_spill] sm:$0xff] %v2982_v59 }
  0xb4   : > { %3526 = vst [vmem:[#allocation37_spill] sm:$0xff] %v2943_v7  ;;  %3527 = vst [vmem:[#allocation38_spill] sm:$0xff] %v2947_v8  ;;  %v2963_v7 = vmul.f32 %v2658_v11, %v687_v62  ;;  %v2970_v8 = vmul.f32 %v2690_v27, %v2732_v41  ;;  %v2985_v52 = vmul.f32 %v2670_v17, %v687_v62 }
  0xb5   : > { %v2829_v9 = vpop.permute.xlu1 %682  ;;  %3528 = vst [vmem:[#allocation39_spill] sm:$0xff] %v2951_v63  ;;  %3529 = vst [vmem:[#allocation40_spill] sm:$0xff] %v2955_v0  ;;  %v2973_v63 = vmul.f32 %v2660_v12, %v687_v62  ;;  %v2976_v0 = vmul.f32 %v2664_v14, %v687_v62  ;;  %v2989_v40 = vmul.f32 %v2696_v30, %v2732_v41 }
  0xb6   : > { %3530 = vst [vmem:[#allocation41_spill] sm:$0xff] %v2959_v53  ;;  %3531 = vst [vmem:[#allocation42_spill] sm:$0xff] %v2963_v7  ;;  %v2979_v53 = vmul.f32 %v2666_v15, %v687_v62  ;;  %v2995_v2 = vmul.f32 %v2678_v21, %v687_v62  ;;  %v3003_v59 = vmul.f32 %v2658_v11, %v2829_v9 }
  0xb7   : > { %3533 = vst [vmem:[#allocation44_spill] sm:$0xff] %v2970_v8  ;;  %3534 = vst [vmem:[#allocation45_spill] sm:$0xff] %v2973_v63  ;;  %v2992_v8 = vmul.f32 %v2674_v19, %v687_v62  ;;  %v3020_v11 = vmul.f32 %v2666_v15, %v2829_v9  ;;  %v3037_v15 = vmul.f32 %v2678_v21, %v2829_v9 }
  0xb8   : > { %3535 = vst [vmem:[#allocation46_spill] sm:$0xff] %v2976_v0  ;;  %3536 = vst [vmem:[#allocation47_spill] sm:$0xff] %v2979_v53  ;;  %v695_v53 = vmul.f32 %v2656_v10, %v2829_v9  ;;  %v3016_v10 = vmul.f32 %v2664_v14, %v2829_v9  ;;  %v3033_v14 = vmul.f32 %v2674_v19, %v2829_v9 }
  0xb9   : > { %3538 = vst [vmem:[#allocation49_spill] sm:$0xff] %v2985_v52  ;;  %3539 = vst [vmem:[#allocation50_spill] sm:$0xff] %v2989_v40  ;;  %v3007_v52 = vmul.f32 %v2660_v12, %v2829_v9  ;;  %v3024_v12 = vmul.f32 %v2668_v16, %v2829_v9 }
  0xba   : > { %v2917_v3 = vpop.permute.xlu1 %710  ;;  %3540 = vst [vmem:[#allocation51_spill] sm:$0xff] %v2992_v8  ;;  %3541 = vst [vmem:[#allocation52_spill] sm:$0xff] %v2995_v2  ;;  %v3011_v8 = vmul.f32 %v2698_v31, %v2732_v41 }
  0xbb   : > { %3543 = vst [vmem:[#allocation54_spill] sm:$0xff] %v3024_v12  ;;  %3545 = vst [vmem:[#allocation56_spill] sm:$0xff] %v3033_v14  ;;  %v723_v16 = vmul.f32 %v2672_v18, %v2917_v3  ;;  %v3051_v21 = vmul.f32 %v2686_v25, %v2917_v3 }
  0xbc   : > { %3542 = vst [vmem:[#allocation53_spill] sm:$0xff] %v3011_v8  ;;  %3546 = vst [vmem:[#allocation57_spill] sm:$0xff] %v3037_v15 }
  0xbe   : > { %v2999_v63 = vpop.permute.xlu1 %714 }
  0xf0   : > { %v933_v40 = vpop.f32.mrb[0].mxu1 }
  0xf1   : > { %v2320_v0 = vpop.f32.mrb[0].mxu0  ;;  %v935_v8 = vpop.f32.mrb[1].mxu1 }
  0xf2   : > { %v635_v62 = vadd.f32 %v2320_v0, %v2636_v51  ;;  %v626_v2 = vpop.f32.mrb[1].mxu0  ;;  %v3029_v51 = vmul.f32 %v2670_v17, %v2829_v9  ;;  %v937_v12 = vpop.f32.mrb[2].mxu1  ;;  %v3045_v17 = vmul.f32 %v2684_v24, %v2917_v3 }
  0xf3   : > { %v627_v7 = vadd.f32 %v626_v2, %v2634_v50  ;;  %v2321_v41 = vpop.f32.mrb[2].mxu0 }
  0xf4   : > { %3544 = vst [vmem:[#allocation55_spill] sm:$0xff] %v3029_v51  ;;  %v671_v0 = vsub.f32 %v635_v62, %v2800_v43  ;;  %v638_v50 = vadd.f32 %v2321_v41, %v2680_v22  ;;  %v629_v2 = vpop.f32.mrb[3].mxu0  ;;  %v939_v51 = vpop.f32.mrb[3].mxu1  ;;  %v3055_v43 = vmul.f32 %v2688_v26, %v2917_v3  ;;  %v724_v62 = vmul.f32 %v2672_v18, %v2999_v63 }
  0xf5   : > { %v669_v19 = vsub.f32 %v627_v7, %v2702_v32  ;;  %v630_v14 = vadd.f32 %v629_v2, %v2638_v61  ;;  %v3062_v32 = vmul.f32 %v2692_v28, %v2917_v3  ;;  %v3068_v41 = vmul.f32 %v2690_v27, %v2917_v3 }
  0xf6   : > { %v699_v22 = vsub.f32 %v671_v0, %v695_v53  ;;  %v672_v9 = vsub.f32 %v638_v50, %v2859_v54  ;;  %v3072_v53 = vmul.f32 %v2694_v29, %v2917_v3  ;;  %v3078_v18 = vmul.f32 %v2696_v30, %v2917_v3 }
  0xf7   : > { %v697_v61 = vsub.f32 %v669_v19, %v2905_v38  ;;  %v670_v7 = vsub.f32 %v630_v14, %v2736_v44  ;;  %3547 = vst [vmem:[#allocation58_spill] sm:$0xff] %v3068_v41  ;;  %v3082_v38 = vmul.f32 %v2698_v31, %v2917_v3  ;;  %v3090_v2 = vmul.f32 %v2684_v24, %v2999_v63 }
  0xf8   : > { %v3074_v54 = vsub.f32 %v699_v22, %v723_v16  ;;  %v700_v0 = vsub.f32 %v672_v9, %v696_v42  ;;  %v3094_v42 = vmul.f32 %v2686_v25, %v2999_v63  ;;  %v943_v19 = vpop.f32.mrb[4].mxu1  ;;  %v3100_v3 = vmul.f32 %v2688_v26, %v2999_v63 }
  0xf9   : > { %3548 = vst [vmem:[#allocation59_spill] sm:$0xff] %v3082_v38  ;;  %v3085_v44 = vsub.f32 %v697_v61, %v2815_v57  ;;  %v698_v14 = vsub.f32 %v670_v7, %v2768_v39  ;;  %v986_v50 = vpop.f32.mrb[4].mxu0  ;;  %v3104_v39 = vmul.f32 %v2692_v28, %v2999_v63  ;;  %v3108_v24 = vmul.f32 %v2694_v29, %v2999_v63  ;;  %v945_v61 = vpop.f32.mrb[5].mxu1 }
  0xfa   : > { %v3096_v16 = vsub.f32 %v700_v0, %v724_v62  ;;  %v988_v22 = vpop.f32.mrb[5].mxu0  ;;  %v944_v62 = vadd.f32 %v943_v19, %v3074_v54  ;;  %v946_v28 = vadd.f32 %v945_v61, %v3074_v54  ;;  %v947_v38 = vpop.f32.mrb[6].mxu1  ;;  %v3132_v41 = vmul.f32 %v2696_v30, %v2999_v63 }
  0xfb   : > { %v3111_v57 = vsub.f32 %v698_v14, %v2933_v20  ;;  %v934_v25 = vadd.f32 %v933_v40, %v3085_v44  ;;  %v936_v9 = vadd.f32 %v935_v8, %v3085_v44  ;;  %v990_v26 = vpop.f32.mrb[6].mxu0  ;;  %v987_v7 = vadd.f32 %v986_v50, %v3085_v44  ;;  %v949_v15 = vpop.f32.mrb[7].mxu1 }
  0xfc   : > { %v989_v0 = vadd.f32 %v988_v22, %v3085_v44  ;;  %v992_v29 = vpop.f32.mrb[7].mxu0  ;;  %v3121_v20 = vmul.f32 %v2690_v27, %v2999_v63  ;;  %v1191_v50 = vadd.f32 %v2819_v56, %v944_v62  ;;  %v1192_v22 = vadd.f32 %v2823_v48, %v946_v28 }
  0xfd   : > { %v1175_v40 = vadd.f32 %v2706_v33, %v934_v25  ;;  %v1176_v8 = vadd.f32 %v2710_v34, %v936_v9  ;;  %v938_v14 = vadd.f32 %v937_v12, %v3111_v57  ;;  %v940_v19 = vadd.f32 %v939_v51, %v3111_v57 }
  0xfe   : > { %v1177_v61 = vadd.f32 %v2714_v35, %v987_v7  ;;  %v1178_v34 = vadd.f32 %v2718_v36, %v989_v0  ;;  %v3139_v12 = vmul.f32 %v2698_v31, %v2999_v63  ;;  %v1287_v48 = vadd.f32 %v3003_v59, %v1191_v50 }
  0xff   : > { %v1271_v27 = vadd.f32 %v2908_v6, %v1175_v40  ;;  %v1183_v33 = vadd.f32 %v2740_v45, %v938_v14  ;;  %v3142_v56 = vadd.f32 %v2920_v4, %v1176_v8  ;;  %v1184_v35 = vadd.f32 %v2744_v46, %v940_v19  ;;  %v3550_v40 = vld [vmem:[#allocation6_spill] sm:$0xff]  ;;  %v3551_v19 = vld [vmem:[#allocation11_spill] sm:$0xff] }
 0x100   : > { %v1273_v30 = vadd.f32 %v2923_v13, %v1177_v61  ;;  %v3152_v36 = vadd.f32 %v3007_v52, %v1192_v22  ;;  %v948_v31 = vadd.f32 %v947_v38, %v3096_v16  ;;  %v3156_v4 = vadd.f32 %v3045_v17, %v1287_v48  ;;  %v3552_v22 = vld [vmem:[#allocation17_spill] sm:$0xff] }
 0x101   : > { %v3148_v51 = vadd.f32 %v2832_v47, %v1271_v27  ;;  %v1279_v45 = vadd.f32 %v2772_v55, %v1183_v33  ;;  %v996_v63 = vpop.f32.mrb[8].mxu0  ;;  %v991_v59 = vadd.f32 %v990_v26, %v3111_v57  ;;  %v950_v6 = vadd.f32 %v949_v15, %v3096_v16  ;;  %v1039_v47 = vpop.f32.mrb[8].mxu1  ;;  %v3554_v48 = vld [vmem:[#allocation45_spill] sm:$0xff] }
 0x102   : > { %v3159_v46 = vadd.f32 %v2835_v1, %v1273_v30  ;;  %v998_v13 = vpop.f32.mrb[9].mxu0  ;;  %v3167_v52 = vadd.f32 %v2926_v5, %v1178_v34  ;;  %v1199_v38 = vadd.f32 %v2874_v60, %v948_v31  ;;  %v993_v17 = vadd.f32 %v992_v29, %v3111_v57  ;;  %v1041_v25 = vpop.f32.mrb[9].mxu1  ;;  %v3549_v5 = vld [vmem:[#allocation42_spill] sm:$0xff] }
 0x103   : > { %v3164_v55 = vadd.f32 %v2937_v23, %v1279_v45  ;;  %v1000_v9 = vpop.f32.mrb[10].mxu0  ;;  %v1399_v1 = vmax.f32 %v3148_v51, 0.0  ;;  %v1280_v62 = vadd.f32 %v2784_v58, %v1184_v35  ;;  %v1185_v15 = vadd.f32 %v2752_v49, %v991_v59  ;;  %v1043_v7 = vpop.f32.mrb[10].mxu1  ;;  %v3553_v34 = vld [vmem:[#allocation38_spill] sm:$0xff]  ;;  %v3556_v59 = vld [vmem:[#allocation12_spill] sm:$0xff] }
 0x104   : > { %v1200_v26 = vadd.f32 %v2878_v37, %v950_v6  ;;  %v1002_v23 = vpop.f32.mrb[11].mxu0  ;;  %v1415_v28 = vmax.f32 %v3156_v4, 0.0  ;;  %v1295_v0 = vadd.f32 %v3549_v5, %v1199_v38  ;;  %v1186_v60 = vadd.f32 %v3550_v40, %v993_v17  ;;  %v1045_v8 = vpop.f32.mrb[11].mxu1  ;;  %v3555_v45 = vld [vmem:[#allocation2_spill] sm:$0xff]  ;;  %v3559_v5 = vld [vmem:[#allocation3_spill] sm:$0xff] }
 0x105   : > { %v997_v29 = vadd.f32 %v996_v63, %v3074_v54  ;;  %v1401_v14 = vmax.f32 %v3159_v46, 0.0  ;;  %v1281_v50 = vadd.f32 %v3551_v19, %v1185_v15  ;;  %v1040_v58 = vadd.f32 %v1039_v47, %v3085_v44 }
 0x106   : > { %v999_v49 = vadd.f32 %v998_v13, %v3074_v54  ;;  %v1407_v37 = vmax.f32 %v3164_v55, 0.0  ;;  %v3185_v61 = vadd.f32 %v3090_v2, %v1295_v0  ;;  %v1042_v33 = vadd.f32 %v1041_v25, %v3085_v44  ;;  %v3557_v2 = vld [vmem:[#allocation19_spill] sm:$0xff] }
 0x107   : > { %v1193_v27 = vadd.f32 %v3552_v22, %v997_v29  ;;  %v3190_v35 = vadd.f32 %v3553_v34, %v1281_v50  ;;  %v3193_v30 = vadd.f32 %v3554_v48, %v1200_v26  ;;  %v1179_v31 = vadd.f32 %v3555_v45, %v1040_v58  ;;  %v3558_v25 = vld [vmem:[#allocation35_spill] sm:$0xff]  ;;  %v3562_v22 = vld [vmem:[#allocation18_spill] sm:$0xff] }
 0x108   : > { %v1001_v63 = vadd.f32 %v1000_v9, %v3096_v16  ;;  %v1282_v6 = vadd.f32 %v3556_v59, %v1186_v60  ;;  %v1194_v13 = vadd.f32 %v3557_v2, %v999_v49  ;;  %v1044_v55 = vadd.f32 %v1043_v7, %v3111_v57  ;;  %v3560_v0 = vld [vmem:[#allocation27_spill] sm:$0xff]  ;;  %v1049_v29 = vpop.f32.mrb[12].mxu1  ;;  %v3563_v34 = vld [vmem:[#allocation46_spill] sm:$0xff] }
 0x109   : > { %v1289_v47 = vadd.f32 %v3016_v10, %v1193_v27  ;;  %v1092_v38 = vpop.f32.mrb[12].mxu0  ;;  %v1423_v17 = vmax.f32 %v3185_v61, 0.0  ;;  %v1275_v15 = vadd.f32 %v3558_v25, %v1179_v31  ;;  %v1180_v26 = vadd.f32 %v3559_v5, %v1042_v33  ;;  %v3561_v10 = vld [vmem:[#allocation7_spill] sm:$0xff]  ;;  %v1051_v58 = vpop.f32.mrb[13].mxu1 }
 0x10a   : > { %v1201_v40 = vadd.f32 %v3560_v0, %v1001_v63  ;;  %v1094_v19 = vpop.f32.mrb[13].mxu0  ;;  %v1409_v9 = vmax.f32 %v3190_v35, 0.0  ;;  %v1187_v50 = vadd.f32 %v3561_v10, %v1044_v55  ;;  %v1003_v7 = vadd.f32 %v1002_v23, %v3096_v16  ;;  %v1053_v31 = vpop.f32.mrb[14].mxu1  ;;  %v3564_v63 = vld [vmem:[#allocation13_spill] sm:$0xff]  ;;  %v3567_v0 = vld [vmem:[#allocation20_spill] sm:$0xff] }
 0x10b   : > { %v3207_v60 = vadd.f32 %v3051_v21, %v1289_v47  ;;  %v1096_v49 = vpop.f32.mrb[14].mxu0  ;;  %v3212_v27 = vadd.f32 %v3562_v22, %v1275_v15  ;;  %v1046_v48 = vadd.f32 %v1045_v8, %v3111_v57  ;;  %v1050_v45 = vadd.f32 %v1049_v29, %v3074_v54  ;;  %v3565_v47 = vld [vmem:[#allocation28_spill] sm:$0xff]  ;;  %v1055_v55 = vpop.f32.mrb[15].mxu1  ;;  %v3568_v29 = vld [vmem:[#allocation39_spill] sm:$0xff] }
 0x10c   : > { %v1297_v33 = vadd.f32 %v3563_v34, %v1201_v40  ;;  %v1098_v35 = vpop.f32.mrb[15].mxu0  ;;  %v3218_v21 = vadd.f32 %v3020_v11, %v1194_v13  ;;  %v1283_v59 = vadd.f32 %v3564_v63, %v1187_v50  ;;  %v1202_v23 = vadd.f32 %v3565_v47, %v1003_v7  ;;  %v3566_v15 = vld [vmem:[#allocation36_spill] sm:$0xff]  ;;  %v3572_v63 = vld [vmem:[#allocation47_spill] sm:$0xff]  ;;  %v3573_v47 = vld [vmem:[#allocation54_spill] sm:$0xff] }
 0x10d   : > { %v1093_v2 = vadd.f32 %v1092_v38, %v3085_v44  ;;  %v1417_v25 = vmax.f32 %v3207_v60, 0.0  ;;  %v3225_v5 = vadd.f32 %v3566_v15, %v1180_v26  ;;  %v1195_v40 = vadd.f32 %v3567_v0, %v1050_v45  ;;  %v3569_v13 = vld [vmem:[#allocation8_spill] sm:$0xff]  ;;  %v3571_v38 = vld [vmem:[#allocation22_spill] sm:$0xff]  ;;  %v3575_v0 = vld [vmem:[#allocation37_spill] sm:$0xff] }
 0x10e   : > { %v3228_v8 = vadd.f32 %v3094_v42, %v1297_v33  ;;  %v3232_v11 = vadd.f32 %v3568_v29, %v1283_v59  ;;  %v1188_v10 = vadd.f32 %v3569_v13, %v1046_v48  ;;  %v3570_v50 = vld [vmem:[#allocation4_spill] sm:$0xff]  ;;  %v1368_v22 = vadd.f32 %v3571_v38, %v3142_v56  ;;  %v3576_v48 = vld [vmem:[#allocation23_spill] sm:$0xff]  ;;  %v3577_v38 = vld [vmem:[#allocation41_spill] sm:$0xff] }
 0x10f   : > { %v1181_v7 = vadd.f32 %v3570_v50, %v1093_v2  ;;  %v1298_v26 = vadd.f32 %v3572_v63, %v1202_v23  ;;  %v1291_v15 = vadd.f32 %v3573_v47, %v1195_v40  ;;  %v3574_v42 = vld [vmem:[#allocation40_spill] sm:$0xff]  ;;  %v1370_v13 = vadd.f32 %v3576_v48, %v3167_v52  ;;  %v3578_v63 = vld [vmem:[#allocation14_spill] sm:$0xff] }
 0x110   : > { %v1376_v33 = vadd.f32 %v3574_v42, %v1280_v62  ;;  %v1425_v45 = vmax.f32 %v3228_v8, 0.0  ;;  %v1400_v29 = vmax.f32 %v1368_v22, 0.0  ;;  %v1378_v34 = vadd.f32 %v3577_v38, %v1282_v6 }
 0x111   : > { %v1277_v59 = vadd.f32 %v3575_v0, %v1181_v7  ;;  %v1102_v2 = vpop.f32.mrb[16].mxu0  ;;  %v3247_v50 = vadd.f32 %v3055_v43, %v1291_v15  ;;  %v1052_v23 = vadd.f32 %v1051_v58, %v3074_v54  ;;  %v1411_v62 = vmax.f32 %v3232_v11, 0.0  ;;  %v3579_v15 = vld [vmem:[#allocation24_spill] sm:$0xff]  ;;  %v3580_v58 = vld [vmem:[#allocation21_spill] sm:$0xff] }
 0x112   : > { %v1408_v56 = vmax.f32 %v1376_v33, 0.0  ;;  %v1104_v40 = vpop.f32.mrb[17].mxu0  ;;  %v1284_v47 = vadd.f32 %v3578_v63, %v1188_v10  ;;  %v1095_v7 = vadd.f32 %v1094_v19, %v3085_v44  ;;  %v1435_v22 = vpack.c.bf16 %v1407_v37, %v1399_v1  ;;  %v3581_v1 = vld [vmem:[#allocation5_spill] sm:$0xff] }
 0x113   : > { %v1106_v52 = vpop.f32.mrb[18].mxu0  ;;  %v1402_v0 = vmax.f32 %v1370_v13, 0.0  ;;  %v1410_v43 = vmax.f32 %v1378_v34, 0.0  ;;  %v1196_v33 = vadd.f32 %v3579_v15, %v1052_v23  ;;  %v1419_v6 = vmax.f32 %v3247_v50, 0.0  ;;  %v3582_v34 = vld [vmem:[#allocation55_spill] sm:$0xff]  ;;  %v3583_v13 = vld [vmem:[#allocation29_spill] sm:$0xff] }
 0x114   : > { %v1436_v42 = vpack.c.bf16 %v1408_v56, %v1400_v29  ;;  %v1108_v48 = vpop.f32.mrb[19].mxu0  ;;  %v3259_v38 = vadd.f32 %v3580_v58, %v1277_v59  ;;  %v1437_v11 = vpack.c.bf16 %v1409_v9, %v1401_v14  ;;  %v1054_v44 = vadd.f32 %v1053_v31, %v3096_v16  ;;  %v3584_v9 = vld [vmem:[#allocation9_spill] sm:$0xff]  ;;  %v3608_v50 = vld [vmem:[#allocation59_spill] sm:$0xff] }
 0x115   : > { %v1438_v51 = vpack.c.bf16 %v1410_v43, %v1402_v0  ;;  %v1182_v37 = vadd.f32 %v3581_v1, %v1095_v7  ;;  %v1097_v19 = vadd.f32 %v1096_v49, %v3111_v57  ;;  %v1384_v10 = vadd.f32 %v3062_v32, %v3152_v36  ;;  %v3585_v36 = vld [vmem:[#allocation48_spill] sm:$0xff]  ;;  %v3586_v7 = vld [vmem:[#allocation30_spill] sm:$0xff]  ;;  %v3590_v43 = vld [vmem:[#allocation25_spill] sm:$0xff] }
 0x116   : > { %1491 = vmatprep.subr.bf16.mxu1 %v1436_v42  ;;  %v1292_v29 = vadd.f32 %v3582_v34, %v1196_v33  ;;  %v1203_v59 = vadd.f32 %v3583_v13, %v1054_v44  ;;  %v1392_v46 = vadd.f32 %v3104_v39, %v3193_v30  ;;  %v1056_v14 = vadd.f32 %v1055_v55, %v3096_v16  ;;  %v3587_v30 = vld [vmem:[#allocation15_spill] sm:$0xff]  ;;  %v3588_v42 = vld [vmem:[#allocation10_spill] sm:$0xff]  ;;  %v3591_v33 = vld [vmem:[#allocation44_spill] sm:$0xff] }
 0x117   : > { %1492 = vmatpush1.bf16.msra.mxu1 %v1435_v22  ;;  %1544 = vmatprep.subr.bf16.mxu0 %v1438_v51  ;;  %v1189_v31 = vadd.f32 %v3584_v9, %v1097_v19  ;;  %v1416_v56 = vmax.f32 %v1384_v10, 0.0  ;;  %v1099_v23 = vadd.f32 %v1098_v35, %v3111_v57  ;;  %v1443_v32 = vpack.c.bf16 %v1423_v17, %v1415_v28  ;;  %v3589_v35 = vld [vmem:[#allocation43_spill] sm:$0xff]  ;;  %v3593_v19 = vld [vmem:[#allocation16_spill] sm:$0xff] }
 0x118   : > { %1545 = vmatpush1.bf16.msra.mxu0 %v1437_v11  ;;  %v1299_v49 = vadd.f32 %v3585_v36, %v1203_v59  ;;  %v1424_v63 = vmax.f32 %v1392_v46, 0.0  ;;  %v1204_v22 = vadd.f32 %v3586_v7, %v1056_v14  ;;  %v1103_v39 = vadd.f32 %v1102_v2, %v3074_v54  ;;  %v3592_v11 = vld [vmem:[#allocation49_spill] sm:$0xff] }
 0x119   : > { %v1285_v55 = vadd.f32 %v3587_v30, %v1189_v31  ;;  %v1190_v0 = vadd.f32 %v3588_v42, %v1099_v23  ;;  %v1386_v57 = vadd.f32 %v3072_v53, %v3218_v21  ;;  %v1394_v4 = vadd.f32 %v3108_v24, %v1298_v26  ;;  %v3296_v53 = vld [vmem:[%s3484_s8] sm:$0xff]   ;;  %v3606_v30 = vld [vmem:[#allocation51_spill] sm:$0xff]  ;;  %v3607_v42 = vld [vmem:[#allocation52_spill] sm:$0xff] }
 0x11a   : > { %v1278_v61 = vadd.f32 %v3589_v35, %v1182_v37  ;;  %v1395_v28 = vadd.f32 %v3100_v3, %v1299_v49  ;;  %v1444_v17 = vpack.c.bf16 %v1424_v63, %v1416_v56  ;;  %v1197_v15 = vadd.f32 %v3590_v43, %v1103_v39  ;;  %v3594_v3 = vld [vmem:[#allocation26_spill] sm:$0xff]  ;;  %v3596_v37 = vld [vmem:[#allocation56_spill] sm:$0xff]  ;;  %v3601_v49 = vld [vmem:[#allocation57_spill] sm:$0xff] }
 0x11b   : > { %v1381_v58 = vadd.f32 %v3591_v33, %v1285_v55  ;;  %v1300_v2 = vadd.f32 %v3592_v11, %v1204_v22  ;;  %v1418_v44 = vmax.f32 %v1386_v57, 0.0  ;;  %v1426_v51 = vmax.f32 %v1394_v4, 0.0  ;;  %v3595_v21 = vld [vmem:[#allocation50_spill] sm:$0xff]  ;;  %v3605_v22 = vld [vmem:[#allocation53_spill] sm:$0xff]  ;;  %v2381_v4 = vld [vmem:[%s3484_s8 + $0x8] sm:$0xff]  }
 0x11c   : > { %v1427_v1 = vmax.f32 %v1395_v28, 0.0  ;;  %1493 = vmatprep.subr.bf16.mxu1 %v1444_v17  ;;  %v1286_v10 = vadd.f32 %v3593_v19, %v1190_v0  ;;  %v1372_v24 = vadd.f32 %v3594_v3, %v3225_v5  ;;  %v1380_v26 = vadd.f32 %v3595_v21, %v1284_v47  ;;  %v3598_v5 = vld [vmem:[#allocation31_spill] sm:$0xff] }
 0x11d   : > { %1494 = vmatpush1.bf16.msra.mxu1 %v1443_v32  ;;  %v1293_v34 = vadd.f32 %v3596_v37, %v1197_v15  ;;  %v1446_v13 = vpack.c.bf16 %v1426_v51, %v1418_v44  ;;  %v1105_v59 = vadd.f32 %v1104_v40, %v3074_v54  ;;  %v1445_v46 = vpack.c.bf16 %v1425_v45, %v1417_v25  ;;  %v3600_v40 = vld [vmem:[#allocation58_spill] sm:$0xff] }
 0x11e   : > { %v1413_v14 = vmax.f32 %v1381_v58, 0.0  ;;  %v1404_v9 = vmax.f32 %v1372_v24, 0.0  ;;  %v1412_v31 = vmax.f32 %v1380_v26, 0.0  ;;  %v3597_v56 = vmax.f32 %v3212_v27, 0.0  ;;  %v3599_v27 = vld [vmem:[#allocation34_spill] sm:$0xff] }
 0x11f   : > { %1546 = vmatprep.subr.bf16.mxu0 %v1446_v13  ;;  %v1198_v47 = vadd.f32 %v3598_v5, %v1105_v59  ;;  %v1107_v32 = vadd.f32 %v1106_v52, %v3096_v16  ;;  %v1109_v36 = vadd.f32 %v1108_v48, %v3096_v16  ;;  %v1388_v54 = vadd.f32 %v3078_v18, %v1292_v29  ;;  %v3602_v52 = vld [vmem:[#allocation32_spill] sm:$0xff]  ;;  %v3603_v16 = vld [vmem:[#allocation33_spill] sm:$0xff] }
 0x120   : > { %v1439_v23 = vpack.c.bf16 %v1411_v62, %v3597_v56  ;;  %v1405_v60 = vmax.f32 %v3259_v38, 0.0  ;;  %2286 = vmatmul.mubr.msk.bf16.vlgmr.msra.gmra.mrb[16].mxu1 %vm585_vm0, %v3296_v53  ;;  %v1440_v25 = vpack.c.bf16 %v1412_v31, %v1404_v9  ;;  %1547 = vmatpush1.bf16.msra.mxu0 %v1445_v46  ;;  %v1396_v8 = vadd.f32 %v3132_v41, %v1300_v2 }
 0x121   : > { %v1374_v45 = vadd.f32 %v3599_v27, %v1278_v61  ;;  %v1389_v62 = vadd.f32 %v3600_v40, %v1293_v34  ;;  %v1294_v63 = vadd.f32 %v3601_v49, %v1198_v47  ;;  %v1205_v7 = vadd.f32 %v3602_v52, %v1107_v32 }
 0x122   : > { %v1206_v48 = vadd.f32 %v3603_v16, %v1109_v36  ;;  %v3604_v18 = vmov 0   ;;  %1597 = vmatprep.subr.bf16.mxu1 %v1440_v25  ;;  %v1420_v38 = vmax.f32 %v1388_v54, 0.0  ;;  %v1428_v29 = vmax.f32 %v1396_v8, 0.0 }
 0x123   : > { %1533 = vmatprep.mubr.bf16.mxu1 %v3604_v18  ;;  %v1382_v39 = vadd.f32 %v3605_v22, %v1286_v10  ;;  %v1447_v41 = vpack.c.bf16 %v1427_v1, %v1419_v6  ;;  %1598 = vmatpush1.bf16.msra.mxu1 %v1439_v23  ;;  %v1301_v55 = vadd.f32 %v3606_v30, %v1205_v7  ;;  %v1406_v61 = vmax.f32 %v1374_v45, 0.0  ;;  %v3354_v10 = vpop.permute.xlu1 %1462 }
 0x124   : > { %v1302_v0 = vadd.f32 %v3607_v42, %v1206_v48  ;;  %2288 = vmatmul.mubr.msk.bf16.vlgmr.msra.gmra.mrb[20].mxu0 %vm585_vm0, %v3296_v53  ;;  %v1441_v57 = vpack.c.bf16 %v1413_v14, %v1405_v60  ;;  %v1448_v35 = vpack.c.bf16 %v1428_v29, %v1420_v38  ;;  %v1390_v6 = vadd.f32 %v3608_v50, %v1294_v63 }
 0x125   : > { %v1414_v28 = vmax.f32 %v1382_v39, 0.0  ;;  %1586 = vmatprep.mubr.bf16.mxu0 %v3604_v18  ;;  %v1397_v17 = vadd.f32 %v3121_v20, %v1301_v55  ;;  %v1421_v33 = vmax.f32 %v1389_v62, 0.0  ;;  %v3351_v20 = vpop.permute.xlu0 %1457 }
 0x126   : > { %v1398_v43 = vadd.f32 %v3139_v12, %v1302_v0  ;;  %1599 = vmatprep.subr.bf16.mxu1 %v1448_v35  ;;  %v1422_v11 = vmax.f32 %v1390_v6, 0.0 }
 0x127   : > { %v1442_v15 = vpack.c.bf16 %v1414_v28, %v1406_v61  ;;  %v1429_v58 = vmax.f32 %v1397_v17, 0.0  ;;  %1600 = vmatpush1.bf16.msra.mxu1 %v1447_v41  ;;  %v3363_v36 = vpop.permute.xlu1 %1467 }
 0x128   : > { %v1430_v2 = vmax.f32 %v1398_v43, 0.0  ;;  %2287 = vmatmul.mubr.msk.bf16.gmra.mrb[20].mxu1 %vm585_vm0, %v2381_v4 }
 0x129   : > { %1650 = vmatprep.subr.bf16.mxu0 %v1442_v15  ;;  %1629 = vmatprep.mubr.bf16.mxu1 %v3604_v18  ;;  %v1449_v51 = vpack.c.bf16 %v1429_v58, %v1421_v33  ;;  %v3366_v49 = vpop.permute.xlu0 %1472 }
 0x12a   : > { %1651 = vmatpush1.bf16.msra.mxu0 %v1441_v57  ;;  %v1450_v44 = vpack.c.bf16 %v1430_v2, %v1422_v11 }
 0x12c   : > { %2289 = vmatmul.mubr.msk.bf16.gmra.mrb[24].mxu0 %vm585_vm0, %v2381_v4  ;;  %1652 = vmatprep.subr.bf16.mxu0 %v1450_v44 }
 0x12d   : > { %1682 = vmatprep.mubr.bf16.mxu0 %v3604_v18 }
 0x12e   : > { %1653 = vmatpush1.bf16.msra.mxu0 %v1449_v51 }
 0x130   : > { %2290 = vmatmul.mubr.msk.bf16.vlgmr.msra.gmra.mrb[24].mxu1 %vm585_vm0, %v3296_v53 }
 0x131   : > { %1639 = vmatprep.mubr.bf16.mxu1 %v3604_v18 }
 0x134   : > { %2292 = vmatmul.mubr.msk.bf16.vlgmr.msra.gmra.mrb[28].mxu0 %vm585_vm0, %v3296_v53 }
 0x135   : > { %1692 = vmatprep.mubr.bf16.mxu0 %v3604_v18 }
 0x138   : > { %2291 = vmatmul.mubr.msk.bf16.gmra.mrb[28].mxu1 %vm585_vm0, %v2381_v4 }
 0x139   : > { %1827 = vmatprep.mubr.bf16.mxu1 %v3604_v18 }
 0x13c   : > { %2293 = vmatmul.mubr.msk.bf16.gmra.mrb[32].mxu0 %vm585_vm0, %v2381_v4 }
 0x13d   : > { %1880 = vmatprep.mubr.bf16.mxu0 %v3604_v18 }
 0x1f3   : > { %v1525_v12 = vpop.f32.mrb[16].mxu1 }
 0x1f4   : > { %v1526_v1 = vadd.f32 %v1525_v12, %v3351_v20  ;;  %v1527_v19 = vpop.f32.mrb[17].mxu1 }
 0x1f5   : > { %v1528_v53 = vadd.f32 %v1527_v19, %v3351_v20  ;;  %v1529_v3 = vpop.f32.mrb[18].mxu1 }
 0x1f6   : > { %v1530_v24 = vadd.f32 %v1529_v3, %v3354_v10  ;;  %v1531_v21 = vpop.f32.mrb[19].mxu1  ;;  %v1703_v59 = vmax.f32 %v1526_v1, 0.0  ;;  %v3380_v1 = vld [vmem:[%s3486_s10] sm:$0xff]  }
 0x1f7   : > { %v1578_v26 = vpop.f32.mrb[20].mxu0  ;;  %v1532_v37 = vadd.f32 %v1531_v21, %v3354_v10  ;;  %v1704_v31 = vmax.f32 %v1528_v53, 0.0 }
 0x1f8   : > { %v1579_v34 = vadd.f32 %v1578_v26, %v3351_v20  ;;  %v1580_v13 = vpop.f32.mrb[21].mxu0  ;;  %v1711_v46 = vmax.f32 %v1530_v24, 0.0 }
 0x1f9   : > { %v1581_v14 = vadd.f32 %v1580_v13, %v3351_v20  ;;  %v1582_v9 = vpop.f32.mrb[22].mxu0  ;;  %v1712_v56 = vmax.f32 %v1532_v37, 0.0 }
 0x1fa   : > { %v1583_v23 = vadd.f32 %v1582_v9, %v3354_v10  ;;  %v1584_v5 = vpop.f32.mrb[23].mxu0  ;;  %v1739_v47 = vpack.c.bf16 %v1711_v46, %v1703_v59  ;;  %v1705_v60 = vmax.f32 %v1579_v34, 0.0 }
 0x1fb   : > { %v1585_v32 = vadd.f32 %v1584_v5, %v3354_v10  ;;  %v1740_v54 = vpack.c.bf16 %v1712_v56, %v1704_v31  ;;  %v1535_v8 = vpop.f32.mrb[20].mxu1  ;;  %v1706_v27 = vmax.f32 %v1581_v14, 0.0 }
 0x1fc   : > { %v1713_v25 = vmax.f32 %v1583_v23, 0.0  ;;  %v1536_v40 = vadd.f32 %v1535_v8, %v3363_v36  ;;  %v1537_v62 = vpop.f32.mrb[21].mxu1 }
 0x1fd   : > { %v1714_v45 = vmax.f32 %v1585_v32, 0.0  ;;  %v1538_v52 = vadd.f32 %v1537_v62, %v3363_v36  ;;  %v1539_v7 = vpop.f32.mrb[22].mxu1  ;;  %1795 = vmatprep.subr.bf16.mxu1 %v1740_v54 }
 0x1fe   : > { %v1741_v63 = vpack.c.bf16 %v1713_v25, %v1705_v60  ;;  %v1540_v48 = vadd.f32 %v1539_v7, %v3366_v49  ;;  %v1541_v38 = vpop.f32.mrb[23].mxu1  ;;  %1796 = vmatpush1.bf16.msra.mxu1 %v1739_v47  ;;  %v1719_v30 = vmax.f32 %v1536_v40, 0.0 }
 0x1ff   : > { %v1742_v16 = vpack.c.bf16 %v1714_v45, %v1706_v27  ;;  %v1588_v29 = vpop.f32.mrb[24].mxu0  ;;  %v1542_v22 = vadd.f32 %v1541_v38, %v3366_v49  ;;  %v1720_v57 = vmax.f32 %v1538_v52, 0.0 }
 0x200   : > { %v1589_v39 = vadd.f32 %v1588_v29, %v3363_v36  ;;  %v1590_v41 = vpop.f32.mrb[25].mxu0  ;;  %v1727_v55 = vmax.f32 %v1540_v48, 0.0 }
 0x201   : > { %v1591_v42 = vadd.f32 %v1590_v41, %v3363_v36  ;;  %v1592_v0 = vpop.f32.mrb[26].mxu0  ;;  %1848 = vmatprep.subr.bf16.mxu0 %v1742_v16  ;;  %v1728_v4 = vmax.f32 %v1542_v22, 0.0 }
 0x202   : > { %v1593_v35 = vadd.f32 %v1592_v0, %v3366_v49  ;;  %v1594_v61 = vpop.f32.mrb[27].mxu0  ;;  %1849 = vmatpush1.bf16.msra.mxu0 %v1741_v63  ;;  %v1747_v28 = vpack.c.bf16 %v1727_v55, %v1719_v30  ;;  %v1721_v17 = vmax.f32 %v1589_v39, 0.0 }
 0x203   : > { %v1595_v50 = vadd.f32 %v1594_v61, %v3366_v49  ;;  %v1748_v6 = vpack.c.bf16 %v1728_v4, %v1720_v57  ;;  %v1631_v15 = vpop.f32.mrb[24].mxu1  ;;  %v1722_v33 = vmax.f32 %v1591_v42, 0.0 }
 0x204   : > { %v1729_v43 = vmax.f32 %v1593_v35, 0.0  ;;  %v1632_v11 = vadd.f32 %v1631_v15, %v3351_v20  ;;  %v1633_v2 = vpop.f32.mrb[25].mxu1 }
 0x205   : > { %v1730_v58 = vmax.f32 %v1595_v50, 0.0  ;;  %v1634_v51 = vadd.f32 %v1633_v2, %v3351_v20  ;;  %v1635_v12 = vpop.f32.mrb[26].mxu1  ;;  %1797 = vmatprep.subr.bf16.mxu1 %v1748_v6 }
 0x206   : > { %v1749_v44 = vpack.c.bf16 %v1729_v43, %v1721_v17  ;;  %v1636_v53 = vadd.f32 %v1635_v12, %v3354_v10  ;;  %v1637_v3 = vpop.f32.mrb[27].mxu1  ;;  %1798 = vmatpush1.bf16.msra.mxu1 %v1747_v28  ;;  %v1707_v34 = vmax.f32 %v1632_v11, 0.0  ;;  %v3420_v11 = vpop.permute.xlu0 %1766 }
 0x207   : > { %v1750_v19 = vpack.c.bf16 %v1730_v58, %v1722_v33  ;;  %v1684_v24 = vpop.f32.mrb[28].mxu0  ;;  %v1638_v21 = vadd.f32 %v1637_v3, %v3354_v10  ;;  %v1708_v14 = vmax.f32 %v1634_v51, 0.0 }
 0x208   : > { %v1685_v26 = vadd.f32 %v1684_v24, %v3351_v20  ;;  %v1686_v37 = vpop.f32.mrb[29].mxu0  ;;  %v1715_v13 = vmax.f32 %v1636_v53, 0.0 }
 0x209   : > { %v1687_v59 = vadd.f32 %v1686_v37, %v3351_v20  ;;  %v1688_v46 = vpop.f32.mrb[30].mxu0  ;;  %1850 = vmatprep.subr.bf16.mxu0 %v1750_v19  ;;  %v1716_v9 = vmax.f32 %v1638_v21, 0.0  ;;  %2296 = vmatmul.mubr.msk.bf16.vlgmr.msra.gmra.mrb[32].mxu1 %vm585_vm0, %v3380_v1 }
 0x20a   : > { %v1689_v31 = vadd.f32 %v1688_v46, %v3354_v10  ;;  %v1690_v56 = vpop.f32.mrb[31].mxu0  ;;  %1851 = vmatpush1.bf16.msra.mxu0 %v1749_v44  ;;  %v1743_v23 = vpack.c.bf16 %v1715_v13, %v1707_v34  ;;  %1837 = vmatprep.mubr.bf16.mxu1 %v3604_v18  ;;  %v1709_v32 = vmax.f32 %v1685_v26, 0.0 }
 0x20b   : > { %v1691_v5 = vadd.f32 %v1690_v56, %v3354_v10  ;;  %v1744_v47 = vpack.c.bf16 %v1716_v9, %v1708_v14  ;;  %v1641_v20 = vpop.f32.mrb[28].mxu1  ;;  %v1710_v60 = vmax.f32 %v1687_v59, 0.0  ;;  %v2383_v10 = vld [vmem:[%s3486_s10 + $0x8] sm:$0xff]  }
 0x20c   : > { %v1717_v54 = vmax.f32 %v1689_v31, 0.0  ;;  %v1642_v8 = vadd.f32 %v1641_v20, %v3363_v36  ;;  %v1643_v27 = vpop.f32.mrb[29].mxu1 }
 0x20d   : > { %v1718_v25 = vmax.f32 %v1691_v5, 0.0  ;;  %2298 = vmatmul.mubr.msk.bf16.vlgmr.msra.gmra.mrb[36].mxu0 %vm585_vm0, %v3380_v1  ;;  %v1644_v40 = vadd.f32 %v1643_v27, %v3363_v36  ;;  %v1645_v62 = vpop.f32.mrb[30].mxu1  ;;  %1901 = vmatprep.subr.bf16.mxu1 %v1744_v47 }
 0x20e   : > { %v1745_v45 = vpack.c.bf16 %v1717_v54, %v1709_v32  ;;  %1890 = vmatprep.mubr.bf16.mxu0 %v3604_v18  ;;  %v1646_v52 = vadd.f32 %v1645_v62, %v3366_v49  ;;  %v1647_v7 = vpop.f32.mrb[31].mxu1  ;;  %1902 = vmatpush1.bf16.msra.mxu1 %v1743_v23  ;;  %v1723_v22 = vmax.f32 %v1642_v8, 0.0 }
 0x20f   : > { %v1746_v63 = vpack.c.bf16 %v1718_v25, %v1710_v60  ;;  %v1694_v16 = vpop.f32.mrb[32].mxu0  ;;  %v1648_v48 = vadd.f32 %v1647_v7, %v3366_v49  ;;  %v1724_v55 = vmax.f32 %v1644_v40, 0.0  ;;  %v3432_v25 = vpop.permute.xlu0 %1776 }
 0x210   : > { %v1695_v38 = vadd.f32 %v1694_v16, %v3363_v36  ;;  %v1696_v29 = vpop.f32.mrb[33].mxu0  ;;  %v1731_v39 = vmax.f32 %v1646_v52, 0.0 }
 0x211   : > { %v1697_v41 = vadd.f32 %v1696_v29, %v3363_v36  ;;  %v1698_v30 = vpop.f32.mrb[34].mxu0  ;;  %1954 = vmatprep.subr.bf16.mxu0 %v1746_v63  ;;  %v1732_v42 = vmax.f32 %v1648_v48, 0.0  ;;  %2297 = vmatmul.mubr.msk.bf16.gmra.mrb[36].mxu1 %vm585_vm0, %v2383_v10 }
 0x212   : > { %v1699_v0 = vadd.f32 %v1698_v30, %v3366_v49  ;;  %v1700_v57 = vpop.f32.mrb[35].mxu0  ;;  %1955 = vmatpush1.bf16.msra.mxu0 %v1745_v45  ;;  %v1751_v4 = vpack.c.bf16 %v1731_v39, %v1723_v22  ;;  %1933 = vmatprep.mubr.bf16.mxu1 %v3604_v18  ;;  %v1725_v28 = vmax.f32 %v1695_v38, 0.0 }
 0x213   : > { %v1701_v35 = vadd.f32 %v1700_v57, %v3366_v49  ;;  %v1752_v61 = vpack.c.bf16 %v1732_v42, %v1724_v55  ;;  %v1726_v6 = vmax.f32 %v1697_v41, 0.0  ;;  %v3417_v49 = vpop.permute.xlu1 %1761 }
 0x214   : > { %v1733_v50 = vmax.f32 %v1699_v0, 0.0 }
 0x215   : > { %v1734_v36 = vmax.f32 %v1701_v35, 0.0  ;;  %2299 = vmatmul.mubr.msk.bf16.gmra.mrb[40].mxu0 %vm585_vm0, %v2383_v10  ;;  %1903 = vmatprep.subr.bf16.mxu1 %v1752_v61 }
 0x216   : > { %v1753_v17 = vpack.c.bf16 %v1733_v50, %v1725_v28  ;;  %1986 = vmatprep.mubr.bf16.mxu0 %v3604_v18  ;;  %1904 = vmatpush1.bf16.msra.mxu1 %v1751_v4 }
 0x217   : > { %v1754_v43 = vpack.c.bf16 %v1734_v36, %v1726_v6  ;;  %v3429_v56 = vpop.permute.xlu1 %1771 }
 0x219   : > { %1956 = vmatprep.subr.bf16.mxu0 %v1754_v43  ;;  %2300 = vmatmul.mubr.msk.bf16.vlgmr.msra.gmra.mrb[40].mxu1 %vm585_vm0, %v3380_v1 }
 0x21a   : > { %1957 = vmatpush1.bf16.msra.mxu0 %v1753_v17  ;;  %1943 = vmatprep.mubr.bf16.mxu1 %v3604_v18 }
 0x21d   : > { %2302 = vmatmul.mubr.msk.bf16.vlgmr.msra.gmra.mrb[44].mxu0 %vm585_vm0, %v3380_v1 }
 0x21e   : > { %1996 = vmatprep.mubr.bf16.mxu0 %v3604_v18 }
 0x221   : > { %2301 = vmatmul.mubr.msk.bf16.gmra.mrb[44].mxu1 %vm585_vm0, %v2383_v10 }
 0x225   : > { %2303 = vmatmul.mubr.msk.bf16.gmra.mrb[48].mxu0 %vm585_vm0, %v2383_v10 }
 0x2dc   : > { %v1829_v15 = vpop.f32.mrb[32].mxu1 }
 0x2dd   : > { %v1830_v33 = vadd.f32 %v1829_v15, %v3417_v49  ;;  %v1831_v58 = vpop.f32.mrb[33].mxu1 }
 0x2de   : > { %v1832_v2 = vadd.f32 %v1831_v58, %v3417_v49  ;;  %v1833_v44 = vpop.f32.mrb[34].mxu1 }
 0x2df   : > { %v2007_v51 = vmax.f32 %v1830_v33, 0.0  ;;  %v1834_v12 = vadd.f32 %v1833_v44, %v3420_v11  ;;  %v1835_v1 = vpop.f32.mrb[35].mxu1 }
 0x2e0   : > { %v1882_v18 = vpop.f32.mrb[36].mxu0  ;;  %v2008_v19 = vmax.f32 %v1832_v2, 0.0  ;;  %v1836_v53 = vadd.f32 %v1835_v1, %v3420_v11 }
 0x2e1   : > { %v1883_v3 = vadd.f32 %v1882_v18, %v3417_v49  ;;  %v1884_v24 = vpop.f32.mrb[37].mxu0  ;;  %v2015_v21 = vmax.f32 %v1834_v12, 0.0 }
 0x2e2   : > { %v1885_v26 = vadd.f32 %v1884_v24, %v3417_v49  ;;  %v1886_v37 = vpop.f32.mrb[38].mxu0  ;;  %v2039_v34 = vmax.f32 %v2007_v51, %v2008_v19  ;;  %v2016_v13 = vmax.f32 %v1836_v53, 0.0 }
 0x2e3   : > { %v2009_v59 = vmax.f32 %v1883_v3, 0.0  ;;  %v1887_v46 = vadd.f32 %v1886_v37, %v3420_v11  ;;  %v1888_v14 = vpop.f32.mrb[39].mxu0 }
 0x2e4   : > { %v2010_v9 = vmax.f32 %v1885_v26, 0.0  ;;  %v1889_v31 = vadd.f32 %v1888_v14, %v3420_v11  ;;  %v2040_v23 = vmax.f32 %v2015_v21, %v2016_v13  ;;  %v1839_v32 = vpop.f32.mrb[36].mxu1 }
 0x2e5   : > { %v2043_v5 = vmax.f32 %v2039_v34, %v2009_v59  ;;  %v2017_v47 = vmax.f32 %v1887_v46, 0.0  ;;  %v1840_v20 = vadd.f32 %v1839_v32, %v3429_v56  ;;  %v1841_v60 = vpop.f32.mrb[37].mxu1 }
 0x2e6   : > { %v2018_v54 = vmax.f32 %v1889_v31, 0.0  ;;  %v1842_v45 = vadd.f32 %v1841_v60, %v3429_v56  ;;  %v1843_v40 = vpop.f32.mrb[38].mxu1 }
 0x2e7   : > { %v2047_v8 = vmax.f32 %v2043_v5, %v2010_v9  ;;  %v2044_v27 = vmax.f32 %v2040_v23, %v2017_v47  ;;  %v2023_v62 = vmax.f32 %v1840_v20, 0.0  ;;  %v1844_v10 = vadd.f32 %v1843_v40, %v3432_v25  ;;  %v1845_v63 = vpop.f32.mrb[39].mxu1 }
 0x2e8   : > { %v1892_v52 = vpop.f32.mrb[40].mxu0  ;;  %v2024_v16 = vmax.f32 %v1842_v45, 0.0  ;;  %v1846_v48 = vadd.f32 %v1845_v63, %v3432_v25 }
 0x2e9   : > { %v2048_v7 = vmax.f32 %v2044_v27, %v2018_v54  ;;  %v1893_v38 = vadd.f32 %v1892_v52, %v3429_v56  ;;  %v1894_v29 = vpop.f32.mrb[41].mxu0  ;;  %v2031_v22 = vmax.f32 %v1844_v10, 0.0 }
 0x2ea   : > { %v1895_v39 = vadd.f32 %v1894_v29, %v3429_v56  ;;  %v1896_v41 = vpop.f32.mrb[42].mxu0  ;;  %v2041_v30 = vmax.f32 %v2023_v62, %v2024_v16  ;;  %v2032_v55 = vmax.f32 %v1846_v48, 0.0 }
 0x2eb   : > { %v2025_v42 = vmax.f32 %v1893_v38, 0.0  ;;  %v1897_v0 = vadd.f32 %v1896_v41, %v3432_v25  ;;  %v1898_v57 = vpop.f32.mrb[43].mxu0 }
 0x2ec   : > { %v2026_v4 = vmax.f32 %v1895_v39, 0.0  ;;  %v1899_v35 = vadd.f32 %v1898_v57, %v3432_v25  ;;  %v2042_v61 = vmax.f32 %v2031_v22, %v2032_v55  ;;  %v1935_v6 = vpop.f32.mrb[40].mxu1 }
 0x2ed   : > { %v2045_v28 = vmax.f32 %v2041_v30, %v2025_v42  ;;  %v2033_v50 = vmax.f32 %v1897_v0, 0.0  ;;  %v1936_v17 = vadd.f32 %v1935_v6, %v3417_v49  ;;  %v1937_v43 = vpop.f32.mrb[41].mxu1 }
 0x2ee   : > { %v2034_v36 = vmax.f32 %v1899_v35, 0.0  ;;  %v1938_v58 = vadd.f32 %v1937_v43, %v3417_v49  ;;  %v1939_v2 = vpop.f32.mrb[42].mxu1 }
 0x2ef   : > { %v2049_v15 = vmax.f32 %v2045_v28, %v2026_v4  ;;  %v2046_v33 = vmax.f32 %v2042_v61, %v2033_v50  ;;  %v2011_v44 = vmax.f32 %v1936_v17, 0.0  ;;  %v1940_v51 = vadd.f32 %v1939_v2, %v3420_v11  ;;  %v1941_v12 = vpop.f32.mrb[43].mxu1 }
 0x2f0   : > { %v1988_v1 = vpop.f32.mrb[44].mxu0  ;;  %v2012_v19 = vmax.f32 %v1938_v58, 0.0  ;;  %v1942_v53 = vadd.f32 %v1941_v12, %v3420_v11 }
 0x2f1   : > { %v2050_v18 = vmax.f32 %v2046_v33, %v2034_v36  ;;  %v1989_v3 = vadd.f32 %v1988_v1, %v3417_v49  ;;  %v1990_v24 = vpop.f32.mrb[45].mxu0  ;;  %v2051_v21 = vmax.f32 %v2047_v8, %v2011_v44  ;;  %v2019_v26 = vmax.f32 %v1940_v51, 0.0 }
 0x2f2   : > { %v1991_v37 = vadd.f32 %v1990_v24, %v3417_v49  ;;  %v1992_v34 = vpop.f32.mrb[46].mxu0  ;;  %v2020_v13 = vmax.f32 %v1942_v53, 0.0 }
 0x2f3   : > { %v2013_v59 = vmax.f32 %v1989_v3, 0.0  ;;  %v1993_v46 = vadd.f32 %v1992_v34, %v3420_v11  ;;  %v1994_v14 = vpop.f32.mrb[47].mxu0  ;;  %v2055_v9 = vmax.f32 %v2051_v21, %v2012_v19  ;;  %v2052_v31 = vmax.f32 %v2048_v7, %v2019_v26 }
 0x2f4   : > { %v2014_v23 = vmax.f32 %v1991_v37, 0.0  ;;  %v1995_v5 = vadd.f32 %v1994_v14, %v3420_v11  ;;  %v1945_v32 = vpop.f32.mrb[44].mxu1 }
 0x2f5   : > { %v2021_v47 = vmax.f32 %v1993_v46, 0.0  ;;  %v2056_v54 = vmax.f32 %v2052_v31, %v2020_v13  ;;  %v2059_v20 = vmax.f32 %v2055_v9, %v2013_v59  ;;  %v1946_v8 = vadd.f32 %v1945_v32, %v3429_v56  ;;  %v1947_v49 = vpop.f32.mrb[45].mxu1 }
 0x2f6   : > { %v2022_v60 = vmax.f32 %v1995_v5, 0.0  ;;  %v1948_v27 = vadd.f32 %v1947_v49, %v3429_v56  ;;  %v1949_v45 = vpop.f32.mrb[46].mxu1 }
 0x2f7   : > { %v2063_v40 = vmax.f32 %v2059_v20, %v2014_v23  ;;  %v2060_v62 = vmax.f32 %v2056_v54, %v2021_v47  ;;  %v2027_v11 = vmax.f32 %v1946_v8, 0.0  ;;  %v1950_v10 = vadd.f32 %v1949_v45, %v3432_v25  ;;  %v1951_v63 = vpop.f32.mrb[47].mxu1 }
 0x2f8   : > { %v1998_v52 = vpop.f32.mrb[48].mxu0  ;;  %v2028_v7 = vmax.f32 %v1948_v27, 0.0  ;;  %v1952_v16 = vadd.f32 %v1951_v63, %v3432_v25 }
 0x2f9   : > { %v1999_v48 = vadd.f32 %v1998_v52, %v3429_v56  ;;  %v2000_v38 = vpop.f32.mrb[49].mxu0  ;;  %2067 = vst [vmem:[%s3454_s19] sm:$0xff] %v2063_v40  ;;  %v2064_v29 = vmax.f32 %v2060_v62, %v2022_v60  ;;  %v2053_v22 = vmax.f32 %v2049_v15, %v2027_v11  ;;  %v2035_v39 = vmax.f32 %v1950_v10, 0.0 }
 0x2fa   : > { %v2001_v41 = vadd.f32 %v2000_v38, %v3429_v56  ;;  %v2002_v30 = vpop.f32.mrb[50].mxu0  ;;  %v2036_v55 = vmax.f32 %v1952_v16, 0.0 }
 0x2fb   : > { %v2029_v42 = vmax.f32 %v1999_v48, 0.0  ;;  %v2003_v0 = vadd.f32 %v2002_v30, %v3432_v25  ;;  %v2004_v57 = vpop.f32.mrb[51].mxu0  ;;  %2068 = vst [vmem:[%s3454_s19 + $0x8] sm:$0xff] %v2064_v29  ;;  %v2057_v4 = vmax.f32 %v2053_v22, %v2028_v7  ;;  %v2054_v35 = vmax.f32 %v2050_v18, %v2035_v39 }
 0x2fc   : > { %v2030_v61 = vmax.f32 %v2001_v41, 0.0  ;;  %v2005_v28 = vadd.f32 %v2004_v57, %v3432_v25 }
 0x2fd   : > { %v2037_v50 = vmax.f32 %v2003_v0, 0.0  ;;  %v2058_v6 = vmax.f32 %v2054_v35, %v2036_v55  ;;  %v2061_v36 = vmax.f32 %v2057_v4, %v2029_v42 }
 0x2fe   : > { %v2038_v17 = vmax.f32 %v2005_v28, 0.0 }
 0x2ff   : > { %v2065_v43 = vmax.f32 %v2061_v36, %v2030_v61  ;;  %v2062_v56 = vmax.f32 %v2058_v6, %v2037_v50 }
 0x301   : > { %2069 = vst [vmem:[%s3454_s19 + $0x10] sm:$0xff] %v2065_v43  ;;  %v2066_v15 = vmax.f32 %v2062_v56, %v2038_v17 }
 0x303   : > { %2070 = vst [vmem:[%s3454_s19 + $0x18] sm:$0xff] %v2066_v15 }
 0x304 PF: > { %s22_s23 = sadd.s32 1, %s2406_s23   ;;  %s3609_s21 = smov %s2402_s22 }
 0x305   : > { %p19_p5 = scmp.ge.s32.totalorder %s22_s23, 6   ;;  %s3610_s22 = smov %s3612_s24 }
 0x307   :  { %21 = sbr.rel (!%p19_p5) target bundleno = 2 (0x2), region = 121 }

</bundles_post_ra>
